<compile_context>
chip_gen: v7x
topology: tpu7x:2x2x1
jax: 0.10.0
libtpu: 0.0.40
codegen_flags: <defaults>
</compile_context>

<pallas_src>
import functools

import jax
import jax.numpy as jnp
from jax.experimental import pallas as pl
from jax.experimental.pallas import tpu as pltpu

NEG_SLOPE = 0.2
BN_EPS = 1e-5


def _round_up(x, m):
    return (x + m - 1) // m * m


# ---------------------------------------------------------------------------
# Pallas kernel 1: tiled matmul (bf16 MXU, f32 acc) with fused epilogue:
#   mode == "bias_lrelu": + bias, LeakyReLU(0.2)
#   mode == "bias"      : + bias
#   mode == "bn_lrelu"  : BatchNorm (batch stats over the M rows) + LeakyReLU
# ---------------------------------------------------------------------------
def _gemm_fused_kernel(x_ref, w_ref, p0_ref, p1_ref, o_ref, acc_ref, *,
                       mode, m_true):
    k = pl.program_id(2)

    @pl.when(k == 0)
    def _():
        acc_ref[...] = jnp.zeros_like(acc_ref)

    acc_ref[...] += jnp.dot(x_ref[...], w_ref[...],
                            preferred_element_type=jnp.float32)

    @pl.when(k == pl.num_programs(2) - 1)
    def _():
        acc = acc_ref[...]
        if mode in ("bias_lrelu", "bias"):
            y = acc + p0_ref[...]
            if mode == "bias_lrelu":
                y = jnp.where(y > 0, y, NEG_SLOPE * y)
        else:  # "bn_lrelu": training-mode batch stats, biased var, eps=1e-5
            inv_m = 1.0 / m_true
            mean = jnp.sum(acc, axis=0, keepdims=True) * inv_m
            # two-pass variance; mask rows beyond the true M (zero-padded rows)
            row = jax.lax.broadcasted_iota(jnp.int32, acc.shape, 0)
            cen = jnp.where(row < m_true, acc - mean, 0.0)
            var = jnp.sum(cen * cen, axis=0, keepdims=True) * inv_m
            z = cen * jax.lax.rsqrt(var + BN_EPS) * p0_ref[...] + p1_ref[...]
            y = jnp.where(z > 0, z, NEG_SLOPE * z)
        o_ref[...] = y.astype(o_ref.dtype)


def gemm_fused(x, w, p0, p1, *, mode):
    """x:(M,K) @ w:(K,N) with fused epilogue. Returns (M,N) f32."""
    M, K = x.shape
    K2, N = w.shape
    assert K == K2

    # Per-layer tile selection (no 128x128x256 one-size-fits-all padding).
    tm = min(_round_up(M, 8), 128)
    Mp = _round_up(M, tm)
    Np = _round_up(N, 128)
    tn = min(Np, 256)              # full MXU width on v6e/v7x, 2 passes on v5e
    tk = K if K <= 2048 else 2048  # big K tiles -> few reduction grid steps
    Kp = _round_up(K, tk)
    if mode == "bn_lrelu":
        assert Mp == tm, "BN fusion needs all M rows in a single tile"

    # bf16 operands for the MXU; pad only what is strictly required.
    xb = x.astype(jnp.bfloat16)
    wb = w.astype(jnp.bfloat16)
    if (Mp, Kp) != (M, K):
        xb = jnp.pad(xb, ((0, Mp - M), (0, Kp - K)))
    if (Kp, Np) != (K, N):
        wb = jnp.pad(wb, ((0, Kp - K), (0, Np - N)))
    p0p = jnp.pad(p0.astype(jnp.float32).reshape(1, N), ((0, 0), (0, Np - N)))
    p1p = jnp.pad(p1.astype(jnp.float32).reshape(1, N), ((0, 0), (0, Np - N)))

    gm, gn, gk = Mp // tm, Np // tn, Kp // tk
    if gn > gm:   # larger parallel axis first (megacore / v7x 2-TC sharding)
        grid = (gn, gm, gk)
        xmap = lambda j, i, k: (i, k)
        wmap = lambda j, i, k: (k, j)
        pmap = lambda j, i, k: (0, j)
        omap = lambda j, i, k: (i, j)
    else:
        grid = (gm, gn, gk)
        xmap = lambda i, j, k: (i, k)
        wmap = lambda i, j, k: (k, j)
        pmap = lambda i, j, k: (0, j)
        omap = lambda i, j, k: (i, j)

    out = pl.pallas_call(
        functools.partial(_gemm_fused_kernel, mode=mode, m_true=M),
        out_shape=jax.ShapeDtypeStruct((Mp, Np), jnp.float32),
        grid_spec=pltpu.PrefetchScalarGridSpec(
            num_scalar_prefetch=0,
            grid=grid,
            in_specs=[
                pl.BlockSpec((tm, tk), xmap),
                pl.BlockSpec((tk, tn), wmap),
                pl.BlockSpec((1, tn), pmap),
                pl.BlockSpec((1, tn), pmap),
            ],
            out_specs=pl.BlockSpec((tm, tn), omap),
            scratch_shapes=[pltpu.VMEM((tm, tn), jnp.float32)],
        ),
        compiler_params=pltpu.CompilerParams(
            dimension_semantics=("parallel", "parallel", "arbitrary")),
    )(xb, wb, p0p, p1p)
    return out[:M, :N]


# ---------------------------------------------------------------------------
# Pallas kernel 2: final 1-channel conv head as a VPU row-dot reduction
# (M=8, N=1, K=8192) — avoids a ~2000x padded MXU GEMM.
# ---------------------------------------------------------------------------
def _rowdot_bias_kernel(x_ref, w_ref, b_ref, o_ref):
    o_ref[...] = (jnp.sum(x_ref[...] * w_ref[...], axis=-1, keepdims=True)
                  + b_ref[...])


def rowdot_bias(x, w_col, bias):
    M, K = x.shape
    Mp = _round_up(M, 8)
    if Mp != M:
        x = jnp.pad(x, ((0, Mp - M), (0, 0)))
    out = pl.pallas_call(
        _rowdot_bias_kernel,
        out_shape=jax.ShapeDtypeStruct((Mp, 1), jnp.float32),
        grid=(1,),
        in_specs=[
            pl.BlockSpec((Mp, K), lambda i: (0, 0)),
            pl.BlockSpec((1, K), lambda i: (0, 0)),
            pl.BlockSpec((1, 1), lambda i: (0, 0)),
        ],
        out_specs=pl.BlockSpec((Mp, 1), lambda i: (0, 0)),
    )(x.astype(jnp.float32),
      w_col.reshape(1, K).astype(jnp.float32),
      bias.reshape(1, 1).astype(jnp.float32))
    return out[:M]


# ---------------------------------------------------------------------------
# Glue: im2col + conv wrapper (NHWC).
# ---------------------------------------------------------------------------
def _im2col(x_nhwc, kh, kw, stride, pad):
    x = jnp.pad(x_nhwc, ((0, 0), (pad, pad), (pad, pad), (0, 0)))
    n, hh, ww, c = x.shape
    oh = (hh - kh) // stride + 1
    ow = (ww - kw) // stride + 1
    patches = []
    for i in range(kh):
        for j in range(kw):
            patches.append(x[:, i:i + stride * oh:stride,
                              j:j + stride * ow:stride, :])
    cols = jnp.concatenate(patches, axis=-1)        # (n, oh, ow, kh*kw*c)
    return cols.reshape(n * oh * ow, kh * kw * c), (n, oh, ow)


def conv2d(x_nhwc, w_oihw, *, stride, pad, mode, p0, p1=None):
    oc, ic, kh, kw = w_oihw.shape
    cols, (n, oh, ow) = _im2col(x_nhwc, kh, kw, stride, pad)
    # patch layout [(kh, kw) outer, ic inner]:
    w_mat = jnp.transpose(w_oihw, (2, 3, 1, 0)).reshape(kh * kw * ic, oc)
    if oc == 1:
        y = rowdot_bias(cols, w_mat[:, 0], p0)      # VPU reduction head
    else:
        if p1 is None:
            p1 = jnp.zeros((oc,), jnp.float32)
        y = gemm_fused(cols, w_mat, p0, p1, mode=mode)
    return y.reshape(n, oh, ow, oc)


# ---------------------------------------------------------------------------
# Deterministic parameter construction (synthetic init, not a checkpoint).
# Channel progression for input_nc=4, ndf=64, n_layers=3:
#   4 -> 64 (s2, bias) -> 128 (s2, BN) -> 256 (s2, BN) -> 512 (s1, BN) -> 1 (s1, bias)
# ---------------------------------------------------------------------------
def init_params(key):
    dims = [(64, 4), (128, 64), (256, 128), (512, 256), (1, 512)]
    params = {}
    for idx, (oc, ic) in enumerate(dims, start=1):
        key, kw_ = jax.random.split(key)
        fan_in = ic * 4 * 4
        params[f"w{idx}"] = (jax.random.normal(kw_, (oc, ic, 4, 4), jnp.float32)
                             * (1.0 / jnp.sqrt(fan_in)))
    key, k1, k5 = jax.random.split(key, 3)
    params["b1"] = jax.random.normal(k1, (64,), jnp.float32) * 0.01
    params["b5"] = jax.random.normal(k5, (1,), jnp.float32) * 0.01
    for idx, c in [(2, 128), (3, 256), (4, 512)]:
        params[f"g{idx}"] = jnp.ones((c,), jnp.float32)    # BN gamma
        params[f"be{idx}"] = jnp.zeros((c,), jnp.float32)  # BN beta
    return params


def discriminator_forward(x_nchw, p):
    x = jnp.transpose(x_nchw, (0, 2, 3, 1))  # NCHW -> NHWC
    # layer 1: conv s2 + bias + LeakyReLU (fused in GEMM epilogue)
    x = conv2d(x, p["w1"], stride=2, pad=1, mode="bias_lrelu", p0=p["b1"])
    # layer 2: conv s2 (no bias) + BN + LeakyReLU (fused in GEMM epilogue)
    x = conv2d(x, p["w2"], stride=2, pad=1, mode="bn_lrelu",
               p0=p["g2"], p1=p["be2"])
    # layer 3: conv s2 (no bias) + BN + LeakyReLU
    x = conv2d(x, p["w3"], stride=2, pad=1, mode="bn_lrelu",
               p0=p["g3"], p1=p["be3"])
    # layer 4: conv s1 (no bias) + BN + LeakyReLU
    x = conv2d(x, p["w4"], stride=1, pad=1, mode="bn_lrelu",
               p0=p["g4"], p1=p["be4"])
    # layer 5: conv s1 + bias, no activation (VPU row-dot kernel, N=1)
    x = conv2d(x, p["w5"], stride=1, pad=1, mode="bias", p0=p["b5"])
    return jnp.transpose(x, (0, 3, 1, 2))  # NHWC -> NCHW


if __name__ == "__main__":
    key = jax.random.PRNGKey(0)
    key, kx = jax.random.split(key)
    # Smallest spatial size that keeps every conv output non-degenerate.
    x = jax.random.normal(kx, (2, 4, 32, 32), jnp.float32)  # NCHW like PyTorch
    params = init_params(key)

    fwd = jax.jit(discriminator_forward)
    out = jax.block_until_ready(fwd(x, params))
    assert out.shape == (2, 1, 2, 2), out.shape
    assert jnp.all(jnp.isfinite(out))
    print("KERNEL_OK")
</pallas_src>

<mosaic_0001>
module attributes {stable_mosaic.version = 11 : i64} {
  func.func @_gemm_fused_kernel(%arg0: i32, %arg1: i32, %arg2: i32, %arg3: memref<128x64xbf16, #tpu.memory_space<vmem>>, %arg4: memref<64x128xbf16, #tpu.memory_space<vmem>>, %arg5: memref<1x128xf32, #tpu.memory_space<vmem>>, %arg6: memref<1x128xf32, #tpu.memory_space<vmem>>, %arg7: memref<128x128xf32, #tpu.memory_space<vmem>>, %arg8: memref<128x128xf32, #tpu.memory_space<vmem>>) attributes {dimension_semantics = [#tpu.dimension_semantics<parallel>, #tpu.dimension_semantics<parallel>, #tpu.dimension_semantics<arbitrary>], iteration_bounds = array<i64: 4, 1, 1>, scalar_prefetch = 0 : i64, scratch_operands = 1 : i64, tpu.core_type = #tpu.core_type<tc>, window_params = [{transform_indices = @transform_0, window_bounds = array<i64: 128, 64>}, {transform_indices = @transform_1, window_bounds = array<i64: 64, 128>}, {transform_indices = @transform_2, window_bounds = array<i64: 1, 128>}, {transform_indices = @transform_3, window_bounds = array<i64: 1, 128>}, {transform_indices = @transform_4, window_bounds = array<i64: 128, 128>}]} {
    %c0_i32 = arith.constant 0 : i32
    %0 = arith.cmpi eq, %arg2, %c0_i32 : i32
    %1 = arith.extui %0 : i1 to i32
    %c0_i32_0 = arith.constant 0 : i32
    %2 = arith.cmpi ne, %1, %c0_i32_0 : i32
    scf.if %2 {
      %cst_10 = arith.constant 0.000000e+00 : f32
      %12 = vector.broadcast %cst_10 : f32 to vector<128x128xf32>
      %c0_11 = arith.constant 0 : index
      %c0_12 = arith.constant 0 : index
      %13 = vector.load %arg8[%c0_11, %c0_12] : memref<128x128xf32, #tpu.memory_space<vmem>>, vector<128x128xf32>
      tpu.vector_store %arg8[%c0_11, %c0_12], %12 {strides = array<i32>} : memref<128x128xf32, #tpu.memory_space<vmem>>, vector<128x128xf32>,
    } else {
    }
    %c0 = arith.constant 0 : index
    %c0_1 = arith.constant 0 : index
    %3 = vector.load %arg8[%c0, %c0_1] : memref<128x128xf32, #tpu.memory_space<vmem>>, vector<128x128xf32>
    %c0_2 = arith.constant 0 : index
    %c0_3 = arith.constant 0 : index
    %4 = vector.load %arg3[%c0_2, %c0_3] : memref<128x64xbf16, #tpu.memory_space<vmem>>, vector<128x64xbf16>
    %c0_4 = arith.constant 0 : index
    %c0_5 = arith.constant 0 : index
    %5 = vector.load %arg4[%c0_4, %c0_5] : memref<64x128xbf16, #tpu.memory_space<vmem>>, vector<64x128xbf16>
    %cst = arith.constant dense<0.000000e+00> : vector<128x128xf32>
    %6 = tpu.matmul %4, %5, %cst {dimension_numbers = #tpu.dot_dimension_numbers<[1], [0], [0], [1], [0, 0, 1, 1], [], []>} : vector<128x64xbf16>, vector<64x128xbf16>, vector<128x128xf32> -> vector<128x128xf32>
    %7 = arith.addf %3, %6 : vector<128x128xf32>
    %c0_6 = arith.constant 0 : index
    %c0_7 = arith.constant 0 : index
    %8 = vector.load %arg8[%c0_6, %c0_7] : memref<128x128xf32, #tpu.memory_space<vmem>>, vector<128x128xf32>
    tpu.vector_store %arg8[%c0_6, %c0_7], %7 {strides = array<i32>} : memref<128x128xf32, #tpu.memory_space<vmem>>, vector<128x128xf32>,
    %c0_i32_8 = arith.constant 0 : i32
    %9 = arith.cmpi eq, %arg2, %c0_i32_8 : i32
    %10 = arith.extui %9 : i1 to i32
    %c0_i32_9 = arith.constant 0 : i32
    %11 = arith.cmpi ne, %10, %c0_i32_9 : i32
    scf.if %11 {
      %c0_10 = arith.constant 0 : index
      %c0_11 = arith.constant 0 : index
      %12 = vector.load %arg8[%c0_10, %c0_11] : memref<128x128xf32, #tpu.memory_space<vmem>>, vector<128x128xf32>
      %c0_12 = arith.constant 0 : index
      %c0_13 = arith.constant 0 : index
      %13 = vector.load %arg5[%c0_12, %c0_13] : memref<1x128xf32, #tpu.memory_space<vmem>>, vector<1x128xf32>
      %14 = vector.broadcast %13 : vector<1x128xf32> to vector<128x128xf32>
      %15 = arith.addf %12, %14 : vector<128x128xf32>
      %cst_14 = arith.constant 0.000000e+00 : f32
      %16 = vector.broadcast %cst_14 : f32 to vector<128x128xf32>
      %17 = arith.cmpf ogt, %15, %16 : vector<128x128xf32>
      %cst_15 = arith.constant 2.000000e-01 : f32
      %18 = vector.broadcast %cst_15 : f32 to vector<128x128xf32>
      %19 = arith.mulf %18, %15 : vector<128x128xf32>
      %20 = arith.select %17, %15, %19 : vector<128x128xi1>, vector<128x128xf32>
      %c0_16 = arith.constant 0 : index
      %c0_17 = arith.constant 0 : index
      %21 = vector.load %arg7[%c0_16, %c0_17] : memref<128x128xf32, #tpu.memory_space<vmem>>, vector<128x128xf32>
      tpu.vector_store %arg7[%c0_16, %c0_17], %20 {strides = array<i32>} : memref<128x128xf32, #tpu.memory_space<vmem>>, vector<128x128xf32>,
    } else {
    }
    return
  }
  func.func @transform_0(%arg0: i32, %arg1: i32, %arg2: i32) -> (i32, i32) {
    %c0_i32 = arith.constant 0 : i32
    return %arg0, %arg2 : i32, i32
  }
  func.func @transform_1(%arg0: i32, %arg1: i32, %arg2: i32) -> (i32, i32) {
    %c0_i32 = arith.constant 0 : i32
    return %arg2, %arg1 : i32, i32
  }
  func.func @transform_2(%arg0: i32, %arg1: i32, %arg2: i32) -> (i32, i32) {
    %c0_i32 = arith.constant 0 : i32
    %c0_i32_0 = arith.constant 0 : i32
    return %c0_i32, %arg1 : i32, i32
  }
  func.func @transform_3(%arg0: i32, %arg1: i32, %arg2: i32) -> (i32, i32) {
    %c0_i32 = arith.constant 0 : i32
    %c0_i32_0 = arith.constant 0 : i32
    return %c0_i32, %arg1 : i32, i32
  }
  func.func @transform_4(%arg0: i32, %arg1: i32, %arg2: i32) -> (i32, i32) {
    %c0_i32 = arith.constant 0 : i32
    return %arg0, %arg1 : i32, i32
  }
}

module attributes {stable_mosaic.version = 11 : i64} {
  func.func @_gemm_fused_kernel(%arg0: i32, %arg1: i32, %arg2: i32, %arg3: memref<128x1024xbf16, #tpu.memory_space<vmem>>, %arg4: memref<1024x128xbf16, #tpu.memory_space<vmem>>, %arg5: memref<1x128xf32, #tpu.memory_space<vmem>>, %arg6: memref<1x128xf32, #tpu.memory_space<vmem>>, %arg7: memref<128x128xf32, #tpu.memory_space<vmem>>, %arg8: memref<128x128xf32, #tpu.memory_space<vmem>>) attributes {dimension_semantics = [#tpu.dimension_semantics<parallel>, #tpu.dimension_semantics<parallel>, #tpu.dimension_semantics<arbitrary>], iteration_bounds = array<i64: 1, 1, 1>, scalar_prefetch = 0 : i64, scratch_operands = 1 : i64, tpu.core_type = #tpu.core_type<tc>, window_params = [{transform_indices = @transform_0, window_bounds = array<i64: 128, 1024>}, {transform_indices = @transform_1, window_bounds = array<i64: 1024, 128>}, {transform_indices = @transform_2, window_bounds = array<i64: 1, 128>}, {transform_indices = @transform_3, window_bounds = array<i64: 1, 128>}, {transform_indices = @transform_4, window_bounds = array<i64: 128, 128>}]} {
    %c0_i32 = arith.constant 0 : i32
    %0 = arith.cmpi eq, %arg2, %c0_i32 : i32
    %1 = arith.extui %0 : i1 to i32
    %c0_i32_0 = arith.constant 0 : i32
    %2 = arith.cmpi ne, %1, %c0_i32_0 : i32
    scf.if %2 {
      %cst_10 = arith.constant 0.000000e+00 : f32
      %12 = vector.broadcast %cst_10 : f32 to vector<128x128xf32>
      %c0_11 = arith.constant 0 : index
      %c0_12 = arith.constant 0 : index
      %13 = vector.load %arg8[%c0_11, %c0_12] : memref<128x128xf32, #tpu.memory_space<vmem>>, vector<128x128xf32>
      tpu.vector_store %arg8[%c0_11, %c0_12], %12 {strides = array<i32>} : memref<128x128xf32, #tpu.memory_space<vmem>>, vector<128x128xf32>,
    } else {
    }
    %c0 = arith.constant 0 : index
    %c0_1 = arith.constant 0 : index
    %3 = vector.load %arg8[%c0, %c0_1] : memref<128x128xf32, #tpu.memory_space<vmem>>, vector<128x128xf32>
    %c0_2 = arith.constant 0 : index
    %c0_3 = arith.constant 0 : index
    %4 = vector.load %arg3[%c0_2, %c0_3] : memref<128x1024xbf16, #tpu.memory_space<vmem>>, vector<128x1024xbf16>
    %c0_4 = arith.constant 0 : index
    %c0_5 = arith.constant 0 : index
    %5 = vector.load %arg4[%c0_4, %c0_5] : memref<1024x128xbf16, #tpu.memory_space<vmem>>, vector<1024x128xbf16>
    %cst = arith.constant dense<0.000000e+00> : vector<128x128xf32>
    %6 = tpu.matmul %4, %5, %cst {dimension_numbers = #tpu.dot_dimension_numbers<[1], [0], [0], [1], [0, 0, 1, 1], [], []>} : vector<128x1024xbf16>, vector<1024x128xbf16>, vector<128x128xf32> -> vector<128x128xf32>
    %7 = arith.addf %3, %6 : vector<128x128xf32>
    %c0_6 = arith.constant 0 : index
    %c0_7 = arith.constant 0 : index
    %8 = vector.load %arg8[%c0_6, %c0_7] : memref<128x128xf32, #tpu.memory_space<vmem>>, vector<128x128xf32>
    tpu.vector_store %arg8[%c0_6, %c0_7], %7 {strides = array<i32>} : memref<128x128xf32, #tpu.memory_space<vmem>>, vector<128x128xf32>,
    %c0_i32_8 = arith.constant 0 : i32
    %9 = arith.cmpi eq, %arg2, %c0_i32_8 : i32
    %10 = arith.extui %9 : i1 to i32
    %c0_i32_9 = arith.constant 0 : i32
    %11 = arith.cmpi ne, %10, %c0_i32_9 : i32
    scf.if %11 {
      %c0_10 = arith.constant 0 : index
      %c0_11 = arith.constant 0 : index
      %12 = vector.load %arg8[%c0_10, %c0_11] : memref<128x128xf32, #tpu.memory_space<vmem>>, vector<128x128xf32>
      %cst_12 = arith.constant dense<0.000000e+00> : vector<128xf32>
      %13 = vector.multi_reduction <add>, %12, %cst_12 [0] : vector<128x128xf32> to vector<128xf32>
      %14 = vector.shape_cast %13 : vector<128xf32> to vector<1x128xf32>
      %cst_13 = arith.constant 7.812500e-03 : f32
      %15 = vector.broadcast %cst_13 : f32 to vector<1x128xf32>
      %16 = arith.mulf %14, %15 : vector<1x128xf32>
      %17 = tpu.iota {dimensions = array<i32: 0>} : vector<128x128xi32>
      %c128_i32 = arith.constant 128 : i32
      %18 = vector.broadcast %c128_i32 : i32 to vector<128x128xi32>
      %19 = arith.cmpi slt, %17, %18 : vector<128x128xi32>
      %20 = vector.broadcast %16 : vector<1x128xf32> to vector<128x128xf32>
      %21 = arith.subf %12, %20 : vector<128x128xf32>
      %cst_14 = arith.constant 0.000000e+00 : f32
      %22 = vector.broadcast %cst_14 : f32 to vector<128x128xf32>
      %23 = arith.select %19, %21, %22 : vector<128x128xi1>, vector<128x128xf32>
      %24 = arith.mulf %23, %23 : vector<128x128xf32>
      %cst_15 = arith.constant dense<0.000000e+00> : vector<128xf32>
      %25 = vector.multi_reduction <add>, %24, %cst_15 [0] : vector<128x128xf32> to vector<128xf32>
      %26 = vector.shape_cast %25 : vector<128xf32> to vector<1x128xf32>
      %cst_16 = arith.constant 7.812500e-03 : f32
      %27 = vector.broadcast %cst_16 : f32 to vector<1x128xf32>
      %28 = arith.mulf %26, %27 : vector<1x128xf32>
      %cst_17 = arith.constant 9.99999974E-6 : f32
      %29 = vector.broadcast %cst_17 : f32 to vector<1x128xf32>
      %30 = arith.addf %28, %29 : vector<1x128xf32>
      %31 = math.rsqrt %30 : vector<1x128xf32>
      %32 = vector.broadcast %31 : vector<1x128xf32> to vector<128x128xf32>
      %33 = arith.mulf %23, %32 : vector<128x128xf32>
      %c0_18 = arith.constant 0 : index
      %c0_19 = arith.constant 0 : index
      %34 = vector.load %arg5[%c0_18, %c0_19] : memref<1x128xf32, #tpu.memory_space<vmem>>, vector<1x128xf32>
      %35 = vector.broadcast %34 : vector<1x128xf32> to vector<128x128xf32>
      %36 = arith.mulf %33, %35 : vector<128x128xf32>
      %c0_20 = arith.constant 0 : index
      %c0_21 = arith.constant 0 : index
      %37 = vector.load %arg6[%c0_20, %c0_21] : memref<1x128xf32, #tpu.memory_space<vmem>>, vector<1x128xf32>
      %38 = vector.broadcast %37 : vector<1x128xf32> to vector<128x128xf32>
      %39 = arith.addf %36, %38 : vector<128x128xf32>
      %cst_22 = arith.constant 0.000000e+00 : f32
      %40 = vector.broadcast %cst_22 : f32 to vector<128x128xf32>
      %41 = arith.cmpf ogt, %39, %40 : vector<128x128xf32>
      %cst_23 = arith.constant 2.000000e-01 : f32
      %42 = vector.broadcast %cst_23 : f32 to vector<128x128xf32>
      %43 = arith.mulf %42, %39 : vector<128x128xf32>
      %44 = arith.select %41, %39, %43 : vector<128x128xi1>, vector<128x128xf32>
      %c0_24 = arith.constant 0 : index
      %c0_25 = arith.constant 0 : index
      %45 = vector.load %arg7[%c0_24, %c0_25] : memref<128x128xf32, #tpu.memory_space<vmem>>, vector<128x128xf32>
      tpu.vector_store %arg7[%c0_24, %c0_25], %44 {strides = array<i32>} : memref<128x128xf32, #tpu.memory_space<vmem>>, vector<128x128xf32>,
    } else {
    }
    return
  }
  func.func @transform_0(%arg0: i32, %arg1: i32, %arg2: i32) -> (i32, i32) {
    %c0_i32 = arith.constant 0 : i32
    return %arg0, %arg2 : i32, i32
  }
  func.func @transform_1(%arg0: i32, %arg1: i32, %arg2: i32) -> (i32, i32) {
    %c0_i32 = arith.constant 0 : i32
    return %arg2, %arg1 : i32, i32
  }
  func.func @transform_2(%arg0: i32, %arg1: i32, %arg2: i32) -> (i32, i32) {
    %c0_i32 = arith.constant 0 : i32
    %c0_i32_0 = arith.constant 0 : i32
    return %c0_i32, %arg1 : i32, i32
  }
  func.func @transform_3(%arg0: i32, %arg1: i32, %arg2: i32) -> (i32, i32) {
    %c0_i32 = arith.constant 0 : i32
    %c0_i32_0 = arith.constant 0 : i32
    return %c0_i32, %arg1 : i32, i32
  }
  func.func @transform_4(%arg0: i32, %arg1: i32, %arg2: i32) -> (i32, i32) {
    %c0_i32 = arith.constant 0 : i32
    return %arg0, %arg1 : i32, i32
  }
}

module attributes {stable_mosaic.version = 11 : i64} {
  func.func @_gemm_fused_kernel(%arg0: i32, %arg1: i32, %arg2: i32, %arg3: memref<32x2048xbf16, #tpu.memory_space<vmem>>, %arg4: memref<2048x256xbf16, #tpu.memory_space<vmem>>, %arg5: memref<1x256xf32, #tpu.memory_space<vmem>>, %arg6: memref<1x256xf32, #tpu.memory_space<vmem>>, %arg7: memref<32x256xf32, #tpu.memory_space<vmem>>, %arg8: memref<32x256xf32, #tpu.memory_space<vmem>>) attributes {dimension_semantics = [#tpu.dimension_semantics<parallel>, #tpu.dimension_semantics<parallel>, #tpu.dimension_semantics<arbitrary>], iteration_bounds = array<i64: 1, 1, 1>, scalar_prefetch = 0 : i64, scratch_operands = 1 : i64, tpu.core_type = #tpu.core_type<tc>, window_params = [{transform_indices = @transform_0, window_bounds = array<i64: 32, 2048>}, {transform_indices = @transform_1, window_bounds = array<i64: 2048, 256>}, {transform_indices = @transform_2, window_bounds = array<i64: 1, 256>}, {transform_indices = @transform_3, window_bounds = array<i64: 1, 256>}, {transform_indices = @transform_4, window_bounds = array<i64: 32, 256>}]} {
    %c0_i32 = arith.constant 0 : i32
    %0 = arith.cmpi eq, %arg2, %c0_i32 : i32
    %1 = arith.extui %0 : i1 to i32
    %c0_i32_0 = arith.constant 0 : i32
    %2 = arith.cmpi ne, %1, %c0_i32_0 : i32
    scf.if %2 {
      %cst_10 = arith.constant 0.000000e+00 : f32
      %12 = vector.broadcast %cst_10 : f32 to vector<32x256xf32>
      %c0_11 = arith.constant 0 : index
      %c0_12 = arith.constant 0 : index
      %13 = vector.load %arg8[%c0_11, %c0_12] : memref<32x256xf32, #tpu.memory_space<vmem>>, vector<32x256xf32>
      tpu.vector_store %arg8[%c0_11, %c0_12], %12 {strides = array<i32>} : memref<32x256xf32, #tpu.memory_space<vmem>>, vector<32x256xf32>,
    } else {
    }
    %c0 = arith.constant 0 : index
    %c0_1 = arith.constant 0 : index
    %3 = vector.load %arg8[%c0, %c0_1] : memref<32x256xf32, #tpu.memory_space<vmem>>, vector<32x256xf32>
    %c0_2 = arith.constant 0 : index
    %c0_3 = arith.constant 0 : index
    %4 = vector.load %arg3[%c0_2, %c0_3] : memref<32x2048xbf16, #tpu.memory_space<vmem>>, vector<32x2048xbf16>
    %c0_4 = arith.constant 0 : index
    %c0_5 = arith.constant 0 : index
    %5 = vector.load %arg4[%c0_4, %c0_5] : memref<2048x256xbf16, #tpu.memory_space<vmem>>, vector<2048x256xbf16>
    %cst = arith.constant dense<0.000000e+00> : vector<32x256xf32>
    %6 = tpu.matmul %4, %5, %cst {dimension_numbers = #tpu.dot_dimension_numbers<[1], [0], [0], [1], [0, 0, 1, 1], [], []>} : vector<32x2048xbf16>, vector<2048x256xbf16>, vector<32x256xf32> -> vector<32x256xf32>
    %7 = arith.addf %3, %6 : vector<32x256xf32>
    %c0_6 = arith.constant 0 : index
    %c0_7 = arith.constant 0 : index
    %8 = vector.load %arg8[%c0_6, %c0_7] : memref<32x256xf32, #tpu.memory_space<vmem>>, vector<32x256xf32>
    tpu.vector_store %arg8[%c0_6, %c0_7], %7 {strides = array<i32>} : memref<32x256xf32, #tpu.memory_space<vmem>>, vector<32x256xf32>,
    %c0_i32_8 = arith.constant 0 : i32
    %9 = arith.cmpi eq, %arg2, %c0_i32_8 : i32
    %10 = arith.extui %9 : i1 to i32
    %c0_i32_9 = arith.constant 0 : i32
    %11 = arith.cmpi ne, %10, %c0_i32_9 : i32
    scf.if %11 {
      %c0_10 = arith.constant 0 : index
      %c0_11 = arith.constant 0 : index
      %12 = vector.load %arg8[%c0_10, %c0_11] : memref<32x256xf32, #tpu.memory_space<vmem>>, vector<32x256xf32>
      %cst_12 = arith.constant dense<0.000000e+00> : vector<256xf32>
      %13 = vector.multi_reduction <add>, %12, %cst_12 [0] : vector<32x256xf32> to vector<256xf32>
      %14 = vector.shape_cast %13 : vector<256xf32> to vector<1x256xf32>
      %cst_13 = arith.constant 3.125000e-02 : f32
      %15 = vector.broadcast %cst_13 : f32 to vector<1x256xf32>
      %16 = arith.mulf %14, %15 : vector<1x256xf32>
      %17 = tpu.iota {dimensions = array<i32: 0>} : vector<32x256xi32>
      %c32_i32 = arith.constant 32 : i32
      %18 = vector.broadcast %c32_i32 : i32 to vector<32x256xi32>
      %19 = arith.cmpi slt, %17, %18 : vector<32x256xi32>
      %20 = vector.broadcast %16 : vector<1x256xf32> to vector<32x256xf32>
      %21 = arith.subf %12, %20 : vector<32x256xf32>
      %cst_14 = arith.constant 0.000000e+00 : f32
      %22 = vector.broadcast %cst_14 : f32 to vector<32x256xf32>
      %23 = arith.select %19, %21, %22 : vector<32x256xi1>, vector<32x256xf32>
      %24 = arith.mulf %23, %23 : vector<32x256xf32>
      %cst_15 = arith.constant dense<0.000000e+00> : vector<256xf32>
      %25 = vector.multi_reduction <add>, %24, %cst_15 [0] : vector<32x256xf32> to vector<256xf32>
      %26 = vector.shape_cast %25 : vector<256xf32> to vector<1x256xf32>
      %cst_16 = arith.constant 3.125000e-02 : f32
      %27 = vector.broadcast %cst_16 : f32 to vector<1x256xf32>
      %28 = arith.mulf %26, %27 : vector<1x256xf32>
      %cst_17 = arith.constant 9.99999974E-6 : f32
      %29 = vector.broadcast %cst_17 : f32 to vector<1x256xf32>
      %30 = arith.addf %28, %29 : vector<1x256xf32>
      %31 = math.rsqrt %30 : vector<1x256xf32>
      %32 = vector.broadcast %31 : vector<1x256xf32> to vector<32x256xf32>
      %33 = arith.mulf %23, %32 : vector<32x256xf32>
      %c0_18 = arith.constant 0 : index
      %c0_19 = arith.constant 0 : index
      %34 = vector.load %arg5[%c0_18, %c0_19] : memref<1x256xf32, #tpu.memory_space<vmem>>, vector<1x256xf32>
      %35 = vector.broadcast %34 : vector<1x256xf32> to vector<32x256xf32>
      %36 = arith.mulf %33, %35 : vector<32x256xf32>
      %c0_20 = arith.constant 0 : index
      %c0_21 = arith.constant 0 : index
      %37 = vector.load %arg6[%c0_20, %c0_21] : memref<1x256xf32, #tpu.memory_space<vmem>>, vector<1x256xf32>
      %38 = vector.broadcast %37 : vector<1x256xf32> to vector<32x256xf32>
      %39 = arith.addf %36, %38 : vector<32x256xf32>
      %cst_22 = arith.constant 0.000000e+00 : f32
      %40 = vector.broadcast %cst_22 : f32 to vector<32x256xf32>
      %41 = arith.cmpf ogt, %39, %40 : vector<32x256xf32>
      %cst_23 = arith.constant 2.000000e-01 : f32
      %42 = vector.broadcast %cst_23 : f32 to vector<32x256xf32>
      %43 = arith.mulf %42, %39 : vector<32x256xf32>
      %44 = arith.select %41, %39, %43 : vector<32x256xi1>, vector<32x256xf32>
      %c0_24 = arith.constant 0 : index
      %c0_25 = arith.constant 0 : index
      %45 = vector.load %arg7[%c0_24, %c0_25] : memref<32x256xf32, #tpu.memory_space<vmem>>, vector<32x256xf32>
      tpu.vector_store %arg7[%c0_24, %c0_25], %44 {strides = array<i32>} : memref<32x256xf32, #tpu.memory_space<vmem>>, vector<32x256xf32>,
    } else {
    }
    return
  }
  func.func @transform_0(%arg0: i32, %arg1: i32, %arg2: i32) -> (i32, i32) {
    %c0_i32 = arith.constant 0 : i32
    return %arg0, %arg2 : i32, i32
  }
  func.func @transform_1(%arg0: i32, %arg1: i32, %arg2: i32) -> (i32, i32) {
    %c0_i32 = arith.constant 0 : i32
    return %arg2, %arg1 : i32, i32
  }
  func.func @transform_2(%arg0: i32, %arg1: i32, %arg2: i32) -> (i32, i32) {
    %c0_i32 = arith.constant 0 : i32
    %c0_i32_0 = arith.constant 0 : i32
    return %c0_i32, %arg1 : i32, i32
  }
  func.func @transform_3(%arg0: i32, %arg1: i32, %arg2: i32) -> (i32, i32) {
    %c0_i32 = arith.constant 0 : i32
    %c0_i32_0 = arith.constant 0 : i32
    return %c0_i32, %arg1 : i32, i32
  }
  func.func @transform_4(%arg0: i32, %arg1: i32, %arg2: i32) -> (i32, i32) {
    %c0_i32 = arith.constant 0 : i32
    return %arg0, %arg1 : i32, i32
  }
}

module attributes {stable_mosaic.version = 11 : i64} {
  func.func @_gemm_fused_kernel(%arg0: i32, %arg1: i32, %arg2: i32, %arg3: memref<24x2048xbf16, #tpu.memory_space<vmem>>, %arg4: memref<2048x256xbf16, #tpu.memory_space<vmem>>, %arg5: memref<1x256xf32, #tpu.memory_space<vmem>>, %arg6: memref<1x256xf32, #tpu.memory_space<vmem>>, %arg7: memref<24x256xf32, #tpu.memory_space<vmem>>, %arg8: memref<24x256xf32, #tpu.memory_space<vmem>>) attributes {dimension_semantics = [#tpu.dimension_semantics<parallel>, #tpu.dimension_semantics<parallel>, #tpu.dimension_semantics<arbitrary>], iteration_bounds = array<i64: 2, 1, 2>, scalar_prefetch = 0 : i64, scratch_operands = 1 : i64, tpu.core_type = #tpu.core_type<tc>, window_params = [{transform_indices = @transform_0, window_bounds = array<i64: 24, 2048>}, {transform_indices = @transform_1, window_bounds = array<i64: 2048, 256>}, {transform_indices = @transform_2, window_bounds = array<i64: 1, 256>}, {transform_indices = @transform_3, window_bounds = array<i64: 1, 256>}, {transform_indices = @transform_4, window_bounds = array<i64: 24, 256>}]} {
    %c0_i32 = arith.constant 0 : i32
    %0 = arith.cmpi eq, %arg2, %c0_i32 : i32
    %1 = arith.extui %0 : i1 to i32
    %c0_i32_0 = arith.constant 0 : i32
    %2 = arith.cmpi ne, %1, %c0_i32_0 : i32
    scf.if %2 {
      %cst_9 = arith.constant 0.000000e+00 : f32
      %12 = vector.broadcast %cst_9 : f32 to vector<24x256xf32>
      %c0_10 = arith.constant 0 : index
      %c0_11 = arith.constant 0 : index
      %13 = vector.load %arg8[%c0_10, %c0_11] : memref<24x256xf32, #tpu.memory_space<vmem>>, vector<24x256xf32>
      tpu.vector_store %arg8[%c0_10, %c0_11], %12 {strides = array<i32>} : memref<24x256xf32, #tpu.memory_space<vmem>>, vector<24x256xf32>,
    } else {
    }
    %c0 = arith.constant 0 : index
    %c0_1 = arith.constant 0 : index
    %3 = vector.load %arg8[%c0, %c0_1] : memref<24x256xf32, #tpu.memory_space<vmem>>, vector<24x256xf32>
    %c0_2 = arith.constant 0 : index
    %c0_3 = arith.constant 0 : index
    %4 = vector.load %arg3[%c0_2, %c0_3] : memref<24x2048xbf16, #tpu.memory_space<vmem>>, vector<24x2048xbf16>
    %c0_4 = arith.constant 0 : index
    %c0_5 = arith.constant 0 : index
    %5 = vector.load %arg4[%c0_4, %c0_5] : memref<2048x256xbf16, #tpu.memory_space<vmem>>, vector<2048x256xbf16>
    %cst = arith.constant dense<0.000000e+00> : vector<24x256xf32>
    %6 = tpu.matmul %4, %5, %cst {dimension_numbers = #tpu.dot_dimension_numbers<[1], [0], [0], [1], [0, 0, 1, 1], [], []>} : vector<24x2048xbf16>, vector<2048x256xbf16>, vector<24x256xf32> -> vector<24x256xf32>
    %7 = arith.addf %3, %6 : vector<24x256xf32>
    %c0_6 = arith.constant 0 : index
    %c0_7 = arith.constant 0 : index
    %8 = vector.load %arg8[%c0_6, %c0_7] : memref<24x256xf32, #tpu.memory_space<vmem>>, vector<24x256xf32>
    tpu.vector_store %arg8[%c0_6, %c0_7], %7 {strides = array<i32>} : memref<24x256xf32, #tpu.memory_space<vmem>>, vector<24x256xf32>,
    %c1_i32 = arith.constant 1 : i32
    %9 = arith.cmpi eq, %arg2, %c1_i32 : i32
    %10 = arith.extui %9 : i1 to i32
    %c0_i32_8 = arith.constant 0 : i32
    %11 = arith.cmpi ne, %10, %c0_i32_8 : i32
    scf.if %11 {
      %c0_9 = arith.constant 0 : index
      %c0_10 = arith.constant 0 : index
      %12 = vector.load %arg8[%c0_9, %c0_10] : memref<24x256xf32, #tpu.memory_space<vmem>>, vector<24x256xf32>
      %cst_11 = arith.constant dense<0.000000e+00> : vector<256xf32>
      %13 = vector.multi_reduction <add>, %12, %cst_11 [0] : vector<24x256xf32> to vector<256xf32>
      %14 = vector.shape_cast %13 : vector<256xf32> to vector<1x256xf32>
      %cst_12 = arith.constant 0.055555556 : f32
      %15 = vector.broadcast %cst_12 : f32 to vector<1x256xf32>
      %16 = arith.mulf %14, %15 : vector<1x256xf32>
      %17 = tpu.iota {dimensions = array<i32: 0>} : vector<24x256xi32>
      %c18_i32 = arith.constant 18 : i32
      %18 = vector.broadcast %c18_i32 : i32 to vector<24x256xi32>
      %19 = arith.cmpi slt, %17, %18 : vector<24x256xi32>
      %20 = vector.broadcast %16 : vector<1x256xf32> to vector<24x256xf32>
      %21 = arith.subf %12, %20 : vector<24x256xf32>
      %cst_13 = arith.constant 0.000000e+00 : f32
      %22 = vector.broadcast %cst_13 : f32 to vector<24x256xf32>
      %23 = arith.select %19, %21, %22 : vector<24x256xi1>, vector<24x256xf32>
      %24 = arith.mulf %23, %23 : vector<24x256xf32>
      %cst_14 = arith.constant dense<0.000000e+00> : vector<256xf32>
      %25 = vector.multi_reduction <add>, %24, %cst_14 [0] : vector<24x256xf32> to vector<256xf32>
      %26 = vector.shape_cast %25 : vector<256xf32> to vector<1x256xf32>
      %cst_15 = arith.constant 0.055555556 : f32
      %27 = vector.broadcast %cst_15 : f32 to vector<1x256xf32>
      %28 = arith.mulf %26, %27 : vector<1x256xf32>
      %cst_16 = arith.constant 9.99999974E-6 : f32
      %29 = vector.broadcast %cst_16 : f32 to vector<1x256xf32>
      %30 = arith.addf %28, %29 : vector<1x256xf32>
      %31 = math.rsqrt %30 : vector<1x256xf32>
      %32 = vector.broadcast %31 : vector<1x256xf32> to vector<24x256xf32>
      %33 = arith.mulf %23, %32 : vector<24x256xf32>
      %c0_17 = arith.constant 0 : index
      %c0_18 = arith.constant 0 : index
      %34 = vector.load %arg5[%c0_17, %c0_18] : memref<1x256xf32, #tpu.memory_space<vmem>>, vector<1x256xf32>
      %35 = vector.broadcast %34 : vector<1x256xf32> to vector<24x256xf32>
      %36 = arith.mulf %33, %35 : vector<24x256xf32>
      %c0_19 = arith.constant 0 : index
      %c0_20 = arith.constant 0 : index
      %37 = vector.load %arg6[%c0_19, %c0_20] : memref<1x256xf32, #tpu.memory_space<vmem>>, vector<1x256xf32>
      %38 = vector.broadcast %37 : vector<1x256xf32> to vector<24x256xf32>
      %39 = arith.addf %36, %38 : vector<24x256xf32>
      %cst_21 = arith.constant 0.000000e+00 : f32
      %40 = vector.broadcast %cst_21 : f32 to vector<24x256xf32>
      %41 = arith.cmpf ogt, %39, %40 : vector<24x256xf32>
      %cst_22 = arith.constant 2.000000e-01 : f32
      %42 = vector.broadcast %cst_22 : f32 to vector<24x256xf32>
      %43 = arith.mulf %42, %39 : vector<24x256xf32>
      %44 = arith.select %41, %39, %43 : vector<24x256xi1>, vector<24x256xf32>
      %c0_23 = arith.constant 0 : index
      %c0_24 = arith.constant 0 : index
      %45 = vector.load %arg7[%c0_23, %c0_24] : memref<24x256xf32, #tpu.memory_space<vmem>>, vector<24x256xf32>
      tpu.vector_store %arg7[%c0_23, %c0_24], %44 {strides = array<i32>} : memref<24x256xf32, #tpu.memory_space<vmem>>, vector<24x256xf32>,
    } else {
    }
    return
  }
  func.func @transform_0(%arg0: i32, %arg1: i32, %arg2: i32) -> (i32, i32) {
    %c0_i32 = arith.constant 0 : i32
    return %arg1, %arg2 : i32, i32
  }
  func.func @transform_1(%arg0: i32, %arg1: i32, %arg2: i32) -> (i32, i32) {
    %c0_i32 = arith.constant 0 : i32
    return %arg2, %arg0 : i32, i32
  }
  func.func @transform_2(%arg0: i32, %arg1: i32, %arg2: i32) -> (i32, i32) {
    %c0_i32 = arith.constant 0 : i32
    %c0_i32_0 = arith.constant 0 : i32
    return %c0_i32, %arg0 : i32, i32
  }
  func.func @transform_3(%arg0: i32, %arg1: i32, %arg2: i32) -> (i32, i32) {
    %c0_i32 = arith.constant 0 : i32
    %c0_i32_0 = arith.constant 0 : i32
    return %c0_i32, %arg0 : i32, i32
  }
  func.func @transform_4(%arg0: i32, %arg1: i32, %arg2: i32) -> (i32, i32) {
    %c0_i32 = arith.constant 0 : i32
    return %arg1, %arg0 : i32, i32
  }
}

module attributes {stable_mosaic.version = 11 : i64} {
  func.func @_rowdot_bias_kernel(%arg0: i32, %arg1: memref<8x8192xf32, #tpu.memory_space<vmem>>, %arg2: memref<1x8192xf32, #tpu.memory_space<vmem>>, %arg3: memref<1x1xf32, #tpu.memory_space<vmem>>, %arg4: memref<8x1xf32, #tpu.memory_space<vmem>>) attributes {dimension_semantics = [#tpu.dimension_semantics<arbitrary>], iteration_bounds = array<i64: 1>, scalar_prefetch = 0 : i64, scratch_operands = 0 : i64, tpu.core_type = #tpu.core_type<tc>, window_params = [{pipeline_mode = #tpu.pipeline_mode<synchronous>, transform_indices = @transform_0, window_bounds = array<i64: 8, 8192>}, {pipeline_mode = #tpu.pipeline_mode<synchronous>, transform_indices = @transform_1, window_bounds = array<i64: 1, 8192>}, {pipeline_mode = #tpu.pipeline_mode<synchronous>, transform_indices = @transform_2, window_bounds = array<i64: 1, 1>}, {pipeline_mode = #tpu.pipeline_mode<synchronous>, transform_indices = @transform_3, window_bounds = array<i64: 8, 1>}]} {
    %c0 = arith.constant 0 : index
    %c0_0 = arith.constant 0 : index
    %0 = vector.load %arg1[%c0, %c0_0] : memref<8x8192xf32, #tpu.memory_space<vmem>>, vector<8x8192xf32>
    %c0_1 = arith.constant 0 : index
    %c0_2 = arith.constant 0 : index
    %1 = vector.load %arg2[%c0_1, %c0_2] : memref<1x8192xf32, #tpu.memory_space<vmem>>, vector<1x8192xf32>
    %2 = vector.broadcast %1 : vector<1x8192xf32> to vector<8x8192xf32>
    %3 = arith.mulf %0, %2 : vector<8x8192xf32>
    %cst = arith.constant dense<0.000000e+00> : vector<8xf32>
    %4 = vector.multi_reduction <add>, %3, %cst [1] : vector<8x8192xf32> to vector<8xf32>
    %5 = vector.shape_cast %4 : vector<8xf32> to vector<8x1xf32>
    %c0_3 = arith.constant 0 : index
    %c0_4 = arith.constant 0 : index
    %6 = vector.load %arg3[%c0_3, %c0_4] : memref<1x1xf32, #tpu.memory_space<vmem>>, vector<1x1xf32>
    %7 = vector.broadcast %6 : vector<1x1xf32> to vector<8x1xf32>
    %8 = arith.addf %5, %7 : vector<8x1xf32>
    %c0_5 = arith.constant 0 : index
    %c0_6 = arith.constant 0 : index
    %9 = vector.load %arg4[%c0_5, %c0_6] : memref<8x1xf32, #tpu.memory_space<vmem>>, vector<8x1xf32>
    tpu.vector_store %arg4[%c0_5, %c0_6], %8 {strides = array<i32>} : memref<8x1xf32, #tpu.memory_space<vmem>>, vector<8x1xf32>,
    return
  }
  func.func @transform_0(%arg0: i32) -> (i32, i32) {
    %c0_i32 = arith.constant 0 : i32
    %c0_i32_0 = arith.constant 0 : i32
    %c0_i32_1 = arith.constant 0 : i32
    return %c0_i32, %c0_i32_0 : i32, i32
  }
  func.func @transform_1(%arg0: i32) -> (i32, i32) {
    %c0_i32 = arith.constant 0 : i32
    %c0_i32_0 = arith.constant 0 : i32
    %c0_i32_1 = arith.constant 0 : i32
    return %c0_i32, %c0_i32_0 : i32, i32
  }
  func.func @transform_2(%arg0: i32) -> (i32, i32) {
    %c0_i32 = arith.constant 0 : i32
    %c0_i32_0 = arith.constant 0 : i32
    %c0_i32_1 = arith.constant 0 : i32
    return %c0_i32, %c0_i32_0 : i32, i32
  }
  func.func @transform_3(%arg0: i32) -> (i32, i32) {
    %c0_i32 = arith.constant 0 : i32
    %c0_i32_0 = arith.constant 0 : i32
    %c0_i32_1 = arith.constant 0 : i32
    return %c0_i32, %c0_i32_0 : i32, i32
  }
}

</mosaic_0001>

<bundles_post_ra>
// kernel: discriminator_forward.5
= control target key start
LH: loop header
LB: loop body
LE: loop exit
PB: predicated region body
PF: predicated region fallthrough
CT: control target
= control target key end

     0   :  { %s972_s15 = smov 0   ;;  %s974_s16 = smov 0   ;;  %s1068_s0 = inlined_call_operand.vmem [shape: bf16[512,64], index: 0, kind: input, shape index: {}]   ;;  %s1069_s1 = inlined_call_operand.vmem [shape: bf16[64,128], index: 1, kind: input, shape index: {}]   ;;  %s1070_s2 = inlined_call_operand.vmem [shape: f32[1,128], index: 2, kind: input, shape index: {}]   ;;  %s1071_s3 = inlined_call_operand.vmem [shape: f32[1,128], index: 3, kind: input, shape index: {}]   ;;  %s1072_s4 = inlined_call_operand.vmem [shape: f32[512,128], index: 4, kind: output, shape index: {}]  }
   0x1   :  { %s976_s17 = smov 0  }
   0x2 LB: > { %s33_s3 = sadd.s32 1, %s941_s16  ;;  %p815_p0 = scmp.ge.s32.totalorder %s945_s17, 1  ;;  %s945_s17 = sphi %s976_s17, %s14_s17   ;;  %s941_s16 = sphi %s974_s16, %s1074_s16   ;;  %s937_s15 = sphi %s972_s15, %s1073_s15  }
   0x3   : > { %p35_p1 = scmp.ge.s32.totalorder %s33_s3, 4  ;;  %p221_p2 = scmp.lt.s32.totalorder %s945_s17, 5 }
   0x5   : > { %s1076_s3 = smov (%p35_p1, %s33_s3), 0  ;;  %p222_p3 = pnand %p815_p0, %p221_p2 }
   0x6   : > { %v911_v0 = vld [vmem:[%s1069_s1] sm:$0xff] (!%p222_p3)   ;;  %s816_s20 = sshll.u32 (!%p222_p3), %s937_s15, 4  ;;  %v912_v1 = vld [vmem:[%s1069_s1 + $0x8] sm:$0xff] (!%p222_p3)   ;;  %v913_v2 = vld [vmem:[%s1069_s1 + $0x10] sm:$0xff] (!%p222_p3)   ;;  %vm425_vm0 = vcmask (!%p222_p3), 523264  }
   0x7   : > { %225 = sbr.rel (%p222_p3) target bundleno = 255 (0xff), region = 36  ;;  %p268_p4 = scmp.lt.s32.totalorder (!%p222_p3), %s816_s20, 63  ;;  %855 = vmatprep.subr.bf16.mxu0 (!%p222_p3), %v911_v0  ;;  %879 = vmatprep.subr.bf16.mxu1 (!%p222_p3), %v911_v0  ;;  %v914_v3 = vld [vmem:[%s1069_s1 + $0x18] sm:$0xff] (!%p222_p3)   ;;  %v1019_v12 = vld [vmem:[%s1070_s2] ss:$0 sm:$0xff] (!%p222_p3) }
   0x8   : > { %856 = vmatpush3.bf16.msra.mxu0 (!%p222_p3), %v911_v0  ;;  %883 = vmatpush3.bf16.msra.mxu1 (!%p222_p3), %v911_v0 }
   0x9   : > { %857 = vmatprep.subr.bf16.mxu0 (!%p222_p3), %v912_v1  ;;  %880 = vmatprep.subr.bf16.mxu1 (!%p222_p3), %v912_v1 }
   0xc   : > { %858 = vmatpush3.bf16.msra.mxu0 (!%p222_p3), %v912_v1  ;;  %884 = vmatpush3.bf16.msra.mxu1 (!%p222_p3), %v912_v1 }
   0xd   : > { %859 = vmatprep.subr.bf16.mxu0 (!%p222_p3), %v913_v2  ;;  %881 = vmatprep.subr.bf16.mxu1 (!%p222_p3), %v913_v2 }
   0xe   : > { %s1078_s20 = smov (!%p268_p4, %s816_s20), 63 }
   0xf   : > { %s817_s25 = sshll.u32 %s1078_s20, 2  ;;  %s819_s7 = sshll.u32 %s1078_s20, 3 }
  0x10   : > { %s274_s30 = scalar_lea.vmem %s1068_s0, %s817_s25  ;;  %860 = vmatpush3.bf16.msra.mxu0 %v913_v2  ;;  %885 = vmatpush3.bf16.msra.mxu1 %v913_v2  ;;  %s1029_s10 = scalar_lea.vmem %s1072_s4, %s819_s7 }
  0x11   : > { %v915_v4 = vld [vmem:[%s274_s30] sm:$0xff]   ;;  %861 = vmatprep.subr.bf16.mxu0 %v914_v3  ;;  %882 = vmatprep.subr.bf16.mxu1 %v914_v3  ;;  %v917_v6 = vld [vmem:[%s274_s30 + $0x8] sm:$0xff]   ;;  %v919_v8 = vld [vmem:[%s274_s30 + $0x10] sm:$0xff]  }
  0x12   : > { %v916_v5 = vld [vmem:[%s274_s30 + $0x20] sm:$0xff]   ;;  %863 = vmatprep.mubr.msk.bf16.mxu0 %vm425_vm0, %v915_v4  ;;  %v918_v7 = vld [vmem:[%s274_s30 + $0x28] sm:$0xff]   ;;  %v920_v9 = vld [vmem:[%s274_s30 + $0x30] sm:$0xff]  }
  0x13   : > { %871 = vmatprep.mubr.msk.bf16.mxu1 %vm425_vm0, %v916_v5  ;;  %v921_v10 = vld [vmem:[%s274_s30 + $0x18] sm:$0xff]  }
  0x14   : > { %862 = vmatpush3.bf16.msra.mxu0 %v914_v3  ;;  %886 = vmatpush3.bf16.msra.mxu1 %v914_v3  ;;  %v922_v11 = vld [vmem:[%s274_s30 + $0x38] sm:$0xff]  }
  0x17   : > { %864 = vmatmul.mubr.msk.bf16.vlgmr.msra.gmra.mrb[0].mxu0 %vm425_vm0, %v917_v6  ;;  %872 = vmatmul.mubr.msk.bf16.vlgmr.msra.gmra.mrb[0].mxu1 %vm425_vm0, %v918_v7 }
  0x18   : > { %867 = vmatprep.mubr.msk.bf16.mxu0 %vm425_vm0, %v919_v8  ;;  %875 = vmatprep.mubr.msk.bf16.mxu1 %vm425_vm0, %v920_v9 }
  0x1f   : > { %868 = vmatmul.mubr.msk.bf16.gmra.mrb[4].mxu0 %vm425_vm0, %v921_v10  ;;  %876 = vmatmul.mubr.msk.bf16.gmra.mrb[4].mxu1 %vm425_vm0, %v922_v11 }
  0xea   : > { %v865_v13 = vpop.f32.mrb[0].mxu0  ;;  %v873_v14 = vpop.f32.mrb[0].mxu1 }
  0xeb   : > { %v607_v15 = vadd.f32 %v865_v13, %v1019_v12  ;;  %v615_v16 = vadd.f32 %v873_v14, %v1019_v12  ;;  %v484_v17 = vpop.f32.mrb[1].mxu0  ;;  %v516_v18 = vpop.f32.mrb[1].mxu1 }
  0xec   : > { %v605_v19 = vadd.f32 %v1019_v12, %v484_v17  ;;  %v613_v20 = vadd.f32 %v1019_v12, %v516_v18  ;;  %v866_v21 = vpop.f32.mrb[2].mxu0  ;;  %v874_v22 = vpop.f32.mrb[2].mxu1 }
  0xed   : > { %vm623_vm1 = vcmp.gt.f32.partialorder %v607_v15, 0.0  ;;  %v639_v23 = vmul.f32 0.2, %v607_v15  ;;  %vm631_vm2 = vcmp.gt.f32.partialorder %v615_v16, 0.0  ;;  %v647_v24 = vmul.f32 0.2, %v615_v16 }
  0xee   : > { %vm621_vm3 = vcmp.gt.f32.partialorder %v605_v19, 0.0  ;;  %v637_v25 = vmul.f32 0.2, %v605_v19  ;;  %vm629_vm4 = vcmp.gt.f32.partialorder %v613_v20, 0.0  ;;  %v645_v26 = vmul.f32 0.2, %v613_v20 }
  0xef   : > { %v655_v27 = vsel %vm623_vm1, %v607_v15, %v639_v23  ;;  %v663_v28 = vsel %vm631_vm2, %v615_v16, %v647_v24  ;;  %v608_v29 = vadd.f32 %v866_v21, %v1019_v12  ;;  %v616_v30 = vadd.f32 %v874_v22, %v1019_v12  ;;  %v487_v31 = vpop.f32.mrb[3].mxu0  ;;  %v519_v32 = vpop.f32.mrb[3].mxu1 }
  0xf0   : > { %671 = vst [vmem:[%s1029_s10 + $0x10] sm:$0xff] %v655_v27  ;;  %679 = vst [vmem:[%s1029_s10 + $0x50] sm:$0xff] %v663_v28  ;;  %v653_v33 = vsel %vm621_vm3, %v605_v19, %v637_v25  ;;  %v661_v34 = vsel %vm629_vm4, %v613_v20, %v645_v26  ;;  %v606_v35 = vadd.f32 %v1019_v12, %v487_v31 }
  0xf1   : > { %v614_v36 = vadd.f32 %v1019_v12, %v519_v32  ;;  %669 = vst [vmem:[%s1029_s10] sm:$0xff] %v653_v33  ;;  %677 = vst [vmem:[%s1029_s10 + $0x40] sm:$0xff] %v661_v34  ;;  %vm624_vm5 = vcmp.gt.f32.partialorder %v608_v29, 0.0  ;;  %v640_v37 = vmul.f32 0.2, %v608_v29  ;;  %vm632_vm6 = vcmp.gt.f32.partialorder %v616_v30, 0.0 }
  0xf2   : > { %v648_v38 = vmul.f32 0.2, %v616_v30  ;;  %vm622_vm7 = vcmp.gt.f32.partialorder %v606_v35, 0.0  ;;  %v638_v39 = vmul.f32 0.2, %v606_v35  ;;  %v869_v43 = vpop.f32.mrb[4].mxu0 }
  0xf3   : > { %vm630_vm8 = vcmp.gt.f32.partialorder %v614_v36, 0.0  ;;  %v646_v40 = vmul.f32 0.2, %v614_v36  ;;  %v656_v41 = vsel %vm624_vm5, %v608_v29, %v640_v37  ;;  %v877_v44 = vpop.f32.mrb[4].mxu1  ;;  %v611_v47 = vadd.f32 %v869_v43, %v1019_v12  ;;  %v500_v49 = vpop.f32.mrb[5].mxu0 }
  0xf4   : > { %v664_v42 = vsel %vm632_vm6, %v616_v30, %v648_v38  ;;  %672 = vst [vmem:[%s1029_s10 + $0x18] sm:$0xff] %v656_v41  ;;  %v654_v45 = vsel %vm622_vm7, %v606_v35, %v638_v39  ;;  %v619_v48 = vadd.f32 %v877_v44, %v1019_v12  ;;  %v532_v50 = vpop.f32.mrb[5].mxu1  ;;  %v609_v51 = vadd.f32 %v1019_v12, %v500_v49  ;;  %v870_v53 = vpop.f32.mrb[6].mxu0 }
  0xf5   : > { %680 = vst [vmem:[%s1029_s10 + $0x58] sm:$0xff] %v664_v42  ;;  %v662_v46 = vsel %vm630_vm8, %v614_v36, %v646_v40  ;;  %670 = vst [vmem:[%s1029_s10 + $0x8] sm:$0xff] %v654_v45  ;;  %v617_v52 = vadd.f32 %v1019_v12, %v532_v50  ;;  %v878_v54 = vpop.f32.mrb[6].mxu1  ;;  %vm627_vm9 = vcmp.gt.f32.partialorder %v611_v47, 0.0  ;;  %v643_v55 = vmul.f32 0.2, %v611_v47 }
  0xf6   : > { %678 = vst [vmem:[%s1029_s10 + $0x48] sm:$0xff] %v662_v46  ;;  %vm635_vm10 = vcmp.gt.f32.partialorder %v619_v48, 0.0  ;;  %v651_v56 = vmul.f32 0.2, %v619_v48  ;;  %vm625_vm11 = vcmp.gt.f32.partialorder %v609_v51, 0.0  ;;  %v612_v61 = vadd.f32 %v870_v53, %v1019_v12  ;;  %v503_v63 = vpop.f32.mrb[7].mxu0 }
  0xf7   : > { %v641_v57 = vmul.f32 0.2, %v609_v51  ;;  %vm633_vm12 = vcmp.gt.f32.partialorder %v617_v52, 0.0  ;;  %v649_v58 = vmul.f32 0.2, %v617_v52  ;;  %v659_v59 = vsel %vm627_vm9, %v611_v47, %v643_v55  ;;  %v535_v0 = vpop.f32.mrb[7].mxu1 }
  0xf8   : > { %v667_v60 = vsel %vm635_vm10, %v619_v48, %v651_v56  ;;  %v620_v62 = vadd.f32 %v878_v54, %v1019_v12  ;;  %675 = vst [vmem:[%s1029_s10 + $0x30] sm:$0xff] %v659_v59  ;;  %v610_v3 = vadd.f32 %v1019_v12, %v503_v63  ;;  %v618_v4 = vadd.f32 %v1019_v12, %v535_v0 }
  0xf9   : > { %683 = vst [vmem:[%s1029_s10 + $0x70] sm:$0xff] %v667_v60  ;;  %v657_v1 = vsel %vm625_vm11, %v609_v51, %v641_v57  ;;  %v665_v2 = vsel %vm633_vm12, %v617_v52, %v649_v58  ;;  %vm628_vm13 = vcmp.gt.f32.partialorder %v612_v61, 0.0  ;;  %v644_v5 = vmul.f32 0.2, %v612_v61 }
  0xfa   : > { %673 = vst [vmem:[%s1029_s10 + $0x20] sm:$0xff] %v657_v1  ;;  %681 = vst [vmem:[%s1029_s10 + $0x60] sm:$0xff] %v665_v2  ;;  %vm636_vm14 = vcmp.gt.f32.partialorder %v620_v62, 0.0  ;;  %v652_v6 = vmul.f32 0.2, %v620_v62  ;;  %vm626_vm15 = vcmp.gt.f32.partialorder %v610_v3, 0.0 }
  0xfb   : > { %v642_v7 = vmul.f32 0.2, %v610_v3  ;;  %vm634_vm0 = vcmp.gt.f32.partialorder %v618_v4, 0.0  ;;  %v650_v8 = vmul.f32 0.2, %v618_v4  ;;  %v660_v9 = vsel %vm628_vm13, %v612_v61, %v644_v5 }
  0xfc   : > { %v668_v10 = vsel %vm636_vm14, %v620_v62, %v652_v6  ;;  %676 = vst [vmem:[%s1029_s10 + $0x38] sm:$0xff] %v660_v9 }
  0xfd   : > { %684 = vst [vmem:[%s1029_s10 + $0x78] sm:$0xff] %v668_v10  ;;  %v658_v11 = vsel %vm626_vm15, %v610_v3, %v642_v7  ;;  %v666_v13 = vsel %vm634_vm0, %v618_v4, %v650_v8 }
  0xfe   : > { %674 = vst [vmem:[%s1029_s10 + $0x28] sm:$0xff] %v658_v11  ;;  %682 = vst [vmem:[%s1029_s10 + $0x68] sm:$0xff] %v666_v13 }
  0xff PF: > { %s14_s17 = sadd.s32 1, %s945_s17   ;;  %s1073_s15 = smov %s941_s16 }
 0x100   : > { %p11_p5 = scmp.ge.s32.totalorder %s14_s17, 6   ;;  %s1074_s16 = smov %s1076_s3 }
 0x102   :  { %13 = sbr.rel (!%p11_p5) target bundleno = 2 (0x2), region = 83 }

// kernel: discriminator_forward.6
= control target key start
LH: loop header
LB: loop body
LE: loop exit
PB: predicated region body
PF: predicated region fallthrough
CT: control target
= control target key end

     0   :  { %s2665_s1 = inlined_call_operand.vmem [shape: bf16[1024,128], index: 1, kind: input, shape index: {}]   ;;  %s2666_s0 = inlined_call_operand.vmem [shape: bf16[128,1024], index: 0, kind: input, shape index: {}]   ;;  %s2667_s2 = inlined_call_operand.vmem [shape: f32[1,128], index: 2, kind: input, shape index: {}]   ;;  %s2668_s3 = inlined_call_operand.vmem [shape: f32[1,128], index: 3, kind: input, shape index: {}]   ;;  %s2669_s4 = inlined_call_operand.vmem [shape: f32[128,128], index: 4, kind: output, shape index: {}]  }
   0x1   :  { %v2032_v0 = vld [vmem:[%s2665_s1 + $0x40] sm:$0xff]   ;;  %v2036_v4 = vld [vmem:[%s2665_s1 + $0x48] sm:$0xff]   ;;  %v2040_v8 = vld [vmem:[%s2665_s1 + $0x50] sm:$0xff]  }
   0x2   :  { %v2033_v1 = vld [vmem:[%s2665_s1 + $0xc0] sm:$0xff]   ;;  %1776 = vmatprep.subr.bf16.mxu0 %v2032_v0  ;;  %v2037_v5 = vld [vmem:[%s2665_s1 + $0xc8] sm:$0xff]   ;;  %v2041_v9 = vld [vmem:[%s2665_s1 + $0xd0] sm:$0xff]  }
   0x3   :  { %v2034_v2 = vld [vmem:[%s2665_s1] sm:$0xff]   ;;  %1840 = vmatprep.subr.bf16.mxu1 %v2033_v1  ;;  %v2038_v6 = vld [vmem:[%s2665_s1 + $0x8] sm:$0xff]   ;;  %v2042_v10 = vld [vmem:[%s2665_s1 + $0x10] sm:$0xff]  }
   0x4   :  { %v2035_v3 = vld [vmem:[%s2665_s1 + $0x80] sm:$0xff]   ;;  %1777 = vmatpush3.bf16.msra.mxu0 %v2034_v2  ;;  %v2039_v7 = vld [vmem:[%s2665_s1 + $0x88] sm:$0xff]   ;;  %v2043_v11 = vld [vmem:[%s2665_s1 + $0x90] sm:$0xff]  }
   0x5   :  { %1841 = vmatpush3.bf16.msra.mxu1 %v2035_v3  ;;  %1778 = vmatprep.subr.bf16.mxu0 %v2036_v4  ;;  %v2044_v12 = vld [vmem:[%s2665_s1 + $0x58] sm:$0xff]   ;;  %v2048_v16 = vld [vmem:[%s2665_s1 + $0x60] sm:$0xff]   ;;  %v2052_v20 = vld [vmem:[%s2665_s1 + $0x68] sm:$0xff]  }
   0x6   :  { %1842 = vmatprep.subr.bf16.mxu1 %v2037_v5  ;;  %v2045_v13 = vld [vmem:[%s2665_s1 + $0xd8] sm:$0xff]   ;;  %v2049_v17 = vld [vmem:[%s2665_s1 + $0xe0] sm:$0xff]   ;;  %v2053_v21 = vld [vmem:[%s2665_s1 + $0xe8] sm:$0xff]  }
   0x7   :  { %v2046_v14 = vld [vmem:[%s2665_s1 + $0x18] sm:$0xff]   ;;  %v2050_v18 = vld [vmem:[%s2665_s1 + $0x20] sm:$0xff]   ;;  %v2054_v22 = vld [vmem:[%s2665_s1 + $0x28] sm:$0xff]  }
   0x8   :  { %1779 = vmatpush3.bf16.msra.mxu0 %v2038_v6  ;;  %v2047_v15 = vld [vmem:[%s2665_s1 + $0x98] sm:$0xff]   ;;  %v2051_v19 = vld [vmem:[%s2665_s1 + $0xa0] sm:$0xff]   ;;  %v2055_v23 = vld [vmem:[%s2665_s1 + $0xa8] sm:$0xff]  }
   0x9   :  { %1843 = vmatpush3.bf16.msra.mxu1 %v2039_v7  ;;  %1780 = vmatprep.subr.bf16.mxu0 %v2040_v8  ;;  %v2056_v24 = vld [vmem:[%s2665_s1 + $0x70] sm:$0xff]   ;;  %v2060_v28 = vld [vmem:[%s2665_s1 + $0x78] sm:$0xff]   ;;  %v54_v32 = vld [vmem:[%s2666_s0] sm:$0xff] }
   0xa   :  { %1844 = vmatprep.subr.bf16.mxu1 %v2041_v9  ;;  %v2057_v25 = vld [vmem:[%s2665_s1 + $0xf0] sm:$0xff]   ;;  %v2061_v29 = vld [vmem:[%s2665_s1 + $0xf8] sm:$0xff]   ;;  %v58_v33 = vld [vmem:[%s2666_s0 + $0x20] sm:$0xff] }
   0xb   :  { %v2058_v26 = vld [vmem:[%s2665_s1 + $0x30] sm:$0xff]   ;;  %v2062_v30 = vld [vmem:[%s2665_s1 + $0x38] sm:$0xff]   ;;  %v55_v34 = vld [vmem:[%s2666_s0 + $0x8] sm:$0xff]  ;;  %v1646_v35 = vcombine.low %v54_v32, %v58_v33  ;;  %v1647_v36 = vcombine.high %v54_v32, %v58_v33 }
   0xc   :  { %1781 = vmatpush3.bf16.msra.mxu0 %v2042_v10  ;;  %v2059_v27 = vld [vmem:[%s2665_s1 + $0xb0] sm:$0xff]   ;;  %v2063_v31 = vld [vmem:[%s2665_s1 + $0xb8] sm:$0xff]   ;;  %v59_v37 = vld [vmem:[%s2666_s0 + $0x28] sm:$0xff] }
   0xd   :  { %1845 = vmatpush3.bf16.msra.mxu1 %v2043_v11  ;;  %1782 = vmatprep.subr.bf16.mxu0 %v2044_v12  ;;  %v1648_v38 = vcombine.low %v55_v34, %v59_v37  ;;  %v1649_v39 = vcombine.high %v55_v34, %v59_v37  ;;  %v2064_v40 = vld [vmem:[%s2665_s1 + $0x140] sm:$0xff]   ;;  %v63_v47 = vld [vmem:[%s2666_s0 + $0x48] sm:$0xff]  ;;  %v2072_v62 = vld [vmem:[%s2665_s1 + $0x150] sm:$0xff]  }
   0xe   :  { %1846 = vmatprep.subr.bf16.mxu1 %v2045_v13  ;;  %982 = vmatprep.mubr.bf16.mxu0 %v1647_v36  ;;  %v2065_v41 = vld [vmem:[%s2665_s1 + $0x100] sm:$0xff]   ;;  %v67_v48 = vld [vmem:[%s2666_s0 + $0x68] sm:$0xff]  ;;  %v2073_v63 = vld [vmem:[%s2665_s1 + $0x110] sm:$0xff]  }
   0xf   :  { %1079 = vmatprep.mubr.bf16.mxu1 %v1649_v39  ;;  %v2066_v42 = vld [vmem:[%s2665_s1 + $0x1c0] sm:$0xff]   ;;  %v1657_v49 = vcombine.high %v63_v47, %v67_v48  ;;  %v2068_v50 = vld [vmem:[%s2665_s1 + $0x148] sm:$0xff]   ;;  %v1656_v53 = vcombine.low %v63_v47, %v67_v48  ;;  %v2074_v0 = vld [vmem:[%s2665_s1 + $0x1d0] sm:$0xff]  }
  0x10   :  { %1783 = vmatpush3.bf16.msra.mxu0 %v2046_v14  ;;  %v2067_v43 = vld [vmem:[%s2665_s1 + $0x180] sm:$0xff]   ;;  %v2069_v52 = vld [vmem:[%s2665_s1 + $0x108] sm:$0xff]   ;;  %v2075_v1 = vld [vmem:[%s2665_s1 + $0x190] sm:$0xff]  }
  0x11   :  { %1847 = vmatpush3.bf16.msra.mxu1 %v2047_v15  ;;  %1784 = vmatprep.subr.bf16.mxu0 %v2048_v16  ;;  %v62_v44 = vld [vmem:[%s2666_s0 + $0x40] sm:$0xff]  ;;  %v2070_v54 = vld [vmem:[%s2665_s1 + $0x1c8] sm:$0xff]   ;;  %v2076_v10 = vld [vmem:[%s2665_s1 + $0x158] sm:$0xff]  }
  0x12   :  { %1848 = vmatprep.subr.bf16.mxu1 %v2049_v17  ;;  %v66_v45 = vld [vmem:[%s2666_s0 + $0x60] sm:$0xff]  ;;  %v2071_v55 = vld [vmem:[%s2665_s1 + $0x188] sm:$0xff]   ;;  %v2077_v11 = vld [vmem:[%s2665_s1 + $0x118] sm:$0xff]  }
  0x13   :  { %v1655_v46 = vcombine.high %v62_v44, %v66_v45  ;;  %v1654_v51 = vcombine.low %v62_v44, %v66_v45  ;;  %v70_v56 = vld [vmem:[%s2666_s0 + $0x80] sm:$0xff]  ;;  %v71_v58 = vld [vmem:[%s2666_s0 + $0x88] sm:$0xff]  ;;  %v2078_v12 = vld [vmem:[%s2665_s1 + $0x1d8] sm:$0xff]  }
  0x14   :  { %1785 = vmatpush3.bf16.msra.mxu0 %v2050_v18  ;;  %v74_v57 = vld [vmem:[%s2666_s0 + $0xa0] sm:$0xff]  ;;  %v75_v59 = vld [vmem:[%s2666_s0 + $0xa8] sm:$0xff]  ;;  %v2079_v13 = vld [vmem:[%s2665_s1 + $0x198] sm:$0xff]  }
  0x15   :  { %1849 = vmatpush3.bf16.msra.mxu1 %v2051_v19  ;;  %1786 = vmatprep.subr.bf16.mxu0 %v2052_v20  ;;  %v1663_v60 = vcombine.high %v70_v56, %v74_v57  ;;  %v1665_v61 = vcombine.high %v71_v58, %v75_v59  ;;  %v1662_v2 = vcombine.low %v70_v56, %v74_v57  ;;  %v78_v3 = vld [vmem:[%s2666_s0 + $0xc0] sm:$0xff]  ;;  %v79_v5 = vld [vmem:[%s2666_s0 + $0xc8] sm:$0xff]  ;;  %v2089_v39 = vld [vmem:[%s2665_s1 + $0x130] sm:$0xff]  }
  0x16   :  { %1850 = vmatprep.subr.bf16.mxu1 %v2053_v21  ;;  %v82_v4 = vld [vmem:[%s2666_s0 + $0xe0] sm:$0xff]  ;;  %v1664_v6 = vcombine.low %v71_v58, %v75_v59  ;;  %v83_v8 = vld [vmem:[%s2666_s0 + $0xe8] sm:$0xff]  ;;  %v2093_v48 = vld [vmem:[%s2665_s1 + $0x138] sm:$0xff]  }
  0x17   :  { %v1671_v7 = vcombine.high %v78_v3, %v82_v4  ;;  %v1673_v9 = vcombine.high %v79_v5, %v83_v8  ;;  %v86_v14 = vld [vmem:[%s2666_s0 + $0x100] sm:$0xff]  ;;  %v87_v16 = vld [vmem:[%s2666_s0 + $0x108] sm:$0xff]  ;;  %v1670_v19 = vcombine.low %v78_v3, %v82_v4  ;;  %v1672_v21 = vcombine.low %v79_v5, %v83_v8  ;;  %v65_v8 = vld [vmem:[%s2666_s0 + $0x58] sm:$0xff] }
  0x18   :  { %1787 = vmatpush3.bf16.msra.mxu0 %v2054_v22  ;;  %v90_v15 = vld [vmem:[%s2666_s0 + $0x120] sm:$0xff]  ;;  %v91_v17 = vld [vmem:[%s2666_s0 + $0x128] sm:$0xff] }
  0x19   :  { %1851 = vmatpush3.bf16.msra.mxu1 %v2055_v23  ;;  %1788 = vmatprep.subr.bf16.mxu0 %v2056_v24  ;;  %v2080_v18 = vld [vmem:[%s2665_s1 + $0x160] sm:$0xff]   ;;  %v1679_v22 = vcombine.high %v86_v14, %v90_v15  ;;  %v1681_v24 = vcombine.high %v87_v16, %v91_v17  ;;  %v2086_v32 = vld [vmem:[%s2665_s1 + $0x1e8] sm:$0xff]   ;;  %v1678_v34 = vcombine.low %v86_v14, %v90_v15  ;;  %v72_v14 = vld [vmem:[%s2666_s0 + $0x90] sm:$0xff] }
  0x1a   :  { %1852 = vmatprep.subr.bf16.mxu1 %v2057_v25  ;;  %v2081_v20 = vld [vmem:[%s2665_s1 + $0x120] sm:$0xff]   ;;  %v2087_v33 = vld [vmem:[%s2665_s1 + $0x1a8] sm:$0xff]   ;;  %v76_v15 = vld [vmem:[%s2666_s0 + $0xb0] sm:$0xff] }
  0x1b   :  { %v2082_v23 = vld [vmem:[%s2665_s1 + $0x1e0] sm:$0xff]   ;;  %v103_v44 = vld [vmem:[%s2666_s0 + $0x188] sm:$0xff] }
  0x1c   :  { %1789 = vmatpush3.bf16.msra.mxu0 %v2058_v26  ;;  %v2083_v25 = vld [vmem:[%s2665_s1 + $0x1a0] sm:$0xff]   ;;  %v107_v45 = vld [vmem:[%s2666_s0 + $0x1a8] sm:$0xff] }
  0x1d   :  { %1853 = vmatpush3.bf16.msra.mxu1 %v2059_v27  ;;  %1790 = vmatprep.subr.bf16.mxu0 %v2060_v28  ;;  %v94_v26 = vld [vmem:[%s2666_s0 + $0x140] sm:$0xff]  ;;  %v2084_v28 = vld [vmem:[%s2665_s1 + $0x168] sm:$0xff]   ;;  %v1696_v59 = vcombine.low %v103_v44, %v107_v45 }
  0x1e   :  { %1854 = vmatprep.subr.bf16.mxu1 %v2061_v29  ;;  %v98_v27 = vld [vmem:[%s2666_s0 + $0x160] sm:$0xff]  ;;  %v95_v29 = vld [vmem:[%s2666_s0 + $0x148] sm:$0xff] }
  0x1f   :  { %v1687_v36 = vcombine.high %v94_v26, %v98_v27  ;;  %v1686_v47 = vcombine.low %v94_v26, %v98_v27  ;;  %v111_v56 = vld [vmem:[%s2666_s0 + $0x1c8] sm:$0xff]  ;;  %v1666_v26 = vcombine.low %v72_v14, %v76_v15 }
  0x20   :  { %1791 = vmatpush3.bf16.msra.mxu0 %v2062_v30  ;;  %v99_v30 = vld [vmem:[%s2666_s0 + $0x168] sm:$0xff] }
  0x21   :  { %1855 = vmatpush3.bf16.msra.mxu1 %v2063_v31  ;;  %1904 = vmatprep.subr.bf16.mxu0 %v2064_v40  ;;  %v2085_v31 = vld [vmem:[%s2665_s1 + $0x128] sm:$0xff]   ;;  %v1689_v37 = vcombine.high %v95_v29, %v99_v30  ;;  %v2090_v40 = vld [vmem:[%s2665_s1 + $0x1f0] sm:$0xff]  }
  0x22   :  { %1968 = vmatprep.subr.bf16.mxu1 %v2066_v42  ;;  %v106_v42 = vld [vmem:[%s2666_s0 + $0x1a0] sm:$0xff]  ;;  %v115_v57 = vld [vmem:[%s2666_s0 + $0x1e8] sm:$0xff] }
  0x23   :  { %983 = vmatmul.mubr.bf16.vlgmr.msra.gmra.mrb[0].mxu0 %v1646_v35  ;;  %v1680_v35 = vcombine.low %v87_v16, %v91_v17  ;;  %v1704_v3 = vcombine.low %v111_v56, %v115_v57  ;;  %v73_v16 = vld [vmem:[%s2666_s0 + $0x98] sm:$0xff] }
  0x24   :  { %1080 = vmatmul.mubr.bf16.vlgmr.msra.gmra.mrb[0].mxu1 %v1648_v38  ;;  %1905 = vmatpush3.bf16.msra.mxu0 %v2065_v41  ;;  %v2088_v38 = vld [vmem:[%s2665_s1 + $0x170] sm:$0xff]   ;;  %v102_v41 = vld [vmem:[%s2666_s0 + $0x180] sm:$0xff]  ;;  %v77_v17 = vld [vmem:[%s2666_s0 + $0xb8] sm:$0xff] }
  0x25   :  { %1969 = vmatpush3.bf16.msra.mxu1 %v2067_v43  ;;  %990 = vmatprep.mubr.bf16.mxu0 %v1655_v46  ;;  %v2091_v43 = vld [vmem:[%s2665_s1 + $0x1b0] sm:$0xff]   ;;  %v2092_v46 = vld [vmem:[%s2665_s1 + $0x178] sm:$0xff]   ;;  %v1694_v58 = vcombine.low %v102_v41, %v106_v42  ;;  %v1668_v27 = vcombine.low %v73_v16, %v77_v17 }
  0x26   :  { %1087 = vmatprep.mubr.bf16.mxu1 %v1657_v49  ;;  %1906 = vmatprep.subr.bf16.mxu0 %v2068_v50  ;;  %v1688_v49 = vcombine.low %v95_v29, %v99_v30  ;;  %v1695_v50 = vcombine.high %v102_v41, %v106_v42  ;;  %v88_v30 = vld [vmem:[%s2666_s0 + $0x110] sm:$0xff]  ;;  %v101_v41 = vld [vmem:[%s2666_s0 + $0x178] sm:$0xff] }
  0x27   :  { %1970 = vmatprep.subr.bf16.mxu1 %v2070_v54  ;;  %v110_v54 = vld [vmem:[%s2666_s0 + $0x1c0] sm:$0xff] }
  0x28   :  { %1907 = vmatpush3.bf16.msra.mxu0 %v2069_v52  ;;  %v1697_v52 = vcombine.high %v103_v44, %v107_v45 }
  0x29   :  { %1971 = vmatpush3.bf16.msra.mxu1 %v2071_v55  ;;  %1908 = vmatprep.subr.bf16.mxu0 %v2072_v62  ;;  %v114_v55 = vld [vmem:[%s2666_s0 + $0x1e0] sm:$0xff]  ;;  %v56_v62 = vld [vmem:[%s2666_s0 + $0x10] sm:$0xff] }
  0x2a   :  { %1972 = vmatprep.subr.bf16.mxu1 %v2074_v0  ;;  %v57_v0 = vld [vmem:[%s2666_s0 + $0x18] sm:$0xff] }
  0x2b   :  { %991 = vmatmul.mubr.bf16.gmra.mrb[4].mxu0 %v1654_v51  ;;  %v2094_v51 = vld [vmem:[%s2665_s1 + $0x1f8] sm:$0xff]  }
  0x2c   :  { %1088 = vmatmul.mubr.bf16.gmra.mrb[4].mxu1 %v1656_v53  ;;  %998 = vmatprep.mubr.bf16.mxu0 %v1663_v60  ;;  %v2095_v53 = vld [vmem:[%s2665_s1 + $0x1b8] sm:$0xff]   ;;  %v1703_v60 = vcombine.high %v110_v54, %v114_v55 }
  0x2d   :  { %1095 = vmatprep.mubr.bf16.mxu1 %v1665_v61  ;;  %1909 = vmatpush3.bf16.msra.mxu0 %v2073_v63  ;;  %v1705_v61 = vcombine.high %v111_v56, %v115_v57  ;;  %v60_v63 = vld [vmem:[%s2666_s0 + $0x30] sm:$0xff]  ;;  %v113_v56 = vld [vmem:[%s2666_s0 + $0x1d8] sm:$0xff] }
  0x2e   :  { %1973 = vmatpush3.bf16.msra.mxu1 %v2075_v1  ;;  %1910 = vmatprep.subr.bf16.mxu0 %v2076_v10  ;;  %v61_v1 = vld [vmem:[%s2666_s0 + $0x38] sm:$0xff]  ;;  %v1651_v4 = vcombine.high %v56_v62, %v60_v63  ;;  %v1650_v10 = vcombine.low %v56_v62, %v60_v63 }
  0x2f   :  { %1974 = vmatprep.subr.bf16.mxu1 %v2078_v12  ;;  %v1653_v5 = vcombine.high %v57_v0, %v61_v1  ;;  %v117_v57 = vld [vmem:[%s2666_s0 + $0x1f8] sm:$0xff] }
  0x30   :  { %v1708_v63 = vcombine.low %v113_v56, %v117_v57 }
  0x31   :  { %1911 = vmatpush3.bf16.msra.mxu0 %v2077_v11  ;;  %v1652_v11 = vcombine.low %v57_v0, %v61_v1 }
  0x32   :  { %1975 = vmatpush3.bf16.msra.mxu1 %v2079_v13  ;;  %1912 = vmatprep.subr.bf16.mxu0 %v2080_v18 }
  0x33   :  { %999 = vmatmul.mubr.bf16.gmra.mrb[8].mxu0 %v1662_v2  ;;  %1976 = vmatprep.subr.bf16.mxu1 %v2082_v23  ;;  %v1702_v2 = vcombine.low %v110_v54, %v114_v55  ;;  %v84_v23 = vld [vmem:[%s2666_s0 + $0xf0] sm:$0xff] }
  0x34   :  { %1096 = vmatmul.mubr.bf16.gmra.mrb[8].mxu1 %v1664_v6  ;;  %1006 = vmatprep.mubr.bf16.mxu0 %v1671_v7  ;;  %v64_v6 = vld [vmem:[%s2666_s0 + $0x50] sm:$0xff] }
  0x35   :  { %1103 = vmatprep.mubr.bf16.mxu1 %v1673_v9  ;;  %1913 = vmatpush3.bf16.msra.mxu0 %v2081_v20  ;;  %v68_v7 = vld [vmem:[%s2666_s0 + $0x70] sm:$0xff]  ;;  %v69_v9 = vld [vmem:[%s2666_s0 + $0x78] sm:$0xff]  ;;  %v1667_v20 = vcombine.high %v72_v14, %v76_v15 }
  0x36   :  { %1977 = vmatpush3.bf16.msra.mxu1 %v2083_v25  ;;  %1914 = vmatprep.subr.bf16.mxu0 %v2084_v28  ;;  %v1659_v12 = vcombine.high %v64_v6, %v68_v7  ;;  %v1661_v13 = vcombine.high %v65_v8, %v69_v9  ;;  %v1658_v18 = vcombine.low %v64_v6, %v68_v7  ;;  %v85_v25 = vld [vmem:[%s2666_s0 + $0xf8] sm:$0xff]  ;;  %v112_v54 = vld [vmem:[%s2666_s0 + $0x1d0] sm:$0xff] }
  0x37   :  { %1978 = vmatprep.subr.bf16.mxu1 %v2086_v32  ;;  %v89_v32 = vld [vmem:[%s2666_s0 + $0x118] sm:$0xff]  ;;  %v116_v55 = vld [vmem:[%s2666_s0 + $0x1f0] sm:$0xff] }
  0x38   :  { %v1706_v62 = vcombine.low %v112_v54, %v116_v55 }
  0x39   :  { %1915 = vmatpush3.bf16.msra.mxu0 %v2085_v31  ;;  %v92_v31 = vld [vmem:[%s2666_s0 + $0x130] sm:$0xff] }
  0x3a   :  { %1979 = vmatpush3.bf16.msra.mxu1 %v2087_v33  ;;  %1916 = vmatprep.subr.bf16.mxu0 %v2088_v38  ;;  %v93_v33 = vld [vmem:[%s2666_s0 + $0x138] sm:$0xff]  ;;  %v96_v38 = vld [vmem:[%s2666_s0 + $0x150] sm:$0xff]  ;;  %v1682_v42 = vcombine.low %v88_v30, %v92_v31 }
  0x3b   :  { %1007 = vmatmul.mubr.bf16.gmra.mrb[12].mxu0 %v1670_v19  ;;  %1980 = vmatprep.subr.bf16.mxu1 %v2090_v40  ;;  %v1660_v19 = vcombine.low %v65_v8, %v69_v9  ;;  %v97_v40 = vld [vmem:[%s2666_s0 + $0x158] sm:$0xff] }
  0x3c   :  { %1104 = vmatmul.mubr.bf16.gmra.mrb[12].mxu1 %v1672_v21  ;;  %1014 = vmatprep.mubr.bf16.mxu0 %v1679_v22  ;;  %v1669_v21 = vcombine.high %v73_v16, %v77_v17  ;;  %v80_v22 = vld [vmem:[%s2666_s0 + $0xd0] sm:$0xff]  ;;  %v1693_v45 = vcombine.high %v97_v40, %v101_v41 }
  0x3d   :  { %1111 = vmatprep.mubr.bf16.mxu1 %v1681_v24  ;;  %1917 = vmatpush3.bf16.msra.mxu0 %v2089_v39  ;;  %v81_v24 = vld [vmem:[%s2666_s0 + $0xd8] sm:$0xff]  ;;  %v1675_v28 = vcombine.high %v80_v22, %v84_v23  ;;  %v100_v39 = vld [vmem:[%s2666_s0 + $0x170] sm:$0xff] }
  0x3e   :  { %1981 = vmatpush3.bf16.msra.mxu1 %v2091_v43  ;;  %1918 = vmatprep.subr.bf16.mxu0 %v2092_v46  ;;  %v1677_v29 = vcombine.high %v81_v24, %v85_v25  ;;  %v1684_v43 = vcombine.low %v89_v32, %v93_v33  ;;  %v1691_v44 = vcombine.high %v96_v38, %v100_v39  ;;  %v104_v46 = vld [vmem:[%s2666_s0 + $0x190] sm:$0xff] }
  0x3f   :  { %1982 = vmatprep.subr.bf16.mxu1 %v2094_v51  ;;  %v1692_v51 = vcombine.low %v97_v40, %v101_v41 }
  0x41   :  { %1919 = vmatpush3.bf16.msra.mxu0 %v2093_v48  ;;  %v105_v48 = vld [vmem:[%s2666_s0 + $0x198] sm:$0xff] }
  0x42   :  { %1983 = vmatpush3.bf16.msra.mxu1 %v2095_v53 }
  0x43   :  { %1015 = vmatmul.mubr.bf16.gmra.mrb[16].mxu0 %v1678_v34  ;;  %v1674_v34 = vcombine.low %v80_v22, %v84_v23 }
  0x44   :  { %1112 = vmatmul.mubr.bf16.gmra.mrb[16].mxu1 %v1680_v35  ;;  %1022 = vmatprep.mubr.bf16.mxu0 %v1687_v36  ;;  %v1676_v35 = vcombine.low %v81_v24, %v85_v25  ;;  %v1683_v36 = vcombine.high %v88_v30, %v92_v31 }
  0x45   :  { %1119 = vmatprep.mubr.bf16.mxu1 %v1689_v37  ;;  %v1685_v37 = vcombine.high %v89_v32, %v93_v33 }
  0x4b   :  { %1023 = vmatmul.mubr.bf16.gmra.mrb[20].mxu0 %v1686_v47  ;;  %v108_v47 = vld [vmem:[%s2666_s0 + $0x1b0] sm:$0xff] }
  0x4c   :  { %1120 = vmatmul.mubr.bf16.gmra.mrb[20].mxu1 %v1688_v49  ;;  %1030 = vmatprep.mubr.bf16.mxu0 %v1695_v50  ;;  %v109_v49 = vld [vmem:[%s2666_s0 + $0x1b8] sm:$0xff]  ;;  %v1690_v50 = vcombine.low %v96_v38, %v100_v39 }
  0x4d   :  { %1127 = vmatprep.mubr.bf16.mxu1 %v1697_v52  ;;  %v1699_v52 = vcombine.high %v104_v46, %v108_v47  ;;  %v1701_v53 = vcombine.high %v105_v48, %v109_v49 }
  0x53   :  { %1031 = vmatmul.mubr.bf16.gmra.mrb[24].mxu0 %v1694_v58  ;;  %v1698_v58 = vcombine.low %v104_v46, %v108_v47 }
  0x54   :  { %1128 = vmatmul.mubr.bf16.gmra.mrb[24].mxu1 %v1696_v59  ;;  %1038 = vmatprep.mubr.bf16.mxu0 %v1703_v60  ;;  %v1700_v59 = vcombine.low %v105_v48, %v109_v49  ;;  %v1707_v60 = vcombine.high %v112_v54, %v116_v55 }
  0x55   :  { %1135 = vmatprep.mubr.bf16.mxu1 %v1705_v61  ;;  %v1709_v61 = vcombine.high %v113_v56, %v117_v57 }
  0x5b   :  { %1039 = vmatmul.mubr.bf16.gmra.mrb[28].mxu0 %v1702_v2 }
  0x5c   :  { %1136 = vmatmul.mubr.bf16.gmra.mrb[28].mxu1 %v1704_v3  ;;  %1176 = vmatprep.mubr.bf16.mxu0 %v1651_v4 }
  0x5d   :  { %1273 = vmatprep.mubr.bf16.mxu1 %v1653_v5 }
  0x63   :  { %1177 = vmatmul.mubr.bf16.vlgmr.msra.gmra.mrb[32].mxu0 %v1650_v10 }
  0x64   :  { %1274 = vmatmul.mubr.bf16.vlgmr.msra.gmra.mrb[32].mxu1 %v1652_v11  ;;  %1184 = vmatprep.mubr.bf16.mxu0 %v1659_v12 }
  0x65   :  { %1281 = vmatprep.mubr.bf16.mxu1 %v1661_v13 }
  0x6b   :  { %1185 = vmatmul.mubr.bf16.gmra.mrb[36].mxu0 %v1658_v18 }
  0x6c   :  { %1282 = vmatmul.mubr.bf16.gmra.mrb[36].mxu1 %v1660_v19  ;;  %1192 = vmatprep.mubr.bf16.mxu0 %v1667_v20 }
  0x6d   :  { %1289 = vmatprep.mubr.bf16.mxu1 %v1669_v21 }
  0x73   :  { %1193 = vmatmul.mubr.bf16.gmra.mrb[40].mxu0 %v1666_v26 }
  0x74   :  { %1290 = vmatmul.mubr.bf16.gmra.mrb[40].mxu1 %v1668_v27  ;;  %1200 = vmatprep.mubr.bf16.mxu0 %v1675_v28 }
  0x75   :  { %1297 = vmatprep.mubr.bf16.mxu1 %v1677_v29 }
  0x7b   :  { %1201 = vmatmul.mubr.bf16.gmra.mrb[44].mxu0 %v1674_v34 }
  0x7c   :  { %1298 = vmatmul.mubr.bf16.gmra.mrb[44].mxu1 %v1676_v35  ;;  %1208 = vmatprep.mubr.bf16.mxu0 %v1683_v36 }
  0x7d   :  { %1305 = vmatprep.mubr.bf16.mxu1 %v1685_v37 }
  0x83   :  { %1209 = vmatmul.mubr.bf16.gmra.mrb[48].mxu0 %v1682_v42 }
  0x84   :  { %1306 = vmatmul.mubr.bf16.gmra.mrb[48].mxu1 %v1684_v43  ;;  %1216 = vmatprep.mubr.bf16.mxu0 %v1691_v44 }
  0x85   :  { %1313 = vmatprep.mubr.bf16.mxu1 %v1693_v45 }
  0x8b   :  { %1217 = vmatmul.mubr.bf16.gmra.mrb[52].mxu0 %v1690_v50 }
  0x8c   :  { %1314 = vmatmul.mubr.bf16.gmra.mrb[52].mxu1 %v1692_v51  ;;  %1224 = vmatprep.mubr.bf16.mxu0 %v1699_v52 }
  0x8d   :  { %1321 = vmatprep.mubr.bf16.mxu1 %v1701_v53 }
  0x93   :  { %1225 = vmatmul.mubr.bf16.gmra.mrb[56].mxu0 %v1698_v58 }
  0x94   :  { %1322 = vmatmul.mubr.bf16.gmra.mrb[56].mxu1 %v1700_v59  ;;  %1232 = vmatprep.mubr.bf16.mxu0 %v1707_v60 }
  0x95   :  { %1329 = vmatprep.mubr.bf16.mxu1 %v1709_v61 }
  0x9b   :  { %1233 = vmatmul.mubr.bf16.gmra.mrb[60].mxu0 %v1706_v62 }
  0x9c   :  { %1330 = vmatmul.mubr.bf16.gmra.mrb[60].mxu1 %v1708_v63 }
  0xf6   :  { %v1792_v0 = vpop.f32.mrb[0].mxu0 }
  0xf7   :  { %v1856_v1 = vpop.f32.mrb[0].mxu1  ;;  %v1793_v2 = vpop.f32.mrb[1].mxu0 }
  0xf8   :  { %v1794_v3 = vadd.f32 %v1793_v2, %v1792_v0  ;;  %v1857_v4 = vpop.f32.mrb[1].mxu1  ;;  %v1795_v5 = vpop.f32.mrb[2].mxu0 }
  0xf9   :  { %v1858_v6 = vadd.f32 %v1857_v4, %v1856_v1  ;;  %v1859_v7 = vpop.f32.mrb[2].mxu1  ;;  %v1796_v8 = vpop.f32.mrb[3].mxu0 }
  0xfa   :  { %v1797_v9 = vadd.f32 %v1796_v8, %v1795_v5  ;;  %v1860_v10 = vpop.f32.mrb[3].mxu1 }
  0xfb   :  { %v2507_v11 = vadd.f32 %v1858_v6, %v1794_v3  ;;  %v1861_v12 = vadd.f32 %v1860_v10, %v1859_v7 }
  0xfd   :  { %v2509_v13 = vadd.f32 %v1861_v12, %v1797_v9 }
  0xfe   :  { %v1798_v14 = vpop.f32.mrb[4].mxu0 }
  0xff   :  { %v1862_v15 = vpop.f32.mrb[4].mxu1  ;;  %v1799_v16 = vpop.f32.mrb[5].mxu0 }
 0x100   :  { %v1800_v17 = vadd.f32 %v1799_v16, %v1798_v14  ;;  %v1863_v18 = vpop.f32.mrb[5].mxu1  ;;  %v1801_v19 = vpop.f32.mrb[6].mxu0 }
 0x101   :  { %v1864_v20 = vadd.f32 %v1863_v18, %v1862_v15  ;;  %v1865_v21 = vpop.f32.mrb[6].mxu1  ;;  %v1802_v22 = vpop.f32.mrb[7].mxu0 }
 0x102   :  { %v1803_v23 = vadd.f32 %v1802_v22, %v1801_v19  ;;  %v1866_v24 = vpop.f32.mrb[7].mxu1 }
 0x103   :  { %v2511_v25 = vadd.f32 %v1864_v20, %v1800_v17  ;;  %v1867_v26 = vadd.f32 %v1866_v24, %v1865_v21 }
 0x105   :  { %v2513_v27 = vadd.f32 %v1867_v26, %v1803_v23 }
 0x106   :  { %v1804_v28 = vpop.f32.mrb[8].mxu0 }
 0x107   :  { %v1868_v29 = vpop.f32.mrb[8].mxu1  ;;  %v1805_v30 = vpop.f32.mrb[9].mxu0 }
 0x108   :  { %v1806_v31 = vadd.f32 %v1805_v30, %v1804_v28  ;;  %v1869_v32 = vpop.f32.mrb[9].mxu1  ;;  %v1807_v33 = vpop.f32.mrb[10].mxu0 }
 0x109   :  { %v1870_v34 = vadd.f32 %v1869_v32, %v1868_v29  ;;  %v1871_v35 = vpop.f32.mrb[10].mxu1  ;;  %v1808_v36 = vpop.f32.mrb[11].mxu0 }
 0x10a   :  { %v1809_v37 = vadd.f32 %v1808_v36, %v1807_v33  ;;  %v1872_v38 = vpop.f32.mrb[11].mxu1 }
 0x10b   :  { %v2515_v39 = vadd.f32 %v1870_v34, %v1806_v31  ;;  %v1873_v40 = vadd.f32 %v1872_v38, %v1871_v35 }
 0x10d   :  { %v2517_v41 = vadd.f32 %v1873_v40, %v1809_v37 }
 0x10e   :  { %v1810_v42 = vpop.f32.mrb[12].mxu0 }
 0x10f   :  { %v1874_v43 = vpop.f32.mrb[12].mxu1  ;;  %v1811_v44 = vpop.f32.mrb[13].mxu0 }
 0x110   :  { %v1812_v45 = vadd.f32 %v1811_v44, %v1810_v42  ;;  %v1875_v46 = vpop.f32.mrb[13].mxu1  ;;  %v1813_v47 = vpop.f32.mrb[14].mxu0 }
 0x111   :  { %v1876_v48 = vadd.f32 %v1875_v46, %v1874_v43  ;;  %v1877_v49 = vpop.f32.mrb[14].mxu1  ;;  %v1814_v50 = vpop.f32.mrb[15].mxu0 }
 0x112   :  { %v1815_v51 = vadd.f32 %v1814_v50, %v1813_v47  ;;  %v1878_v52 = vpop.f32.mrb[15].mxu1 }
 0x113   :  { %v2519_v53 = vadd.f32 %v1876_v48, %v1812_v45  ;;  %v1879_v54 = vadd.f32 %v1878_v52, %v1877_v49 }
 0x115   :  { %v2521_v55 = vadd.f32 %v1879_v54, %v1815_v51 }
 0x116   :  { %v1816_v56 = vpop.f32.mrb[16].mxu0 }
 0x117   :  { %v1880_v57 = vpop.f32.mrb[16].mxu1  ;;  %v1817_v58 = vpop.f32.mrb[17].mxu0 }
 0x118   :  { %v1818_v59 = vadd.f32 %v1817_v58, %v1816_v56  ;;  %v1881_v60 = vpop.f32.mrb[17].mxu1  ;;  %v1819_v61 = vpop.f32.mrb[18].mxu0 }
 0x119   :  { %v1882_v62 = vadd.f32 %v1881_v60, %v1880_v57  ;;  %v1883_v63 = vpop.f32.mrb[18].mxu1  ;;  %v1820_v0 = vpop.f32.mrb[19].mxu0 }
 0x11a   :  { %v1821_v1 = vadd.f32 %v1820_v0, %v1819_v61  ;;  %v1884_v2 = vpop.f32.mrb[19].mxu1 }
 0x11b   :  { %v2523_v3 = vadd.f32 %v1882_v62, %v1818_v59  ;;  %v1885_v4 = vadd.f32 %v1884_v2, %v1883_v63 }
 0x11d   :  { %v2525_v5 = vadd.f32 %v1885_v4, %v1821_v1 }
 0x11e   :  { %v1822_v6 = vpop.f32.mrb[20].mxu0 }
 0x11f   :  { %v1886_v7 = vpop.f32.mrb[20].mxu1  ;;  %v1823_v8 = vpop.f32.mrb[21].mxu0 }
 0x120   :  { %v1824_v9 = vadd.f32 %v1823_v8, %v1822_v6  ;;  %v1887_v10 = vpop.f32.mrb[21].mxu1  ;;  %v1825_v12 = vpop.f32.mrb[22].mxu0 }
 0x121   :  { %v1888_v14 = vadd.f32 %v1887_v10, %v1886_v7  ;;  %v1889_v15 = vpop.f32.mrb[22].mxu1  ;;  %v1826_v16 = vpop.f32.mrb[23].mxu0 }
 0x122   :  { %v1827_v17 = vadd.f32 %v1826_v16, %v1825_v12  ;;  %v1890_v18 = vpop.f32.mrb[23].mxu1 }
 0x123   :  { %v2527_v19 = vadd.f32 %v1888_v14, %v1824_v9  ;;  %v1891_v20 = vadd.f32 %v1890_v18, %v1889_v15 }
 0x125   :  { %v2529_v21 = vadd.f32 %v1891_v20, %v1827_v17 }
 0x126   :  { %v1828_v22 = vpop.f32.mrb[24].mxu0 }
 0x127   :  { %v1892_v23 = vpop.f32.mrb[24].mxu1  ;;  %v1829_v24 = vpop.f32.mrb[25].mxu0 }
 0x128   :  { %v1830_v26 = vadd.f32 %v1829_v24, %v1828_v22  ;;  %v1893_v28 = vpop.f32.mrb[25].mxu1  ;;  %v1831_v29 = vpop.f32.mrb[26].mxu0 }
 0x129   :  { %v1894_v30 = vadd.f32 %v1893_v28, %v1892_v23  ;;  %v1895_v31 = vpop.f32.mrb[26].mxu1  ;;  %v1832_v32 = vpop.f32.mrb[27].mxu0 }
 0x12a   :  { %v1833_v33 = vadd.f32 %v1832_v32, %v1831_v29  ;;  %v1896_v34 = vpop.f32.mrb[27].mxu1 }
 0x12b   :  { %v2531_v35 = vadd.f32 %v1894_v30, %v1830_v26  ;;  %v1897_v36 = vadd.f32 %v1896_v34, %v1895_v31 }
 0x12d   :  { %v2533_v37 = vadd.f32 %v1897_v36, %v1833_v33 }
 0x12e   :  { %v1834_v38 = vpop.f32.mrb[28].mxu0 }
 0x12f   :  { %v1898_v40 = vpop.f32.mrb[28].mxu1  ;;  %v1835_v42 = vpop.f32.mrb[29].mxu0 }
 0x130   :  { %v1836_v43 = vadd.f32 %v1835_v42, %v1834_v38  ;;  %v1899_v44 = vpop.f32.mrb[29].mxu1  ;;  %v1837_v45 = vpop.f32.mrb[30].mxu0 }
 0x131   :  { %v1900_v46 = vadd.f32 %v1899_v44, %v1898_v40  ;;  %v1901_v47 = vpop.f32.mrb[30].mxu1  ;;  %v1838_v48 = vpop.f32.mrb[31].mxu0 }
 0x132   :  { %v1839_v49 = vadd.f32 %v1838_v48, %v1837_v45  ;;  %v1902_v50 = vpop.f32.mrb[31].mxu1 }
 0x133   :  { %v2535_v51 = vadd.f32 %v1900_v46, %v1836_v43  ;;  %v1903_v52 = vadd.f32 %v1902_v50, %v1901_v47 }
 0x135   :  { %v2537_v54 = vadd.f32 %v1903_v52, %v1839_v49 }
 0x136   :  { %v1920_v56 = vpop.f32.mrb[32].mxu0 }
 0x137   :  { %v1984_v57 = vpop.f32.mrb[32].mxu1  ;;  %v1921_v58 = vpop.f32.mrb[33].mxu0 }
 0x138   :  { %v1922_v59 = vadd.f32 %v1921_v58, %v1920_v56  ;;  %v1985_v60 = vpop.f32.mrb[33].mxu1  ;;  %v1923_v61 = vpop.f32.mrb[34].mxu0 }
 0x139   :  { %v1986_v62 = vadd.f32 %v1985_v60, %v1984_v57  ;;  %v1987_v63 = vpop.f32.mrb[34].mxu1  ;;  %v1924_v0 = vpop.f32.mrb[35].mxu0 }
 0x13a   :  { %v1179_v1 = vadd.f32 %v1922_v59, %v2507_v11  ;;  %v1925_v2 = vadd.f32 %v1924_v0, %v1923_v61  ;;  %v1988_v4 = vpop.f32.mrb[35].mxu1 }
 0x13b   :  { %v1989_v6 = vadd.f32 %v1988_v4, %v1987_v63 }
 0x13c   :  { %v2540_v7 = vadd.f32 %v1986_v62, %v1179_v1  ;;  %v1182_v8 = vadd.f32 %v1925_v2, %v2509_v13 }
 0x13e   :  { %v2543_v9 = vadd.f32 %v1989_v6, %v1182_v8  ;;  %v1926_v10 = vpop.f32.mrb[36].mxu0 }
 0x13f   :  { %v1990_v12 = vpop.f32.mrb[36].mxu1  ;;  %v1927_v14 = vpop.f32.mrb[37].mxu0 }
 0x140   :  { %v1389_v15 = vadd.f32 %v2543_v9, %v2540_v7  ;;  %v1928_v16 = vadd.f32 %v1927_v14, %v1926_v10  ;;  %v1991_v17 = vpop.f32.mrb[37].mxu1  ;;  %v1929_v18 = vpop.f32.mrb[38].mxu0 }
 0x141   :  { %v1992_v20 = vadd.f32 %v1991_v17, %v1990_v12  ;;  %v1993_v11 = vpop.f32.mrb[38].mxu1  ;;  %v1930_v22 = vpop.f32.mrb[39].mxu0 }
 0x142   :  { %v1187_v23 = vadd.f32 %v1928_v16, %v2511_v25  ;;  %v1931_v24 = vadd.f32 %v1930_v22, %v1929_v18  ;;  %v1994_v26 = vpop.f32.mrb[39].mxu1 }
 0x143   :  { %v1995_v28 = vadd.f32 %v1994_v26, %v1993_v11 }
 0x144   :  { %v2548_v13 = vadd.f32 %v1992_v20, %v1187_v23  ;;  %v1190_v29 = vadd.f32 %v1931_v24, %v2513_v27 }
 0x146   :  { %v1390_v30 = vadd.f32 %v1389_v15, %v2548_v13  ;;  %v2552_v31 = vadd.f32 %v1995_v28, %v1190_v29  ;;  %v1932_v32 = vpop.f32.mrb[40].mxu0 }
 0x147   :  { %v1996_v33 = vpop.f32.mrb[40].mxu1  ;;  %v1933_v34 = vpop.f32.mrb[41].mxu0 }
 0x148   :  { %v1391_v36 = vadd.f32 %v1390_v30, %v2552_v31  ;;  %v1934_v38 = vadd.f32 %v1933_v34, %v1932_v32  ;;  %v1997_v40 = vpop.f32.mrb[41].mxu1  ;;  %v1935_v42 = vpop.f32.mrb[42].mxu0 }
 0x149   :  { %v1998_v25 = vadd.f32 %v1997_v40, %v1996_v33  ;;  %v1999_v43 = vpop.f32.mrb[42].mxu1  ;;  %v1936_v44 = vpop.f32.mrb[43].mxu0 }
 0x14a   :  { %v1195_v45 = vadd.f32 %v1934_v38, %v2515_v39  ;;  %v1937_v46 = vadd.f32 %v1936_v44, %v1935_v42  ;;  %v2000_v47 = vpop.f32.mrb[43].mxu1 }
 0x14b   :  { %v2001_v27 = vadd.f32 %v2000_v47, %v1999_v43 }
 0x14c   :  { %v2556_v48 = vadd.f32 %v1998_v25, %v1195_v45  ;;  %v1198_v49 = vadd.f32 %v1937_v46, %v2517_v41 }
 0x14e   :  { %v1392_v50 = vadd.f32 %v1391_v36, %v2556_v48  ;;  %v2560_v52 = vadd.f32 %v2001_v27, %v1198_v49  ;;  %v1938_v56 = vpop.f32.mrb[44].mxu0 }
 0x14f   :  { %v2002_v57 = vpop.f32.mrb[44].mxu1  ;;  %v1939_v58 = vpop.f32.mrb[45].mxu0 }
 0x150   :  { %v1393_v59 = vadd.f32 %v1392_v50, %v2560_v52  ;;  %v1940_v60 = vadd.f32 %v1939_v58, %v1938_v56  ;;  %v2003_v61 = vpop.f32.mrb[45].mxu1  ;;  %v1941_v62 = vpop.f32.mrb[46].mxu0 }
 0x151   :  { %v2004_v39 = vadd.f32 %v2003_v61, %v2002_v57  ;;  %v2005_v63 = vpop.f32.mrb[46].mxu1  ;;  %v1942_v0 = vpop.f32.mrb[47].mxu0 }
 0x152   :  { %v1203_v1 = vadd.f32 %v1940_v60, %v2519_v53  ;;  %v1943_v2 = vadd.f32 %v1942_v0, %v1941_v62  ;;  %v2006_v4 = vpop.f32.mrb[47].mxu1 }
 0x153   :  { %v2007_v41 = vadd.f32 %v2006_v4, %v2005_v63 }
 0x154   :  { %v2564_v6 = vadd.f32 %v2004_v39, %v1203_v1  ;;  %v1206_v8 = vadd.f32 %v1943_v2, %v2521_v55 }
 0x156   :  { %v1394_v10 = vadd.f32 %v1393_v59, %v2564_v6  ;;  %v2568_v12 = vadd.f32 %v2007_v41, %v1206_v8  ;;  %v1944_v14 = vpop.f32.mrb[48].mxu0 }
 0x157   :  { %v2008_v15 = vpop.f32.mrb[48].mxu1  ;;  %v1945_v16 = vpop.f32.mrb[49].mxu0 }
 0x158   :  { %v1395_v17 = vadd.f32 %v1394_v10, %v2568_v12  ;;  %v1946_v18 = vadd.f32 %v1945_v16, %v1944_v14  ;;  %v2009_v20 = vpop.f32.mrb[49].mxu1  ;;  %v1947_v11 = vpop.f32.mrb[50].mxu0 }
 0x159   :  { %v2010_v53 = vadd.f32 %v2009_v20, %v2008_v15  ;;  %v2011_v22 = vpop.f32.mrb[50].mxu1  ;;  %v1948_v23 = vpop.f32.mrb[51].mxu0 }
 0x15a   :  { %v1211_v24 = vadd.f32 %v1946_v18, %v2523_v3  ;;  %v1949_v26 = vadd.f32 %v1948_v23, %v1947_v11  ;;  %v2012_v28 = vpop.f32.mrb[51].mxu1 }
 0x15b   :  { %v2013_v55 = vadd.f32 %v2012_v28, %v2011_v22 }
 0x15c   :  { %v2572_v29 = vadd.f32 %v2010_v53, %v1211_v24  ;;  %v1214_v30 = vadd.f32 %v1949_v26, %v2525_v5 }
 0x15e   :  { %v1396_v32 = vadd.f32 %v1395_v17, %v2572_v29  ;;  %v2576_v33 = vadd.f32 %v2013_v55, %v1214_v30  ;;  %v1950_v34 = vpop.f32.mrb[52].mxu0 }
 0x15f   :  { %v2014_v36 = vpop.f32.mrb[52].mxu1  ;;  %v1951_v38 = vpop.f32.mrb[53].mxu0 }
 0x160   :  { %v1397_v40 = vadd.f32 %v1396_v32, %v2576_v33  ;;  %v1952_v42 = vadd.f32 %v1951_v38, %v1950_v34  ;;  %v2015_v25 = vpop.f32.mrb[53].mxu1  ;;  %v1953_v43 = vpop.f32.mrb[54].mxu0 }
 0x161   :  { %v2016_v3 = vadd.f32 %v2015_v25, %v2014_v36  ;;  %v2017_v44 = vpop.f32.mrb[54].mxu1  ;;  %v1954_v45 = vpop.f32.mrb[55].mxu0 }
 0x162   :  { %v1219_v46 = vadd.f32 %v1952_v42, %v2527_v19  ;;  %v1955_v47 = vadd.f32 %v1954_v45, %v1953_v43  ;;  %v2018_v27 = vpop.f32.mrb[55].mxu1 }
 0x163   :  { %v2019_v5 = vadd.f32 %v2018_v27, %v2017_v44 }
 0x164   :  { %v1316_v49 = vadd.f32 %v2016_v3, %v1219_v46  ;;  %v1222_v50 = vadd.f32 %v1955_v47, %v2529_v21 }
 0x166   :  { %v1398_v56 = vadd.f32 %v1397_v40, %v1316_v49  ;;  %v1319_v57 = vadd.f32 %v2019_v5, %v1222_v50  ;;  %v1956_v58 = vpop.f32.mrb[56].mxu0 }
 0x167   :  { %v2020_v59 = vpop.f32.mrb[56].mxu1  ;;  %v1957_v60 = vpop.f32.mrb[57].mxu0 }
 0x168   :  { %v1399_v61 = vadd.f32 %v1398_v56, %v1319_v57  ;;  %v1958_v62 = vadd.f32 %v1957_v60, %v1956_v58  ;;  %v2021_v39 = vpop.f32.mrb[57].mxu1  ;;  %v1959_v63 = vpop.f32.mrb[58].mxu0 }
 0x169   :  { %v2022_v0 = vadd.f32 %v2021_v39, %v2020_v59  ;;  %v2023_v1 = vpop.f32.mrb[58].mxu1  ;;  %v1960_v2 = vpop.f32.mrb[59].mxu0 }
 0x16a   :  { %v1227_v19 = vadd.f32 %v1958_v62, %v2531_v35  ;;  %v1961_v4 = vadd.f32 %v1960_v2, %v1959_v63  ;;  %v2024_v41 = vpop.f32.mrb[59].mxu1 }
 0x16b   :  { %v2025_v8 = vadd.f32 %v2024_v41, %v2023_v1 }
 0x16c   :  { %v1324_v10 = vadd.f32 %v2022_v0, %v1227_v19  ;;  %v1230_v21 = vadd.f32 %v1961_v4, %v2533_v37 }
 0x16e   :  { %v1400_v14 = vadd.f32 %v1399_v61, %v1324_v10  ;;  %v1327_v15 = vadd.f32 %v2025_v8, %v1230_v21  ;;  %v1962_v16 = vpop.f32.mrb[60].mxu0 }
 0x16f   :  { %v2026_v17 = vpop.f32.mrb[60].mxu1  ;;  %v1963_v18 = vpop.f32.mrb[61].mxu0 }
 0x170   :  { %v1401_v20 = vadd.f32 %v1400_v14, %v1327_v15  ;;  %v1964_v11 = vadd.f32 %v1963_v18, %v1962_v16  ;;  %v2027_v53 = vpop.f32.mrb[61].mxu1  ;;  %v1965_v22 = vpop.f32.mrb[62].mxu0 }
 0x171   :  { %v2028_v23 = vadd.f32 %v2027_v53, %v2026_v17  ;;  %v2029_v24 = vpop.f32.mrb[62].mxu1  ;;  %v1966_v26 = vpop.f32.mrb[63].mxu0 }
 0x172   :  { %v1235_v35 = vadd.f32 %v1964_v11, %v2535_v51  ;;  %v1967_v28 = vadd.f32 %v1966_v26, %v1965_v22  ;;  %v2030_v55 = vpop.f32.mrb[63].mxu1 }
 0x173   :  { %v2031_v30 = vadd.f32 %v2030_v55, %v2029_v24 }
 0x174   :  { %v1332_v32 = vadd.f32 %v2028_v23, %v1235_v35  ;;  %v1238_v37 = vadd.f32 %v1967_v28, %v2537_v54 }
 0x176   :  { %v1402_v34 = vadd.f32 %v1401_v20, %v1332_v32  ;;  %v1335_v36 = vadd.f32 %v2031_v30, %v1238_v37 }
 0x178   :  { %v1403_v38 = vadd.f32 %v1402_v34, %v1335_v36 }
 0x17a   :  { %v1404_v40 = vrot.slane %v1403_v38, 4 }
 0x17c   :  { %v1405_v42 = vadd.f32 %v1404_v40, %v1403_v38 }
 0x17e   :  { %v1406_v25 = vrot.slane %v1405_v42, 2 }
 0x180   :  { %v1407_v43 = vadd.f32 %v1406_v25, %v1405_v42 }
 0x182   :  { %v1408_v3 = vrot.slane %v1407_v43, 1 }
 0x184   :  { %v1409_v44 = vadd.f32 %v1408_v3, %v1407_v43 }
 0x186   :  { %v1410_v45 = vmul.f32 0.0078125, %v1409_v44 }
 0x188   :  { %v1444_v46 = vsub.f32 %v2540_v7, %v1410_v45  ;;  %v1445_v51 = vsub.f32 %v2543_v9, %v1410_v45  ;;  %v1446_v47 = vsub.f32 %v2548_v13, %v1410_v45  ;;  %v1447_v27 = vsub.f32 %v2552_v31, %v1410_v45 }
 0x189   :  { %v1448_v54 = vsub.f32 %v2556_v48, %v1410_v45  ;;  %v1449_v5 = vsub.f32 %v2560_v52, %v1410_v45  ;;  %v1450_v50 = vsub.f32 %v2564_v6, %v1410_v45  ;;  %v1451_v56 = vsub.f32 %v2568_v12, %v1410_v45 }
 0x18a   :  { %v1452_v58 = vsub.f32 %v2572_v29, %v1410_v45  ;;  %v1453_v59 = vsub.f32 %v2576_v33, %v1410_v45  ;;  %v1454_v60 = vsub.f32 %v1316_v49, %v1410_v45  ;;  %v1455_v7 = vsub.f32 %v1319_v57, %v1410_v45 }
 0x18b   :  { %v1456_v61 = vsub.f32 %v1324_v10, %v1410_v45  ;;  %v1457_v9 = vsub.f32 %v1327_v15, %v1410_v45  ;;  %v1458_v62 = vsub.f32 %v1332_v32, %v1410_v45  ;;  %v1459_v13 = vsub.f32 %v1335_v36, %v1410_v45 }
 0x18c   :  { %v1476_v39 = vmul.f32 %v1444_v46, %v1444_v46  ;;  %v1477_v31 = vmul.f32 %v1445_v51, %v1445_v51  ;;  %v1478_v63 = vmul.f32 %v1446_v47, %v1446_v47  ;;  %v1479_v0 = vmul.f32 %v1447_v27, %v1447_v27 }
 0x18d   :  { %v1480_v1 = vmul.f32 %v1448_v54, %v1448_v54  ;;  %v1481_v2 = vmul.f32 %v1449_v5, %v1449_v5  ;;  %v1482_v19 = vmul.f32 %v1450_v50, %v1450_v50  ;;  %v1483_v4 = vmul.f32 %v1451_v56, %v1451_v56 }
 0x18e   :  { %v1492_v48 = vadd.f32 %v1477_v31, %v1476_v39  ;;  %v1484_v49 = vmul.f32 %v1452_v58, %v1452_v58  ;;  %v1485_v41 = vmul.f32 %v1453_v59, %v1453_v59  ;;  %v1486_v10 = vmul.f32 %v1454_v60, %v1454_v60  ;;  %v1774_v39 = vld [vmem:[%s2667_s2] ss:$0 sm:$0xff] }
 0x18f   :  { %v1487_v14 = vmul.f32 %v1455_v7, %v1455_v7  ;;  %v1488_v16 = vmul.f32 %v1456_v61, %v1456_v61  ;;  %v1489_v18 = vmul.f32 %v1457_v9, %v1457_v9  ;;  %v1490_v11 = vmul.f32 %v1458_v62, %v1458_v62 }
 0x190   :  { %v1493_v52 = vadd.f32 %v1492_v48, %v1478_v63  ;;  %v1491_v22 = vmul.f32 %v1459_v13, %v1459_v13 }
 0x192   :  { %v1494_v6 = vadd.f32 %v1493_v52, %v1479_v0 }
 0x194   :  { %v1495_v12 = vadd.f32 %v1494_v6, %v1480_v1 }
 0x196   :  { %v1496_v29 = vadd.f32 %v1495_v12, %v1481_v2  ;;  %v1775_v12 = vld [vmem:[%s2668_s3] ss:$0 sm:$0xff] }
 0x198   :  { %v1497_v33 = vadd.f32 %v1496_v29, %v1482_v19 }
 0x19a   :  { %v1498_v57 = vadd.f32 %v1497_v33, %v1483_v4 }
 0x19c   :  { %v1499_v8 = vadd.f32 %v1498_v57, %v1484_v49 }
 0x19e   :  { %v1500_v21 = vadd.f32 %v1499_v8, %v1485_v41 }
 0x1a0   :  { %v1501_v15 = vadd.f32 %v1500_v21, %v1486_v10 }
 0x1a2   :  { %v1502_v17 = vadd.f32 %v1501_v15, %v1487_v14 }
 0x1a4   :  { %v1503_v20 = vadd.f32 %v1502_v17, %v1488_v16 }
 0x1a6   :  { %v1504_v53 = vadd.f32 %v1503_v20, %v1489_v18 }
 0x1a8   :  { %v1505_v23 = vadd.f32 %v1504_v53, %v1490_v11 }
 0x1aa   :  { %v1506_v24 = vadd.f32 %v1505_v23, %v1491_v22 }
 0x1ac   :  { %v1507_v26 = vrot.slane %v1506_v24, 4 }
 0x1ae   :  { %v1508_v35 = vadd.f32 %v1507_v26, %v1506_v24 }
 0x1b0   :  { %v1509_v28 = vrot.slane %v1508_v35, 2 }
 0x1b2   :  { %v1510_v55 = vadd.f32 %v1509_v28, %v1508_v35 }
 0x1b4   :  { %v1511_v30 = vrot.slane %v1510_v55, 1 }
 0x1b6   :  { %v1512_v32 = vadd.f32 %v1511_v30, %v1510_v55 }
 0x1b8   :  { %v1513_v37 = vmul.f32 0.0078125, %v1512_v32 }
 0x1ba   :  { %v1514_v34 = vadd.f32 1e-05, %v1513_v37 }
 0x1bc   :  { %2096 = vrsqrt.f32 %v1514_v34 }
 0x1c6   :  { %v2097_v36 = vpop.eup %2096 }
 0x1c7   :  { %v1516_v38 = vmul.f32 %v2097_v36, %v1444_v46  ;;  %v1517_v40 = vmul.f32 %v2097_v36, %v1445_v51  ;;  %v1518_v42 = vmul.f32 %v2097_v36, %v1446_v47  ;;  %v1519_v25 = vmul.f32 %v2097_v36, %v1447_v27 }
 0x1c8   :  { %v1520_v43 = vmul.f32 %v2097_v36, %v1448_v54  ;;  %v1521_v3 = vmul.f32 %v2097_v36, %v1449_v5  ;;  %v1522_v44 = vmul.f32 %v2097_v36, %v1450_v50  ;;  %v1523_v45 = vmul.f32 %v2097_v36, %v1451_v56 }
 0x1c9   :  { %v1524_v31 = vmul.f32 %v2097_v36, %v1452_v58  ;;  %v1525_v63 = vmul.f32 %v2097_v36, %v1453_v59  ;;  %v1526_v48 = vmul.f32 %v2097_v36, %v1454_v60  ;;  %v1527_v0 = vmul.f32 %v2097_v36, %v1455_v7 }
 0x1ca   :  { %v1528_v52 = vmul.f32 %v2097_v36, %v1456_v61  ;;  %v1529_v1 = vmul.f32 %v2097_v36, %v1457_v9  ;;  %v1530_v6 = vmul.f32 %v2097_v36, %v1458_v62  ;;  %v1531_v2 = vmul.f32 %v2097_v36, %v1459_v13 }
 0x1cb   :  { %v1539_v46 = vmul.f32 %v1774_v39, %v1516_v38  ;;  %v1540_v51 = vmul.f32 %v1774_v39, %v1517_v40  ;;  %v1541_v47 = vmul.f32 %v1774_v39, %v1518_v42  ;;  %v1542_v27 = vmul.f32 %v1774_v39, %v1519_v25 }
 0x1cc   :  { %v1543_v54 = vmul.f32 %v1774_v39, %v1520_v43  ;;  %v1544_v5 = vmul.f32 %v1774_v39, %v1521_v3  ;;  %v1545_v50 = vmul.f32 %v1774_v39, %v1522_v44  ;;  %v1546_v56 = vmul.f32 %v1774_v39, %v1523_v45 }
 0x1cd   :  { %v1547_v58 = vmul.f32 %v1774_v39, %v1524_v31  ;;  %v1548_v59 = vmul.f32 %v1774_v39, %v1525_v63  ;;  %v1549_v60 = vmul.f32 %v1774_v39, %v1526_v48  ;;  %v1550_v7 = vmul.f32 %v1774_v39, %v1527_v0 }
 0x1ce   :  { %v1551_v61 = vmul.f32 %v1774_v39, %v1528_v52  ;;  %v1552_v9 = vmul.f32 %v1774_v39, %v1529_v1  ;;  %v1553_v62 = vmul.f32 %v1774_v39, %v1530_v6  ;;  %v1554_v13 = vmul.f32 %v1774_v39, %v1531_v2 }
 0x1cf   :  { %v1562_v19 = vadd.f32 %v1775_v12, %v1539_v46  ;;  %v1563_v29 = vadd.f32 %v1775_v12, %v1540_v51  ;;  %v1564_v4 = vadd.f32 %v1775_v12, %v1541_v47  ;;  %v1565_v33 = vadd.f32 %v1775_v12, %v1542_v27 }
 0x1d0   :  { %v1566_v49 = vadd.f32 %v1775_v12, %v1543_v54  ;;  %v1567_v57 = vadd.f32 %v1775_v12, %v1544_v5  ;;  %v1568_v41 = vadd.f32 %v1775_v12, %v1545_v50  ;;  %v1569_v8 = vadd.f32 %v1775_v12, %v1546_v56 }
 0x1d1   :  { %v1570_v10 = vadd.f32 %v1775_v12, %v1547_v58  ;;  %v1571_v21 = vadd.f32 %v1775_v12, %v1548_v59  ;;  %v1572_v14 = vadd.f32 %v1775_v12, %v1549_v60  ;;  %v1573_v15 = vadd.f32 %v1775_v12, %v1550_v7 }
 0x1d2   :  { %v1574_v16 = vadd.f32 %v1775_v12, %v1551_v61  ;;  %v1575_v17 = vadd.f32 %v1775_v12, %v1552_v9  ;;  %v1576_v18 = vadd.f32 %v1775_v12, %v1553_v62  ;;  %v1577_v20 = vadd.f32 %v1775_v12, %v1554_v13 }
 0x1d3   :  { %vm1578_vm0 = vcmp.gt.f32.partialorder %v1562_v19, 0.0  ;;  %vm1579_vm1 = vcmp.gt.f32.partialorder %v1563_v29, 0.0  ;;  %vm1580_vm2 = vcmp.gt.f32.partialorder %v1564_v4, 0.0  ;;  %vm1581_vm3 = vcmp.gt.f32.partialorder %v1565_v33, 0.0 }
 0x1d4   :  { %vm1582_vm4 = vcmp.gt.f32.partialorder %v1566_v49, 0.0  ;;  %vm1583_vm5 = vcmp.gt.f32.partialorder %v1567_v57, 0.0  ;;  %vm1584_vm6 = vcmp.gt.f32.partialorder %v1568_v41, 0.0  ;;  %vm1585_vm7 = vcmp.gt.f32.partialorder %v1569_v8, 0.0 }
 0x1d5   :  { %vm1586_vm8 = vcmp.gt.f32.partialorder %v1570_v10, 0.0  ;;  %vm1587_vm9 = vcmp.gt.f32.partialorder %v1571_v21, 0.0  ;;  %vm1588_vm10 = vcmp.gt.f32.partialorder %v1572_v14, 0.0  ;;  %vm1589_vm11 = vcmp.gt.f32.partialorder %v1573_v15, 0.0 }
 0x1d6   :  { %vm1590_vm12 = vcmp.gt.f32.partialorder %v1574_v16, 0.0  ;;  %vm1591_vm13 = vcmp.gt.f32.partialorder %v1575_v17, 0.0  ;;  %vm1592_vm14 = vcmp.gt.f32.partialorder %v1576_v18, 0.0  ;;  %vm1593_vm15 = vcmp.gt.f32.partialorder %v1577_v20, 0.0 }
 0x1d7   :  { %v1594_v11 = vmul.f32 0.2, %v1562_v19  ;;  %v1595_v53 = vmul.f32 0.2, %v1563_v29  ;;  %v1596_v22 = vmul.f32 0.2, %v1564_v4 }
 0x1d8   :  { %v1597_v23 = vmul.f32 0.2, %v1565_v33  ;;  %v1598_v24 = vmul.f32 0.2, %v1566_v49  ;;  %v1599_v26 = vmul.f32 0.2, %v1567_v57 }
 0x1d9   :  { %v1600_v35 = vmul.f32 0.2, %v1568_v41  ;;  %v1601_v28 = vmul.f32 0.2, %v1569_v8  ;;  %v1602_v55 = vmul.f32 0.2, %v1570_v10  ;;  %v1610_v30 = vsel %vm1578_vm0, %v1562_v19, %v1594_v11 }
 0x1da   :  { %v1603_v32 = vmul.f32 0.2, %v1571_v21  ;;  %v1604_v37 = vmul.f32 0.2, %v1572_v14  ;;  %v1605_v34 = vmul.f32 0.2, %v1573_v15  ;;  %v1611_v36 = vsel %vm1579_vm1, %v1563_v29, %v1595_v53  ;;  %1626 = vst [vmem:[%s2669_s4] sm:$0xff] %v1610_v30 }
 0x1db   :  { %v1606_v38 = vmul.f32 0.2, %v1574_v16  ;;  %v1607_v40 = vmul.f32 0.2, %v1575_v17  ;;  %v1608_v42 = vmul.f32 0.2, %v1576_v18  ;;  %v1612_v25 = vsel %vm1580_vm2, %v1564_v4, %v1596_v22 }
 0x1dc   :  { %1627 = vst [vmem:[%s2669_s4 + $0x8] sm:$0xff] %v1611_v36  ;;  %v1609_v43 = vmul.f32 0.2, %v1577_v20  ;;  %v1613_v3 = vsel %vm1581_vm3, %v1565_v33, %v1597_v23  ;;  %v1614_v44 = vsel %vm1582_vm4, %v1566_v49, %v1598_v24  ;;  %v1615_v45 = vsel %vm1583_vm5, %v1567_v57, %v1599_v26  ;;  %1628 = vst [vmem:[%s2669_s4 + $0x10] sm:$0xff] %v1612_v25 }
 0x1dd   :  { %v1616_v39 = vsel %vm1584_vm6, %v1568_v41, %v1600_v35  ;;  %v1617_v31 = vsel %vm1585_vm7, %v1569_v8, %v1601_v28  ;;  %v1618_v63 = vsel %vm1586_vm8, %v1570_v10, %v1602_v55  ;;  %v1619_v48 = vsel %vm1587_vm9, %v1571_v21, %v1603_v32  ;;  %1629 = vst [vmem:[%s2669_s4 + $0x18] sm:$0xff] %v1613_v3 }
 0x1de   :  { %1630 = vst [vmem:[%s2669_s4 + $0x20] sm:$0xff] %v1614_v44  ;;  %1631 = vst [vmem:[%s2669_s4 + $0x28] sm:$0xff] %v1615_v45  ;;  %v1620_v0 = vsel %vm1588_vm10, %v1572_v14, %v1604_v37  ;;  %v1621_v52 = vsel %vm1589_vm11, %v1573_v15, %v1605_v34  ;;  %v1622_v1 = vsel %vm1590_vm12, %v1574_v16, %v1606_v38 }
 0x1df   :  { %v1623_v6 = vsel %vm1591_vm13, %v1575_v17, %v1607_v40  ;;  %1632 = vst [vmem:[%s2669_s4 + $0x30] sm:$0xff] %v1616_v39  ;;  %1633 = vst [vmem:[%s2669_s4 + $0x38] sm:$0xff] %v1617_v31  ;;  %v1624_v2 = vsel %vm1592_vm14, %v1576_v18, %v1608_v42  ;;  %v1625_v46 = vsel %vm1593_vm15, %v1577_v20, %v1609_v43 }
 0x1e0   :  { %1634 = vst [vmem:[%s2669_s4 + $0x40] sm:$0xff] %v1618_v63  ;;  %1635 = vst [vmem:[%s2669_s4 + $0x48] sm:$0xff] %v1619_v48 }
 0x1e1   :  { %1636 = vst [vmem:[%s2669_s4 + $0x50] sm:$0xff] %v1620_v0  ;;  %1637 = vst [vmem:[%s2669_s4 + $0x58] sm:$0xff] %v1621_v52 }
 0x1e2   :  { %1638 = vst [vmem:[%s2669_s4 + $0x60] sm:$0xff] %v1622_v1  ;;  %1639 = vst [vmem:[%s2669_s4 + $0x68] sm:$0xff] %v1623_v6 }
 0x1e3   :  { %1640 = vst [vmem:[%s2669_s4 + $0x70] sm:$0xff] %v1624_v2  ;;  %1641 = vst [vmem:[%s2669_s4 + $0x78] sm:$0xff] %v1625_v46 }

// kernel: discriminator_forward.7
= control target key start
LH: loop header
LB: loop body
LE: loop exit
PB: predicated region body
PF: predicated region fallthrough
CT: control target
= control target key end

     0   :  { %s4079_s1 = inlined_call_operand.vmem [shape: bf16[2048,256], index: 1, kind: input, shape index: {}]   ;;  %s4080_s0 = inlined_call_operand.vmem [shape: bf16[32,2048], index: 0, kind: input, shape index: {}]   ;;  %s4081_s2 = inlined_call_operand.vmem [shape: f32[1,256], index: 2, kind: input, shape index: {}]   ;;  %s4082_s3 = inlined_call_operand.vmem [shape: f32[1,256], index: 3, kind: input, shape index: {}]   ;;  %s4083_s4 = inlined_call_operand.vmem [shape: f32[32,256], index: 4, kind: output, shape index: {}]  }
   0x1   :  { %v2721_v0 = vld [vmem:[%s4079_s1 + $0x4] ss:$8 sps:$4 sm:$0xff]   ;;  %v2725_v2 = vld [vmem:[%s4079_s1] ss:$8 sps:$4 sm:$0xff]   ;;  %v2727_v4 = vld [vmem:[%s4079_s1 + $0x14] ss:$8 sps:$4 sm:$0xff]  }
   0x2   :  { %v2723_v1 = vld [vmem:[%s4079_s1 + $0x404] ss:$8 sps:$4 sm:$0xff]   ;;  %1765 = vmatprep.subr.bf16.mxu1 %v2721_v0  ;;  %v2726_v3 = vld [vmem:[%s4079_s1 + $0x400] ss:$8 sps:$4 sm:$0xff]   ;;  %v2729_v5 = vld [vmem:[%s4079_s1 + $0x414] ss:$8 sps:$4 sm:$0xff]  }
   0x3   :  { %1977 = vmatprep.subr.bf16.mxu0 %v2723_v1  ;;  %1766 = vmatpush1.bf16.msra.mxu1 %v2725_v2  ;;  %v2731_v6 = vld [vmem:[%s4079_s1 + $0x10] ss:$8 sps:$4 sm:$0xff]   ;;  %v2733_v8 = vld [vmem:[%s4079_s1 + $0x24] ss:$8 sps:$4 sm:$0xff]   ;;  %v2737_v10 = vld [vmem:[%s4079_s1 + $0x20] ss:$8 sps:$4 sm:$0xff]  }
   0x4   :  { %1978 = vmatpush1.bf16.msra.mxu0 %v2726_v3  ;;  %1767 = vmatprep.subr.bf16.mxu1 %v2727_v4  ;;  %v2732_v7 = vld [vmem:[%s4079_s1 + $0x410] ss:$8 sps:$4 sm:$0xff]   ;;  %v2735_v9 = vld [vmem:[%s4079_s1 + $0x424] ss:$8 sps:$4 sm:$0xff]   ;;  %v2738_v11 = vld [vmem:[%s4079_s1 + $0x420] ss:$8 sps:$4 sm:$0xff]  }
   0x5   :  { %1979 = vmatprep.subr.bf16.mxu0 %v2729_v5  ;;  %v2739_v12 = vld [vmem:[%s4079_s1 + $0x34] ss:$8 sps:$4 sm:$0xff]   ;;  %v2743_v14 = vld [vmem:[%s4079_s1 + $0x30] ss:$8 sps:$4 sm:$0xff]   ;;  %v2745_v16 = vld [vmem:[%s4079_s1 + $0x44] ss:$8 sps:$4 sm:$0xff]  }
   0x6   :  { %v2741_v13 = vld [vmem:[%s4079_s1 + $0x434] ss:$8 sps:$4 sm:$0xff]   ;;  %v2744_v15 = vld [vmem:[%s4079_s1 + $0x430] ss:$8 sps:$4 sm:$0xff]   ;;  %v2747_v17 = vld [vmem:[%s4079_s1 + $0x444] ss:$8 sps:$4 sm:$0xff]  }
   0x7   :  { %1768 = vmatpush1.bf16.msra.mxu1 %v2731_v6  ;;  %v2749_v18 = vld [vmem:[%s4079_s1 + $0x40] ss:$8 sps:$4 sm:$0xff]   ;;  %v2751_v20 = vld [vmem:[%s4079_s1 + $0x54] ss:$8 sps:$4 sm:$0xff]   ;;  %v2755_v22 = vld [vmem:[%s4079_s1 + $0x50] ss:$8 sps:$4 sm:$0xff]  }
   0x8   :  { %1980 = vmatpush1.bf16.msra.mxu0 %v2732_v7  ;;  %1769 = vmatprep.subr.bf16.mxu1 %v2733_v8  ;;  %v2750_v19 = vld [vmem:[%s4079_s1 + $0x440] ss:$8 sps:$4 sm:$0xff]   ;;  %v2753_v21 = vld [vmem:[%s4079_s1 + $0x454] ss:$8 sps:$4 sm:$0xff]   ;;  %v2756_v23 = vld [vmem:[%s4079_s1 + $0x450] ss:$8 sps:$4 sm:$0xff]  }
   0x9   :  { %1981 = vmatprep.subr.bf16.mxu0 %v2735_v9  ;;  %v2757_v24 = vld [vmem:[%s4079_s1 + $0x64] ss:$8 sps:$4 sm:$0xff]   ;;  %v2761_v26 = vld [vmem:[%s4079_s1 + $0x60] ss:$8 sps:$4 sm:$0xff]   ;;  %v2763_v28 = vld [vmem:[%s4079_s1 + $0x74] ss:$8 sps:$4 sm:$0xff]  }
   0xa   :  { %v2759_v25 = vld [vmem:[%s4079_s1 + $0x464] ss:$8 sps:$4 sm:$0xff]   ;;  %v2762_v27 = vld [vmem:[%s4079_s1 + $0x460] ss:$8 sps:$4 sm:$0xff]   ;;  %v2765_v29 = vld [vmem:[%s4079_s1 + $0x474] ss:$8 sps:$4 sm:$0xff]  }
   0xb   :  { %1770 = vmatpush1.bf16.msra.mxu1 %v2737_v10  ;;  %v2767_v30 = vld [vmem:[%s4079_s1 + $0x70] ss:$8 sps:$4 sm:$0xff]   ;;  %v2769_v32 = vld [vmem:[%s4079_s1 + $0x84] ss:$8 sps:$4 sm:$0xff]   ;;  %v2773_v34 = vld [vmem:[%s4079_s1 + $0x80] ss:$8 sps:$4 sm:$0xff]  }
   0xc   :  { %1982 = vmatpush1.bf16.msra.mxu0 %v2738_v11  ;;  %1771 = vmatprep.subr.bf16.mxu1 %v2739_v12  ;;  %v2768_v31 = vld [vmem:[%s4079_s1 + $0x470] ss:$8 sps:$4 sm:$0xff]   ;;  %v2771_v33 = vld [vmem:[%s4079_s1 + $0x484] ss:$8 sps:$4 sm:$0xff]   ;;  %v2774_v35 = vld [vmem:[%s4079_s1 + $0x480] ss:$8 sps:$4 sm:$0xff]  }
   0xd   :  { %1983 = vmatprep.subr.bf16.mxu0 %v2741_v13  ;;  %v2775_v36 = vld [vmem:[%s4079_s1 + $0x94] ss:$8 sps:$4 sm:$0xff]   ;;  %v2779_v38 = vld [vmem:[%s4079_s1 + $0x90] ss:$8 sps:$4 sm:$0xff]   ;;  %v2781_v40 = vld [vmem:[%s4079_s1 + $0xa4] ss:$8 sps:$4 sm:$0xff]  }
   0xe   :  { %v2777_v37 = vld [vmem:[%s4079_s1 + $0x494] ss:$8 sps:$4 sm:$0xff]   ;;  %v2780_v39 = vld [vmem:[%s4079_s1 + $0x490] ss:$8 sps:$4 sm:$0xff]   ;;  %v2783_v41 = vld [vmem:[%s4079_s1 + $0x4a4] ss:$8 sps:$4 sm:$0xff]  }
   0xf   :  { %1772 = vmatpush1.bf16.msra.mxu1 %v2743_v14  ;;  %v2785_v42 = vld [vmem:[%s4079_s1 + $0xa0] ss:$8 sps:$4 sm:$0xff]   ;;  %v2787_v44 = vld [vmem:[%s4079_s1 + $0xb4] ss:$8 sps:$4 sm:$0xff]   ;;  %v2791_v46 = vld [vmem:[%s4079_s1 + $0xb0] ss:$8 sps:$4 sm:$0xff]  }
  0x10   :  { %1984 = vmatpush1.bf16.msra.mxu0 %v2744_v15  ;;  %1773 = vmatprep.subr.bf16.mxu1 %v2745_v16  ;;  %v2786_v43 = vld [vmem:[%s4079_s1 + $0x4a0] ss:$8 sps:$4 sm:$0xff]   ;;  %v2789_v45 = vld [vmem:[%s4079_s1 + $0x4b4] ss:$8 sps:$4 sm:$0xff]   ;;  %v2792_v47 = vld [vmem:[%s4079_s1 + $0x4b0] ss:$8 sps:$4 sm:$0xff]  }
  0x11   :  { %1985 = vmatprep.subr.bf16.mxu0 %v2747_v17  ;;  %v37_v48 = vld [vmem:[%s4080_s0] sm:$0xff]  ;;  %v2799_v58 = vld [vmem:[%s4079_s1 + $0xd4] ss:$8 sps:$4 sm:$0xff]   ;;  %v2803_v60 = vld [vmem:[%s4079_s1 + $0xd0] ss:$8 sps:$4 sm:$0xff]  }
  0x12   :  { %v45_v49 = vld [vmem:[%s4080_s0 + $0x40] sm:$0xff]  ;;  %v2801_v59 = vld [vmem:[%s4079_s1 + $0x4d4] ss:$8 sps:$4 sm:$0xff]   ;;  %v2804_v61 = vld [vmem:[%s4079_s1 + $0x4d0] ss:$8 sps:$4 sm:$0xff]  }
  0x13   :  { %1774 = vmatpush1.bf16.msra.mxu1 %v2749_v18  ;;  %v2793_v50 = vld [vmem:[%s4079_s1 + $0xc4] ss:$8 sps:$4 sm:$0xff]   ;;  %v2378_v52 = vcombine.high %v37_v48, %v45_v49  ;;  %v2797_v56 = vld [vmem:[%s4079_s1 + $0xc0] ss:$8 sps:$4 sm:$0xff]   ;;  %v2811_v2 = vld [vmem:[%s4079_s1 + $0xf4] ss:$8 sps:$4 sm:$0xff]   ;;  %v2377_v8 = vcombine.low %v37_v48, %v45_v49 }
  0x14   :  { %1986 = vmatpush1.bf16.msra.mxu0 %v2750_v19  ;;  %1775 = vmatprep.subr.bf16.mxu1 %v2751_v20  ;;  %v2795_v51 = vld [vmem:[%s4079_s1 + $0x4c4] ss:$8 sps:$4 sm:$0xff]   ;;  %v2798_v57 = vld [vmem:[%s4079_s1 + $0x4c0] ss:$8 sps:$4 sm:$0xff]   ;;  %v2813_v3 = vld [vmem:[%s4079_s1 + $0x4f4] ss:$8 sps:$4 sm:$0xff]  }
  0x15   :  { %1987 = vmatprep.subr.bf16.mxu0 %v2753_v21  ;;  %v41_v53 = vld [vmem:[%s4080_s0 + $0x20] sm:$0xff]  ;;  %1797 = vmatprep.mubr.bf16.mxu1 %v2378_v52  ;;  %v2815_v4 = vld [vmem:[%s4079_s1 + $0xf0] ss:$8 sps:$4 sm:$0xff]   ;;  %v2825_v12 = vld [vmem:[%s4079_s1 + $0x114] ss:$8 sps:$4 sm:$0xff]  }
  0x16   :  { %v49_v54 = vld [vmem:[%s4080_s0 + $0x60] sm:$0xff]  ;;  %v2816_v5 = vld [vmem:[%s4079_s1 + $0x4f0] ss:$8 sps:$4 sm:$0xff]   ;;  %v2828_v13 = vld [vmem:[%s4079_s1 + $0x514] ss:$8 sps:$4 sm:$0xff]  }
  0x17   :  { %1776 = vmatpush1.bf16.msra.mxu1 %v2755_v22  ;;  %v2386_v55 = vcombine.high %v41_v53, %v49_v54  ;;  %v2805_v62 = vld [vmem:[%s4079_s1 + $0xe4] ss:$8 sps:$4 sm:$0xff]   ;;  %v2809_v0 = vld [vmem:[%s4079_s1 + $0xe0] ss:$8 sps:$4 sm:$0xff]   ;;  %v2385_v10 = vcombine.low %v41_v53, %v49_v54  ;;  %v2823_v14 = vld [vmem:[%s4079_s1 + $0x110] ss:$8 sps:$4 sm:$0xff]  }
  0x18   :  { %1988 = vmatpush1.bf16.msra.mxu0 %v2756_v23  ;;  %1777 = vmatprep.subr.bf16.mxu1 %v2757_v24  ;;  %v2807_v63 = vld [vmem:[%s4079_s1 + $0x4e4] ss:$8 sps:$4 sm:$0xff]   ;;  %v2810_v1 = vld [vmem:[%s4079_s1 + $0x4e0] ss:$8 sps:$4 sm:$0xff]   ;;  %v2826_v15 = vld [vmem:[%s4079_s1 + $0x510] ss:$8 sps:$4 sm:$0xff]  }
  0x19   :  { %1989 = vmatprep.subr.bf16.mxu0 %v2759_v25  ;;  %2009 = vmatprep.mubr.bf16.mxu0 %v2386_v55  ;;  %v2819_v6 = vld [vmem:[%s4079_s1 + $0x104] ss:$8 sps:$4 sm:$0xff]   ;;  %v2817_v9 = vld [vmem:[%s4079_s1 + $0x100] ss:$8 sps:$4 sm:$0xff]   ;;  %v2837_v20 = vld [vmem:[%s4079_s1 + $0x134] ss:$8 sps:$4 sm:$0xff]  }
  0x1a   :  { %v2822_v7 = vld [vmem:[%s4079_s1 + $0x504] ss:$8 sps:$4 sm:$0xff]   ;;  %v2820_v11 = vld [vmem:[%s4079_s1 + $0x500] ss:$8 sps:$4 sm:$0xff]   ;;  %v2840_v21 = vld [vmem:[%s4079_s1 + $0x534] ss:$8 sps:$4 sm:$0xff]  }
  0x1b   :  { %1778 = vmatpush1.bf16.msra.mxu1 %v2761_v26  ;;  %v2831_v16 = vld [vmem:[%s4079_s1 + $0x124] ss:$8 sps:$4 sm:$0xff]   ;;  %v2829_v18 = vld [vmem:[%s4079_s1 + $0x120] ss:$8 sps:$4 sm:$0xff]   ;;  %v2835_v22 = vld [vmem:[%s4079_s1 + $0x130] ss:$8 sps:$4 sm:$0xff]  }
  0x1c   :  { %1990 = vmatpush1.bf16.msra.mxu0 %v2762_v27  ;;  %1779 = vmatprep.subr.bf16.mxu1 %v2763_v28  ;;  %v2834_v17 = vld [vmem:[%s4079_s1 + $0x524] ss:$8 sps:$4 sm:$0xff]   ;;  %v2832_v19 = vld [vmem:[%s4079_s1 + $0x520] ss:$8 sps:$4 sm:$0xff]   ;;  %v2838_v23 = vld [vmem:[%s4079_s1 + $0x530] ss:$8 sps:$4 sm:$0xff]  }
  0x1d   :  { %1991 = vmatprep.subr.bf16.mxu0 %v2765_v29  ;;  %v2843_v24 = vld [vmem:[%s4079_s1 + $0x144] ss:$8 sps:$4 sm:$0xff]   ;;  %v2841_v26 = vld [vmem:[%s4079_s1 + $0x140] ss:$8 sps:$4 sm:$0xff]   ;;  %v2849_v28 = vld [vmem:[%s4079_s1 + $0x154] ss:$8 sps:$4 sm:$0xff]  }
  0x1e   :  { %v2846_v25 = vld [vmem:[%s4079_s1 + $0x544] ss:$8 sps:$4 sm:$0xff]   ;;  %v2844_v27 = vld [vmem:[%s4079_s1 + $0x540] ss:$8 sps:$4 sm:$0xff]   ;;  %v2852_v29 = vld [vmem:[%s4079_s1 + $0x554] ss:$8 sps:$4 sm:$0xff]  }
  0x1f   :  { %1780 = vmatpush1.bf16.msra.mxu1 %v2767_v30  ;;  %v53_v30 = vld [vmem:[%s4080_s0 + $0x80] sm:$0xff]  ;;  %v3455_v49 = vld [vmem:[%s4080_s0 + $0x28] sm:$0xff]  ;;  %v2862_v52 = vld [vmem:[%s4079_s1 + $0x570] ss:$8 sps:$4 sm:$0xff]  }
  0x20   :  { %1992 = vmatpush1.bf16.msra.mxu0 %v2768_v31  ;;  %1781 = vmatprep.subr.bf16.mxu1 %v2769_v32  ;;  %v61_v31 = vld [vmem:[%s4080_s0 + $0xc0] sm:$0xff]  ;;  %v2847_v32 = vld [vmem:[%s4079_s1 + $0x150] ss:$8 sps:$4 sm:$0xff]  }
  0x21   :  { %1993 = vmatprep.subr.bf16.mxu0 %v2771_v33  ;;  %v2394_v33 = vcombine.high %v53_v30, %v61_v31  ;;  %v2867_v54 = vld [vmem:[%s4079_s1 + $0x184] ss:$8 sps:$4 sm:$0xff]  }
  0x22   :  { %v2870_v55 = vld [vmem:[%s4079_s1 + $0x584] ss:$8 sps:$4 sm:$0xff]  }
  0x23   :  { %1782 = vmatpush1.bf16.msra.mxu1 %v2773_v34  ;;  %v2850_v34 = vld [vmem:[%s4079_s1 + $0x550] ss:$8 sps:$4 sm:$0xff]  }
  0x24   :  { %1994 = vmatpush1.bf16.msra.mxu0 %v2774_v35  ;;  %1783 = vmatprep.subr.bf16.mxu1 %v2775_v36  ;;  %v57_v35 = vld [vmem:[%s4080_s0 + $0xa0] sm:$0xff] }
  0x25   :  { %1995 = vmatprep.subr.bf16.mxu0 %v2777_v37  ;;  %v65_v36 = vld [vmem:[%s4080_s0 + $0xe0] sm:$0xff]  ;;  %v2393_v37 = vcombine.low %v53_v30, %v61_v31  ;;  %v2921_v30 = vld [vmem:[%s4079_s1 + $0x214] ss:$8 sps:$4 sm:$0xff]  }
  0x26   :  { %v2924_v31 = vld [vmem:[%s4079_s1 + $0x614] ss:$8 sps:$4 sm:$0xff]  }
  0x27   :  { %1784 = vmatpush1.bf16.msra.mxu1 %v2779_v38  ;;  %v2855_v38 = vld [vmem:[%s4079_s1 + $0x164] ss:$8 sps:$4 sm:$0xff]  }
  0x28   :  { %1996 = vmatpush1.bf16.msra.mxu0 %v2780_v39  ;;  %1785 = vmatprep.subr.bf16.mxu1 %v2781_v40  ;;  %v2402_v39 = vcombine.high %v57_v35, %v65_v36  ;;  %v2401_v40 = vcombine.low %v57_v35, %v65_v36  ;;  %v2919_v36 = vld [vmem:[%s4079_s1 + $0x210] ss:$8 sps:$4 sm:$0xff]  }
  0x29   :  { %1997 = vmatprep.subr.bf16.mxu0 %v2783_v41  ;;  %v2858_v41 = vld [vmem:[%s4079_s1 + $0x564] ss:$8 sps:$4 sm:$0xff]  }
  0x2b   :  { %1786 = vmatpush1.bf16.msra.mxu1 %v2785_v42  ;;  %v2853_v42 = vld [vmem:[%s4079_s1 + $0x160] ss:$8 sps:$4 sm:$0xff]  }
  0x2c   :  { %1998 = vmatpush1.bf16.msra.mxu0 %v2786_v43  ;;  %1787 = vmatprep.subr.bf16.mxu1 %v2787_v44  ;;  %v2856_v43 = vld [vmem:[%s4079_s1 + $0x560] ss:$8 sps:$4 sm:$0xff]  }
  0x2d   :  { %1999 = vmatprep.subr.bf16.mxu0 %v2789_v45  ;;  %v3437_v44 = vld [vmem:[%s4080_s0 + $0x8] sm:$0xff] }
  0x2e   :  { %v3442_v45 = vld [vmem:[%s4080_s0 + $0x48] sm:$0xff] }
  0x2f   :  { %1788 = vmatpush1.bf16.msra.mxu1 %v2791_v46  ;;  %v2861_v46 = vld [vmem:[%s4079_s1 + $0x174] ss:$8 sps:$4 sm:$0xff]   ;;  %v2380_v48 = vcombine.high %v3437_v44, %v3442_v45 }
  0x30   :  { %2000 = vmatpush1.bf16.msra.mxu0 %v2792_v47  ;;  %1789 = vmatprep.subr.bf16.mxu1 %v2793_v50  ;;  %v2864_v47 = vld [vmem:[%s4079_s1 + $0x574] ss:$8 sps:$4 sm:$0xff]   ;;  %v3460_v50 = vld [vmem:[%s4080_s0 + $0x68] sm:$0xff] }
  0x31   :  { %2001 = vmatprep.subr.bf16.mxu0 %v2795_v51  ;;  %v2859_v51 = vld [vmem:[%s4079_s1 + $0x170] ss:$8 sps:$4 sm:$0xff]   ;;  %v2388_v53 = vcombine.high %v3455_v49, %v3460_v50 }
  0x33   :  { %1790 = vmatpush1.bf16.msra.mxu1 %v2797_v56  ;;  %v2865_v56 = vld [vmem:[%s4079_s1 + $0x180] ss:$8 sps:$4 sm:$0xff]  }
  0x34   :  { %2002 = vmatpush1.bf16.msra.mxu0 %v2798_v57  ;;  %1791 = vmatprep.subr.bf16.mxu1 %v2799_v58  ;;  %v2868_v57 = vld [vmem:[%s4079_s1 + $0x580] ss:$8 sps:$4 sm:$0xff]   ;;  %v2873_v58 = vld [vmem:[%s4079_s1 + $0x194] ss:$8 sps:$4 sm:$0xff]  }
  0x35   :  { %2003 = vmatprep.subr.bf16.mxu0 %v2801_v59  ;;  %v2876_v59 = vld [vmem:[%s4079_s1 + $0x594] ss:$8 sps:$4 sm:$0xff]  }
  0x37   :  { %1792 = vmatpush1.bf16.msra.mxu1 %v2803_v60  ;;  %v2871_v60 = vld [vmem:[%s4079_s1 + $0x190] ss:$8 sps:$4 sm:$0xff]  }
  0x38   :  { %2004 = vmatpush1.bf16.msra.mxu0 %v2804_v61  ;;  %1793 = vmatprep.subr.bf16.mxu1 %v2805_v62  ;;  %v2874_v61 = vld [vmem:[%s4079_s1 + $0x590] ss:$8 sps:$4 sm:$0xff]   ;;  %v2879_v62 = vld [vmem:[%s4079_s1 + $0x1a4] ss:$8 sps:$4 sm:$0xff]  }
  0x39   :  { %2005 = vmatprep.subr.bf16.mxu0 %v2807_v63  ;;  %v2882_v63 = vld [vmem:[%s4079_s1 + $0x5a4] ss:$8 sps:$4 sm:$0xff]  }
  0x3b   :  { %1794 = vmatpush1.bf16.msra.mxu1 %v2809_v0  ;;  %v2877_v0 = vld [vmem:[%s4079_s1 + $0x1a0] ss:$8 sps:$4 sm:$0xff]  }
  0x3c   :  { %2006 = vmatpush1.bf16.msra.mxu0 %v2810_v1  ;;  %1795 = vmatprep.subr.bf16.mxu1 %v2811_v2  ;;  %v2880_v1 = vld [vmem:[%s4079_s1 + $0x5a0] ss:$8 sps:$4 sm:$0xff]   ;;  %v2885_v2 = vld [vmem:[%s4079_s1 + $0x1b4] ss:$8 sps:$4 sm:$0xff]  }
  0x3d   :  { %2007 = vmatprep.subr.bf16.mxu0 %v2813_v3  ;;  %v2888_v3 = vld [vmem:[%s4079_s1 + $0x5b4] ss:$8 sps:$4 sm:$0xff]  }
  0x3f   :  { %1796 = vmatpush1.bf16.msra.mxu1 %v2815_v4  ;;  %v2883_v4 = vld [vmem:[%s4079_s1 + $0x1b0] ss:$8 sps:$4 sm:$0xff]  }
  0x40   :  { %2008 = vmatpush1.bf16.msra.mxu0 %v2816_v5  ;;  %1818 = vmatprep.subr.bf16.mxu1 %v2819_v6  ;;  %v2886_v5 = vld [vmem:[%s4079_s1 + $0x5b0] ss:$8 sps:$4 sm:$0xff]   ;;  %v2891_v6 = vld [vmem:[%s4079_s1 + $0x1c4] ss:$8 sps:$4 sm:$0xff]  }
  0x41   :  { %2030 = vmatprep.subr.bf16.mxu0 %v2822_v7  ;;  %v2894_v7 = vld [vmem:[%s4079_s1 + $0x5c4] ss:$8 sps:$4 sm:$0xff]  }
  0x42   :  { %1798 = vmatmul.mubr.bf16.vlgmr.msra.gmra.mrb[0].mxu1 %v2377_v8  ;;  %v2889_v8 = vld [vmem:[%s4079_s1 + $0x1c0] ss:$8 sps:$4 sm:$0xff]  }
  0x43   :  { %2010 = vmatmul.mubr.bf16.vlgmr.msra.gmra.mrb[0].mxu0 %v2385_v10  ;;  %1819 = vmatpush1.bf16.msra.mxu1 %v2817_v9  ;;  %v2892_v9 = vld [vmem:[%s4079_s1 + $0x5c0] ss:$8 sps:$4 sm:$0xff]   ;;  %v2897_v10 = vld [vmem:[%s4079_s1 + $0x1d4] ss:$8 sps:$4 sm:$0xff]  }
  0x44   :  { %2031 = vmatpush1.bf16.msra.mxu0 %v2820_v11  ;;  %1820 = vmatprep.subr.bf16.mxu1 %v2825_v12  ;;  %v2900_v11 = vld [vmem:[%s4079_s1 + $0x5d4] ss:$8 sps:$4 sm:$0xff]   ;;  %v2895_v12 = vld [vmem:[%s4079_s1 + $0x1d0] ss:$8 sps:$4 sm:$0xff]  }
  0x45   :  { %2032 = vmatprep.subr.bf16.mxu0 %v2828_v13  ;;  %1807 = vmatprep.mubr.bf16.mxu1 %v2394_v33  ;;  %v2898_v13 = vld [vmem:[%s4079_s1 + $0x5d0] ss:$8 sps:$4 sm:$0xff]   ;;  %v66_v33 = vld [vmem:[%s4080_s0 + $0xe8] sm:$0xff] }
  0x46   :  { %2019 = vmatprep.mubr.bf16.mxu0 %v2402_v39  ;;  %v2930_v39 = vld [vmem:[%s4079_s1 + $0x624] ss:$8 sps:$4 sm:$0xff]  }
  0x47   :  { %1821 = vmatpush1.bf16.msra.mxu1 %v2823_v14  ;;  %v2903_v14 = vld [vmem:[%s4079_s1 + $0x1e4] ss:$8 sps:$4 sm:$0xff]  }
  0x48   :  { %2033 = vmatpush1.bf16.msra.mxu0 %v2826_v15  ;;  %1822 = vmatprep.subr.bf16.mxu1 %v2831_v16  ;;  %v2906_v15 = vld [vmem:[%s4079_s1 + $0x5e4] ss:$8 sps:$4 sm:$0xff]   ;;  %v2901_v16 = vld [vmem:[%s4079_s1 + $0x1e0] ss:$8 sps:$4 sm:$0xff]  }
  0x49   :  { %2034 = vmatprep.subr.bf16.mxu0 %v2834_v17  ;;  %v2904_v17 = vld [vmem:[%s4079_s1 + $0x5e0] ss:$8 sps:$4 sm:$0xff]  }
  0x4a   :  { %1808 = vmatmul.mubr.bf16.gmra.mrb[4].mxu1 %v2393_v37  ;;  %v2922_v37 = vld [vmem:[%s4079_s1 + $0x610] ss:$8 sps:$4 sm:$0xff]  }
  0x4b   :  { %1823 = vmatpush1.bf16.msra.mxu1 %v2829_v18  ;;  %2020 = vmatmul.mubr.bf16.gmra.mrb[4].mxu0 %v2401_v40  ;;  %v2909_v18 = vld [vmem:[%s4079_s1 + $0x1f4] ss:$8 sps:$4 sm:$0xff]   ;;  %v2925_v40 = vld [vmem:[%s4079_s1 + $0x220] ss:$8 sps:$4 sm:$0xff]  }
  0x4c   :  { %2035 = vmatpush1.bf16.msra.mxu0 %v2832_v19  ;;  %1824 = vmatprep.subr.bf16.mxu1 %v2837_v20  ;;  %v2912_v19 = vld [vmem:[%s4079_s1 + $0x5f4] ss:$8 sps:$4 sm:$0xff]   ;;  %v2907_v20 = vld [vmem:[%s4079_s1 + $0x1f0] ss:$8 sps:$4 sm:$0xff]  }
  0x4d   :  { %2036 = vmatprep.subr.bf16.mxu0 %v2840_v21  ;;  %1850 = vmatprep.mubr.bf16.mxu1 %v2380_v48  ;;  %v2910_v21 = vld [vmem:[%s4079_s1 + $0x5f0] ss:$8 sps:$4 sm:$0xff]   ;;  %v2933_v48 = vld [vmem:[%s4079_s1 + $0x234] ss:$8 sps:$4 sm:$0xff]  }
  0x4e   :  { %2062 = vmatprep.mubr.bf16.mxu0 %v2388_v53  ;;  %v2934_v53 = vld [vmem:[%s4079_s1 + $0x630] ss:$8 sps:$4 sm:$0xff]  }
  0x4f   :  { %1825 = vmatpush1.bf16.msra.mxu1 %v2835_v22  ;;  %v2915_v22 = vld [vmem:[%s4079_s1 + $0x204] ss:$8 sps:$4 sm:$0xff]  }
  0x50   :  { %2037 = vmatpush1.bf16.msra.mxu0 %v2838_v23  ;;  %1826 = vmatprep.subr.bf16.mxu1 %v2843_v24  ;;  %v2918_v23 = vld [vmem:[%s4079_s1 + $0x604] ss:$8 sps:$4 sm:$0xff]   ;;  %v2913_v24 = vld [vmem:[%s4079_s1 + $0x200] ss:$8 sps:$4 sm:$0xff]  }
  0x51   :  { %2038 = vmatprep.subr.bf16.mxu0 %v2846_v25  ;;  %v2916_v25 = vld [vmem:[%s4079_s1 + $0x600] ss:$8 sps:$4 sm:$0xff]  }
  0x53   :  { %1827 = vmatpush1.bf16.msra.mxu1 %v2841_v26  ;;  %v54_v26 = vld [vmem:[%s4080_s0 + $0x88] sm:$0xff] }
  0x54   :  { %2039 = vmatpush1.bf16.msra.mxu0 %v2844_v27  ;;  %1828 = vmatprep.subr.bf16.mxu1 %v2849_v28  ;;  %v2379_v27 = vcombine.low %v3437_v44, %v3442_v45  ;;  %v2387_v28 = vcombine.low %v3455_v49, %v3460_v50  ;;  %v3626_v45 = vld [vmem:[%s4080_s0 + $0x50] sm:$0xff] }
  0x55   :  { %2040 = vmatprep.subr.bf16.mxu0 %v2852_v29  ;;  %v62_v29 = vld [vmem:[%s4080_s0 + $0xc8] sm:$0xff]  ;;  %v2936_v49 = vld [vmem:[%s4079_s1 + $0x634] ss:$8 sps:$4 sm:$0xff]  }
  0x57   :  { %1829 = vmatpush1.bf16.msra.mxu1 %v2847_v32  ;;  %v58_v32 = vld [vmem:[%s4080_s0 + $0xa8] sm:$0xff] }
  0x58   :  { %2041 = vmatpush1.bf16.msra.mxu0 %v2850_v34  ;;  %1830 = vmatprep.subr.bf16.mxu1 %v2855_v38  ;;  %v2396_v34 = vcombine.high %v54_v26, %v62_v29  ;;  %v2404_v35 = vcombine.high %v58_v32, %v66_v33  ;;  %v2927_v38 = vld [vmem:[%s4079_s1 + $0x224] ss:$8 sps:$4 sm:$0xff]   ;;  %v2403_v44 = vcombine.low %v58_v32, %v66_v33  ;;  %v2997_v32 = vld [vmem:[%s4079_s1 + $0x2e0] ss:$8 sps:$4 sm:$0xff]  }
  0x59   :  { %2042 = vmatprep.subr.bf16.mxu0 %v2858_v41  ;;  %v2928_v41 = vld [vmem:[%s4079_s1 + $0x620] ss:$8 sps:$4 sm:$0xff]  }
  0x5a   :  { %v3000_v33 = vld [vmem:[%s4079_s1 + $0x6e0] ss:$8 sps:$4 sm:$0xff]  }
  0x5b   :  { %1831 = vmatpush1.bf16.msra.mxu1 %v2853_v42  ;;  %v3621_v42 = vld [vmem:[%s4080_s0 + $0x10] sm:$0xff] }
  0x5c   :  { %2043 = vmatpush1.bf16.msra.mxu0 %v2856_v43  ;;  %1832 = vmatprep.subr.bf16.mxu1 %v2861_v46  ;;  %v2395_v43 = vcombine.low %v54_v26, %v62_v29  ;;  %v3631_v46 = vld [vmem:[%s4080_s0 + $0x30] sm:$0xff]  ;;  %v2382_v50 = vcombine.high %v3621_v42, %v3626_v45 }
  0x5d   :  { %2044 = vmatprep.subr.bf16.mxu0 %v2864_v47  ;;  %v3636_v47 = vld [vmem:[%s4080_s0 + $0x70] sm:$0xff] }
  0x5e   :  { %v2993_v26 = vld [vmem:[%s4079_s1 + $0x2d4] ss:$8 sps:$4 sm:$0xff]   ;;  %v2994_v29 = vld [vmem:[%s4079_s1 + $0x6d0] ss:$8 sps:$4 sm:$0xff]  }
  0x5f   :  { %1833 = vmatpush1.bf16.msra.mxu1 %v2859_v51  ;;  %v2390_v51 = vcombine.high %v3631_v46, %v3636_v47 }
  0x60   :  { %2045 = vmatpush1.bf16.msra.mxu0 %v2862_v52  ;;  %1834 = vmatprep.subr.bf16.mxu1 %v2867_v54  ;;  %v2931_v52 = vld [vmem:[%s4079_s1 + $0x230] ss:$8 sps:$4 sm:$0xff]   ;;  %v2939_v54 = vld [vmem:[%s4079_s1 + $0x244] ss:$8 sps:$4 sm:$0xff]  }
  0x61   :  { %2046 = vmatprep.subr.bf16.mxu0 %v2870_v55  ;;  %v2942_v55 = vld [vmem:[%s4079_s1 + $0x644] ss:$8 sps:$4 sm:$0xff]  }
  0x63   :  { %1835 = vmatpush1.bf16.msra.mxu1 %v2865_v56  ;;  %v2937_v56 = vld [vmem:[%s4079_s1 + $0x240] ss:$8 sps:$4 sm:$0xff]  }
  0x64   :  { %2047 = vmatpush1.bf16.msra.mxu0 %v2868_v57  ;;  %1836 = vmatprep.subr.bf16.mxu1 %v2873_v58  ;;  %v2940_v57 = vld [vmem:[%s4079_s1 + $0x640] ss:$8 sps:$4 sm:$0xff]   ;;  %v2945_v58 = vld [vmem:[%s4079_s1 + $0x254] ss:$8 sps:$4 sm:$0xff]  }
  0x65   :  { %2048 = vmatprep.subr.bf16.mxu0 %v2876_v59  ;;  %v2948_v59 = vld [vmem:[%s4079_s1 + $0x654] ss:$8 sps:$4 sm:$0xff]  }
  0x67   :  { %1837 = vmatpush1.bf16.msra.mxu1 %v2871_v60  ;;  %v2943_v60 = vld [vmem:[%s4079_s1 + $0x250] ss:$8 sps:$4 sm:$0xff]  }
  0x68   :  { %2049 = vmatpush1.bf16.msra.mxu0 %v2874_v61  ;;  %1838 = vmatprep.subr.bf16.mxu1 %v2879_v62  ;;  %v2946_v61 = vld [vmem:[%s4079_s1 + $0x650] ss:$8 sps:$4 sm:$0xff]   ;;  %v2951_v62 = vld [vmem:[%s4079_s1 + $0x264] ss:$8 sps:$4 sm:$0xff]  }
  0x69   :  { %2050 = vmatprep.subr.bf16.mxu0 %v2882_v63  ;;  %v2954_v63 = vld [vmem:[%s4079_s1 + $0x664] ss:$8 sps:$4 sm:$0xff]  }
  0x6b   :  { %1839 = vmatpush1.bf16.msra.mxu1 %v2877_v0  ;;  %v2949_v0 = vld [vmem:[%s4079_s1 + $0x260] ss:$8 sps:$4 sm:$0xff]  }
  0x6c   :  { %2051 = vmatpush1.bf16.msra.mxu0 %v2880_v1  ;;  %1840 = vmatprep.subr.bf16.mxu1 %v2885_v2  ;;  %v2952_v1 = vld [vmem:[%s4079_s1 + $0x660] ss:$8 sps:$4 sm:$0xff]   ;;  %v2957_v2 = vld [vmem:[%s4079_s1 + $0x274] ss:$8 sps:$4 sm:$0xff]  }
  0x6d   :  { %2052 = vmatprep.subr.bf16.mxu0 %v2888_v3  ;;  %v2960_v3 = vld [vmem:[%s4079_s1 + $0x674] ss:$8 sps:$4 sm:$0xff]  }
  0x6f   :  { %1841 = vmatpush1.bf16.msra.mxu1 %v2883_v4  ;;  %v2955_v4 = vld [vmem:[%s4079_s1 + $0x270] ss:$8 sps:$4 sm:$0xff]  }
  0x70   :  { %2053 = vmatpush1.bf16.msra.mxu0 %v2886_v5  ;;  %1842 = vmatprep.subr.bf16.mxu1 %v2891_v6  ;;  %v2958_v5 = vld [vmem:[%s4079_s1 + $0x670] ss:$8 sps:$4 sm:$0xff]   ;;  %v2963_v6 = vld [vmem:[%s4079_s1 + $0x284] ss:$8 sps:$4 sm:$0xff]  }
  0x71   :  { %2054 = vmatprep.subr.bf16.mxu0 %v2894_v7  ;;  %v2966_v7 = vld [vmem:[%s4079_s1 + $0x684] ss:$8 sps:$4 sm:$0xff]  }
  0x73   :  { %1843 = vmatpush1.bf16.msra.mxu1 %v2889_v8  ;;  %v2961_v8 = vld [vmem:[%s4079_s1 + $0x280] ss:$8 sps:$4 sm:$0xff]  }
  0x74   :  { %2055 = vmatpush1.bf16.msra.mxu0 %v2892_v9  ;;  %1844 = vmatprep.subr.bf16.mxu1 %v2897_v10  ;;  %v2964_v9 = vld [vmem:[%s4079_s1 + $0x680] ss:$8 sps:$4 sm:$0xff]   ;;  %v2969_v10 = vld [vmem:[%s4079_s1 + $0x294] ss:$8 sps:$4 sm:$0xff]  }
  0x75   :  { %2056 = vmatprep.subr.bf16.mxu0 %v2900_v11  ;;  %v2972_v11 = vld [vmem:[%s4079_s1 + $0x694] ss:$8 sps:$4 sm:$0xff]  }
  0x77   :  { %1845 = vmatpush1.bf16.msra.mxu1 %v2895_v12  ;;  %v2967_v12 = vld [vmem:[%s4079_s1 + $0x290] ss:$8 sps:$4 sm:$0xff]  }
  0x78   :  { %2057 = vmatpush1.bf16.msra.mxu0 %v2898_v13  ;;  %1846 = vmatprep.subr.bf16.mxu1 %v2903_v14  ;;  %v2970_v13 = vld [vmem:[%s4079_s1 + $0x690] ss:$8 sps:$4 sm:$0xff]   ;;  %v2975_v14 = vld [vmem:[%s4079_s1 + $0x2a4] ss:$8 sps:$4 sm:$0xff]  }
  0x79   :  { %2058 = vmatprep.subr.bf16.mxu0 %v2906_v15  ;;  %v2978_v15 = vld [vmem:[%s4079_s1 + $0x6a4] ss:$8 sps:$4 sm:$0xff]  }
  0x7b   :  { %1847 = vmatpush1.bf16.msra.mxu1 %v2901_v16  ;;  %v2973_v16 = vld [vmem:[%s4079_s1 + $0x2a0] ss:$8 sps:$4 sm:$0xff]  }
  0x7c   :  { %2059 = vmatpush1.bf16.msra.mxu0 %v2904_v17  ;;  %1848 = vmatprep.subr.bf16.mxu1 %v2909_v18  ;;  %v2976_v17 = vld [vmem:[%s4079_s1 + $0x6a0] ss:$8 sps:$4 sm:$0xff]   ;;  %v2981_v18 = vld [vmem:[%s4079_s1 + $0x2b4] ss:$8 sps:$4 sm:$0xff]  }
  0x7d   :  { %2060 = vmatprep.subr.bf16.mxu0 %v2912_v19  ;;  %v2984_v19 = vld [vmem:[%s4079_s1 + $0x6b4] ss:$8 sps:$4 sm:$0xff]  }
  0x7f   :  { %1849 = vmatpush1.bf16.msra.mxu1 %v2907_v20  ;;  %v2979_v20 = vld [vmem:[%s4079_s1 + $0x2b0] ss:$8 sps:$4 sm:$0xff]  }
  0x80   :  { %2061 = vmatpush1.bf16.msra.mxu0 %v2910_v21  ;;  %1871 = vmatprep.subr.bf16.mxu1 %v2915_v22  ;;  %v2982_v21 = vld [vmem:[%s4079_s1 + $0x6b0] ss:$8 sps:$4 sm:$0xff]   ;;  %v2987_v22 = vld [vmem:[%s4079_s1 + $0x2c4] ss:$8 sps:$4 sm:$0xff]  }
  0x81   :  { %2083 = vmatprep.subr.bf16.mxu0 %v2918_v23  ;;  %v2990_v23 = vld [vmem:[%s4079_s1 + $0x6c4] ss:$8 sps:$4 sm:$0xff]  }
  0x82   :  { %1851 = vmatmul.mubr.bf16.vlgmr.msra.gmra.mrb[0].mxu1 %v2379_v27  ;;  %v2996_v27 = vld [vmem:[%s4079_s1 + $0x6d4] ss:$8 sps:$4 sm:$0xff]  }
  0x83   :  { %2063 = vmatmul.mubr.bf16.vlgmr.msra.gmra.mrb[0].mxu0 %v2387_v28  ;;  %1872 = vmatpush1.bf16.msra.mxu1 %v2913_v24  ;;  %v2985_v24 = vld [vmem:[%s4079_s1 + $0x2c0] ss:$8 sps:$4 sm:$0xff]   ;;  %v2991_v28 = vld [vmem:[%s4079_s1 + $0x2d0] ss:$8 sps:$4 sm:$0xff]  }
  0x84   :  { %2084 = vmatpush1.bf16.msra.mxu0 %v2916_v25  ;;  %1873 = vmatprep.subr.bf16.mxu1 %v2921_v30  ;;  %v2988_v25 = vld [vmem:[%s4079_s1 + $0x6c0] ss:$8 sps:$4 sm:$0xff]   ;;  %v2999_v30 = vld [vmem:[%s4079_s1 + $0x2e4] ss:$8 sps:$4 sm:$0xff]  }
  0x85   :  { %2085 = vmatprep.subr.bf16.mxu0 %v2924_v31  ;;  %1860 = vmatprep.mubr.bf16.mxu1 %v2396_v34  ;;  %v3002_v31 = vld [vmem:[%s4079_s1 + $0x6e4] ss:$8 sps:$4 sm:$0xff]   ;;  %v3005_v34 = vld [vmem:[%s4079_s1 + $0x2f4] ss:$8 sps:$4 sm:$0xff]  }
  0x86   :  { %2072 = vmatprep.mubr.bf16.mxu0 %v2404_v35  ;;  %v3008_v35 = vld [vmem:[%s4079_s1 + $0x6f4] ss:$8 sps:$4 sm:$0xff]  }
  0x87   :  { %1874 = vmatpush1.bf16.msra.mxu1 %v2919_v36  ;;  %v3003_v36 = vld [vmem:[%s4079_s1 + $0x2f0] ss:$8 sps:$4 sm:$0xff]  }
  0x88   :  { %2086 = vmatpush1.bf16.msra.mxu0 %v2922_v37  ;;  %1875 = vmatprep.subr.bf16.mxu1 %v2927_v38  ;;  %v3006_v37 = vld [vmem:[%s4079_s1 + $0x6f0] ss:$8 sps:$4 sm:$0xff]   ;;  %v3011_v38 = vld [vmem:[%s4079_s1 + $0x304] ss:$8 sps:$4 sm:$0xff]  }
  0x89   :  { %2087 = vmatprep.subr.bf16.mxu0 %v2930_v39  ;;  %v3014_v39 = vld [vmem:[%s4079_s1 + $0x704] ss:$8 sps:$4 sm:$0xff]  }
  0x8a   :  { %1861 = vmatmul.mubr.bf16.gmra.mrb[4].mxu1 %v2395_v43  ;;  %v2389_v43 = vcombine.low %v3631_v46, %v3636_v47  ;;  %v3017_v46 = vld [vmem:[%s4079_s1 + $0x314] ss:$8 sps:$4 sm:$0xff]  }
  0x8b   :  { %2073 = vmatmul.mubr.bf16.gmra.mrb[4].mxu0 %v2403_v44  ;;  %1876 = vmatpush1.bf16.msra.mxu1 %v2925_v40  ;;  %v55_v40 = vld [vmem:[%s4080_s0 + $0x90] sm:$0xff] }
  0x8c   :  { %2088 = vmatpush1.bf16.msra.mxu0 %v2928_v41  ;;  %1877 = vmatprep.subr.bf16.mxu1 %v2933_v48  ;;  %v2381_v41 = vcombine.low %v3621_v42, %v3626_v45  ;;  %v63_v44 = vld [vmem:[%s4080_s0 + $0xd0] sm:$0xff]  ;;  %v3009_v42 = vld [vmem:[%s4079_s1 + $0x300] ss:$8 sps:$4 sm:$0xff]  }
  0x8d   :  { %2089 = vmatprep.subr.bf16.mxu0 %v2936_v49  ;;  %1903 = vmatprep.mubr.bf16.mxu1 %v2382_v50  ;;  %v59_v48 = vld [vmem:[%s4080_s0 + $0xb0] sm:$0xff]  ;;  %v3012_v45 = vld [vmem:[%s4079_s1 + $0x700] ss:$8 sps:$4 sm:$0xff]   ;;  %v2398_v50 = vcombine.high %v55_v40, %v63_v44 }
  0x8e   :  { %2115 = vmatprep.mubr.bf16.mxu0 %v2390_v51  ;;  %v67_v49 = vld [vmem:[%s4080_s0 + $0xf0] sm:$0xff] }
  0x8f   :  { %1878 = vmatpush1.bf16.msra.mxu1 %v2931_v52  ;;  %v3020_v47 = vld [vmem:[%s4079_s1 + $0x714] ss:$8 sps:$4 sm:$0xff]   ;;  %v2406_v51 = vcombine.high %v59_v48, %v67_v49  ;;  %v3015_v52 = vld [vmem:[%s4079_s1 + $0x310] ss:$8 sps:$4 sm:$0xff]  }
  0x90   :  { %2090 = vmatpush1.bf16.msra.mxu0 %v2934_v53  ;;  %1879 = vmatprep.subr.bf16.mxu1 %v2939_v54  ;;  %v3018_v53 = vld [vmem:[%s4079_s1 + $0x710] ss:$8 sps:$4 sm:$0xff]   ;;  %v3023_v54 = vld [vmem:[%s4079_s1 + $0x324] ss:$8 sps:$4 sm:$0xff]  }
  0x91   :  { %2091 = vmatprep.subr.bf16.mxu0 %v2942_v55  ;;  %v3026_v55 = vld [vmem:[%s4079_s1 + $0x724] ss:$8 sps:$4 sm:$0xff]  }
  0x93   :  { %1880 = vmatpush1.bf16.msra.mxu1 %v2937_v56  ;;  %v3847_v56 = vld [vmem:[%s4080_s0 + $0x18] sm:$0xff] }
  0x94   :  { %2092 = vmatpush1.bf16.msra.mxu0 %v2940_v57  ;;  %1881 = vmatprep.subr.bf16.mxu1 %v2945_v58  ;;  %v2397_v57 = vcombine.low %v55_v40, %v63_v44  ;;  %v2405_v58 = vcombine.low %v59_v48, %v67_v49  ;;  %v3081_v40 = vld [vmem:[%s4079_s1 + $0x3c0] ss:$8 sps:$4 sm:$0xff]   ;;  %v3092_v44 = vld [vmem:[%s4079_s1 + $0x7d4] ss:$8 sps:$4 sm:$0xff]   ;;  %v3087_v48 = vld [vmem:[%s4079_s1 + $0x3d0] ss:$8 sps:$4 sm:$0xff]  }
  0x95   :  { %2093 = vmatprep.subr.bf16.mxu0 %v2948_v59  ;;  %v3852_v59 = vld [vmem:[%s4080_s0 + $0x58] sm:$0xff] }
  0x96   :  { %v3090_v49 = vld [vmem:[%s4079_s1 + $0x7d0] ss:$8 sps:$4 sm:$0xff]  }
  0x97   :  { %1882 = vmatpush1.bf16.msra.mxu1 %v2943_v60  ;;  %v3857_v60 = vld [vmem:[%s4080_s0 + $0x38] sm:$0xff] }
  0x98   :  { %2094 = vmatpush1.bf16.msra.mxu0 %v2946_v61  ;;  %1883 = vmatprep.subr.bf16.mxu1 %v2951_v62  ;;  %v3862_v61 = vld [vmem:[%s4080_s0 + $0x78] sm:$0xff]  ;;  %v3021_v62 = vld [vmem:[%s4079_s1 + $0x320] ss:$8 sps:$4 sm:$0xff]  }
  0x99   :  { %2095 = vmatprep.subr.bf16.mxu0 %v2954_v63  ;;  %v3024_v63 = vld [vmem:[%s4079_s1 + $0x720] ss:$8 sps:$4 sm:$0xff]  }
  0x9b   :  { %1884 = vmatpush1.bf16.msra.mxu1 %v2949_v0  ;;  %v3029_v0 = vld [vmem:[%s4079_s1 + $0x334] ss:$8 sps:$4 sm:$0xff]  }
  0x9c   :  { %2096 = vmatpush1.bf16.msra.mxu0 %v2952_v1  ;;  %1885 = vmatprep.subr.bf16.mxu1 %v2957_v2  ;;  %v3032_v1 = vld [vmem:[%s4079_s1 + $0x734] ss:$8 sps:$4 sm:$0xff]   ;;  %v2384_v2 = vcombine.high %v3847_v56, %v3852_v59 }
  0x9d   :  { %2097 = vmatprep.subr.bf16.mxu0 %v2960_v3  ;;  %v2392_v3 = vcombine.high %v3857_v60, %v3862_v61 }
  0x9f   :  { %1886 = vmatpush1.bf16.msra.mxu1 %v2955_v4  ;;  %v3027_v4 = vld [vmem:[%s4079_s1 + $0x330] ss:$8 sps:$4 sm:$0xff]  }
  0xa0   :  { %2098 = vmatpush1.bf16.msra.mxu0 %v2958_v5  ;;  %1887 = vmatprep.subr.bf16.mxu1 %v2963_v6  ;;  %v3030_v5 = vld [vmem:[%s4079_s1 + $0x730] ss:$8 sps:$4 sm:$0xff]   ;;  %v3035_v6 = vld [vmem:[%s4079_s1 + $0x344] ss:$8 sps:$4 sm:$0xff]  }
  0xa1   :  { %2099 = vmatprep.subr.bf16.mxu0 %v2966_v7  ;;  %v3038_v7 = vld [vmem:[%s4079_s1 + $0x744] ss:$8 sps:$4 sm:$0xff]  }
  0xa3   :  { %1888 = vmatpush1.bf16.msra.mxu1 %v2961_v8  ;;  %v3033_v8 = vld [vmem:[%s4079_s1 + $0x340] ss:$8 sps:$4 sm:$0xff]  }
  0xa4   :  { %2100 = vmatpush1.bf16.msra.mxu0 %v2964_v9  ;;  %1889 = vmatprep.subr.bf16.mxu1 %v2969_v10  ;;  %v3036_v9 = vld [vmem:[%s4079_s1 + $0x740] ss:$8 sps:$4 sm:$0xff]   ;;  %v3041_v10 = vld [vmem:[%s4079_s1 + $0x354] ss:$8 sps:$4 sm:$0xff]  }
  0xa5   :  { %2101 = vmatprep.subr.bf16.mxu0 %v2972_v11  ;;  %v3044_v11 = vld [vmem:[%s4079_s1 + $0x754] ss:$8 sps:$4 sm:$0xff]  }
  0xa7   :  { %1890 = vmatpush1.bf16.msra.mxu1 %v2967_v12  ;;  %v3039_v12 = vld [vmem:[%s4079_s1 + $0x350] ss:$8 sps:$4 sm:$0xff]  }
  0xa8   :  { %2102 = vmatpush1.bf16.msra.mxu0 %v2970_v13  ;;  %1891 = vmatprep.subr.bf16.mxu1 %v2975_v14  ;;  %v3042_v13 = vld [vmem:[%s4079_s1 + $0x750] ss:$8 sps:$4 sm:$0xff]   ;;  %v3047_v14 = vld [vmem:[%s4079_s1 + $0x364] ss:$8 sps:$4 sm:$0xff]  }
  0xa9   :  { %2103 = vmatprep.subr.bf16.mxu0 %v2978_v15  ;;  %v3050_v15 = vld [vmem:[%s4079_s1 + $0x764] ss:$8 sps:$4 sm:$0xff]  }
  0xab   :  { %1892 = vmatpush1.bf16.msra.mxu1 %v2973_v16  ;;  %v3045_v16 = vld [vmem:[%s4079_s1 + $0x360] ss:$8 sps:$4 sm:$0xff]  }
  0xac   :  { %2104 = vmatpush1.bf16.msra.mxu0 %v2976_v17  ;;  %1893 = vmatprep.subr.bf16.mxu1 %v2981_v18  ;;  %v3048_v17 = vld [vmem:[%s4079_s1 + $0x760] ss:$8 sps:$4 sm:$0xff]   ;;  %v3053_v18 = vld [vmem:[%s4079_s1 + $0x374] ss:$8 sps:$4 sm:$0xff]  }
  0xad   :  { %2105 = vmatprep.subr.bf16.mxu0 %v2984_v19  ;;  %v3056_v19 = vld [vmem:[%s4079_s1 + $0x774] ss:$8 sps:$4 sm:$0xff]  }
  0xaf   :  { %1894 = vmatpush1.bf16.msra.mxu1 %v2979_v20  ;;  %v3051_v20 = vld [vmem:[%s4079_s1 + $0x370] ss:$8 sps:$4 sm:$0xff]  }
  0xb0   :  { %2106 = vmatpush1.bf16.msra.mxu0 %v2982_v21  ;;  %1895 = vmatprep.subr.bf16.mxu1 %v2987_v22  ;;  %v3054_v21 = vld [vmem:[%s4079_s1 + $0x770] ss:$8 sps:$4 sm:$0xff]   ;;  %v3059_v22 = vld [vmem:[%s4079_s1 + $0x384] ss:$8 sps:$4 sm:$0xff]  }
  0xb1   :  { %2107 = vmatprep.subr.bf16.mxu0 %v2990_v23  ;;  %v3062_v23 = vld [vmem:[%s4079_s1 + $0x784] ss:$8 sps:$4 sm:$0xff]  }
  0xb3   :  { %1896 = vmatpush1.bf16.msra.mxu1 %v2985_v24  ;;  %v3057_v24 = vld [vmem:[%s4079_s1 + $0x380] ss:$8 sps:$4 sm:$0xff]  }
  0xb4   :  { %2108 = vmatpush1.bf16.msra.mxu0 %v2988_v25  ;;  %1897 = vmatprep.subr.bf16.mxu1 %v2993_v26  ;;  %v3060_v25 = vld [vmem:[%s4079_s1 + $0x780] ss:$8 sps:$4 sm:$0xff]   ;;  %v3065_v26 = vld [vmem:[%s4079_s1 + $0x394] ss:$8 sps:$4 sm:$0xff]  }
  0xb5   :  { %2109 = vmatprep.subr.bf16.mxu0 %v2996_v27  ;;  %v3068_v27 = vld [vmem:[%s4079_s1 + $0x794] ss:$8 sps:$4 sm:$0xff]  }
  0xb7   :  { %1898 = vmatpush1.bf16.msra.mxu1 %v2991_v28  ;;  %v3063_v28 = vld [vmem:[%s4079_s1 + $0x390] ss:$8 sps:$4 sm:$0xff]  }
  0xb8   :  { %2110 = vmatpush1.bf16.msra.mxu0 %v2994_v29  ;;  %1899 = vmatprep.subr.bf16.mxu1 %v2999_v30  ;;  %v3066_v29 = vld [vmem:[%s4079_s1 + $0x790] ss:$8 sps:$4 sm:$0xff]   ;;  %v3071_v30 = vld [vmem:[%s4079_s1 + $0x3a4] ss:$8 sps:$4 sm:$0xff]  }
  0xb9   :  { %2111 = vmatprep.subr.bf16.mxu0 %v3002_v31  ;;  %v3074_v31 = vld [vmem:[%s4079_s1 + $0x7a4] ss:$8 sps:$4 sm:$0xff]  }
  0xbb   :  { %1900 = vmatpush1.bf16.msra.mxu1 %v2997_v32  ;;  %v3069_v32 = vld [vmem:[%s4079_s1 + $0x3a0] ss:$8 sps:$4 sm:$0xff]  }
  0xbc   :  { %2112 = vmatpush1.bf16.msra.mxu0 %v3000_v33  ;;  %1901 = vmatprep.subr.bf16.mxu1 %v3005_v34  ;;  %v3072_v33 = vld [vmem:[%s4079_s1 + $0x7a0] ss:$8 sps:$4 sm:$0xff]   ;;  %v3077_v34 = vld [vmem:[%s4079_s1 + $0x3b4] ss:$8 sps:$4 sm:$0xff]  }
  0xbd   :  { %2113 = vmatprep.subr.bf16.mxu0 %v3008_v35  ;;  %v3080_v35 = vld [vmem:[%s4079_s1 + $0x7b4] ss:$8 sps:$4 sm:$0xff]  }
  0xbf   :  { %1902 = vmatpush1.bf16.msra.mxu1 %v3003_v36  ;;  %v3075_v36 = vld [vmem:[%s4079_s1 + $0x3b0] ss:$8 sps:$4 sm:$0xff]  }
  0xc0   :  { %2114 = vmatpush1.bf16.msra.mxu0 %v3006_v37  ;;  %1924 = vmatprep.subr.bf16.mxu1 %v3011_v38  ;;  %v3078_v37 = vld [vmem:[%s4079_s1 + $0x7b0] ss:$8 sps:$4 sm:$0xff]   ;;  %v3083_v38 = vld [vmem:[%s4079_s1 + $0x3c4] ss:$8 sps:$4 sm:$0xff]  }
  0xc1   :  { %2136 = vmatprep.subr.bf16.mxu0 %v3014_v39  ;;  %v3086_v39 = vld [vmem:[%s4079_s1 + $0x7c4] ss:$8 sps:$4 sm:$0xff]  }
  0xc2   :  { %1904 = vmatmul.mubr.bf16.vlgmr.msra.gmra.mrb[0].mxu1 %v2381_v41  ;;  %v3084_v41 = vld [vmem:[%s4079_s1 + $0x7c0] ss:$8 sps:$4 sm:$0xff]  }
  0xc3   :  { %2116 = vmatmul.mubr.bf16.vlgmr.msra.gmra.mrb[0].mxu0 %v2389_v43  ;;  %1925 = vmatpush1.bf16.msra.mxu1 %v3009_v42  ;;  %v3089_v43 = vld [vmem:[%s4079_s1 + $0x3d4] ss:$8 sps:$4 sm:$0xff]   ;;  %v3095_v42 = vld [vmem:[%s4079_s1 + $0x3e4] ss:$8 sps:$4 sm:$0xff]  }
  0xc4   :  { %2137 = vmatpush1.bf16.msra.mxu0 %v3012_v45  ;;  %1926 = vmatprep.subr.bf16.mxu1 %v3017_v46  ;;  %v3098_v45 = vld [vmem:[%s4079_s1 + $0x7e4] ss:$8 sps:$4 sm:$0xff]   ;;  %v3093_v46 = vld [vmem:[%s4079_s1 + $0x3e0] ss:$8 sps:$4 sm:$0xff]  }
  0xc5   :  { %2138 = vmatprep.subr.bf16.mxu0 %v3020_v47  ;;  %1913 = vmatprep.mubr.bf16.mxu1 %v2398_v50  ;;  %v3096_v47 = vld [vmem:[%s4079_s1 + $0x7e0] ss:$8 sps:$4 sm:$0xff]   ;;  %v3101_v50 = vld [vmem:[%s4079_s1 + $0x3f4] ss:$8 sps:$4 sm:$0xff]  }
  0xc6   :  { %2125 = vmatprep.mubr.bf16.mxu0 %v2406_v51  ;;  %v3104_v51 = vld [vmem:[%s4079_s1 + $0x7f4] ss:$8 sps:$4 sm:$0xff]  }
  0xc7   :  { %1927 = vmatpush1.bf16.msra.mxu1 %v3015_v52  ;;  %v3099_v52 = vld [vmem:[%s4079_s1 + $0x3f0] ss:$8 sps:$4 sm:$0xff]  }
  0xc8   :  { %2139 = vmatpush1.bf16.msra.mxu0 %v3018_v53  ;;  %1928 = vmatprep.subr.bf16.mxu1 %v3023_v54  ;;  %v3102_v53 = vld [vmem:[%s4079_s1 + $0x7f0] ss:$8 sps:$4 sm:$0xff]  }
  0xc9   :  { %2140 = vmatprep.subr.bf16.mxu0 %v3026_v55  ;;  %v56_v54 = vld [vmem:[%s4080_s0 + $0x98] sm:$0xff] }
  0xca   :  { %1914 = vmatmul.mubr.bf16.gmra.mrb[4].mxu1 %v2397_v57  ;;  %v64_v55 = vld [vmem:[%s4080_s0 + $0xd8] sm:$0xff] }
  0xcb   :  { %2126 = vmatmul.mubr.bf16.gmra.mrb[4].mxu0 %v2405_v58  ;;  %1929 = vmatpush1.bf16.msra.mxu1 %v3021_v62  ;;  %v60_v57 = vld [vmem:[%s4080_s0 + $0xb8] sm:$0xff]  ;;  %v2383_v62 = vcombine.low %v3847_v56, %v3852_v59 }
  0xcc   :  { %2141 = vmatpush1.bf16.msra.mxu0 %v3024_v63  ;;  %1930 = vmatprep.subr.bf16.mxu1 %v3029_v0  ;;  %v68_v58 = vld [vmem:[%s4080_s0 + $0xf8] sm:$0xff]  ;;  %v2391_v63 = vcombine.low %v3857_v60, %v3862_v61  ;;  %v2400_v0 = vcombine.high %v56_v54, %v64_v55 }
  0xcd   :  { %2142 = vmatprep.subr.bf16.mxu0 %v3032_v1  ;;  %1956 = vmatprep.mubr.bf16.mxu1 %v2384_v2  ;;  %v2408_v1 = vcombine.high %v60_v57, %v68_v58  ;;  %v2399_v2 = vcombine.low %v56_v54, %v64_v55 }
  0xce   :  { %2168 = vmatprep.mubr.bf16.mxu0 %v2392_v3  ;;  %v2407_v3 = vcombine.low %v60_v57, %v68_v58 }
  0xcf   :  { %1931 = vmatpush1.bf16.msra.mxu1 %v3027_v4 }
  0xd0   :  { %2143 = vmatpush1.bf16.msra.mxu0 %v3030_v5  ;;  %1932 = vmatprep.subr.bf16.mxu1 %v3035_v6 }
  0xd1   :  { %2144 = vmatprep.subr.bf16.mxu0 %v3038_v7 }
  0xd3   :  { %1933 = vmatpush1.bf16.msra.mxu1 %v3033_v8 }
  0xd4   :  { %2145 = vmatpush1.bf16.msra.mxu0 %v3036_v9  ;;  %1934 = vmatprep.subr.bf16.mxu1 %v3041_v10 }
  0xd5   :  { %2146 = vmatprep.subr.bf16.mxu0 %v3044_v11 }
  0xd7   :  { %1935 = vmatpush1.bf16.msra.mxu1 %v3039_v12 }
  0xd8   :  { %2147 = vmatpush1.bf16.msra.mxu0 %v3042_v13  ;;  %1936 = vmatprep.subr.bf16.mxu1 %v3047_v14 }
  0xd9   :  { %2148 = vmatprep.subr.bf16.mxu0 %v3050_v15 }
  0xdb   :  { %1937 = vmatpush1.bf16.msra.mxu1 %v3045_v16 }
  0xdc   :  { %2149 = vmatpush1.bf16.msra.mxu0 %v3048_v17  ;;  %1938 = vmatprep.subr.bf16.mxu1 %v3053_v18 }
  0xdd   :  { %2150 = vmatprep.subr.bf16.mxu0 %v3056_v19 }
  0xdf   :  { %1939 = vmatpush1.bf16.msra.mxu1 %v3051_v20 }
  0xe0   :  { %2151 = vmatpush1.bf16.msra.mxu0 %v3054_v21  ;;  %1940 = vmatprep.subr.bf16.mxu1 %v3059_v22 }
  0xe1   :  { %2152 = vmatprep.subr.bf16.mxu0 %v3062_v23 }
  0xe3   :  { %1941 = vmatpush1.bf16.msra.mxu1 %v3057_v24 }
  0xe4   :  { %2153 = vmatpush1.bf16.msra.mxu0 %v3060_v25  ;;  %1942 = vmatprep.subr.bf16.mxu1 %v3065_v26 }
  0xe5   :  { %2154 = vmatprep.subr.bf16.mxu0 %v3068_v27 }
  0xe7   :  { %1943 = vmatpush1.bf16.msra.mxu1 %v3063_v28 }
  0xe8   :  { %2155 = vmatpush1.bf16.msra.mxu0 %v3066_v29  ;;  %1944 = vmatprep.subr.bf16.mxu1 %v3071_v30 }
  0xe9   :  { %2156 = vmatprep.subr.bf16.mxu0 %v3074_v31 }
  0xeb   :  { %1945 = vmatpush1.bf16.msra.mxu1 %v3069_v32 }
  0xec   :  { %2157 = vmatpush1.bf16.msra.mxu0 %v3072_v33  ;;  %1946 = vmatprep.subr.bf16.mxu1 %v3077_v34 }
  0xed   :  { %2158 = vmatprep.subr.bf16.mxu0 %v3080_v35 }
  0xef   :  { %1947 = vmatpush1.bf16.msra.mxu1 %v3075_v36 }
  0xf0   :  { %2159 = vmatpush1.bf16.msra.mxu0 %v3078_v37  ;;  %1948 = vmatprep.subr.bf16.mxu1 %v3083_v38 }
  0xf1   :  { %2160 = vmatprep.subr.bf16.mxu0 %v3086_v39 }
  0xf3   :  { %1949 = vmatpush1.bf16.msra.mxu1 %v3081_v40 }
  0xf4   :  { %2161 = vmatpush1.bf16.msra.mxu0 %v3084_v41  ;;  %1950 = vmatprep.subr.bf16.mxu1 %v3089_v43 }
  0xf5   :  { %2162 = vmatprep.subr.bf16.mxu0 %v3092_v44 }
  0xf7   :  { %1951 = vmatpush1.bf16.msra.mxu1 %v3087_v48 }
  0xf8   :  { %2163 = vmatpush1.bf16.msra.mxu0 %v3090_v49  ;;  %1952 = vmatprep.subr.bf16.mxu1 %v3095_v42 }
  0xf9   :  { %2164 = vmatprep.subr.bf16.mxu0 %v3098_v45 }
  0xfb   :  { %1953 = vmatpush1.bf16.msra.mxu1 %v3093_v46 }
  0xfc   :  { %2165 = vmatpush1.bf16.msra.mxu0 %v3096_v47  ;;  %1954 = vmatprep.subr.bf16.mxu1 %v3101_v50 }
  0xfd   :  { %2166 = vmatprep.subr.bf16.mxu0 %v3104_v51 }
  0xff   :  { %1955 = vmatpush1.bf16.msra.mxu1 %v3099_v52 }
 0x100   :  { %2167 = vmatpush1.bf16.msra.mxu0 %v3102_v53 }
 0x102   :  { %1957 = vmatmul.mubr.bf16.vlgmr.msra.gmra.mrb[0].mxu1 %v2383_v62 }
 0x103   :  { %2169 = vmatmul.mubr.bf16.vlgmr.msra.gmra.mrb[0].mxu0 %v2391_v63  ;;  %1966 = vmatprep.mubr.bf16.mxu1 %v2400_v0 }
 0x104   :  { %2178 = vmatprep.mubr.bf16.mxu0 %v2408_v1 }
 0x10a   :  { %1967 = vmatmul.mubr.bf16.gmra.mrb[4].mxu1 %v2399_v2 }
 0x10b   :  { %2179 = vmatmul.mubr.bf16.gmra.mrb[4].mxu0 %v2407_v3 }
 0x1d5   :  { %v1958_v4 = vpop.f32.mrb[0].mxu1 }
 0x1d6   :  { %v2170_v5 = vpop.f32.mrb[0].mxu0  ;;  %v1960_v7 = vpop.f32.mrb[1].mxu1 }
 0x1d7   :  { %v2665_v6 = vadd.f32 %v2170_v5, %v1958_v4  ;;  %v2172_v56 = vpop.f32.mrb[1].mxu0  ;;  %v1962_v8 = vpop.f32.mrb[2].mxu1 }
 0x1d8   :  { %v2666_v59 = vadd.f32 %v2172_v56, %v1960_v7  ;;  %v2174_v60 = vpop.f32.mrb[2].mxu0  ;;  %v1964_v9 = vpop.f32.mrb[3].mxu1 }
 0x1d9   :  { %v2667_v61 = vadd.f32 %v2174_v60, %v1962_v8  ;;  %v2176_v10 = vpop.f32.mrb[3].mxu0 }
 0x1da   :  { %v2668_v11 = vadd.f32 %v2176_v10, %v1964_v9 }
 0x1db   :  { %v2216_v12 = vadd.f32 %v2667_v61, %v2665_v6 }
 0x1dc   :  { %v2225_v13 = vadd.f32 %v2668_v11, %v2666_v59 }
 0x1dd   :  { %v1968_v14 = vpop.f32.mrb[4].mxu1 }
 0x1de   :  { %v2180_v15 = vpop.f32.mrb[4].mxu0  ;;  %v1970_v17 = vpop.f32.mrb[5].mxu1 }
 0x1df   :  { %v2669_v16 = vadd.f32 %v2180_v15, %v1968_v14  ;;  %v2182_v18 = vpop.f32.mrb[5].mxu0  ;;  %v1972_v20 = vpop.f32.mrb[6].mxu1  ;;  %v2303_v15 = vlaneseq }
 0x1e0   :  { %v2670_v19 = vadd.f32 %v2182_v18, %v1970_v17  ;;  %v2184_v21 = vpop.f32.mrb[6].mxu0  ;;  %v1974_v24 = vpop.f32.mrb[7].mxu1 }
 0x1e1   :  { %v2217_v22 = vadd.f32 %v2669_v16, %v2216_v12  ;;  %v2671_v23 = vadd.f32 %v2184_v21, %v1972_v20  ;;  %v2186_v25 = vpop.f32.mrb[7].mxu0  ;;  %v2301_v21 = vld [vmem:[%s4081_s2] sm:$0x3] }
 0x1e2   :  { %v2226_v26 = vadd.f32 %v2670_v19, %v2225_v13  ;;  %v2672_v27 = vadd.f32 %v2186_v25, %v1974_v24 }
 0x1e3   :  { %v2218_v28 = vadd.f32 %v2671_v23, %v2217_v22 }
 0x1e4   :  { %v2227_v29 = vadd.f32 %v2672_v27, %v2226_v26 }
 0x1e5   :  { %v2219_v30 = vrot.slane %v2218_v28, 4 }
 0x1e6   :  { %v2228_v31 = vrot.slane %v2227_v29, 4 }
 0x1e7   :  { %v2220_v32 = vadd.f32 %v2219_v30, %v2218_v28 }
 0x1e8   :  { %v2229_v33 = vadd.f32 %v2228_v31, %v2227_v29 }
 0x1e9   :  { %v2221_v34 = vrot.slane %v2220_v32, 2 }
 0x1ea   :  { %v2230_v35 = vrot.slane %v2229_v33, 2 }
 0x1eb   :  { %v2222_v36 = vadd.f32 %v2221_v34, %v2220_v32 }
 0x1ec   :  { %v2231_v37 = vadd.f32 %v2230_v35, %v2229_v33 }
 0x1ed   :  { %v2223_v38 = vrot.slane %v2222_v36, 1 }
 0x1ee   :  { %v2232_v39 = vrot.slane %v2231_v37, 1 }
 0x1ef   :  { %v2224_v40 = vadd.f32 %v2223_v38, %v2222_v36 }
 0x1f0   :  { %v2233_v41 = vadd.f32 %v2232_v39, %v2231_v37 }
 0x1f1   :  { %v2234_v43 = vmul.f32 0.03125, %v2224_v40 }
 0x1f2   :  { %v2235_v44 = vmul.f32 0.03125, %v2233_v41 }
 0x1f3   :  { %v2245_v48 = vsub.f32 %v2665_v6, %v2234_v43  ;;  %v2247_v49 = vsub.f32 %v2667_v61, %v2234_v43  ;;  %v2249_v42 = vsub.f32 %v2669_v16, %v2234_v43  ;;  %v2251_v45 = vsub.f32 %v2671_v23, %v2234_v43  ;;  %v2321_v23 = vld [vmem:[%s4082_s3] sm:$0x3] }
 0x1f4   :  { %v2246_v46 = vsub.f32 %v2666_v59, %v2235_v44  ;;  %v2248_v47 = vsub.f32 %v2668_v11, %v2235_v44  ;;  %v2250_v50 = vsub.f32 %v2670_v19, %v2235_v44  ;;  %v2252_v51 = vsub.f32 %v2672_v27, %v2235_v44 }
 0x1f5   :  { %v2261_v52 = vmul.f32 %v2245_v48, %v2245_v48  ;;  %v2263_v53 = vmul.f32 %v2247_v49, %v2247_v49  ;;  %v2265_v57 = vmul.f32 %v2249_v42, %v2249_v42  ;;  %v2267_v0 = vmul.f32 %v2251_v45, %v2251_v45 }
 0x1f6   :  { %v2262_v54 = vmul.f32 %v2246_v46, %v2246_v46  ;;  %v2264_v55 = vmul.f32 %v2248_v47, %v2248_v47  ;;  %v2266_v62 = vmul.f32 %v2250_v50, %v2250_v50  ;;  %v2268_v2 = vmul.f32 %v2252_v51, %v2252_v51 }
 0x1f7   :  { %v2269_v58 = vadd.f32 %v2263_v53, %v2261_v52  ;;  %v2304_v19 = vshrl.u32 %v2303_v15, 7 }
 0x1f8   :  { %v2278_v63 = vadd.f32 %v2264_v55, %v2262_v54 }
 0x1f9   :  { %v2270_v1 = vadd.f32 %v2269_v58, %v2265_v57  ;;  %v2305_v20 = vsub.s32 0, %v2304_v19  ;;  %v2309_v22 = vsub.s32 1, %v2304_v19 }
 0x1fa   :  { %v2279_v3 = vadd.f32 %v2278_v63, %v2266_v62 }
 0x1fb   :  { %v2271_v4 = vadd.f32 %v2270_v1, %v2267_v0  ;;  %v2306_v24 = vrot.slane %v2301_v21, %v2305_v20  ;;  %v2326_v26 = vrot.slane %v2321_v23, %v2305_v20  ;;  %v2310_v27 = vrot.slane %v2301_v21, %v2309_v22 }
 0x1fc   :  { %v2280_v5 = vadd.f32 %v2279_v3, %v2268_v2  ;;  %v2330_v28 = vrot.slane %v2321_v23, %v2309_v22 }
 0x1fd   :  { %v2272_v6 = vrot.slane %v2271_v4, 4 }
 0x1fe   :  { %v2281_v7 = vrot.slane %v2280_v5, 4 }
 0x1ff   :  { %v2273_v56 = vadd.f32 %v2272_v6, %v2271_v4 }
 0x200   :  { %v2282_v59 = vadd.f32 %v2281_v7, %v2280_v5 }
 0x201   :  { %v2274_v8 = vrot.slane %v2273_v56, 2 }
 0x202   :  { %v2283_v60 = vrot.slane %v2282_v59, 2 }
 0x203   :  { %v2275_v61 = vadd.f32 %v2274_v8, %v2273_v56 }
 0x204   :  { %v2284_v9 = vadd.f32 %v2283_v60, %v2282_v59 }
 0x205   :  { %v2276_v10 = vrot.slane %v2275_v61, 1 }
 0x206   :  { %v2285_v11 = vrot.slane %v2284_v9, 1 }
 0x207   :  { %v2277_v12 = vadd.f32 %v2276_v10, %v2275_v61 }
 0x208   :  { %v2286_v13 = vadd.f32 %v2285_v11, %v2284_v9 }
 0x209   :  { %v2287_v14 = vmul.f32 0.03125, %v2277_v12 }
 0x20a   :  { %v2288_v16 = vmul.f32 0.03125, %v2286_v13 }
 0x20b   :  { %v2289_v17 = vadd.f32 1e-05, %v2287_v14 }
 0x20c   :  { %v2290_v18 = vadd.f32 1e-05, %v2288_v16 }
 0x20d   :  { %3105 = vrsqrt.f32 %v2289_v17 }
 0x20e   :  { %3107 = vrsqrt.f32 %v2290_v18 }
 0x217   :  { %v3106_v25 = vpop.eup %3105 }
 0x218   :  { %v3108_v29 = vpop.eup %3107  ;;  %v2293_v30 = vmul.f32 %v3106_v25, %v2245_v48  ;;  %v2295_v31 = vmul.f32 %v3106_v25, %v2247_v49  ;;  %v2297_v32 = vmul.f32 %v3106_v25, %v2249_v42  ;;  %v2299_v33 = vmul.f32 %v3106_v25, %v2251_v45 }
 0x219   :  { %v2294_v34 = vmul.f32 %v3108_v29, %v2246_v46  ;;  %v2296_v35 = vmul.f32 %v3108_v29, %v2248_v47  ;;  %v2298_v36 = vmul.f32 %v3108_v29, %v2250_v50  ;;  %v2300_v37 = vmul.f32 %v3108_v29, %v2252_v51 }
 0x21a   :  { %v2313_v38 = vmul.f32 %v2306_v24, %v2293_v30  ;;  %v2315_v39 = vmul.f32 %v2306_v24, %v2295_v31  ;;  %v2317_v40 = vmul.f32 %v2306_v24, %v2297_v32  ;;  %v2319_v41 = vmul.f32 %v2306_v24, %v2299_v33 }
 0x21b   :  { %v2314_v43 = vmul.f32 %v2310_v27, %v2294_v34  ;;  %v2316_v44 = vmul.f32 %v2310_v27, %v2296_v35  ;;  %v2318_v52 = vmul.f32 %v2310_v27, %v2298_v36  ;;  %v2320_v53 = vmul.f32 %v2310_v27, %v2300_v37 }
 0x21c   :  { %v2333_v54 = vadd.f32 %v2326_v26, %v2313_v38  ;;  %v2335_v55 = vadd.f32 %v2326_v26, %v2315_v39  ;;  %v2337_v57 = vadd.f32 %v2326_v26, %v2317_v40  ;;  %v2339_v58 = vadd.f32 %v2326_v26, %v2319_v41 }
 0x21d   :  { %v2334_v48 = vadd.f32 %v2330_v28, %v2314_v43  ;;  %v2336_v49 = vadd.f32 %v2330_v28, %v2316_v44  ;;  %v2338_v42 = vadd.f32 %v2330_v28, %v2318_v52  ;;  %v2340_v45 = vadd.f32 %v2330_v28, %v2320_v53 }
 0x21e   :  { %vm2341_vm0 = vcmp.gt.f32.partialorder %v2333_v54, 0.0  ;;  %vm2343_vm1 = vcmp.gt.f32.partialorder %v2335_v55, 0.0  ;;  %vm2345_vm2 = vcmp.gt.f32.partialorder %v2337_v57, 0.0  ;;  %vm2347_vm3 = vcmp.gt.f32.partialorder %v2339_v58, 0.0 }
 0x21f   :  { %v2349_v46 = vmul.f32 0.2, %v2333_v54  ;;  %v2351_v47 = vmul.f32 0.2, %v2335_v55  ;;  %v2353_v50 = vmul.f32 0.2, %v2337_v57 }
 0x220   :  { %v2355_v51 = vmul.f32 0.2, %v2339_v58  ;;  %vm2342_vm4 = vcmp.gt.f32.partialorder %v2334_v48, 0.0  ;;  %vm2344_vm5 = vcmp.gt.f32.partialorder %v2336_v49, 0.0  ;;  %vm2346_vm6 = vcmp.gt.f32.partialorder %v2338_v42, 0.0 }
 0x221   :  { %v2357_v62 = vsel %vm2341_vm0, %v2333_v54, %v2349_v46  ;;  %v2359_v63 = vsel %vm2343_vm1, %v2335_v55, %v2351_v47  ;;  %v2361_v0 = vsel %vm2345_vm2, %v2337_v57, %v2353_v50  ;;  %vm2348_vm7 = vcmp.gt.f32.partialorder %v2340_v45, 0.0 }
 0x222   :  { %v2363_v1 = vsel %vm2347_vm3, %v2339_v58, %v2355_v51  ;;  %2365 = vst [vmem:[%s4083_s4] sm:$0xff] %v2357_v62  ;;  %2367 = vst [vmem:[%s4083_s4 + $0x10] sm:$0xff] %v2359_v63  ;;  %v2350_v2 = vmul.f32 0.2, %v2334_v48  ;;  %v2352_v3 = vmul.f32 0.2, %v2336_v49 }
 0x223   :  { %2369 = vst [vmem:[%s4083_s4 + $0x20] sm:$0xff] %v2361_v0  ;;  %v2354_v4 = vmul.f32 0.2, %v2338_v42  ;;  %2371 = vst [vmem:[%s4083_s4 + $0x30] sm:$0xff] %v2363_v1  ;;  %v2356_v5 = vmul.f32 0.2, %v2340_v45 }
 0x224   :  { %v2358_v6 = vsel %vm2342_vm4, %v2334_v48, %v2350_v2  ;;  %v2360_v7 = vsel %vm2344_vm5, %v2336_v49, %v2352_v3 }
 0x225   :  { %v2362_v56 = vsel %vm2346_vm6, %v2338_v42, %v2354_v4  ;;  %v2364_v59 = vsel %vm2348_vm7, %v2340_v45, %v2356_v5  ;;  %2366 = vst [vmem:[%s4083_s4 + $0x8] sm:$0xff] %v2358_v6  ;;  %2368 = vst [vmem:[%s4083_s4 + $0x18] sm:$0xff] %v2360_v7 }
 0x226   :  { %2370 = vst [vmem:[%s4083_s4 + $0x28] sm:$0xff] %v2362_v56  ;;  %2372 = vst [vmem:[%s4083_s4 + $0x38] sm:$0xff] %v2364_v59 }

// kernel: discriminator_forward.8
= control target key start
LH: loop header
LB: loop body
LE: loop exit
PB: predicated region body
PF: predicated region fallthrough
CT: control target
= control target key end

     0   :  { %s5887_s0 = inlined_call_operand.vmem [shape: bf16[24,4096], index: 0, kind: input, shape index: {}]   ;;  %s5888_s1 = inlined_call_operand.vmem [shape: bf16[4096,512], index: 1, kind: input, shape index: {}]   ;;  %s5889_s2 = inlined_call_operand.vmem [shape: f32[1,512], index: 2, kind: input, shape index: {}]   ;;  %s5890_s3 = inlined_call_operand.vmem [shape: f32[1,512], index: 3, kind: input, shape index: {}]   ;;  %s5891_s4 = inlined_call_operand.vmem [shape: f32[24,512], index: 4, kind: output, shape index: {}]  }
   0x1   :  { %5894 = sst [smem:[#allocation8_spill]] %s5887_s0 }
   0x2   :  { %5895 = sst [smem:[#allocation9_spill]] %s5888_s1 }
   0x3   :  { %s4787_s15 = smov 0   ;;  %s4789_s16 = smov 0  }
   0x4   :  { %s4791_s17 = smov 0   ;;  %s4793_s18 = smov 0  }
   0x5   :  { %s4795_s19 = smov 0   ;;  %s4797_s20 = smov 0  }
   0x6   :  { %s4799_s21 = smov 0   ;;  %s4801_s22 = smov 0  }
   0x7   :  { %s4803_s23 = smov 0   ;;  %s4805_s24 = smov 0  }
   0x8   :  { %s4807_s25 = smov 0  }
   0x9 LB: > { %s3837_s26 = sadd.s32 4294967295, %s4759_s25   ;;  %s26_s27 = sadd.s32 1, %s4751_s23  ;;  %s4759_s25 = sphi %s4807_s25, %s14_s25   ;;  %s4755_s24 = sphi %s4805_s24, %s5914_s24   ;;  %s4751_s23 = sphi %s4803_s23, %s5913_s23   ;;  %s4747_s22 = sphi %s4801_s22, %s5912_s22   ;;  %s4743_s21 = sphi %s4799_s21, %s5911_s21   ;;  %s4739_s20 = sphi %s4797_s20, %s5910_s20   ;;  %s4735_s19 = sphi %s4795_s19, %s5909_s19   ;;  %s4731_s18 = sphi %s4793_s18, %s5908_s18   ;;  %s4727_s17 = sphi %s4791_s17, %s5907_s17   ;;  %s4723_s16 = sphi %s4789_s16, %s5906_s16   ;;  %s4719_s15 = sphi %s4787_s15, %s5905_s15  }
   0xa   : > { %p27_p0 = scmp.ge.s32.totalorder %s26_s27, 2  ;;  %s33_s28 = sadd.s32 1, %s4755_s24 }
   0xb   : > { %s42_s29 = sadd.s32 1, %s4739_s20  ;;  %p49_p1 = scmp.ne.s32.totalorder %s4739_s20, %s4735_s19 }
   0xc   : > { %s5916_s27 = smov (%p27_p0, %s26_s27), 0  ;;  %s5918_s28 = smov (!%p27_p0, %s33_s28), %s4755_s24 }
   0xd   : > { %5896 = sst [smem:[#allocation6_spill]] %s5916_s27  ;;  %s38_s30 = ssub.s32 %s4751_s23, %s5916_s27 }
   0xe   : > { %p50_p2 = scmp.eq.s32.totalorder %s4759_s25, 0  ;;  %p35_p3 = scmp.ge.s32.totalorder %s5918_s28, 2 }
   0xf   : > { %p40_p4 = scmp.eq.s32.totalorder %s38_s30, 0  ;;  %s70_s6 = sadd.s32 1, %s4731_s18 }
  0x10   : > { %p4854_p5 = por %p50_p2, %p49_p1  ;;  %s5920_s28 = smov (%p35_p3, %s5918_s28), 0 }
  0x11   : > { %5898 = sst [smem:[#allocation7_spill]] %s5920_s28  ;;  %s66_s8 = ssub.s32 %s4755_s24, %s5920_s28 }
  0x12   : > { %s4862_s7 = scalar_select %p40_p4, %s4739_s20, %s42_s29  }
  0x13   : > { %p77_p6 = scmp.ne.s32.totalorder %s4731_s18, %s4727_s17  ;;  %s67_s9 = sor.u32 %s66_s8, %s38_s30 }
  0x14   : > { %p148_p7 = scmp.eq.s32.totalorder %s66_s8, 0  ;;  %p68_p8 = scmp.eq.s32.totalorder %s67_s9, 0 }
  0x15   : > { %p4868_p9 = por %p77_p6, %p50_p2  ;;  %s150_s11 = sadd.s32 1, %s4723_s16 }
  0x16   : > { %p160_p10 = scmp.ne.s32.totalorder %s4723_s16, %s4719_s15  ;;  %p161_p11 = scmp.eq.s32.totalorder %s3837_s26, 3 }
  0x17   : > { %s4876_s12 = scalar_select %p68_p8, %s4731_s18, %s70_s6  }
  0x18   : > { %s4879_s13 = scalar_select %p148_p7, %s4723_s16, %s150_s11  }
  0x19   : > { %p4881_p12 = por %p161_p11, %p160_p10  ;;  %p3840_p13 = scmp.ge.s32.totalorder %s4759_s25, 4 }
  0x1b   : > { %183 = sbr.rel (%p3840_p13) target bundleno = 195 (0xc3), region = 16 }
  0x22   : > { %186 = sbr.rel (!%p4854_p5) target bundleno = 57 (0x39), region = 20  ;;  %s188_s29 = sand.u32 (%p4854_p5), 1, %s4739_s20  }
  0x23   : > { %s4146_s30 = sshll.u32 (%p4854_p5), %s4751_s23, 6  ;;  %s4177_s8 = smul.u32 (%p4854_p5), 192, %s188_s29 }
  0x24   : > { %s5901_s0 = sld [smem:[#allocation8_spill]] (%p4854_p5) }
  0x25   : > { %s4901_s26 = scalar_lea.vmem (%p4854_p5), [#allocation3], %s4177_s8 }
  0x2a   : > { %s4893_s11 = scalar_lea.vmem %s5901_s0, %s4146_s30 }
  0x2b   : > { %v209_v0 = vld [vmem:[%s4893_s11] sm:$0xff]  ;;  %v211_v1 = vld [vmem:[%s4893_s11 + $0x8] sm:$0xff]  ;;  %v213_v2 = vld [vmem:[%s4893_s11 + $0x10] sm:$0xff] }
  0x2c   : > { %v215_v3 = vld [vmem:[%s4893_s11 + $0x18] sm:$0xff]  ;;  %v217_v4 = vld [vmem:[%s4893_s11 + $0x20] sm:$0xff]  ;;  %v219_v5 = vld [vmem:[%s4893_s11 + $0x28] sm:$0xff]  ;;  %210 = vst [vmem:[%s4901_s26] sm:$0xff] %v209_v0 }
  0x2d   : > { %212 = vst [vmem:[%s4901_s26 + $0x8] sm:$0xff] %v211_v1  ;;  %214 = vst [vmem:[%s4901_s26 + $0x10] sm:$0xff] %v213_v2  ;;  %v221_v6 = vld [vmem:[%s4893_s11 + $0x30] sm:$0xff]  ;;  %v223_v7 = vld [vmem:[%s4893_s11 + $0x38] sm:$0xff] }
  0x2e   : > { %216 = vst [vmem:[%s4901_s26 + $0x18] sm:$0xff] %v215_v3  ;;  %218 = vst [vmem:[%s4901_s26 + $0x20] sm:$0xff] %v217_v4  ;;  %v225_v8 = vld [vmem:[%s4893_s11 + $0x80] sm:$0xff]  ;;  %v227_v9 = vld [vmem:[%s4893_s11 + $0x88] sm:$0xff] }
  0x2f   : > { %220 = vst [vmem:[%s4901_s26 + $0x28] sm:$0xff] %v219_v5  ;;  %222 = vst [vmem:[%s4901_s26 + $0x30] sm:$0xff] %v221_v6  ;;  %v229_v10 = vld [vmem:[%s4893_s11 + $0x90] sm:$0xff]  ;;  %v231_v11 = vld [vmem:[%s4893_s11 + $0x98] sm:$0xff] }
  0x30   : > { %224 = vst [vmem:[%s4901_s26 + $0x38] sm:$0xff] %v223_v7  ;;  %226 = vst [vmem:[%s4901_s26 + $0x40] sm:$0xff] %v225_v8  ;;  %v233_v12 = vld [vmem:[%s4893_s11 + $0xa0] sm:$0xff]  ;;  %v235_v13 = vld [vmem:[%s4893_s11 + $0xa8] sm:$0xff] }
  0x31   : > { %228 = vst [vmem:[%s4901_s26 + $0x48] sm:$0xff] %v227_v9  ;;  %230 = vst [vmem:[%s4901_s26 + $0x50] sm:$0xff] %v229_v10  ;;  %v237_v14 = vld [vmem:[%s4893_s11 + $0xb0] sm:$0xff]  ;;  %v239_v15 = vld [vmem:[%s4893_s11 + $0xb8] sm:$0xff] }
  0x32   : > { %232 = vst [vmem:[%s4901_s26 + $0x58] sm:$0xff] %v231_v11  ;;  %234 = vst [vmem:[%s4901_s26 + $0x60] sm:$0xff] %v233_v12  ;;  %v241_v16 = vld [vmem:[%s4893_s11 + $0x100] sm:$0xff]  ;;  %v243_v17 = vld [vmem:[%s4893_s11 + $0x108] sm:$0xff] }
  0x33   : > { %236 = vst [vmem:[%s4901_s26 + $0x68] sm:$0xff] %v235_v13  ;;  %238 = vst [vmem:[%s4901_s26 + $0x70] sm:$0xff] %v237_v14  ;;  %v245_v18 = vld [vmem:[%s4893_s11 + $0x110] sm:$0xff]  ;;  %v247_v19 = vld [vmem:[%s4893_s11 + $0x118] sm:$0xff] }
  0x34   : > { %240 = vst [vmem:[%s4901_s26 + $0x78] sm:$0xff] %v239_v15  ;;  %242 = vst [vmem:[%s4901_s26 + $0x80] sm:$0xff] %v241_v16  ;;  %v249_v20 = vld [vmem:[%s4893_s11 + $0x120] sm:$0xff]  ;;  %v251_v21 = vld [vmem:[%s4893_s11 + $0x128] sm:$0xff] }
  0x35   : > { %244 = vst [vmem:[%s4901_s26 + $0x88] sm:$0xff] %v243_v17  ;;  %246 = vst [vmem:[%s4901_s26 + $0x90] sm:$0xff] %v245_v18  ;;  %v253_v22 = vld [vmem:[%s4893_s11 + $0x130] sm:$0xff]  ;;  %v255_v23 = vld [vmem:[%s4893_s11 + $0x138] sm:$0xff] }
  0x36   : > { %248 = vst [vmem:[%s4901_s26 + $0x98] sm:$0xff] %v247_v19  ;;  %250 = vst [vmem:[%s4901_s26 + $0xa0] sm:$0xff] %v249_v20 }
  0x37   : > { %252 = vst [vmem:[%s4901_s26 + $0xa8] sm:$0xff] %v251_v21  ;;  %254 = vst [vmem:[%s4901_s26 + $0xb0] sm:$0xff] %v253_v22 }
  0x38   : > { %256 = vst [vmem:[%s4901_s26 + $0xb8] sm:$0xff] %v255_v23 }
  0x39 PF: > { %262 = sbr.rel (!%p4868_p9) target bundleno = 195 (0xc3), region = 43  ;;  %s264_s5 = sand.u32 (%p4868_p9), 1, %s4731_s18  }
  0x3a   : > { %s3845_s29 = sshll.u32 (%p4868_p9), %s4755_s24, 1  ;;  %s3843_s30 = sshll.u32 (%p4868_p9), %s264_s5, 11 }
  0x3b   : > { %s4147_s8 = sshll.u32 (%p4868_p9), %s4751_s23, 10  ;;  %s5902_s1 = sld [smem:[#allocation9_spill]] (%p4868_p9) }
  0x3c   : > { %s270_s6 = sadd.s32 (%p4868_p9), %s4147_s8, %s3845_s29  ;;  %s4958_s10 = scalar_lea.vmem (%p4868_p9), [#allocation4], %s3843_s30 }
  0x3d   : > { %s3847_s9 = sshll.u32 (%p4868_p9), %s270_s6, 2 }
  0x41   : > { %s4953_s11 = scalar_lea.vmem %s5902_s1, %s3847_s9 }
  0x42   : > { %v810_v24 = vld [vmem:[%s4953_s11] sm:$0xff]  ;;  %v812_v25 = vld [vmem:[%s4953_s11 + $0x10] sm:$0xff] }
  0x43   : > { %v814_v26 = vld [vmem:[%s4953_s11 + $0x20] sm:$0xff]  ;;  %811 = vst [vmem:[%s4958_s10] sm:$0xff] %v810_v24  ;;  %813 = vst [vmem:[%s4958_s10 + $0x8] sm:$0xff] %v812_v25  ;;  %v816_v27 = vld [vmem:[%s4953_s11 + $0x30] sm:$0xff] }
  0x44   : > { %815 = vst [vmem:[%s4958_s10 + $0x10] sm:$0xff] %v814_v26  ;;  %v818_v28 = vld [vmem:[%s4953_s11 + $0x40] sm:$0xff]  ;;  %v820_v29 = vld [vmem:[%s4953_s11 + $0x50] sm:$0xff]  ;;  %817 = vst [vmem:[%s4958_s10 + $0x18] sm:$0xff] %v816_v27 }
  0x45   : > { %819 = vst [vmem:[%s4958_s10 + $0x20] sm:$0xff] %v818_v28  ;;  %821 = vst [vmem:[%s4958_s10 + $0x28] sm:$0xff] %v820_v29  ;;  %v822_v30 = vld [vmem:[%s4953_s11 + $0x60] sm:$0xff]  ;;  %v824_v31 = vld [vmem:[%s4953_s11 + $0x70] sm:$0xff] }
  0x46   : > { %v826_v32 = vld [vmem:[%s4953_s11 + $0x80] sm:$0xff]  ;;  %823 = vst [vmem:[%s4958_s10 + $0x30] sm:$0xff] %v822_v30  ;;  %825 = vst [vmem:[%s4958_s10 + $0x38] sm:$0xff] %v824_v31  ;;  %v828_v33 = vld [vmem:[%s4953_s11 + $0x90] sm:$0xff] }
  0x47   : > { %827 = vst [vmem:[%s4958_s10 + $0x40] sm:$0xff] %v826_v32  ;;  %v830_v34 = vld [vmem:[%s4953_s11 + $0xa0] sm:$0xff]  ;;  %v832_v35 = vld [vmem:[%s4953_s11 + $0xb0] sm:$0xff]  ;;  %829 = vst [vmem:[%s4958_s10 + $0x48] sm:$0xff] %v828_v33 }
  0x48   : > { %831 = vst [vmem:[%s4958_s10 + $0x50] sm:$0xff] %v830_v34  ;;  %833 = vst [vmem:[%s4958_s10 + $0x58] sm:$0xff] %v832_v35  ;;  %v834_v36 = vld [vmem:[%s4953_s11 + $0xc0] sm:$0xff]  ;;  %v836_v37 = vld [vmem:[%s4953_s11 + $0xd0] sm:$0xff] }
  0x49   : > { %v838_v38 = vld [vmem:[%s4953_s11 + $0xe0] sm:$0xff]  ;;  %835 = vst [vmem:[%s4958_s10 + $0x60] sm:$0xff] %v834_v36  ;;  %837 = vst [vmem:[%s4958_s10 + $0x68] sm:$0xff] %v836_v37  ;;  %v840_v39 = vld [vmem:[%s4953_s11 + $0xf0] sm:$0xff] }
  0x4a   : > { %839 = vst [vmem:[%s4958_s10 + $0x70] sm:$0xff] %v838_v38  ;;  %v842_v40 = vld [vmem:[%s4953_s11 + $0x100] sm:$0xff]  ;;  %v844_v41 = vld [vmem:[%s4953_s11 + $0x110] sm:$0xff]  ;;  %841 = vst [vmem:[%s4958_s10 + $0x78] sm:$0xff] %v840_v39 }
  0x4b   : > { %843 = vst [vmem:[%s4958_s10 + $0x80] sm:$0xff] %v842_v40  ;;  %845 = vst [vmem:[%s4958_s10 + $0x88] sm:$0xff] %v844_v41  ;;  %v846_v42 = vld [vmem:[%s4953_s11 + $0x120] sm:$0xff]  ;;  %v848_v43 = vld [vmem:[%s4953_s11 + $0x130] sm:$0xff] }
  0x4c   : > { %v850_v44 = vld [vmem:[%s4953_s11 + $0x140] sm:$0xff]  ;;  %847 = vst [vmem:[%s4958_s10 + $0x90] sm:$0xff] %v846_v42  ;;  %849 = vst [vmem:[%s4958_s10 + $0x98] sm:$0xff] %v848_v43  ;;  %v852_v45 = vld [vmem:[%s4953_s11 + $0x150] sm:$0xff] }
  0x4d   : > { %851 = vst [vmem:[%s4958_s10 + $0xa0] sm:$0xff] %v850_v44  ;;  %v854_v46 = vld [vmem:[%s4953_s11 + $0x160] sm:$0xff]  ;;  %v856_v47 = vld [vmem:[%s4953_s11 + $0x170] sm:$0xff]  ;;  %853 = vst [vmem:[%s4958_s10 + $0xa8] sm:$0xff] %v852_v45 }
  0x4e   : > { %855 = vst [vmem:[%s4958_s10 + $0xb0] sm:$0xff] %v854_v46  ;;  %857 = vst [vmem:[%s4958_s10 + $0xb8] sm:$0xff] %v856_v47  ;;  %v858_v48 = vld [vmem:[%s4953_s11 + $0x180] sm:$0xff]  ;;  %v860_v49 = vld [vmem:[%s4953_s11 + $0x190] sm:$0xff] }
  0x4f   : > { %v862_v50 = vld [vmem:[%s4953_s11 + $0x1a0] sm:$0xff]  ;;  %859 = vst [vmem:[%s4958_s10 + $0xc0] sm:$0xff] %v858_v48  ;;  %861 = vst [vmem:[%s4958_s10 + $0xc8] sm:$0xff] %v860_v49  ;;  %v864_v51 = vld [vmem:[%s4953_s11 + $0x1b0] sm:$0xff] }
  0x50   : > { %863 = vst [vmem:[%s4958_s10 + $0xd0] sm:$0xff] %v862_v50  ;;  %v866_v52 = vld [vmem:[%s4953_s11 + $0x1c0] sm:$0xff]  ;;  %v868_v53 = vld [vmem:[%s4953_s11 + $0x1d0] sm:$0xff]  ;;  %865 = vst [vmem:[%s4958_s10 + $0xd8] sm:$0xff] %v864_v51 }
  0x51   : > { %867 = vst [vmem:[%s4958_s10 + $0xe0] sm:$0xff] %v866_v52  ;;  %869 = vst [vmem:[%s4958_s10 + $0xe8] sm:$0xff] %v868_v53  ;;  %v870_v54 = vld [vmem:[%s4953_s11 + $0x1e0] sm:$0xff]  ;;  %v872_v55 = vld [vmem:[%s4953_s11 + $0x1f0] sm:$0xff] }
  0x52   : > { %v874_v56 = vld [vmem:[%s4953_s11 + $0x200] sm:$0xff]  ;;  %871 = vst [vmem:[%s4958_s10 + $0xf0] sm:$0xff] %v870_v54  ;;  %873 = vst [vmem:[%s4958_s10 + $0xf8] sm:$0xff] %v872_v55  ;;  %v876_v57 = vld [vmem:[%s4953_s11 + $0x210] sm:$0xff] }
  0x53   : > { %875 = vst [vmem:[%s4958_s10 + $0x100] sm:$0xff] %v874_v56  ;;  %v878_v58 = vld [vmem:[%s4953_s11 + $0x220] sm:$0xff]  ;;  %v880_v59 = vld [vmem:[%s4953_s11 + $0x230] sm:$0xff]  ;;  %877 = vst [vmem:[%s4958_s10 + $0x108] sm:$0xff] %v876_v57 }
  0x54   : > { %879 = vst [vmem:[%s4958_s10 + $0x110] sm:$0xff] %v878_v58  ;;  %881 = vst [vmem:[%s4958_s10 + $0x118] sm:$0xff] %v880_v59  ;;  %v882_v60 = vld [vmem:[%s4953_s11 + $0x240] sm:$0xff]  ;;  %v884_v61 = vld [vmem:[%s4953_s11 + $0x250] sm:$0xff] }
  0x55   : > { %v886_v62 = vld [vmem:[%s4953_s11 + $0x260] sm:$0xff]  ;;  %883 = vst [vmem:[%s4958_s10 + $0x120] sm:$0xff] %v882_v60  ;;  %885 = vst [vmem:[%s4958_s10 + $0x128] sm:$0xff] %v884_v61  ;;  %v888_v63 = vld [vmem:[%s4953_s11 + $0x270] sm:$0xff] }
  0x56   : > { %887 = vst [vmem:[%s4958_s10 + $0x130] sm:$0xff] %v886_v62  ;;  %v890_v0 = vld [vmem:[%s4953_s11 + $0x280] sm:$0xff]  ;;  %v892_v1 = vld [vmem:[%s4953_s11 + $0x290] sm:$0xff]  ;;  %889 = vst [vmem:[%s4958_s10 + $0x138] sm:$0xff] %v888_v63 }
  0x57   : > { %891 = vst [vmem:[%s4958_s10 + $0x140] sm:$0xff] %v890_v0  ;;  %893 = vst [vmem:[%s4958_s10 + $0x148] sm:$0xff] %v892_v1  ;;  %v894_v2 = vld [vmem:[%s4953_s11 + $0x2a0] sm:$0xff]  ;;  %v896_v3 = vld [vmem:[%s4953_s11 + $0x2b0] sm:$0xff] }
  0x58   : > { %v898_v4 = vld [vmem:[%s4953_s11 + $0x2c0] sm:$0xff]  ;;  %895 = vst [vmem:[%s4958_s10 + $0x150] sm:$0xff] %v894_v2  ;;  %897 = vst [vmem:[%s4958_s10 + $0x158] sm:$0xff] %v896_v3  ;;  %v900_v5 = vld [vmem:[%s4953_s11 + $0x2d0] sm:$0xff] }
  0x59   : > { %899 = vst [vmem:[%s4958_s10 + $0x160] sm:$0xff] %v898_v4  ;;  %v902_v6 = vld [vmem:[%s4953_s11 + $0x2e0] sm:$0xff]  ;;  %v904_v7 = vld [vmem:[%s4953_s11 + $0x2f0] sm:$0xff]  ;;  %901 = vst [vmem:[%s4958_s10 + $0x168] sm:$0xff] %v900_v5 }
  0x5a   : > { %903 = vst [vmem:[%s4958_s10 + $0x170] sm:$0xff] %v902_v6  ;;  %905 = vst [vmem:[%s4958_s10 + $0x178] sm:$0xff] %v904_v7  ;;  %v906_v8 = vld [vmem:[%s4953_s11 + $0x300] sm:$0xff]  ;;  %v908_v9 = vld [vmem:[%s4953_s11 + $0x310] sm:$0xff] }
  0x5b   : > { %v910_v10 = vld [vmem:[%s4953_s11 + $0x320] sm:$0xff]  ;;  %907 = vst [vmem:[%s4958_s10 + $0x180] sm:$0xff] %v906_v8  ;;  %909 = vst [vmem:[%s4958_s10 + $0x188] sm:$0xff] %v908_v9  ;;  %v912_v11 = vld [vmem:[%s4953_s11 + $0x330] sm:$0xff] }
  0x5c   : > { %911 = vst [vmem:[%s4958_s10 + $0x190] sm:$0xff] %v910_v10  ;;  %v914_v12 = vld [vmem:[%s4953_s11 + $0x340] sm:$0xff]  ;;  %v916_v13 = vld [vmem:[%s4953_s11 + $0x350] sm:$0xff]  ;;  %913 = vst [vmem:[%s4958_s10 + $0x198] sm:$0xff] %v912_v11 }
  0x5d   : > { %915 = vst [vmem:[%s4958_s10 + $0x1a0] sm:$0xff] %v914_v12  ;;  %917 = vst [vmem:[%s4958_s10 + $0x1a8] sm:$0xff] %v916_v13  ;;  %v918_v14 = vld [vmem:[%s4953_s11 + $0x360] sm:$0xff]  ;;  %v920_v15 = vld [vmem:[%s4953_s11 + $0x370] sm:$0xff] }
  0x5e   : > { %v922_v16 = vld [vmem:[%s4953_s11 + $0x380] sm:$0xff]  ;;  %919 = vst [vmem:[%s4958_s10 + $0x1b0] sm:$0xff] %v918_v14  ;;  %921 = vst [vmem:[%s4958_s10 + $0x1b8] sm:$0xff] %v920_v15  ;;  %v924_v17 = vld [vmem:[%s4953_s11 + $0x390] sm:$0xff] }
  0x5f   : > { %923 = vst [vmem:[%s4958_s10 + $0x1c0] sm:$0xff] %v922_v16  ;;  %v926_v18 = vld [vmem:[%s4953_s11 + $0x3a0] sm:$0xff]  ;;  %v928_v19 = vld [vmem:[%s4953_s11 + $0x3b0] sm:$0xff]  ;;  %925 = vst [vmem:[%s4958_s10 + $0x1c8] sm:$0xff] %v924_v17 }
  0x60   : > { %927 = vst [vmem:[%s4958_s10 + $0x1d0] sm:$0xff] %v926_v18  ;;  %929 = vst [vmem:[%s4958_s10 + $0x1d8] sm:$0xff] %v928_v19  ;;  %v930_v20 = vld [vmem:[%s4953_s11 + $0x3c0] sm:$0xff]  ;;  %v932_v21 = vld [vmem:[%s4953_s11 + $0x3d0] sm:$0xff] }
  0x61   : > { %v934_v22 = vld [vmem:[%s4953_s11 + $0x3e0] sm:$0xff]  ;;  %931 = vst [vmem:[%s4958_s10 + $0x1e0] sm:$0xff] %v930_v20  ;;  %933 = vst [vmem:[%s4958_s10 + $0x1e8] sm:$0xff] %v932_v21  ;;  %v936_v23 = vld [vmem:[%s4953_s11 + $0x3f0] sm:$0xff] }
  0x62   : > { %935 = vst [vmem:[%s4958_s10 + $0x1f0] sm:$0xff] %v934_v22  ;;  %v938_v24 = vld [vmem:[%s4953_s11 + $0x400] sm:$0xff]  ;;  %v940_v25 = vld [vmem:[%s4953_s11 + $0x410] sm:$0xff]  ;;  %937 = vst [vmem:[%s4958_s10 + $0x1f8] sm:$0xff] %v936_v23 }
  0x63   : > { %939 = vst [vmem:[%s4958_s10 + $0x200] sm:$0xff] %v938_v24  ;;  %941 = vst [vmem:[%s4958_s10 + $0x208] sm:$0xff] %v940_v25  ;;  %v942_v26 = vld [vmem:[%s4953_s11 + $0x420] sm:$0xff]  ;;  %v944_v27 = vld [vmem:[%s4953_s11 + $0x430] sm:$0xff] }
  0x64   : > { %v946_v28 = vld [vmem:[%s4953_s11 + $0x440] sm:$0xff]  ;;  %943 = vst [vmem:[%s4958_s10 + $0x210] sm:$0xff] %v942_v26  ;;  %945 = vst [vmem:[%s4958_s10 + $0x218] sm:$0xff] %v944_v27  ;;  %v948_v29 = vld [vmem:[%s4953_s11 + $0x450] sm:$0xff] }
  0x65   : > { %947 = vst [vmem:[%s4958_s10 + $0x220] sm:$0xff] %v946_v28  ;;  %v950_v30 = vld [vmem:[%s4953_s11 + $0x460] sm:$0xff]  ;;  %v952_v31 = vld [vmem:[%s4953_s11 + $0x470] sm:$0xff]  ;;  %949 = vst [vmem:[%s4958_s10 + $0x228] sm:$0xff] %v948_v29 }
  0x66   : > { %951 = vst [vmem:[%s4958_s10 + $0x230] sm:$0xff] %v950_v30  ;;  %953 = vst [vmem:[%s4958_s10 + $0x238] sm:$0xff] %v952_v31  ;;  %v954_v32 = vld [vmem:[%s4953_s11 + $0x480] sm:$0xff]  ;;  %v956_v33 = vld [vmem:[%s4953_s11 + $0x490] sm:$0xff] }
  0x67   : > { %v958_v34 = vld [vmem:[%s4953_s11 + $0x4a0] sm:$0xff]  ;;  %955 = vst [vmem:[%s4958_s10 + $0x240] sm:$0xff] %v954_v32  ;;  %957 = vst [vmem:[%s4958_s10 + $0x248] sm:$0xff] %v956_v33  ;;  %v960_v35 = vld [vmem:[%s4953_s11 + $0x4b0] sm:$0xff] }
  0x68   : > { %959 = vst [vmem:[%s4958_s10 + $0x250] sm:$0xff] %v958_v34  ;;  %v962_v36 = vld [vmem:[%s4953_s11 + $0x4c0] sm:$0xff]  ;;  %v964_v37 = vld [vmem:[%s4953_s11 + $0x4d0] sm:$0xff]  ;;  %961 = vst [vmem:[%s4958_s10 + $0x258] sm:$0xff] %v960_v35 }
  0x69   : > { %963 = vst [vmem:[%s4958_s10 + $0x260] sm:$0xff] %v962_v36  ;;  %965 = vst [vmem:[%s4958_s10 + $0x268] sm:$0xff] %v964_v37  ;;  %v966_v38 = vld [vmem:[%s4953_s11 + $0x4e0] sm:$0xff]  ;;  %v968_v39 = vld [vmem:[%s4953_s11 + $0x4f0] sm:$0xff] }
  0x6a   : > { %v970_v40 = vld [vmem:[%s4953_s11 + $0x500] sm:$0xff]  ;;  %967 = vst [vmem:[%s4958_s10 + $0x270] sm:$0xff] %v966_v38  ;;  %969 = vst [vmem:[%s4958_s10 + $0x278] sm:$0xff] %v968_v39  ;;  %v972_v41 = vld [vmem:[%s4953_s11 + $0x510] sm:$0xff] }
  0x6b   : > { %971 = vst [vmem:[%s4958_s10 + $0x280] sm:$0xff] %v970_v40  ;;  %v974_v42 = vld [vmem:[%s4953_s11 + $0x520] sm:$0xff]  ;;  %v976_v43 = vld [vmem:[%s4953_s11 + $0x530] sm:$0xff]  ;;  %973 = vst [vmem:[%s4958_s10 + $0x288] sm:$0xff] %v972_v41 }
  0x6c   : > { %975 = vst [vmem:[%s4958_s10 + $0x290] sm:$0xff] %v974_v42  ;;  %977 = vst [vmem:[%s4958_s10 + $0x298] sm:$0xff] %v976_v43  ;;  %v978_v44 = vld [vmem:[%s4953_s11 + $0x540] sm:$0xff]  ;;  %v980_v45 = vld [vmem:[%s4953_s11 + $0x550] sm:$0xff] }
  0x6d   : > { %v982_v46 = vld [vmem:[%s4953_s11 + $0x560] sm:$0xff]  ;;  %979 = vst [vmem:[%s4958_s10 + $0x2a0] sm:$0xff] %v978_v44  ;;  %981 = vst [vmem:[%s4958_s10 + $0x2a8] sm:$0xff] %v980_v45  ;;  %v984_v47 = vld [vmem:[%s4953_s11 + $0x570] sm:$0xff] }
  0x6e   : > { %983 = vst [vmem:[%s4958_s10 + $0x2b0] sm:$0xff] %v982_v46  ;;  %v986_v48 = vld [vmem:[%s4953_s11 + $0x580] sm:$0xff]  ;;  %v988_v49 = vld [vmem:[%s4953_s11 + $0x590] sm:$0xff]  ;;  %985 = vst [vmem:[%s4958_s10 + $0x2b8] sm:$0xff] %v984_v47 }
  0x6f   : > { %987 = vst [vmem:[%s4958_s10 + $0x2c0] sm:$0xff] %v986_v48  ;;  %989 = vst [vmem:[%s4958_s10 + $0x2c8] sm:$0xff] %v988_v49  ;;  %v990_v50 = vld [vmem:[%s4953_s11 + $0x5a0] sm:$0xff]  ;;  %v992_v51 = vld [vmem:[%s4953_s11 + $0x5b0] sm:$0xff] }
  0x70   : > { %v994_v52 = vld [vmem:[%s4953_s11 + $0x5c0] sm:$0xff]  ;;  %991 = vst [vmem:[%s4958_s10 + $0x2d0] sm:$0xff] %v990_v50  ;;  %993 = vst [vmem:[%s4958_s10 + $0x2d8] sm:$0xff] %v992_v51  ;;  %v996_v53 = vld [vmem:[%s4953_s11 + $0x5d0] sm:$0xff] }
  0x71   : > { %995 = vst [vmem:[%s4958_s10 + $0x2e0] sm:$0xff] %v994_v52  ;;  %v998_v54 = vld [vmem:[%s4953_s11 + $0x5e0] sm:$0xff]  ;;  %v1000_v55 = vld [vmem:[%s4953_s11 + $0x5f0] sm:$0xff]  ;;  %997 = vst [vmem:[%s4958_s10 + $0x2e8] sm:$0xff] %v996_v53 }
  0x72   : > { %999 = vst [vmem:[%s4958_s10 + $0x2f0] sm:$0xff] %v998_v54  ;;  %1001 = vst [vmem:[%s4958_s10 + $0x2f8] sm:$0xff] %v1000_v55  ;;  %v1002_v56 = vld [vmem:[%s4953_s11 + $0x600] sm:$0xff]  ;;  %v1004_v57 = vld [vmem:[%s4953_s11 + $0x610] sm:$0xff] }
  0x73   : > { %v1006_v58 = vld [vmem:[%s4953_s11 + $0x620] sm:$0xff]  ;;  %1003 = vst [vmem:[%s4958_s10 + $0x300] sm:$0xff] %v1002_v56  ;;  %1005 = vst [vmem:[%s4958_s10 + $0x308] sm:$0xff] %v1004_v57  ;;  %v1008_v59 = vld [vmem:[%s4953_s11 + $0x630] sm:$0xff] }
  0x74   : > { %1007 = vst [vmem:[%s4958_s10 + $0x310] sm:$0xff] %v1006_v58  ;;  %v1010_v60 = vld [vmem:[%s4953_s11 + $0x640] sm:$0xff]  ;;  %v1012_v61 = vld [vmem:[%s4953_s11 + $0x650] sm:$0xff]  ;;  %1009 = vst [vmem:[%s4958_s10 + $0x318] sm:$0xff] %v1008_v59 }
  0x75   : > { %1011 = vst [vmem:[%s4958_s10 + $0x320] sm:$0xff] %v1010_v60  ;;  %1013 = vst [vmem:[%s4958_s10 + $0x328] sm:$0xff] %v1012_v61  ;;  %v1014_v62 = vld [vmem:[%s4953_s11 + $0x660] sm:$0xff]  ;;  %v1016_v63 = vld [vmem:[%s4953_s11 + $0x670] sm:$0xff] }
  0x76   : > { %v1018_v0 = vld [vmem:[%s4953_s11 + $0x680] sm:$0xff]  ;;  %1015 = vst [vmem:[%s4958_s10 + $0x330] sm:$0xff] %v1014_v62  ;;  %1017 = vst [vmem:[%s4958_s10 + $0x338] sm:$0xff] %v1016_v63  ;;  %v1020_v1 = vld [vmem:[%s4953_s11 + $0x690] sm:$0xff] }
  0x77   : > { %1019 = vst [vmem:[%s4958_s10 + $0x340] sm:$0xff] %v1018_v0  ;;  %v1022_v2 = vld [vmem:[%s4953_s11 + $0x6a0] sm:$0xff]  ;;  %v1024_v3 = vld [vmem:[%s4953_s11 + $0x6b0] sm:$0xff]  ;;  %1021 = vst [vmem:[%s4958_s10 + $0x348] sm:$0xff] %v1020_v1 }
  0x78   : > { %1023 = vst [vmem:[%s4958_s10 + $0x350] sm:$0xff] %v1022_v2  ;;  %1025 = vst [vmem:[%s4958_s10 + $0x358] sm:$0xff] %v1024_v3  ;;  %v1026_v4 = vld [vmem:[%s4953_s11 + $0x6c0] sm:$0xff]  ;;  %v1028_v5 = vld [vmem:[%s4953_s11 + $0x6d0] sm:$0xff] }
  0x79   : > { %v1030_v6 = vld [vmem:[%s4953_s11 + $0x6e0] sm:$0xff]  ;;  %1027 = vst [vmem:[%s4958_s10 + $0x360] sm:$0xff] %v1026_v4  ;;  %1029 = vst [vmem:[%s4958_s10 + $0x368] sm:$0xff] %v1028_v5  ;;  %v1032_v7 = vld [vmem:[%s4953_s11 + $0x6f0] sm:$0xff] }
  0x7a   : > { %1031 = vst [vmem:[%s4958_s10 + $0x370] sm:$0xff] %v1030_v6  ;;  %v1034_v8 = vld [vmem:[%s4953_s11 + $0x700] sm:$0xff]  ;;  %v1036_v9 = vld [vmem:[%s4953_s11 + $0x710] sm:$0xff]  ;;  %1033 = vst [vmem:[%s4958_s10 + $0x378] sm:$0xff] %v1032_v7 }
  0x7b   : > { %1035 = vst [vmem:[%s4958_s10 + $0x380] sm:$0xff] %v1034_v8  ;;  %1037 = vst [vmem:[%s4958_s10 + $0x388] sm:$0xff] %v1036_v9  ;;  %v1038_v10 = vld [vmem:[%s4953_s11 + $0x720] sm:$0xff]  ;;  %v1040_v11 = vld [vmem:[%s4953_s11 + $0x730] sm:$0xff] }
  0x7c   : > { %v1042_v12 = vld [vmem:[%s4953_s11 + $0x740] sm:$0xff]  ;;  %1039 = vst [vmem:[%s4958_s10 + $0x390] sm:$0xff] %v1038_v10  ;;  %1041 = vst [vmem:[%s4958_s10 + $0x398] sm:$0xff] %v1040_v11  ;;  %v1044_v13 = vld [vmem:[%s4953_s11 + $0x750] sm:$0xff] }
  0x7d   : > { %1043 = vst [vmem:[%s4958_s10 + $0x3a0] sm:$0xff] %v1042_v12  ;;  %v1046_v14 = vld [vmem:[%s4953_s11 + $0x760] sm:$0xff]  ;;  %v1048_v15 = vld [vmem:[%s4953_s11 + $0x770] sm:$0xff]  ;;  %1045 = vst [vmem:[%s4958_s10 + $0x3a8] sm:$0xff] %v1044_v13 }
  0x7e   : > { %1047 = vst [vmem:[%s4958_s10 + $0x3b0] sm:$0xff] %v1046_v14  ;;  %1049 = vst [vmem:[%s4958_s10 + $0x3b8] sm:$0xff] %v1048_v15  ;;  %v1050_v16 = vld [vmem:[%s4953_s11 + $0x780] sm:$0xff]  ;;  %v1052_v17 = vld [vmem:[%s4953_s11 + $0x790] sm:$0xff] }
  0x7f   : > { %v1054_v18 = vld [vmem:[%s4953_s11 + $0x7a0] sm:$0xff]  ;;  %1051 = vst [vmem:[%s4958_s10 + $0x3c0] sm:$0xff] %v1050_v16  ;;  %1053 = vst [vmem:[%s4958_s10 + $0x3c8] sm:$0xff] %v1052_v17  ;;  %v1056_v19 = vld [vmem:[%s4953_s11 + $0x7b0] sm:$0xff] }
  0x80   : > { %1055 = vst [vmem:[%s4958_s10 + $0x3d0] sm:$0xff] %v1054_v18  ;;  %v1058_v20 = vld [vmem:[%s4953_s11 + $0x7c0] sm:$0xff]  ;;  %v1060_v21 = vld [vmem:[%s4953_s11 + $0x7d0] sm:$0xff]  ;;  %1057 = vst [vmem:[%s4958_s10 + $0x3d8] sm:$0xff] %v1056_v19 }
  0x81   : > { %1059 = vst [vmem:[%s4958_s10 + $0x3e0] sm:$0xff] %v1058_v20  ;;  %1061 = vst [vmem:[%s4958_s10 + $0x3e8] sm:$0xff] %v1060_v21  ;;  %v1062_v22 = vld [vmem:[%s4953_s11 + $0x7e0] sm:$0xff]  ;;  %v1064_v23 = vld [vmem:[%s4953_s11 + $0x7f0] sm:$0xff] }
  0x82   : > { %v1066_v24 = vld [vmem:[%s4953_s11 + $0x800] sm:$0xff]  ;;  %1063 = vst [vmem:[%s4958_s10 + $0x3f0] sm:$0xff] %v1062_v22  ;;  %1065 = vst [vmem:[%s4958_s10 + $0x3f8] sm:$0xff] %v1064_v23  ;;  %v1068_v25 = vld [vmem:[%s4953_s11 + $0x810] sm:$0xff] }
  0x83   : > { %1067 = vst [vmem:[%s4958_s10 + $0x400] sm:$0xff] %v1066_v24  ;;  %v1070_v26 = vld [vmem:[%s4953_s11 + $0x820] sm:$0xff]  ;;  %v1072_v27 = vld [vmem:[%s4953_s11 + $0x830] sm:$0xff]  ;;  %1069 = vst [vmem:[%s4958_s10 + $0x408] sm:$0xff] %v1068_v25 }
  0x84   : > { %1071 = vst [vmem:[%s4958_s10 + $0x410] sm:$0xff] %v1070_v26  ;;  %1073 = vst [vmem:[%s4958_s10 + $0x418] sm:$0xff] %v1072_v27  ;;  %v1074_v28 = vld [vmem:[%s4953_s11 + $0x840] sm:$0xff]  ;;  %v1076_v29 = vld [vmem:[%s4953_s11 + $0x850] sm:$0xff] }
  0x85   : > { %v1078_v30 = vld [vmem:[%s4953_s11 + $0x860] sm:$0xff]  ;;  %1075 = vst [vmem:[%s4958_s10 + $0x420] sm:$0xff] %v1074_v28  ;;  %1077 = vst [vmem:[%s4958_s10 + $0x428] sm:$0xff] %v1076_v29  ;;  %v1080_v31 = vld [vmem:[%s4953_s11 + $0x870] sm:$0xff] }
  0x86   : > { %1079 = vst [vmem:[%s4958_s10 + $0x430] sm:$0xff] %v1078_v30  ;;  %v1082_v32 = vld [vmem:[%s4953_s11 + $0x880] sm:$0xff]  ;;  %v1084_v33 = vld [vmem:[%s4953_s11 + $0x890] sm:$0xff]  ;;  %1081 = vst [vmem:[%s4958_s10 + $0x438] sm:$0xff] %v1080_v31 }
  0x87   : > { %1083 = vst [vmem:[%s4958_s10 + $0x440] sm:$0xff] %v1082_v32  ;;  %1085 = vst [vmem:[%s4958_s10 + $0x448] sm:$0xff] %v1084_v33  ;;  %v1086_v34 = vld [vmem:[%s4953_s11 + $0x8a0] sm:$0xff]  ;;  %v1088_v35 = vld [vmem:[%s4953_s11 + $0x8b0] sm:$0xff] }
  0x88   : > { %v1090_v36 = vld [vmem:[%s4953_s11 + $0x8c0] sm:$0xff]  ;;  %1087 = vst [vmem:[%s4958_s10 + $0x450] sm:$0xff] %v1086_v34  ;;  %1089 = vst [vmem:[%s4958_s10 + $0x458] sm:$0xff] %v1088_v35  ;;  %v1092_v37 = vld [vmem:[%s4953_s11 + $0x8d0] sm:$0xff] }
  0x89   : > { %1091 = vst [vmem:[%s4958_s10 + $0x460] sm:$0xff] %v1090_v36  ;;  %v1094_v38 = vld [vmem:[%s4953_s11 + $0x8e0] sm:$0xff]  ;;  %v1096_v39 = vld [vmem:[%s4953_s11 + $0x8f0] sm:$0xff]  ;;  %1093 = vst [vmem:[%s4958_s10 + $0x468] sm:$0xff] %v1092_v37 }
  0x8a   : > { %1095 = vst [vmem:[%s4958_s10 + $0x470] sm:$0xff] %v1094_v38  ;;  %1097 = vst [vmem:[%s4958_s10 + $0x478] sm:$0xff] %v1096_v39  ;;  %v1098_v40 = vld [vmem:[%s4953_s11 + $0x900] sm:$0xff]  ;;  %v1100_v41 = vld [vmem:[%s4953_s11 + $0x910] sm:$0xff] }
  0x8b   : > { %v1102_v42 = vld [vmem:[%s4953_s11 + $0x920] sm:$0xff]  ;;  %1099 = vst [vmem:[%s4958_s10 + $0x480] sm:$0xff] %v1098_v40  ;;  %1101 = vst [vmem:[%s4958_s10 + $0x488] sm:$0xff] %v1100_v41  ;;  %v1104_v43 = vld [vmem:[%s4953_s11 + $0x930] sm:$0xff] }
  0x8c   : > { %1103 = vst [vmem:[%s4958_s10 + $0x490] sm:$0xff] %v1102_v42  ;;  %v1106_v44 = vld [vmem:[%s4953_s11 + $0x940] sm:$0xff]  ;;  %v1108_v45 = vld [vmem:[%s4953_s11 + $0x950] sm:$0xff]  ;;  %1105 = vst [vmem:[%s4958_s10 + $0x498] sm:$0xff] %v1104_v43 }
  0x8d   : > { %1107 = vst [vmem:[%s4958_s10 + $0x4a0] sm:$0xff] %v1106_v44  ;;  %1109 = vst [vmem:[%s4958_s10 + $0x4a8] sm:$0xff] %v1108_v45  ;;  %v1110_v46 = vld [vmem:[%s4953_s11 + $0x960] sm:$0xff]  ;;  %v1112_v47 = vld [vmem:[%s4953_s11 + $0x970] sm:$0xff] }
  0x8e   : > { %v1114_v48 = vld [vmem:[%s4953_s11 + $0x980] sm:$0xff]  ;;  %1111 = vst [vmem:[%s4958_s10 + $0x4b0] sm:$0xff] %v1110_v46  ;;  %1113 = vst [vmem:[%s4958_s10 + $0x4b8] sm:$0xff] %v1112_v47  ;;  %v1116_v49 = vld [vmem:[%s4953_s11 + $0x990] sm:$0xff] }
  0x8f   : > { %1115 = vst [vmem:[%s4958_s10 + $0x4c0] sm:$0xff] %v1114_v48  ;;  %v1118_v50 = vld [vmem:[%s4953_s11 + $0x9a0] sm:$0xff]  ;;  %v1120_v51 = vld [vmem:[%s4953_s11 + $0x9b0] sm:$0xff]  ;;  %1117 = vst [vmem:[%s4958_s10 + $0x4c8] sm:$0xff] %v1116_v49 }
  0x90   : > { %1119 = vst [vmem:[%s4958_s10 + $0x4d0] sm:$0xff] %v1118_v50  ;;  %1121 = vst [vmem:[%s4958_s10 + $0x4d8] sm:$0xff] %v1120_v51  ;;  %v1122_v52 = vld [vmem:[%s4953_s11 + $0x9c0] sm:$0xff]  ;;  %v1124_v53 = vld [vmem:[%s4953_s11 + $0x9d0] sm:$0xff] }
  0x91   : > { %v1126_v54 = vld [vmem:[%s4953_s11 + $0x9e0] sm:$0xff]  ;;  %1123 = vst [vmem:[%s4958_s10 + $0x4e0] sm:$0xff] %v1122_v52  ;;  %1125 = vst [vmem:[%s4958_s10 + $0x4e8] sm:$0xff] %v1124_v53  ;;  %v1128_v55 = vld [vmem:[%s4953_s11 + $0x9f0] sm:$0xff] }
  0x92   : > { %1127 = vst [vmem:[%s4958_s10 + $0x4f0] sm:$0xff] %v1126_v54  ;;  %v1130_v56 = vld [vmem:[%s4953_s11 + $0xa00] sm:$0xff]  ;;  %v1132_v57 = vld [vmem:[%s4953_s11 + $0xa10] sm:$0xff]  ;;  %1129 = vst [vmem:[%s4958_s10 + $0x4f8] sm:$0xff] %v1128_v55 }
  0x93   : > { %1131 = vst [vmem:[%s4958_s10 + $0x500] sm:$0xff] %v1130_v56  ;;  %1133 = vst [vmem:[%s4958_s10 + $0x508] sm:$0xff] %v1132_v57  ;;  %v1134_v58 = vld [vmem:[%s4953_s11 + $0xa20] sm:$0xff]  ;;  %v1136_v59 = vld [vmem:[%s4953_s11 + $0xa30] sm:$0xff] }
  0x94   : > { %v1138_v60 = vld [vmem:[%s4953_s11 + $0xa40] sm:$0xff]  ;;  %1135 = vst [vmem:[%s4958_s10 + $0x510] sm:$0xff] %v1134_v58  ;;  %1137 = vst [vmem:[%s4958_s10 + $0x518] sm:$0xff] %v1136_v59  ;;  %v1140_v61 = vld [vmem:[%s4953_s11 + $0xa50] sm:$0xff] }
  0x95   : > { %1139 = vst [vmem:[%s4958_s10 + $0x520] sm:$0xff] %v1138_v60  ;;  %v1142_v62 = vld [vmem:[%s4953_s11 + $0xa60] sm:$0xff]  ;;  %v1144_v63 = vld [vmem:[%s4953_s11 + $0xa70] sm:$0xff]  ;;  %1141 = vst [vmem:[%s4958_s10 + $0x528] sm:$0xff] %v1140_v61 }
  0x96   : > { %1143 = vst [vmem:[%s4958_s10 + $0x530] sm:$0xff] %v1142_v62  ;;  %1145 = vst [vmem:[%s4958_s10 + $0x538] sm:$0xff] %v1144_v63  ;;  %v1146_v0 = vld [vmem:[%s4953_s11 + $0xa80] sm:$0xff]  ;;  %v1148_v1 = vld [vmem:[%s4953_s11 + $0xa90] sm:$0xff] }
  0x97   : > { %v1150_v2 = vld [vmem:[%s4953_s11 + $0xaa0] sm:$0xff]  ;;  %1147 = vst [vmem:[%s4958_s10 + $0x540] sm:$0xff] %v1146_v0  ;;  %1149 = vst [vmem:[%s4958_s10 + $0x548] sm:$0xff] %v1148_v1  ;;  %v1152_v3 = vld [vmem:[%s4953_s11 + $0xab0] sm:$0xff] }
  0x98   : > { %1151 = vst [vmem:[%s4958_s10 + $0x550] sm:$0xff] %v1150_v2  ;;  %v1154_v4 = vld [vmem:[%s4953_s11 + $0xac0] sm:$0xff]  ;;  %v1156_v5 = vld [vmem:[%s4953_s11 + $0xad0] sm:$0xff]  ;;  %1153 = vst [vmem:[%s4958_s10 + $0x558] sm:$0xff] %v1152_v3 }
  0x99   : > { %1155 = vst [vmem:[%s4958_s10 + $0x560] sm:$0xff] %v1154_v4  ;;  %1157 = vst [vmem:[%s4958_s10 + $0x568] sm:$0xff] %v1156_v5  ;;  %v1158_v6 = vld [vmem:[%s4953_s11 + $0xae0] sm:$0xff]  ;;  %v1160_v7 = vld [vmem:[%s4953_s11 + $0xaf0] sm:$0xff] }
  0x9a   : > { %v1162_v8 = vld [vmem:[%s4953_s11 + $0xb00] sm:$0xff]  ;;  %1159 = vst [vmem:[%s4958_s10 + $0x570] sm:$0xff] %v1158_v6  ;;  %1161 = vst [vmem:[%s4958_s10 + $0x578] sm:$0xff] %v1160_v7  ;;  %v1164_v9 = vld [vmem:[%s4953_s11 + $0xb10] sm:$0xff] }
  0x9b   : > { %1163 = vst [vmem:[%s4958_s10 + $0x580] sm:$0xff] %v1162_v8  ;;  %v1166_v10 = vld [vmem:[%s4953_s11 + $0xb20] sm:$0xff]  ;;  %v1168_v11 = vld [vmem:[%s4953_s11 + $0xb30] sm:$0xff]  ;;  %1165 = vst [vmem:[%s4958_s10 + $0x588] sm:$0xff] %v1164_v9 }
  0x9c   : > { %1167 = vst [vmem:[%s4958_s10 + $0x590] sm:$0xff] %v1166_v10  ;;  %1169 = vst [vmem:[%s4958_s10 + $0x598] sm:$0xff] %v1168_v11  ;;  %v1170_v12 = vld [vmem:[%s4953_s11 + $0xb40] sm:$0xff]  ;;  %v1172_v13 = vld [vmem:[%s4953_s11 + $0xb50] sm:$0xff] }
  0x9d   : > { %v1174_v14 = vld [vmem:[%s4953_s11 + $0xb60] sm:$0xff]  ;;  %1171 = vst [vmem:[%s4958_s10 + $0x5a0] sm:$0xff] %v1170_v12  ;;  %1173 = vst [vmem:[%s4958_s10 + $0x5a8] sm:$0xff] %v1172_v13  ;;  %v1176_v15 = vld [vmem:[%s4953_s11 + $0xb70] sm:$0xff] }
  0x9e   : > { %1175 = vst [vmem:[%s4958_s10 + $0x5b0] sm:$0xff] %v1174_v14  ;;  %v1178_v16 = vld [vmem:[%s4953_s11 + $0xb80] sm:$0xff]  ;;  %v1180_v17 = vld [vmem:[%s4953_s11 + $0xb90] sm:$0xff]  ;;  %1177 = vst [vmem:[%s4958_s10 + $0x5b8] sm:$0xff] %v1176_v15 }
  0x9f   : > { %1179 = vst [vmem:[%s4958_s10 + $0x5c0] sm:$0xff] %v1178_v16  ;;  %1181 = vst [vmem:[%s4958_s10 + $0x5c8] sm:$0xff] %v1180_v17  ;;  %v1182_v18 = vld [vmem:[%s4953_s11 + $0xba0] sm:$0xff]  ;;  %v1184_v19 = vld [vmem:[%s4953_s11 + $0xbb0] sm:$0xff] }
  0xa0   : > { %v1186_v20 = vld [vmem:[%s4953_s11 + $0xbc0] sm:$0xff]  ;;  %1183 = vst [vmem:[%s4958_s10 + $0x5d0] sm:$0xff] %v1182_v18  ;;  %1185 = vst [vmem:[%s4958_s10 + $0x5d8] sm:$0xff] %v1184_v19  ;;  %v1188_v21 = vld [vmem:[%s4953_s11 + $0xbd0] sm:$0xff] }
  0xa1   : > { %1187 = vst [vmem:[%s4958_s10 + $0x5e0] sm:$0xff] %v1186_v20  ;;  %v1190_v22 = vld [vmem:[%s4953_s11 + $0xbe0] sm:$0xff]  ;;  %v1192_v23 = vld [vmem:[%s4953_s11 + $0xbf0] sm:$0xff]  ;;  %1189 = vst [vmem:[%s4958_s10 + $0x5e8] sm:$0xff] %v1188_v21 }
  0xa2   : > { %1191 = vst [vmem:[%s4958_s10 + $0x5f0] sm:$0xff] %v1190_v22  ;;  %1193 = vst [vmem:[%s4958_s10 + $0x5f8] sm:$0xff] %v1192_v23  ;;  %v1194_v24 = vld [vmem:[%s4953_s11 + $0xc00] sm:$0xff]  ;;  %v1196_v25 = vld [vmem:[%s4953_s11 + $0xc10] sm:$0xff] }
  0xa3   : > { %v1198_v26 = vld [vmem:[%s4953_s11 + $0xc20] sm:$0xff]  ;;  %1195 = vst [vmem:[%s4958_s10 + $0x600] sm:$0xff] %v1194_v24  ;;  %1197 = vst [vmem:[%s4958_s10 + $0x608] sm:$0xff] %v1196_v25  ;;  %v1200_v27 = vld [vmem:[%s4953_s11 + $0xc30] sm:$0xff] }
  0xa4   : > { %1199 = vst [vmem:[%s4958_s10 + $0x610] sm:$0xff] %v1198_v26  ;;  %v1202_v28 = vld [vmem:[%s4953_s11 + $0xc40] sm:$0xff]  ;;  %v1204_v29 = vld [vmem:[%s4953_s11 + $0xc50] sm:$0xff]  ;;  %1201 = vst [vmem:[%s4958_s10 + $0x618] sm:$0xff] %v1200_v27 }
  0xa5   : > { %1203 = vst [vmem:[%s4958_s10 + $0x620] sm:$0xff] %v1202_v28  ;;  %1205 = vst [vmem:[%s4958_s10 + $0x628] sm:$0xff] %v1204_v29  ;;  %v1206_v30 = vld [vmem:[%s4953_s11 + $0xc60] sm:$0xff]  ;;  %v1208_v31 = vld [vmem:[%s4953_s11 + $0xc70] sm:$0xff] }
  0xa6   : > { %v1210_v32 = vld [vmem:[%s4953_s11 + $0xc80] sm:$0xff]  ;;  %1207 = vst [vmem:[%s4958_s10 + $0x630] sm:$0xff] %v1206_v30  ;;  %1209 = vst [vmem:[%s4958_s10 + $0x638] sm:$0xff] %v1208_v31  ;;  %v1212_v33 = vld [vmem:[%s4953_s11 + $0xc90] sm:$0xff] }
  0xa7   : > { %1211 = vst [vmem:[%s4958_s10 + $0x640] sm:$0xff] %v1210_v32  ;;  %v1214_v34 = vld [vmem:[%s4953_s11 + $0xca0] sm:$0xff]  ;;  %v1216_v35 = vld [vmem:[%s4953_s11 + $0xcb0] sm:$0xff]  ;;  %1213 = vst [vmem:[%s4958_s10 + $0x648] sm:$0xff] %v1212_v33 }
  0xa8   : > { %1215 = vst [vmem:[%s4958_s10 + $0x650] sm:$0xff] %v1214_v34  ;;  %1217 = vst [vmem:[%s4958_s10 + $0x658] sm:$0xff] %v1216_v35  ;;  %v1218_v36 = vld [vmem:[%s4953_s11 + $0xcc0] sm:$0xff]  ;;  %v1220_v37 = vld [vmem:[%s4953_s11 + $0xcd0] sm:$0xff] }
  0xa9   : > { %v1222_v38 = vld [vmem:[%s4953_s11 + $0xce0] sm:$0xff]  ;;  %1219 = vst [vmem:[%s4958_s10 + $0x660] sm:$0xff] %v1218_v36  ;;  %1221 = vst [vmem:[%s4958_s10 + $0x668] sm:$0xff] %v1220_v37  ;;  %v1224_v39 = vld [vmem:[%s4953_s11 + $0xcf0] sm:$0xff] }
  0xaa   : > { %1223 = vst [vmem:[%s4958_s10 + $0x670] sm:$0xff] %v1222_v38  ;;  %v1226_v40 = vld [vmem:[%s4953_s11 + $0xd00] sm:$0xff]  ;;  %v1228_v41 = vld [vmem:[%s4953_s11 + $0xd10] sm:$0xff]  ;;  %1225 = vst [vmem:[%s4958_s10 + $0x678] sm:$0xff] %v1224_v39 }
  0xab   : > { %1227 = vst [vmem:[%s4958_s10 + $0x680] sm:$0xff] %v1226_v40  ;;  %1229 = vst [vmem:[%s4958_s10 + $0x688] sm:$0xff] %v1228_v41  ;;  %v1230_v42 = vld [vmem:[%s4953_s11 + $0xd20] sm:$0xff]  ;;  %v1232_v43 = vld [vmem:[%s4953_s11 + $0xd30] sm:$0xff] }
  0xac   : > { %v1234_v44 = vld [vmem:[%s4953_s11 + $0xd40] sm:$0xff]  ;;  %1231 = vst [vmem:[%s4958_s10 + $0x690] sm:$0xff] %v1230_v42  ;;  %1233 = vst [vmem:[%s4958_s10 + $0x698] sm:$0xff] %v1232_v43  ;;  %v1236_v45 = vld [vmem:[%s4953_s11 + $0xd50] sm:$0xff] }
  0xad   : > { %1235 = vst [vmem:[%s4958_s10 + $0x6a0] sm:$0xff] %v1234_v44  ;;  %v1238_v46 = vld [vmem:[%s4953_s11 + $0xd60] sm:$0xff]  ;;  %v1240_v47 = vld [vmem:[%s4953_s11 + $0xd70] sm:$0xff]  ;;  %1237 = vst [vmem:[%s4958_s10 + $0x6a8] sm:$0xff] %v1236_v45 }
  0xae   : > { %1239 = vst [vmem:[%s4958_s10 + $0x6b0] sm:$0xff] %v1238_v46  ;;  %1241 = vst [vmem:[%s4958_s10 + $0x6b8] sm:$0xff] %v1240_v47  ;;  %v1242_v48 = vld [vmem:[%s4953_s11 + $0xd80] sm:$0xff]  ;;  %v1244_v49 = vld [vmem:[%s4953_s11 + $0xd90] sm:$0xff] }
  0xaf   : > { %v1246_v50 = vld [vmem:[%s4953_s11 + $0xda0] sm:$0xff]  ;;  %1243 = vst [vmem:[%s4958_s10 + $0x6c0] sm:$0xff] %v1242_v48  ;;  %1245 = vst [vmem:[%s4958_s10 + $0x6c8] sm:$0xff] %v1244_v49  ;;  %v1248_v51 = vld [vmem:[%s4953_s11 + $0xdb0] sm:$0xff] }
  0xb0   : > { %1247 = vst [vmem:[%s4958_s10 + $0x6d0] sm:$0xff] %v1246_v50  ;;  %v1250_v52 = vld [vmem:[%s4953_s11 + $0xdc0] sm:$0xff]  ;;  %v1252_v53 = vld [vmem:[%s4953_s11 + $0xdd0] sm:$0xff]  ;;  %1249 = vst [vmem:[%s4958_s10 + $0x6d8] sm:$0xff] %v1248_v51 }
  0xb1   : > { %1251 = vst [vmem:[%s4958_s10 + $0x6e0] sm:$0xff] %v1250_v52  ;;  %1253 = vst [vmem:[%s4958_s10 + $0x6e8] sm:$0xff] %v1252_v53  ;;  %v1254_v54 = vld [vmem:[%s4953_s11 + $0xde0] sm:$0xff]  ;;  %v1256_v55 = vld [vmem:[%s4953_s11 + $0xdf0] sm:$0xff] }
  0xb2   : > { %v1258_v56 = vld [vmem:[%s4953_s11 + $0xe00] sm:$0xff]  ;;  %1255 = vst [vmem:[%s4958_s10 + $0x6f0] sm:$0xff] %v1254_v54  ;;  %1257 = vst [vmem:[%s4958_s10 + $0x6f8] sm:$0xff] %v1256_v55  ;;  %v1260_v57 = vld [vmem:[%s4953_s11 + $0xe10] sm:$0xff] }
  0xb3   : > { %1259 = vst [vmem:[%s4958_s10 + $0x700] sm:$0xff] %v1258_v56  ;;  %v1262_v58 = vld [vmem:[%s4953_s11 + $0xe20] sm:$0xff]  ;;  %v1264_v59 = vld [vmem:[%s4953_s11 + $0xe30] sm:$0xff]  ;;  %1261 = vst [vmem:[%s4958_s10 + $0x708] sm:$0xff] %v1260_v57 }
  0xb4   : > { %1263 = vst [vmem:[%s4958_s10 + $0x710] sm:$0xff] %v1262_v58  ;;  %1265 = vst [vmem:[%s4958_s10 + $0x718] sm:$0xff] %v1264_v59  ;;  %v1266_v60 = vld [vmem:[%s4953_s11 + $0xe40] sm:$0xff]  ;;  %v1268_v61 = vld [vmem:[%s4953_s11 + $0xe50] sm:$0xff] }
  0xb5   : > { %v1270_v62 = vld [vmem:[%s4953_s11 + $0xe60] sm:$0xff]  ;;  %1267 = vst [vmem:[%s4958_s10 + $0x720] sm:$0xff] %v1266_v60  ;;  %1269 = vst [vmem:[%s4958_s10 + $0x728] sm:$0xff] %v1268_v61  ;;  %v1272_v63 = vld [vmem:[%s4953_s11 + $0xe70] sm:$0xff] }
  0xb6   : > { %1271 = vst [vmem:[%s4958_s10 + $0x730] sm:$0xff] %v1270_v62  ;;  %v1274_v0 = vld [vmem:[%s4953_s11 + $0xe80] sm:$0xff]  ;;  %v1276_v1 = vld [vmem:[%s4953_s11 + $0xe90] sm:$0xff]  ;;  %1273 = vst [vmem:[%s4958_s10 + $0x738] sm:$0xff] %v1272_v63 }
  0xb7   : > { %1275 = vst [vmem:[%s4958_s10 + $0x740] sm:$0xff] %v1274_v0  ;;  %1277 = vst [vmem:[%s4958_s10 + $0x748] sm:$0xff] %v1276_v1  ;;  %v1278_v2 = vld [vmem:[%s4953_s11 + $0xea0] sm:$0xff]  ;;  %v1280_v3 = vld [vmem:[%s4953_s11 + $0xeb0] sm:$0xff] }
  0xb8   : > { %v1282_v4 = vld [vmem:[%s4953_s11 + $0xec0] sm:$0xff]  ;;  %1279 = vst [vmem:[%s4958_s10 + $0x750] sm:$0xff] %v1278_v2  ;;  %1281 = vst [vmem:[%s4958_s10 + $0x758] sm:$0xff] %v1280_v3  ;;  %v1284_v5 = vld [vmem:[%s4953_s11 + $0xed0] sm:$0xff] }
  0xb9   : > { %1283 = vst [vmem:[%s4958_s10 + $0x760] sm:$0xff] %v1282_v4  ;;  %v1286_v6 = vld [vmem:[%s4953_s11 + $0xee0] sm:$0xff]  ;;  %v1288_v7 = vld [vmem:[%s4953_s11 + $0xef0] sm:$0xff]  ;;  %1285 = vst [vmem:[%s4958_s10 + $0x768] sm:$0xff] %v1284_v5 }
  0xba   : > { %1287 = vst [vmem:[%s4958_s10 + $0x770] sm:$0xff] %v1286_v6  ;;  %1289 = vst [vmem:[%s4958_s10 + $0x778] sm:$0xff] %v1288_v7  ;;  %v1290_v8 = vld [vmem:[%s4953_s11 + $0xf00] sm:$0xff]  ;;  %v1292_v9 = vld [vmem:[%s4953_s11 + $0xf10] sm:$0xff] }
  0xbb   : > { %v1294_v10 = vld [vmem:[%s4953_s11 + $0xf20] sm:$0xff]  ;;  %1291 = vst [vmem:[%s4958_s10 + $0x780] sm:$0xff] %v1290_v8  ;;  %1293 = vst [vmem:[%s4958_s10 + $0x788] sm:$0xff] %v1292_v9  ;;  %v1296_v11 = vld [vmem:[%s4953_s11 + $0xf30] sm:$0xff] }
  0xbc   : > { %1295 = vst [vmem:[%s4958_s10 + $0x790] sm:$0xff] %v1294_v10  ;;  %v1298_v12 = vld [vmem:[%s4953_s11 + $0xf40] sm:$0xff]  ;;  %v1300_v13 = vld [vmem:[%s4953_s11 + $0xf50] sm:$0xff]  ;;  %1297 = vst [vmem:[%s4958_s10 + $0x798] sm:$0xff] %v1296_v11 }
  0xbd   : > { %1299 = vst [vmem:[%s4958_s10 + $0x7a0] sm:$0xff] %v1298_v12  ;;  %1301 = vst [vmem:[%s4958_s10 + $0x7a8] sm:$0xff] %v1300_v13  ;;  %v1302_v14 = vld [vmem:[%s4953_s11 + $0xf60] sm:$0xff]  ;;  %v1304_v15 = vld [vmem:[%s4953_s11 + $0xf70] sm:$0xff] }
  0xbe   : > { %v1306_v16 = vld [vmem:[%s4953_s11 + $0xf80] sm:$0xff]  ;;  %1303 = vst [vmem:[%s4958_s10 + $0x7b0] sm:$0xff] %v1302_v14  ;;  %1305 = vst [vmem:[%s4958_s10 + $0x7b8] sm:$0xff] %v1304_v15  ;;  %v1308_v17 = vld [vmem:[%s4953_s11 + $0xf90] sm:$0xff] }
  0xbf   : > { %1307 = vst [vmem:[%s4958_s10 + $0x7c0] sm:$0xff] %v1306_v16  ;;  %v1310_v18 = vld [vmem:[%s4953_s11 + $0xfa0] sm:$0xff]  ;;  %v1312_v19 = vld [vmem:[%s4953_s11 + $0xfb0] sm:$0xff]  ;;  %1309 = vst [vmem:[%s4958_s10 + $0x7c8] sm:$0xff] %v1308_v17 }
  0xc0   : > { %1311 = vst [vmem:[%s4958_s10 + $0x7d0] sm:$0xff] %v1310_v18  ;;  %1313 = vst [vmem:[%s4958_s10 + $0x7d8] sm:$0xff] %v1312_v19  ;;  %v1314_v20 = vld [vmem:[%s4953_s11 + $0xfc0] sm:$0xff]  ;;  %v1316_v21 = vld [vmem:[%s4953_s11 + $0xfd0] sm:$0xff] }
  0xc1   : > { %v1318_v22 = vld [vmem:[%s4953_s11 + $0xfe0] sm:$0xff]  ;;  %1315 = vst [vmem:[%s4958_s10 + $0x7e0] sm:$0xff] %v1314_v20  ;;  %1317 = vst [vmem:[%s4958_s10 + $0x7e8] sm:$0xff] %v1316_v21  ;;  %v1320_v23 = vld [vmem:[%s4953_s11 + $0xff0] sm:$0xff] }
  0xc2   : > { %1319 = vst [vmem:[%s4958_s10 + $0x7f0] sm:$0xff] %v1318_v22  ;;  %1321 = vst [vmem:[%s4958_s10 + $0x7f8] sm:$0xff] %v1320_v23 }
  0xc3 PF: > { %p3848_p0 = scmp.ge.s32.totalorder %s4759_s25, 1  ;;  %p1342_p1 = scmp.lt.s32.totalorder %s4759_s25, 5 }
  0xc5   : > { %p1343_p2 = pnand %p3848_p0, %p1342_p1 }
  0xc6   : > { %s1349_s0 = sand.u32 (!%p1343_p2), 1, %s4735_s19   ;;  %s1356_s28 = sand.u32 (!%p1343_p2), 1, %s4727_s17  }
  0xc7   : > { %1346 = sbr.rel (%p1343_p2) target bundleno = 782 (0x30e), region = 89  ;;  %s3849_s5 = sshll.u32 (!%p1343_p2), %s1356_s28, 11 }
  0xc8   : > { %s4178_s26 = smul.u32 (!%p1343_p2), 192, %s1349_s0  ;;  %s1389_s29 = sand.u32 (!%p1343_p2), 1, %s4719_s15  }
  0xc9   : > { %s4179_s30 = smul.u32 (!%p1343_p2), 48, %s1389_s29  ;;  %s3850_s8 = sshll.u32 (!%p1343_p2), %s4747_s22, 1 }
  0xca   : > { %p1397_p3 = scmp.lt.s32.totalorder (!%p1343_p2), %s3850_s8, 3  ;;  %s5485_s19 = scalar_lea.vmem (!%p1343_p2), [#allocation3], %s4178_s26 }
  0xcb   : > { %s5487_s17 = scalar_lea.vmem (!%p1343_p2), [#allocation4], %s3849_s5  ;;  %s5489_s15 = scalar_lea.vmem (!%p1343_p2), [#allocation5], %s4179_s30 }
  0xcc   : > { %p3852_p4 = scmp.ne.s32.totalorder (!%p1343_p2), %s4743_s21, 0 }
  0xce   : > { %s5922_s8 = smov (!%p1397_p3, %s3850_s8), 3  ;;  %1411 = sbr.rel (%p3852_p4) target bundleno = 213 (0xd5), region = 101 }
  0xcf   : > { %s1399_s11 = scalar_lea.vmem %s5889_s2, %s5922_s8  ;;  %s1404_s27 = scalar_lea.vmem %s5890_s3, %s5922_s8  ;;  %v4761_v24 = vmov (!%p3852_p4), 0.0  }
  0xd0   : > { %1412 = vst [vmem:[#allocation2] sm:$0xff] (!%p3852_p4), %v4761_v24  ;;  %1413 = vst [vmem:[#allocation2 + $0x8] sm:$0xff] (!%p3852_p4), %v4761_v24 }
  0xd1   : > { %1414 = vst [vmem:[#allocation2 + $0x10] sm:$0xff] (!%p3852_p4), %v4761_v24  ;;  %1415 = vst [vmem:[#allocation2 + $0x18] sm:$0xff] (!%p3852_p4), %v4761_v24 }
  0xd2   : > { %1416 = vst [vmem:[#allocation2 + $0x20] sm:$0xff] (!%p3852_p4), %v4761_v24  ;;  %1417 = vst [vmem:[#allocation2 + $0x28] sm:$0xff] (!%p3852_p4), %v4761_v24 }
  0xd5 PF: > { %v4269_v25 = vld [vmem:[%s5487_s17 + $0x4] ss:$8 sps:$4 sm:$0xff]   ;;  %v4273_v27 = vld [vmem:[%s5487_s17] ss:$8 sps:$4 sm:$0xff]   ;;  %v4275_v29 = vld [vmem:[%s5487_s17 + $0x14] ss:$8 sps:$4 sm:$0xff]  }
  0xd6   : > { %v4271_v26 = vld [vmem:[%s5487_s17 + $0x404] ss:$8 sps:$4 sm:$0xff]   ;;  %3120 = vmatprep.subr.bf16.mxu1 %v4269_v25  ;;  %v4274_v28 = vld [vmem:[%s5487_s17 + $0x400] ss:$8 sps:$4 sm:$0xff]   ;;  %v4277_v30 = vld [vmem:[%s5487_s17 + $0x414] ss:$8 sps:$4 sm:$0xff]  }
  0xd7   : > { %3324 = vmatprep.subr.bf16.mxu0 %v4271_v26  ;;  %3121 = vmatpush1.bf16.msra.mxu1 %v4273_v27  ;;  %v4279_v31 = vld [vmem:[%s5487_s17 + $0x10] ss:$8 sps:$4 sm:$0xff]   ;;  %v4281_v33 = vld [vmem:[%s5487_s17 + $0x24] ss:$8 sps:$4 sm:$0xff]   ;;  %v4285_v35 = vld [vmem:[%s5487_s17 + $0x20] ss:$8 sps:$4 sm:$0xff]  }
  0xd8   : > { %3325 = vmatpush1.bf16.msra.mxu0 %v4274_v28  ;;  %3122 = vmatprep.subr.bf16.mxu1 %v4275_v29  ;;  %v4280_v32 = vld [vmem:[%s5487_s17 + $0x410] ss:$8 sps:$4 sm:$0xff]   ;;  %v4283_v34 = vld [vmem:[%s5487_s17 + $0x424] ss:$8 sps:$4 sm:$0xff]   ;;  %v4286_v36 = vld [vmem:[%s5487_s17 + $0x420] ss:$8 sps:$4 sm:$0xff]  }
  0xd9   : > { %3326 = vmatprep.subr.bf16.mxu0 %v4277_v30  ;;  %v4287_v37 = vld [vmem:[%s5487_s17 + $0x34] ss:$8 sps:$4 sm:$0xff]   ;;  %v4291_v39 = vld [vmem:[%s5487_s17 + $0x30] ss:$8 sps:$4 sm:$0xff]   ;;  %v4293_v41 = vld [vmem:[%s5487_s17 + $0x44] ss:$8 sps:$4 sm:$0xff]  }
  0xda   : > { %v4289_v38 = vld [vmem:[%s5487_s17 + $0x434] ss:$8 sps:$4 sm:$0xff]   ;;  %v4292_v40 = vld [vmem:[%s5487_s17 + $0x430] ss:$8 sps:$4 sm:$0xff]   ;;  %v4295_v42 = vld [vmem:[%s5487_s17 + $0x444] ss:$8 sps:$4 sm:$0xff]  }
  0xdb   : > { %3123 = vmatpush1.bf16.msra.mxu1 %v4279_v31  ;;  %v4297_v43 = vld [vmem:[%s5487_s17 + $0x40] ss:$8 sps:$4 sm:$0xff]   ;;  %v4299_v45 = vld [vmem:[%s5487_s17 + $0x54] ss:$8 sps:$4 sm:$0xff]   ;;  %v4303_v47 = vld [vmem:[%s5487_s17 + $0x50] ss:$8 sps:$4 sm:$0xff]  }
  0xdc   : > { %3327 = vmatpush1.bf16.msra.mxu0 %v4280_v32  ;;  %3124 = vmatprep.subr.bf16.mxu1 %v4281_v33  ;;  %v4298_v44 = vld [vmem:[%s5487_s17 + $0x440] ss:$8 sps:$4 sm:$0xff]   ;;  %v4301_v46 = vld [vmem:[%s5487_s17 + $0x454] ss:$8 sps:$4 sm:$0xff]   ;;  %v4304_v48 = vld [vmem:[%s5487_s17 + $0x450] ss:$8 sps:$4 sm:$0xff]  }
  0xdd   : > { %3328 = vmatprep.subr.bf16.mxu0 %v4283_v34  ;;  %v4305_v49 = vld [vmem:[%s5487_s17 + $0x64] ss:$8 sps:$4 sm:$0xff]   ;;  %v4309_v51 = vld [vmem:[%s5487_s17 + $0x60] ss:$8 sps:$4 sm:$0xff]   ;;  %v4311_v53 = vld [vmem:[%s5487_s17 + $0x74] ss:$8 sps:$4 sm:$0xff]  }
  0xde   : > { %v4307_v50 = vld [vmem:[%s5487_s17 + $0x464] ss:$8 sps:$4 sm:$0xff]   ;;  %v4310_v52 = vld [vmem:[%s5487_s17 + $0x460] ss:$8 sps:$4 sm:$0xff]   ;;  %v4313_v54 = vld [vmem:[%s5487_s17 + $0x474] ss:$8 sps:$4 sm:$0xff]  }
  0xdf   : > { %3125 = vmatpush1.bf16.msra.mxu1 %v4285_v35  ;;  %v4315_v55 = vld [vmem:[%s5487_s17 + $0x70] ss:$8 sps:$4 sm:$0xff]   ;;  %v4317_v57 = vld [vmem:[%s5487_s17 + $0x84] ss:$8 sps:$4 sm:$0xff]   ;;  %v4321_v59 = vld [vmem:[%s5487_s17 + $0x80] ss:$8 sps:$4 sm:$0xff]  }
  0xe0   : > { %3329 = vmatpush1.bf16.msra.mxu0 %v4286_v36  ;;  %3126 = vmatprep.subr.bf16.mxu1 %v4287_v37  ;;  %v4316_v56 = vld [vmem:[%s5487_s17 + $0x470] ss:$8 sps:$4 sm:$0xff]   ;;  %v4319_v58 = vld [vmem:[%s5487_s17 + $0x484] ss:$8 sps:$4 sm:$0xff]   ;;  %v4322_v60 = vld [vmem:[%s5487_s17 + $0x480] ss:$8 sps:$4 sm:$0xff]  }
  0xe1   : > { %3330 = vmatprep.subr.bf16.mxu0 %v4289_v38  ;;  %v4323_v61 = vld [vmem:[%s5487_s17 + $0x94] ss:$8 sps:$4 sm:$0xff]   ;;  %v4327_v63 = vld [vmem:[%s5487_s17 + $0x90] ss:$8 sps:$4 sm:$0xff]   ;;  %v4329_v1 = vld [vmem:[%s5487_s17 + $0xa4] ss:$8 sps:$4 sm:$0xff]  }
  0xe2   : > { %v4325_v62 = vld [vmem:[%s5487_s17 + $0x494] ss:$8 sps:$4 sm:$0xff]   ;;  %v4328_v0 = vld [vmem:[%s5487_s17 + $0x490] ss:$8 sps:$4 sm:$0xff]   ;;  %v4331_v2 = vld [vmem:[%s5487_s17 + $0x4a4] ss:$8 sps:$4 sm:$0xff]  }
  0xe3   : > { %3127 = vmatpush1.bf16.msra.mxu1 %v4291_v39  ;;  %v4333_v3 = vld [vmem:[%s5487_s17 + $0xa0] ss:$8 sps:$4 sm:$0xff]   ;;  %v4335_v5 = vld [vmem:[%s5487_s17 + $0xb4] ss:$8 sps:$4 sm:$0xff]   ;;  %v4339_v7 = vld [vmem:[%s5487_s17 + $0xb0] ss:$8 sps:$4 sm:$0xff]  }
  0xe4   : > { %3331 = vmatpush1.bf16.msra.mxu0 %v4292_v40  ;;  %3128 = vmatprep.subr.bf16.mxu1 %v4293_v41  ;;  %v4334_v4 = vld [vmem:[%s5487_s17 + $0x4a0] ss:$8 sps:$4 sm:$0xff]   ;;  %v4337_v6 = vld [vmem:[%s5487_s17 + $0x4b4] ss:$8 sps:$4 sm:$0xff]   ;;  %v4340_v8 = vld [vmem:[%s5487_s17 + $0x4b0] ss:$8 sps:$4 sm:$0xff]  }
  0xe5   : > { %3332 = vmatprep.subr.bf16.mxu0 %v4295_v42  ;;  %v1424_v9 = vld [vmem:[%s5485_s19] sm:$0xff]  ;;  %v4347_v19 = vld [vmem:[%s5487_s17 + $0xd4] ss:$8 sps:$4 sm:$0xff]   ;;  %v4351_v21 = vld [vmem:[%s5487_s17 + $0xd0] ss:$8 sps:$4 sm:$0xff]   ;;  %p4141_p5 = scmp.ne.s32.totalorder %s4743_s21, 1 }
  0xe6   : > { %v1432_v10 = vld [vmem:[%s5485_s19 + $0x40] sm:$0xff]  ;;  %v4349_v20 = vld [vmem:[%s5487_s17 + $0x4d4] ss:$8 sps:$4 sm:$0xff]   ;;  %v4352_v22 = vld [vmem:[%s5487_s17 + $0x4d0] ss:$8 sps:$4 sm:$0xff]  }
  0xe7   : > { %3129 = vmatpush1.bf16.msra.mxu1 %v4297_v43  ;;  %v4341_v11 = vld [vmem:[%s5487_s17 + $0xc4] ss:$8 sps:$4 sm:$0xff]   ;;  %v3854_v13 = vcombine.high %v1424_v9, %v1432_v10  ;;  %v4345_v17 = vld [vmem:[%s5487_s17 + $0xc0] ss:$8 sps:$4 sm:$0xff]   ;;  %v4359_v27 = vld [vmem:[%s5487_s17 + $0xf4] ss:$8 sps:$4 sm:$0xff]   ;;  %v3853_v33 = vcombine.low %v1424_v9, %v1432_v10 }
  0xe8   : > { %3333 = vmatpush1.bf16.msra.mxu0 %v4298_v44  ;;  %3130 = vmatprep.subr.bf16.mxu1 %v4299_v45  ;;  %v4343_v12 = vld [vmem:[%s5487_s17 + $0x4c4] ss:$8 sps:$4 sm:$0xff]   ;;  %v4346_v18 = vld [vmem:[%s5487_s17 + $0x4c0] ss:$8 sps:$4 sm:$0xff]   ;;  %v4361_v28 = vld [vmem:[%s5487_s17 + $0x4f4] ss:$8 sps:$4 sm:$0xff]  }
  0xe9   : > { %3334 = vmatprep.subr.bf16.mxu0 %v4301_v46  ;;  %v1428_v14 = vld [vmem:[%s5485_s19 + $0x20] sm:$0xff]  ;;  %3152 = vmatprep.mubr.bf16.mxu1 %v3854_v13  ;;  %v4363_v29 = vld [vmem:[%s5487_s17 + $0xf0] ss:$8 sps:$4 sm:$0xff]   ;;  %v4373_v37 = vld [vmem:[%s5487_s17 + $0x114] ss:$8 sps:$4 sm:$0xff]  }
  0xea   : > { %v1436_v15 = vld [vmem:[%s5485_s19 + $0x60] sm:$0xff]  ;;  %v4364_v30 = vld [vmem:[%s5487_s17 + $0x4f0] ss:$8 sps:$4 sm:$0xff]   ;;  %v4376_v38 = vld [vmem:[%s5487_s17 + $0x514] ss:$8 sps:$4 sm:$0xff]  }
  0xeb   : > { %3131 = vmatpush1.bf16.msra.mxu1 %v4303_v47  ;;  %v3862_v16 = vcombine.high %v1428_v14, %v1436_v15  ;;  %v4353_v23 = vld [vmem:[%s5487_s17 + $0xe4] ss:$8 sps:$4 sm:$0xff]   ;;  %v4357_v25 = vld [vmem:[%s5487_s17 + $0xe0] ss:$8 sps:$4 sm:$0xff]   ;;  %v3861_v35 = vcombine.low %v1428_v14, %v1436_v15  ;;  %v4371_v39 = vld [vmem:[%s5487_s17 + $0x110] ss:$8 sps:$4 sm:$0xff]  }
  0xec   : > { %3335 = vmatpush1.bf16.msra.mxu0 %v4304_v48  ;;  %3132 = vmatprep.subr.bf16.mxu1 %v4305_v49  ;;  %v4355_v24 = vld [vmem:[%s5487_s17 + $0x4e4] ss:$8 sps:$4 sm:$0xff]   ;;  %v4358_v26 = vld [vmem:[%s5487_s17 + $0x4e0] ss:$8 sps:$4 sm:$0xff]   ;;  %v4374_v40 = vld [vmem:[%s5487_s17 + $0x510] ss:$8 sps:$4 sm:$0xff]  }
  0xed   : > { %3336 = vmatprep.subr.bf16.mxu0 %v4307_v50  ;;  %3356 = vmatprep.mubr.bf16.mxu0 %v3862_v16  ;;  %v4367_v31 = vld [vmem:[%s5487_s17 + $0x104] ss:$8 sps:$4 sm:$0xff]   ;;  %v4365_v34 = vld [vmem:[%s5487_s17 + $0x100] ss:$8 sps:$4 sm:$0xff]   ;;  %v4385_v45 = vld [vmem:[%s5487_s17 + $0x134] ss:$8 sps:$4 sm:$0xff]  }
  0xee   : > { %v4370_v32 = vld [vmem:[%s5487_s17 + $0x504] ss:$8 sps:$4 sm:$0xff]   ;;  %v4368_v36 = vld [vmem:[%s5487_s17 + $0x500] ss:$8 sps:$4 sm:$0xff]   ;;  %v4388_v46 = vld [vmem:[%s5487_s17 + $0x534] ss:$8 sps:$4 sm:$0xff]  }
  0xef   : > { %3133 = vmatpush1.bf16.msra.mxu1 %v4309_v51  ;;  %v4379_v41 = vld [vmem:[%s5487_s17 + $0x124] ss:$8 sps:$4 sm:$0xff]   ;;  %v4377_v43 = vld [vmem:[%s5487_s17 + $0x120] ss:$8 sps:$4 sm:$0xff]   ;;  %v4383_v47 = vld [vmem:[%s5487_s17 + $0x130] ss:$8 sps:$4 sm:$0xff]  }
  0xf0   : > { %3337 = vmatpush1.bf16.msra.mxu0 %v4310_v52  ;;  %3134 = vmatprep.subr.bf16.mxu1 %v4311_v53  ;;  %v4382_v42 = vld [vmem:[%s5487_s17 + $0x524] ss:$8 sps:$4 sm:$0xff]   ;;  %v4380_v44 = vld [vmem:[%s5487_s17 + $0x520] ss:$8 sps:$4 sm:$0xff]   ;;  %v4386_v48 = vld [vmem:[%s5487_s17 + $0x530] ss:$8 sps:$4 sm:$0xff]  }
  0xf1   : > { %3338 = vmatprep.subr.bf16.mxu0 %v4313_v54  ;;  %v4391_v49 = vld [vmem:[%s5487_s17 + $0x144] ss:$8 sps:$4 sm:$0xff]   ;;  %v4389_v51 = vld [vmem:[%s5487_s17 + $0x140] ss:$8 sps:$4 sm:$0xff]   ;;  %v4397_v53 = vld [vmem:[%s5487_s17 + $0x154] ss:$8 sps:$4 sm:$0xff]  }
  0xf2   : > { %v4394_v50 = vld [vmem:[%s5487_s17 + $0x544] ss:$8 sps:$4 sm:$0xff]   ;;  %v4392_v52 = vld [vmem:[%s5487_s17 + $0x540] ss:$8 sps:$4 sm:$0xff]   ;;  %v4400_v54 = vld [vmem:[%s5487_s17 + $0x554] ss:$8 sps:$4 sm:$0xff]  }
  0xf3   : > { %3135 = vmatpush1.bf16.msra.mxu1 %v4315_v55  ;;  %v1440_v55 = vld [vmem:[%s5485_s19 + $0x80] sm:$0xff]  ;;  %v5604_v9 = vld [vmem:[%s5485_s19 + $0x68] sm:$0xff] }
  0xf4   : > { %3339 = vmatpush1.bf16.msra.mxu0 %v4316_v56  ;;  %3136 = vmatprep.subr.bf16.mxu1 %v4317_v57  ;;  %v3870_v56 = vcombine.high %v1440_v55, %v1440_v55  ;;  %v3869_v57 = vcombine.low %v1440_v55, %v1440_v55  ;;  %v4415_v13 = vld [vmem:[%s5487_s17 + $0x184] ss:$8 sps:$4 sm:$0xff]   ;;  %v4413_v15 = vld [vmem:[%s5487_s17 + $0x180] ss:$8 sps:$4 sm:$0xff]  }
  0xf5   : > { %3340 = vmatprep.subr.bf16.mxu0 %v4319_v58  ;;  %v1444_v58 = vld [vmem:[%s5485_s19 + $0xa0] sm:$0xff] }
  0xf6   : > { %v4418_v14 = vld [vmem:[%s5487_s17 + $0x584] ss:$8 sps:$4 sm:$0xff]   ;;  %v4416_v16 = vld [vmem:[%s5487_s17 + $0x580] ss:$8 sps:$4 sm:$0xff]  }
  0xf7   : > { %3137 = vmatpush1.bf16.msra.mxu1 %v4321_v59  ;;  %v4395_v59 = vld [vmem:[%s5487_s17 + $0x150] ss:$8 sps:$4 sm:$0xff]  }
  0xf8   : > { %3341 = vmatpush1.bf16.msra.mxu0 %v4322_v60  ;;  %3138 = vmatprep.subr.bf16.mxu1 %v4323_v61  ;;  %v4398_v60 = vld [vmem:[%s5487_s17 + $0x550] ss:$8 sps:$4 sm:$0xff]   ;;  %v3878_v61 = vcombine.high %v1444_v58, %v1444_v58 }
  0xf9   : > { %3342 = vmatprep.subr.bf16.mxu0 %v4325_v62  ;;  %v3877_v62 = vcombine.low %v1444_v58, %v1444_v58  ;;  %v4474_v58 = vld [vmem:[%s5487_s17 + $0x610] ss:$8 sps:$4 sm:$0xff]  }
  0xfb   : > { %3139 = vmatpush1.bf16.msra.mxu1 %v4327_v63  ;;  %v4403_v63 = vld [vmem:[%s5487_s17 + $0x164] ss:$8 sps:$4 sm:$0xff]  }
  0xfc   : > { %3343 = vmatpush1.bf16.msra.mxu0 %v4328_v0  ;;  %3140 = vmatprep.subr.bf16.mxu1 %v4329_v1  ;;  %v4406_v0 = vld [vmem:[%s5487_s17 + $0x564] ss:$8 sps:$4 sm:$0xff]   ;;  %v4401_v1 = vld [vmem:[%s5487_s17 + $0x160] ss:$8 sps:$4 sm:$0xff]  }
  0xfd   : > { %3344 = vmatprep.subr.bf16.mxu0 %v4331_v2  ;;  %v4404_v2 = vld [vmem:[%s5487_s17 + $0x560] ss:$8 sps:$4 sm:$0xff]  }
  0xff   : > { %3141 = vmatpush1.bf16.msra.mxu1 %v4333_v3  ;;  %v5591_v3 = vld [vmem:[%s5485_s19 + $0x8] sm:$0xff] }
 0x100   : > { %3345 = vmatpush1.bf16.msra.mxu0 %v4334_v4  ;;  %3142 = vmatprep.subr.bf16.mxu1 %v4335_v5  ;;  %v5594_v4 = vld [vmem:[%s5485_s19 + $0x48] sm:$0xff]  ;;  %v4409_v5 = vld [vmem:[%s5487_s17 + $0x174] ss:$8 sps:$4 sm:$0xff]  }
 0x101   : > { %3346 = vmatprep.subr.bf16.mxu0 %v4337_v6  ;;  %v3856_v6 = vcombine.high %v5591_v3, %v5594_v4 }
 0x103   : > { %3143 = vmatpush1.bf16.msra.mxu1 %v4339_v7  ;;  %v4412_v7 = vld [vmem:[%s5487_s17 + $0x574] ss:$8 sps:$4 sm:$0xff]  }
 0x104   : > { %3347 = vmatpush1.bf16.msra.mxu0 %v4340_v8  ;;  %3144 = vmatprep.subr.bf16.mxu1 %v4341_v11  ;;  %v5601_v8 = vld [vmem:[%s5485_s19 + $0x28] sm:$0xff]  ;;  %v4407_v11 = vld [vmem:[%s5487_s17 + $0x170] ss:$8 sps:$4 sm:$0xff]  }
 0x105   : > { %3348 = vmatprep.subr.bf16.mxu0 %v4343_v12  ;;  %v3864_v10 = vcombine.high %v5601_v8, %v5604_v9  ;;  %v4410_v12 = vld [vmem:[%s5487_s17 + $0x570] ss:$8 sps:$4 sm:$0xff]  }
 0x107   : > { %3145 = vmatpush1.bf16.msra.mxu1 %v4345_v17  ;;  %v4421_v17 = vld [vmem:[%s5487_s17 + $0x194] ss:$8 sps:$4 sm:$0xff]  }
 0x108   : > { %3349 = vmatpush1.bf16.msra.mxu0 %v4346_v18  ;;  %3146 = vmatprep.subr.bf16.mxu1 %v4347_v19  ;;  %v4424_v18 = vld [vmem:[%s5487_s17 + $0x594] ss:$8 sps:$4 sm:$0xff]   ;;  %v4419_v19 = vld [vmem:[%s5487_s17 + $0x190] ss:$8 sps:$4 sm:$0xff]  }
 0x109   : > { %3350 = vmatprep.subr.bf16.mxu0 %v4349_v20  ;;  %v4422_v20 = vld [vmem:[%s5487_s17 + $0x590] ss:$8 sps:$4 sm:$0xff]  }
 0x10b   : > { %3147 = vmatpush1.bf16.msra.mxu1 %v4351_v21  ;;  %v4427_v21 = vld [vmem:[%s5487_s17 + $0x1a4] ss:$8 sps:$4 sm:$0xff]  }
 0x10c   : > { %3351 = vmatpush1.bf16.msra.mxu0 %v4352_v22  ;;  %3148 = vmatprep.subr.bf16.mxu1 %v4353_v23  ;;  %v4430_v22 = vld [vmem:[%s5487_s17 + $0x5a4] ss:$8 sps:$4 sm:$0xff]   ;;  %v4425_v23 = vld [vmem:[%s5487_s17 + $0x1a0] ss:$8 sps:$4 sm:$0xff]  }
 0x10d   : > { %3352 = vmatprep.subr.bf16.mxu0 %v4355_v24  ;;  %v4428_v24 = vld [vmem:[%s5487_s17 + $0x5a0] ss:$8 sps:$4 sm:$0xff]  }
 0x10f   : > { %3149 = vmatpush1.bf16.msra.mxu1 %v4357_v25  ;;  %v4433_v25 = vld [vmem:[%s5487_s17 + $0x1b4] ss:$8 sps:$4 sm:$0xff]  }
 0x110   : > { %3353 = vmatpush1.bf16.msra.mxu0 %v4358_v26  ;;  %3150 = vmatprep.subr.bf16.mxu1 %v4359_v27  ;;  %v4436_v26 = vld [vmem:[%s5487_s17 + $0x5b4] ss:$8 sps:$4 sm:$0xff]   ;;  %v4431_v27 = vld [vmem:[%s5487_s17 + $0x1b0] ss:$8 sps:$4 sm:$0xff]  }
 0x111   : > { %3354 = vmatprep.subr.bf16.mxu0 %v4361_v28  ;;  %v4434_v28 = vld [vmem:[%s5487_s17 + $0x5b0] ss:$8 sps:$4 sm:$0xff]  }
 0x113   : > { %3151 = vmatpush1.bf16.msra.mxu1 %v4363_v29  ;;  %v4439_v29 = vld [vmem:[%s5487_s17 + $0x1c4] ss:$8 sps:$4 sm:$0xff]  }
 0x114   : > { %3355 = vmatpush1.bf16.msra.mxu0 %v4364_v30  ;;  %3171 = vmatprep.subr.bf16.mxu1 %v4367_v31  ;;  %v4442_v30 = vld [vmem:[%s5487_s17 + $0x5c4] ss:$8 sps:$4 sm:$0xff]   ;;  %v4437_v31 = vld [vmem:[%s5487_s17 + $0x1c0] ss:$8 sps:$4 sm:$0xff]  }
 0x115   : > { %3375 = vmatprep.subr.bf16.mxu0 %v4370_v32  ;;  %v4440_v32 = vld [vmem:[%s5487_s17 + $0x5c0] ss:$8 sps:$4 sm:$0xff]  }
 0x116   : > { %3153 = vmatmul.mubr.bf16.vlgmr.msra.gmra.mrb[0].mxu1 %v3853_v33  ;;  %v4445_v33 = vld [vmem:[%s5487_s17 + $0x1d4] ss:$8 sps:$4 sm:$0xff]  }
 0x117   : > { %3357 = vmatmul.mubr.bf16.vlgmr.msra.gmra.mrb[0].mxu0 %v3861_v35  ;;  %3172 = vmatpush1.bf16.msra.mxu1 %v4365_v34  ;;  %v4448_v34 = vld [vmem:[%s5487_s17 + $0x5d4] ss:$8 sps:$4 sm:$0xff]   ;;  %v4443_v35 = vld [vmem:[%s5487_s17 + $0x1d0] ss:$8 sps:$4 sm:$0xff]  }
 0x118   : > { %3376 = vmatpush1.bf16.msra.mxu0 %v4368_v36  ;;  %3173 = vmatprep.subr.bf16.mxu1 %v4373_v37  ;;  %v4446_v36 = vld [vmem:[%s5487_s17 + $0x5d0] ss:$8 sps:$4 sm:$0xff]   ;;  %v4453_v37 = vld [vmem:[%s5487_s17 + $0x1e4] ss:$8 sps:$4 sm:$0xff]  }
 0x119   : > { %3377 = vmatprep.subr.bf16.mxu0 %v4376_v38  ;;  %3162 = vmatprep.mubr.bf16.mxu1 %v3870_v56  ;;  %v4457_v38 = vld [vmem:[%s5487_s17 + $0x5e4] ss:$8 sps:$4 sm:$0xff]  }
 0x11a   : > { %3366 = vmatprep.mubr.bf16.mxu0 %v3878_v61  ;;  %v4479_v61 = vld [vmem:[%s5487_s17 + $0x220] ss:$8 sps:$4 sm:$0xff]  }
 0x11b   : > { %3174 = vmatpush1.bf16.msra.mxu1 %v4371_v39  ;;  %v4451_v39 = vld [vmem:[%s5487_s17 + $0x1e0] ss:$8 sps:$4 sm:$0xff]  }
 0x11c   : > { %3378 = vmatpush1.bf16.msra.mxu0 %v4374_v40  ;;  %3175 = vmatprep.subr.bf16.mxu1 %v4379_v41  ;;  %v4455_v40 = vld [vmem:[%s5487_s17 + $0x5e0] ss:$8 sps:$4 sm:$0xff]   ;;  %v4461_v41 = vld [vmem:[%s5487_s17 + $0x1f4] ss:$8 sps:$4 sm:$0xff]  }
 0x11d   : > { %3379 = vmatprep.subr.bf16.mxu0 %v4382_v42  ;;  %v4464_v42 = vld [vmem:[%s5487_s17 + $0x5f4] ss:$8 sps:$4 sm:$0xff]  }
 0x11e   : > { %3163 = vmatmul.mubr.bf16.gmra.mrb[4].mxu1 %v3869_v57  ;;  %v4471_v57 = vld [vmem:[%s5487_s17 + $0x210] ss:$8 sps:$4 sm:$0xff]  }
 0x11f   : > { %3176 = vmatpush1.bf16.msra.mxu1 %v4377_v43  ;;  %3367 = vmatmul.mubr.bf16.gmra.mrb[4].mxu0 %v3877_v62  ;;  %v4459_v43 = vld [vmem:[%s5487_s17 + $0x1f0] ss:$8 sps:$4 sm:$0xff]   ;;  %v4482_v62 = vld [vmem:[%s5487_s17 + $0x620] ss:$8 sps:$4 sm:$0xff]  }
 0x120   : > { %3380 = vmatpush1.bf16.msra.mxu0 %v4380_v44  ;;  %3177 = vmatprep.subr.bf16.mxu1 %v4385_v45  ;;  %v4462_v44 = vld [vmem:[%s5487_s17 + $0x5f0] ss:$8 sps:$4 sm:$0xff]   ;;  %v4467_v45 = vld [vmem:[%s5487_s17 + $0x204] ss:$8 sps:$4 sm:$0xff]  }
 0x121   : > { %3381 = vmatprep.subr.bf16.mxu0 %v4388_v46  ;;  %3203 = vmatprep.mubr.bf16.mxu1 %v3856_v6  ;;  %v4470_v46 = vld [vmem:[%s5487_s17 + $0x604] ss:$8 sps:$4 sm:$0xff]   ;;  %v4490_v6 = vld [vmem:[%s5487_s17 + $0x634] ss:$8 sps:$4 sm:$0xff]  }
 0x122   : > { %3407 = vmatprep.mubr.bf16.mxu0 %v3864_v10  ;;  %v4488_v10 = vld [vmem:[%s5487_s17 + $0x630] ss:$8 sps:$4 sm:$0xff]  }
 0x123   : > { %3178 = vmatpush1.bf16.msra.mxu1 %v4383_v47  ;;  %v4465_v47 = vld [vmem:[%s5487_s17 + $0x200] ss:$8 sps:$4 sm:$0xff]  }
 0x124   : > { %3382 = vmatpush1.bf16.msra.mxu0 %v4386_v48  ;;  %3179 = vmatprep.subr.bf16.mxu1 %v4391_v49  ;;  %v3855_v48 = vcombine.low %v5591_v3, %v5594_v4  ;;  %v3863_v49 = vcombine.low %v5601_v8, %v5604_v9  ;;  %v5667_v3 = vld [vmem:[%s5485_s19 + $0x30] sm:$0xff] }
 0x125   : > { %3383 = vmatprep.subr.bf16.mxu0 %v4394_v50  ;;  %v4468_v50 = vld [vmem:[%s5487_s17 + $0x600] ss:$8 sps:$4 sm:$0xff]   ;;  %v5670_v4 = vld [vmem:[%s5485_s19 + $0x70] sm:$0xff] }
 0x126   : > { %v3866_v8 = vcombine.high %v5667_v3, %v5670_v4  ;;  %v4485_v9 = vld [vmem:[%s5487_s17 + $0x230] ss:$8 sps:$4 sm:$0xff]  }
 0x127   : > { %3180 = vmatpush1.bf16.msra.mxu1 %v4389_v51  ;;  %v1441_v51 = vld [vmem:[%s5485_s19 + $0x88] sm:$0xff] }
 0x128   : > { %3384 = vmatpush1.bf16.msra.mxu0 %v4392_v52  ;;  %3181 = vmatprep.subr.bf16.mxu1 %v4397_v53  ;;  %v1445_v52 = vld [vmem:[%s5485_s19 + $0xa8] sm:$0xff]  ;;  %v4473_v53 = vld [vmem:[%s5487_s17 + $0x214] ss:$8 sps:$4 sm:$0xff]   ;;  %v3872_v55 = vcombine.high %v1441_v51, %v1441_v51 }
 0x129   : > { %3385 = vmatprep.subr.bf16.mxu0 %v4400_v54  ;;  %v4476_v54 = vld [vmem:[%s5487_s17 + $0x614] ss:$8 sps:$4 sm:$0xff]   ;;  %v3880_v56 = vcombine.high %v1445_v52, %v1445_v52 }
 0x12b   : > { %3182 = vmatpush1.bf16.msra.mxu1 %v4395_v59  ;;  %v4481_v59 = vld [vmem:[%s5487_s17 + $0x224] ss:$8 sps:$4 sm:$0xff]  }
 0x12c   : > { %3386 = vmatpush1.bf16.msra.mxu0 %v4398_v60  ;;  %3183 = vmatprep.subr.bf16.mxu1 %v4403_v63  ;;  %v4484_v60 = vld [vmem:[%s5487_s17 + $0x624] ss:$8 sps:$4 sm:$0xff]   ;;  %v5661_v63 = vld [vmem:[%s5485_s19 + $0x10] sm:$0xff] }
 0x12d   : > { %3387 = vmatprep.subr.bf16.mxu0 %v4406_v0  ;;  %v5664_v0 = vld [vmem:[%s5485_s19 + $0x50] sm:$0xff] }
 0x12f   : > { %3184 = vmatpush1.bf16.msra.mxu1 %v4401_v1  ;;  %v3871_v1 = vcombine.low %v1441_v51, %v1441_v51  ;;  %v4553_v51 = vld [vmem:[%s5487_s17 + $0x2e4] ss:$8 sps:$4 sm:$0xff]  }
 0x130   : > { %3388 = vmatpush1.bf16.msra.mxu0 %v4404_v2  ;;  %3185 = vmatprep.subr.bf16.mxu1 %v4409_v5  ;;  %v3879_v2 = vcombine.low %v1445_v52, %v1445_v52  ;;  %v4487_v5 = vld [vmem:[%s5487_s17 + $0x234] ss:$8 sps:$4 sm:$0xff]   ;;  %v4557_v52 = vld [vmem:[%s5487_s17 + $0x6e4] ss:$8 sps:$4 sm:$0xff]  }
 0x131   : > { %3389 = vmatprep.subr.bf16.mxu0 %v4412_v7  ;;  %v3858_v7 = vcombine.high %v5661_v63, %v5664_v0 }
 0x133   : > { %3186 = vmatpush1.bf16.msra.mxu1 %v4407_v11  ;;  %v4493_v11 = vld [vmem:[%s5487_s17 + $0x244] ss:$8 sps:$4 sm:$0xff]  }
 0x134   : > { %3390 = vmatpush1.bf16.msra.mxu0 %v4410_v12  ;;  %3187 = vmatprep.subr.bf16.mxu1 %v4415_v13  ;;  %v4496_v12 = vld [vmem:[%s5487_s17 + $0x644] ss:$8 sps:$4 sm:$0xff]   ;;  %v4491_v13 = vld [vmem:[%s5487_s17 + $0x240] ss:$8 sps:$4 sm:$0xff]  }
 0x135   : > { %3391 = vmatprep.subr.bf16.mxu0 %v4418_v14  ;;  %v4494_v14 = vld [vmem:[%s5487_s17 + $0x640] ss:$8 sps:$4 sm:$0xff]  }
 0x137   : > { %3188 = vmatpush1.bf16.msra.mxu1 %v4413_v15  ;;  %v4499_v15 = vld [vmem:[%s5487_s17 + $0x254] ss:$8 sps:$4 sm:$0xff]  }
 0x138   : > { %3392 = vmatpush1.bf16.msra.mxu0 %v4416_v16  ;;  %3189 = vmatprep.subr.bf16.mxu1 %v4421_v17  ;;  %v4502_v16 = vld [vmem:[%s5487_s17 + $0x654] ss:$8 sps:$4 sm:$0xff]   ;;  %v4497_v17 = vld [vmem:[%s5487_s17 + $0x250] ss:$8 sps:$4 sm:$0xff]  }
 0x139   : > { %3393 = vmatprep.subr.bf16.mxu0 %v4424_v18  ;;  %v4500_v18 = vld [vmem:[%s5487_s17 + $0x650] ss:$8 sps:$4 sm:$0xff]  }
 0x13b   : > { %3190 = vmatpush1.bf16.msra.mxu1 %v4419_v19  ;;  %v4505_v19 = vld [vmem:[%s5487_s17 + $0x264] ss:$8 sps:$4 sm:$0xff]  }
 0x13c   : > { %3394 = vmatpush1.bf16.msra.mxu0 %v4422_v20  ;;  %3191 = vmatprep.subr.bf16.mxu1 %v4427_v21  ;;  %v4508_v20 = vld [vmem:[%s5487_s17 + $0x664] ss:$8 sps:$4 sm:$0xff]   ;;  %v4503_v21 = vld [vmem:[%s5487_s17 + $0x260] ss:$8 sps:$4 sm:$0xff]  }
 0x13d   : > { %3395 = vmatprep.subr.bf16.mxu0 %v4430_v22  ;;  %v4506_v22 = vld [vmem:[%s5487_s17 + $0x660] ss:$8 sps:$4 sm:$0xff]  }
 0x13f   : > { %3192 = vmatpush1.bf16.msra.mxu1 %v4425_v23  ;;  %v4511_v23 = vld [vmem:[%s5487_s17 + $0x274] ss:$8 sps:$4 sm:$0xff]  }
 0x140   : > { %3396 = vmatpush1.bf16.msra.mxu0 %v4428_v24  ;;  %3193 = vmatprep.subr.bf16.mxu1 %v4433_v25  ;;  %v4514_v24 = vld [vmem:[%s5487_s17 + $0x674] ss:$8 sps:$4 sm:$0xff]   ;;  %v4509_v25 = vld [vmem:[%s5487_s17 + $0x270] ss:$8 sps:$4 sm:$0xff]  }
 0x141   : > { %3397 = vmatprep.subr.bf16.mxu0 %v4436_v26  ;;  %v4512_v26 = vld [vmem:[%s5487_s17 + $0x670] ss:$8 sps:$4 sm:$0xff]  }
 0x143   : > { %3194 = vmatpush1.bf16.msra.mxu1 %v4431_v27  ;;  %v4517_v27 = vld [vmem:[%s5487_s17 + $0x284] ss:$8 sps:$4 sm:$0xff]  }
 0x144   : > { %3398 = vmatpush1.bf16.msra.mxu0 %v4434_v28  ;;  %3195 = vmatprep.subr.bf16.mxu1 %v4439_v29  ;;  %v4520_v28 = vld [vmem:[%s5487_s17 + $0x684] ss:$8 sps:$4 sm:$0xff]   ;;  %v4515_v29 = vld [vmem:[%s5487_s17 + $0x280] ss:$8 sps:$4 sm:$0xff]  }
 0x145   : > { %3399 = vmatprep.subr.bf16.mxu0 %v4442_v30  ;;  %v4518_v30 = vld [vmem:[%s5487_s17 + $0x680] ss:$8 sps:$4 sm:$0xff]  }
 0x147   : > { %3196 = vmatpush1.bf16.msra.mxu1 %v4437_v31  ;;  %v4523_v31 = vld [vmem:[%s5487_s17 + $0x294] ss:$8 sps:$4 sm:$0xff]  }
 0x148   : > { %3400 = vmatpush1.bf16.msra.mxu0 %v4440_v32  ;;  %3197 = vmatprep.subr.bf16.mxu1 %v4445_v33  ;;  %v4526_v32 = vld [vmem:[%s5487_s17 + $0x694] ss:$8 sps:$4 sm:$0xff]   ;;  %v4521_v33 = vld [vmem:[%s5487_s17 + $0x290] ss:$8 sps:$4 sm:$0xff]  }
 0x149   : > { %3401 = vmatprep.subr.bf16.mxu0 %v4448_v34  ;;  %v4524_v34 = vld [vmem:[%s5487_s17 + $0x690] ss:$8 sps:$4 sm:$0xff]  }
 0x14b   : > { %3198 = vmatpush1.bf16.msra.mxu1 %v4443_v35  ;;  %v4529_v35 = vld [vmem:[%s5487_s17 + $0x2a4] ss:$8 sps:$4 sm:$0xff]  }
 0x14c   : > { %3402 = vmatpush1.bf16.msra.mxu0 %v4446_v36  ;;  %3199 = vmatprep.subr.bf16.mxu1 %v4453_v37  ;;  %v4532_v36 = vld [vmem:[%s5487_s17 + $0x6a4] ss:$8 sps:$4 sm:$0xff]   ;;  %v4527_v37 = vld [vmem:[%s5487_s17 + $0x2a0] ss:$8 sps:$4 sm:$0xff]  }
 0x14d   : > { %3403 = vmatprep.subr.bf16.mxu0 %v4457_v38  ;;  %v4530_v38 = vld [vmem:[%s5487_s17 + $0x6a0] ss:$8 sps:$4 sm:$0xff]  }
 0x14f   : > { %3200 = vmatpush1.bf16.msra.mxu1 %v4451_v39  ;;  %v4535_v39 = vld [vmem:[%s5487_s17 + $0x2b4] ss:$8 sps:$4 sm:$0xff]  }
 0x150   : > { %3404 = vmatpush1.bf16.msra.mxu0 %v4455_v40  ;;  %3201 = vmatprep.subr.bf16.mxu1 %v4461_v41  ;;  %v4538_v40 = vld [vmem:[%s5487_s17 + $0x6b4] ss:$8 sps:$4 sm:$0xff]   ;;  %v4533_v41 = vld [vmem:[%s5487_s17 + $0x2b0] ss:$8 sps:$4 sm:$0xff]  }
 0x151   : > { %3405 = vmatprep.subr.bf16.mxu0 %v4464_v42  ;;  %v4536_v42 = vld [vmem:[%s5487_s17 + $0x6b0] ss:$8 sps:$4 sm:$0xff]  }
 0x153   : > { %3202 = vmatpush1.bf16.msra.mxu1 %v4459_v43  ;;  %v4541_v43 = vld [vmem:[%s5487_s17 + $0x2c4] ss:$8 sps:$4 sm:$0xff]  }
 0x154   : > { %3406 = vmatpush1.bf16.msra.mxu0 %v4462_v44  ;;  %3222 = vmatprep.subr.bf16.mxu1 %v4467_v45  ;;  %v4544_v44 = vld [vmem:[%s5487_s17 + $0x6c4] ss:$8 sps:$4 sm:$0xff]   ;;  %v4539_v45 = vld [vmem:[%s5487_s17 + $0x2c0] ss:$8 sps:$4 sm:$0xff]  }
 0x155   : > { %3426 = vmatprep.subr.bf16.mxu0 %v4470_v46  ;;  %v4542_v46 = vld [vmem:[%s5487_s17 + $0x6c0] ss:$8 sps:$4 sm:$0xff]  }
 0x156   : > { %3204 = vmatmul.mubr.bf16.vlgmr.msra.gmra.mrb[0].mxu1 %v3855_v48  ;;  %v4550_v48 = vld [vmem:[%s5487_s17 + $0x6d4] ss:$8 sps:$4 sm:$0xff]  }
 0x157   : > { %3408 = vmatmul.mubr.bf16.vlgmr.msra.gmra.mrb[0].mxu0 %v3863_v49  ;;  %3223 = vmatpush1.bf16.msra.mxu1 %v4465_v47  ;;  %v4547_v47 = vld [vmem:[%s5487_s17 + $0x2d4] ss:$8 sps:$4 sm:$0xff]   ;;  %v4545_v49 = vld [vmem:[%s5487_s17 + $0x2d0] ss:$8 sps:$4 sm:$0xff]  }
 0x158   : > { %3427 = vmatpush1.bf16.msra.mxu0 %v4468_v50  ;;  %3224 = vmatprep.subr.bf16.mxu1 %v4473_v53  ;;  %v4548_v50 = vld [vmem:[%s5487_s17 + $0x6d0] ss:$8 sps:$4 sm:$0xff]   ;;  %v4551_v53 = vld [vmem:[%s5487_s17 + $0x2e0] ss:$8 sps:$4 sm:$0xff]  }
 0x159   : > { %3428 = vmatprep.subr.bf16.mxu0 %v4476_v54  ;;  %3213 = vmatprep.mubr.bf16.mxu1 %v3872_v55  ;;  %v4555_v54 = vld [vmem:[%s5487_s17 + $0x6e0] ss:$8 sps:$4 sm:$0xff]   ;;  %v4561_v55 = vld [vmem:[%s5487_s17 + $0x2f4] ss:$8 sps:$4 sm:$0xff]  }
 0x15a   : > { %3417 = vmatprep.mubr.bf16.mxu0 %v3880_v56  ;;  %v4564_v56 = vld [vmem:[%s5487_s17 + $0x6f4] ss:$8 sps:$4 sm:$0xff]  }
 0x15b   : > { %3225 = vmatpush1.bf16.msra.mxu1 %v4471_v57  ;;  %v4559_v57 = vld [vmem:[%s5487_s17 + $0x2f0] ss:$8 sps:$4 sm:$0xff]  }
 0x15c   : > { %3429 = vmatpush1.bf16.msra.mxu0 %v4474_v58  ;;  %3226 = vmatprep.subr.bf16.mxu1 %v4481_v59  ;;  %v4562_v58 = vld [vmem:[%s5487_s17 + $0x6f0] ss:$8 sps:$4 sm:$0xff]   ;;  %v4567_v59 = vld [vmem:[%s5487_s17 + $0x304] ss:$8 sps:$4 sm:$0xff]  }
 0x15d   : > { %3430 = vmatprep.subr.bf16.mxu0 %v4484_v60  ;;  %v4570_v60 = vld [vmem:[%s5487_s17 + $0x704] ss:$8 sps:$4 sm:$0xff]  }
 0x15e   : > { %3214 = vmatmul.mubr.bf16.gmra.mrb[8].mxu1 %v3871_v1  ;;  %v1442_v1 = vld [vmem:[%s5485_s19 + $0x90] sm:$0xff] }
 0x15f   : > { %3418 = vmatmul.mubr.bf16.gmra.mrb[8].mxu0 %v3879_v2  ;;  %3227 = vmatpush1.bf16.msra.mxu1 %v4479_v61  ;;  %v3857_v61 = vcombine.low %v5661_v63, %v5664_v0  ;;  %v1446_v2 = vld [vmem:[%s5485_s19 + $0xb0] sm:$0xff] }
 0x160   : > { %3431 = vmatpush1.bf16.msra.mxu0 %v4482_v62  ;;  %3228 = vmatprep.subr.bf16.mxu1 %v4487_v5  ;;  %v3865_v62 = vcombine.low %v5667_v3, %v5670_v4  ;;  %v4565_v5 = vld [vmem:[%s5487_s17 + $0x300] ss:$8 sps:$4 sm:$0xff]   ;;  %v3882_v63 = vcombine.high %v1446_v2, %v1446_v2  ;;  %v4571_v0 = vld [vmem:[%s5487_s17 + $0x310] ss:$8 sps:$4 sm:$0xff]   ;;  %v4581_v4 = vld [vmem:[%s5487_s17 + $0x324] ss:$8 sps:$4 sm:$0xff]  }
 0x161   : > { %3432 = vmatprep.subr.bf16.mxu0 %v4490_v6  ;;  %3254 = vmatprep.mubr.bf16.mxu1 %v3858_v7  ;;  %v4568_v6 = vld [vmem:[%s5487_s17 + $0x700] ss:$8 sps:$4 sm:$0xff]   ;;  %v4573_v7 = vld [vmem:[%s5487_s17 + $0x314] ss:$8 sps:$4 sm:$0xff]   ;;  %v4574_v3 = vld [vmem:[%s5487_s17 + $0x710] ss:$8 sps:$4 sm:$0xff]  }
 0x162   : > { %3458 = vmatprep.mubr.bf16.mxu0 %v3866_v8  ;;  %v4576_v8 = vld [vmem:[%s5487_s17 + $0x714] ss:$8 sps:$4 sm:$0xff]  }
 0x163   : > { %3229 = vmatpush1.bf16.msra.mxu1 %v4485_v9  ;;  %v3874_v9 = vcombine.high %v1442_v1, %v1442_v1 }
 0x164   : > { %3433 = vmatpush1.bf16.msra.mxu0 %v4488_v10  ;;  %3230 = vmatprep.subr.bf16.mxu1 %v4493_v11  ;;  %v4584_v10 = vld [vmem:[%s5487_s17 + $0x724] ss:$8 sps:$4 sm:$0xff]   ;;  %v5745_v11 = vld [vmem:[%s5485_s19 + $0x18] sm:$0xff] }
 0x165   : > { %3434 = vmatprep.subr.bf16.mxu0 %v4496_v12  ;;  %v3873_v12 = vcombine.low %v1442_v1, %v1442_v1  ;;  %v4645_v1 = vld [vmem:[%s5487_s17 + $0x3d0] ss:$8 sps:$4 sm:$0xff]  }
 0x167   : > { %3231 = vmatpush1.bf16.msra.mxu1 %v4491_v13  ;;  %v3881_v13 = vcombine.low %v1446_v2, %v1446_v2  ;;  %v4648_v2 = vld [vmem:[%s5487_s17 + $0x7d0] ss:$8 sps:$4 sm:$0xff]  }
 0x168   : > { %3435 = vmatpush1.bf16.msra.mxu0 %v4494_v14  ;;  %3232 = vmatprep.subr.bf16.mxu1 %v4499_v15  ;;  %v5748_v14 = vld [vmem:[%s5485_s19 + $0x58] sm:$0xff] }
 0x169   : > { %3436 = vmatprep.subr.bf16.mxu0 %v4502_v16  ;;  %v5751_v15 = vld [vmem:[%s5485_s19 + $0x38] sm:$0xff] }
 0x16a   : > { %v5754_v16 = vld [vmem:[%s5485_s19 + $0x78] sm:$0xff] }
 0x16b   : > { %3233 = vmatpush1.bf16.msra.mxu1 %v4497_v17  ;;  %v4579_v17 = vld [vmem:[%s5487_s17 + $0x320] ss:$8 sps:$4 sm:$0xff]  }
 0x16c   : > { %3437 = vmatpush1.bf16.msra.mxu0 %v4500_v18  ;;  %3234 = vmatprep.subr.bf16.mxu1 %v4505_v19  ;;  %v4582_v18 = vld [vmem:[%s5487_s17 + $0x720] ss:$8 sps:$4 sm:$0xff]   ;;  %v4587_v19 = vld [vmem:[%s5487_s17 + $0x334] ss:$8 sps:$4 sm:$0xff]  }
 0x16d   : > { %3438 = vmatprep.subr.bf16.mxu0 %v4508_v20  ;;  %v4590_v20 = vld [vmem:[%s5487_s17 + $0x734] ss:$8 sps:$4 sm:$0xff]  }
 0x16f   : > { %3235 = vmatpush1.bf16.msra.mxu1 %v4503_v21  ;;  %v3860_v21 = vcombine.high %v5745_v11, %v5748_v14 }
 0x170   : > { %3439 = vmatpush1.bf16.msra.mxu0 %v4506_v22  ;;  %3236 = vmatprep.subr.bf16.mxu1 %v4511_v23  ;;  %v3868_v22 = vcombine.high %v5751_v15, %v5754_v16  ;;  %v4585_v23 = vld [vmem:[%s5487_s17 + $0x330] ss:$8 sps:$4 sm:$0xff]  }
 0x171   : > { %3440 = vmatprep.subr.bf16.mxu0 %v4514_v24  ;;  %v4588_v24 = vld [vmem:[%s5487_s17 + $0x730] ss:$8 sps:$4 sm:$0xff]  }
 0x173   : > { %3237 = vmatpush1.bf16.msra.mxu1 %v4509_v25  ;;  %v4593_v25 = vld [vmem:[%s5487_s17 + $0x344] ss:$8 sps:$4 sm:$0xff]  }
 0x174   : > { %3441 = vmatpush1.bf16.msra.mxu0 %v4512_v26  ;;  %3238 = vmatprep.subr.bf16.mxu1 %v4517_v27  ;;  %v4596_v26 = vld [vmem:[%s5487_s17 + $0x744] ss:$8 sps:$4 sm:$0xff]   ;;  %v4591_v27 = vld [vmem:[%s5487_s17 + $0x340] ss:$8 sps:$4 sm:$0xff]  }
 0x175   : > { %3442 = vmatprep.subr.bf16.mxu0 %v4520_v28  ;;  %v4594_v28 = vld [vmem:[%s5487_s17 + $0x740] ss:$8 sps:$4 sm:$0xff]  }
 0x177   : > { %3239 = vmatpush1.bf16.msra.mxu1 %v4515_v29  ;;  %v4599_v29 = vld [vmem:[%s5487_s17 + $0x354] ss:$8 sps:$4 sm:$0xff]  }
 0x178   : > { %3443 = vmatpush1.bf16.msra.mxu0 %v4518_v30  ;;  %3240 = vmatprep.subr.bf16.mxu1 %v4523_v31  ;;  %v4602_v30 = vld [vmem:[%s5487_s17 + $0x754] ss:$8 sps:$4 sm:$0xff]   ;;  %v4597_v31 = vld [vmem:[%s5487_s17 + $0x350] ss:$8 sps:$4 sm:$0xff]  }
 0x179   : > { %3444 = vmatprep.subr.bf16.mxu0 %v4526_v32  ;;  %v4600_v32 = vld [vmem:[%s5487_s17 + $0x750] ss:$8 sps:$4 sm:$0xff]  }
 0x17b   : > { %3241 = vmatpush1.bf16.msra.mxu1 %v4521_v33  ;;  %v4605_v33 = vld [vmem:[%s5487_s17 + $0x364] ss:$8 sps:$4 sm:$0xff]  }
 0x17c   : > { %3445 = vmatpush1.bf16.msra.mxu0 %v4524_v34  ;;  %3242 = vmatprep.subr.bf16.mxu1 %v4529_v35  ;;  %v4608_v34 = vld [vmem:[%s5487_s17 + $0x764] ss:$8 sps:$4 sm:$0xff]   ;;  %v4603_v35 = vld [vmem:[%s5487_s17 + $0x360] ss:$8 sps:$4 sm:$0xff]  }
 0x17d   : > { %3446 = vmatprep.subr.bf16.mxu0 %v4532_v36  ;;  %v4606_v36 = vld [vmem:[%s5487_s17 + $0x760] ss:$8 sps:$4 sm:$0xff]  }
 0x17f   : > { %3243 = vmatpush1.bf16.msra.mxu1 %v4527_v37  ;;  %v4611_v37 = vld [vmem:[%s5487_s17 + $0x374] ss:$8 sps:$4 sm:$0xff]  }
 0x180   : > { %3447 = vmatpush1.bf16.msra.mxu0 %v4530_v38  ;;  %3244 = vmatprep.subr.bf16.mxu1 %v4535_v39  ;;  %v4614_v38 = vld [vmem:[%s5487_s17 + $0x774] ss:$8 sps:$4 sm:$0xff]   ;;  %v4609_v39 = vld [vmem:[%s5487_s17 + $0x370] ss:$8 sps:$4 sm:$0xff]  }
 0x181   : > { %3448 = vmatprep.subr.bf16.mxu0 %v4538_v40  ;;  %v4612_v40 = vld [vmem:[%s5487_s17 + $0x770] ss:$8 sps:$4 sm:$0xff]  }
 0x183   : > { %3245 = vmatpush1.bf16.msra.mxu1 %v4533_v41  ;;  %v4617_v41 = vld [vmem:[%s5487_s17 + $0x384] ss:$8 sps:$4 sm:$0xff]  }
 0x184   : > { %3449 = vmatpush1.bf16.msra.mxu0 %v4536_v42  ;;  %3246 = vmatprep.subr.bf16.mxu1 %v4541_v43  ;;  %v4620_v42 = vld [vmem:[%s5487_s17 + $0x784] ss:$8 sps:$4 sm:$0xff]   ;;  %v4615_v43 = vld [vmem:[%s5487_s17 + $0x380] ss:$8 sps:$4 sm:$0xff]  }
 0x185   : > { %3450 = vmatprep.subr.bf16.mxu0 %v4544_v44  ;;  %v4618_v44 = vld [vmem:[%s5487_s17 + $0x780] ss:$8 sps:$4 sm:$0xff]  }
 0x187   : > { %3247 = vmatpush1.bf16.msra.mxu1 %v4539_v45  ;;  %v4623_v45 = vld [vmem:[%s5487_s17 + $0x394] ss:$8 sps:$4 sm:$0xff]  }
 0x188   : > { %3451 = vmatpush1.bf16.msra.mxu0 %v4542_v46  ;;  %3248 = vmatprep.subr.bf16.mxu1 %v4547_v47  ;;  %v4626_v46 = vld [vmem:[%s5487_s17 + $0x794] ss:$8 sps:$4 sm:$0xff]   ;;  %v4621_v47 = vld [vmem:[%s5487_s17 + $0x390] ss:$8 sps:$4 sm:$0xff]  }
 0x189   : > { %3452 = vmatprep.subr.bf16.mxu0 %v4550_v48  ;;  %v4624_v48 = vld [vmem:[%s5487_s17 + $0x790] ss:$8 sps:$4 sm:$0xff]  }
 0x18b   : > { %3249 = vmatpush1.bf16.msra.mxu1 %v4545_v49  ;;  %v4629_v49 = vld [vmem:[%s5487_s17 + $0x3a4] ss:$8 sps:$4 sm:$0xff]  }
 0x18c   : > { %3453 = vmatpush1.bf16.msra.mxu0 %v4548_v50  ;;  %3250 = vmatprep.subr.bf16.mxu1 %v4553_v51  ;;  %v4632_v50 = vld [vmem:[%s5487_s17 + $0x7a4] ss:$8 sps:$4 sm:$0xff]   ;;  %v4627_v51 = vld [vmem:[%s5487_s17 + $0x3a0] ss:$8 sps:$4 sm:$0xff]  }
 0x18d   : > { %3454 = vmatprep.subr.bf16.mxu0 %v4557_v52  ;;  %v4630_v52 = vld [vmem:[%s5487_s17 + $0x7a0] ss:$8 sps:$4 sm:$0xff]  }
 0x18f   : > { %3251 = vmatpush1.bf16.msra.mxu1 %v4551_v53  ;;  %v4635_v53 = vld [vmem:[%s5487_s17 + $0x3b4] ss:$8 sps:$4 sm:$0xff]  }
 0x190   : > { %3455 = vmatpush1.bf16.msra.mxu0 %v4555_v54  ;;  %3252 = vmatprep.subr.bf16.mxu1 %v4561_v55  ;;  %v4638_v54 = vld [vmem:[%s5487_s17 + $0x7b4] ss:$8 sps:$4 sm:$0xff]   ;;  %v4633_v55 = vld [vmem:[%s5487_s17 + $0x3b0] ss:$8 sps:$4 sm:$0xff]  }
 0x191   : > { %3456 = vmatprep.subr.bf16.mxu0 %v4564_v56  ;;  %v4636_v56 = vld [vmem:[%s5487_s17 + $0x7b0] ss:$8 sps:$4 sm:$0xff]  }
 0x193   : > { %3253 = vmatpush1.bf16.msra.mxu1 %v4559_v57  ;;  %v4641_v57 = vld [vmem:[%s5487_s17 + $0x3c4] ss:$8 sps:$4 sm:$0xff]  }
 0x194   : > { %3457 = vmatpush1.bf16.msra.mxu0 %v4562_v58  ;;  %3273 = vmatprep.subr.bf16.mxu1 %v4567_v59  ;;  %v4644_v58 = vld [vmem:[%s5487_s17 + $0x7c4] ss:$8 sps:$4 sm:$0xff]   ;;  %v4639_v59 = vld [vmem:[%s5487_s17 + $0x3c0] ss:$8 sps:$4 sm:$0xff]  }
 0x195   : > { %3477 = vmatprep.subr.bf16.mxu0 %v4570_v60  ;;  %v4642_v60 = vld [vmem:[%s5487_s17 + $0x7c0] ss:$8 sps:$4 sm:$0xff]  }
 0x196   : > { %3255 = vmatmul.mubr.bf16.vlgmr.msra.gmra.mrb[0].mxu1 %v3857_v61  ;;  %v4647_v61 = vld [vmem:[%s5487_s17 + $0x3d4] ss:$8 sps:$4 sm:$0xff]  }
 0x197   : > { %3459 = vmatmul.mubr.bf16.vlgmr.msra.gmra.mrb[0].mxu0 %v3865_v62  ;;  %3274 = vmatpush1.bf16.msra.mxu1 %v4565_v5  ;;  %v4650_v62 = vld [vmem:[%s5487_s17 + $0x7d4] ss:$8 sps:$4 sm:$0xff]   ;;  %v4654_v5 = vld [vmem:[%s5487_s17 + $0x3e4] ss:$8 sps:$4 sm:$0xff]  }
 0x198   : > { %3478 = vmatpush1.bf16.msra.mxu0 %v4568_v6  ;;  %3275 = vmatprep.subr.bf16.mxu1 %v4573_v7  ;;  %v4658_v6 = vld [vmem:[%s5487_s17 + $0x7e4] ss:$8 sps:$4 sm:$0xff]   ;;  %v4652_v7 = vld [vmem:[%s5487_s17 + $0x3e0] ss:$8 sps:$4 sm:$0xff]  }
 0x199   : > { %3479 = vmatprep.subr.bf16.mxu0 %v4576_v8  ;;  %3264 = vmatprep.mubr.bf16.mxu1 %v3874_v9  ;;  %v4656_v8 = vld [vmem:[%s5487_s17 + $0x7e0] ss:$8 sps:$4 sm:$0xff]   ;;  %v4661_v9 = vld [vmem:[%s5487_s17 + $0x3f4] ss:$8 sps:$4 sm:$0xff]  }
 0x19a   : > { %3468 = vmatprep.mubr.bf16.mxu0 %v3882_v63  ;;  %v4664_v63 = vld [vmem:[%s5487_s17 + $0x7f4] ss:$8 sps:$4 sm:$0xff]  }
 0x19b   : > { %3276 = vmatpush1.bf16.msra.mxu1 %v4571_v0  ;;  %v4659_v0 = vld [vmem:[%s5487_s17 + $0x3f0] ss:$8 sps:$4 sm:$0xff]  }
 0x19c   : > { %3480 = vmatpush1.bf16.msra.mxu0 %v4574_v3  ;;  %3277 = vmatprep.subr.bf16.mxu1 %v4581_v4  ;;  %v4662_v3 = vld [vmem:[%s5487_s17 + $0x7f0] ss:$8 sps:$4 sm:$0xff]  }
 0x19d   : > { %3481 = vmatprep.subr.bf16.mxu0 %v4584_v10  ;;  %v1443_v4 = vld [vmem:[%s5485_s19 + $0x98] sm:$0xff] }
 0x19e   : > { %3265 = vmatmul.mubr.bf16.gmra.mrb[12].mxu1 %v3873_v12  ;;  %v1447_v10 = vld [vmem:[%s5485_s19 + $0xb8] sm:$0xff]  ;;  %v3859_v12 = vcombine.low %v5745_v11, %v5748_v14 }
 0x19f   : > { %3469 = vmatmul.mubr.bf16.gmra.mrb[12].mxu0 %v3881_v13  ;;  %3278 = vmatpush1.bf16.msra.mxu1 %v4579_v17  ;;  %v3867_v13 = vcombine.low %v5751_v15, %v5754_v16  ;;  %v3876_v17 = vcombine.high %v1443_v4, %v1443_v4 }
 0x1a0   : > { %3482 = vmatpush1.bf16.msra.mxu0 %v4582_v18  ;;  %3279 = vmatprep.subr.bf16.mxu1 %v4587_v19  ;;  %v3884_v18 = vcombine.high %v1447_v10, %v1447_v10  ;;  %v3875_v19 = vcombine.low %v1443_v4, %v1443_v4 }
 0x1a1   : > { %3483 = vmatprep.subr.bf16.mxu0 %v4590_v20  ;;  %3305 = vmatprep.mubr.bf16.mxu1 %v3860_v21  ;;  %v3883_v20 = vcombine.low %v1447_v10, %v1447_v10 }
 0x1a2   : > { %3509 = vmatprep.mubr.bf16.mxu0 %v3868_v22 }
 0x1a3   : > { %3280 = vmatpush1.bf16.msra.mxu1 %v4585_v23 }
 0x1a4   : > { %3484 = vmatpush1.bf16.msra.mxu0 %v4588_v24  ;;  %3281 = vmatprep.subr.bf16.mxu1 %v4593_v25 }
 0x1a5   : > { %3485 = vmatprep.subr.bf16.mxu0 %v4596_v26 }
 0x1a7   : > { %3282 = vmatpush1.bf16.msra.mxu1 %v4591_v27 }
 0x1a8   : > { %3486 = vmatpush1.bf16.msra.mxu0 %v4594_v28  ;;  %3283 = vmatprep.subr.bf16.mxu1 %v4599_v29 }
 0x1a9   : > { %3487 = vmatprep.subr.bf16.mxu0 %v4602_v30 }
 0x1ab   : > { %3284 = vmatpush1.bf16.msra.mxu1 %v4597_v31 }
 0x1ac   : > { %3488 = vmatpush1.bf16.msra.mxu0 %v4600_v32  ;;  %3285 = vmatprep.subr.bf16.mxu1 %v4605_v33 }
 0x1ad   : > { %3489 = vmatprep.subr.bf16.mxu0 %v4608_v34 }
 0x1af   : > { %3286 = vmatpush1.bf16.msra.mxu1 %v4603_v35 }
 0x1b0   : > { %3490 = vmatpush1.bf16.msra.mxu0 %v4606_v36  ;;  %3287 = vmatprep.subr.bf16.mxu1 %v4611_v37 }
 0x1b1   : > { %3491 = vmatprep.subr.bf16.mxu0 %v4614_v38 }
 0x1b3   : > { %3288 = vmatpush1.bf16.msra.mxu1 %v4609_v39 }
 0x1b4   : > { %3492 = vmatpush1.bf16.msra.mxu0 %v4612_v40  ;;  %3289 = vmatprep.subr.bf16.mxu1 %v4617_v41 }
 0x1b5   : > { %3493 = vmatprep.subr.bf16.mxu0 %v4620_v42 }
 0x1b7   : > { %3290 = vmatpush1.bf16.msra.mxu1 %v4615_v43 }
 0x1b8   : > { %3494 = vmatpush1.bf16.msra.mxu0 %v4618_v44  ;;  %3291 = vmatprep.subr.bf16.mxu1 %v4623_v45 }
 0x1b9   : > { %3495 = vmatprep.subr.bf16.mxu0 %v4626_v46  ;;  %v1418_v46 = vld [vmem:[#allocation2] sm:$0xff] }
 0x1bb   : > { %3292 = vmatpush1.bf16.msra.mxu1 %v4621_v47 }
 0x1bc   : > { %3496 = vmatpush1.bf16.msra.mxu0 %v4624_v48  ;;  %3293 = vmatprep.subr.bf16.mxu1 %v4629_v49 }
 0x1bd   : > { %3497 = vmatprep.subr.bf16.mxu0 %v4632_v50  ;;  %v1419_v50 = vld [vmem:[#allocation2 + $0x8] sm:$0xff] }
 0x1bf   : > { %3294 = vmatpush1.bf16.msra.mxu1 %v4627_v51 }
 0x1c0   : > { %3498 = vmatpush1.bf16.msra.mxu0 %v4630_v52  ;;  %3295 = vmatprep.subr.bf16.mxu1 %v4635_v53 }
 0x1c1   : > { %3499 = vmatprep.subr.bf16.mxu0 %v4638_v54  ;;  %v1420_v54 = vld [vmem:[#allocation2 + $0x10] sm:$0xff] }
 0x1c3   : > { %3296 = vmatpush1.bf16.msra.mxu1 %v4633_v55 }
 0x1c4   : > { %3500 = vmatpush1.bf16.msra.mxu0 %v4636_v56  ;;  %3297 = vmatprep.subr.bf16.mxu1 %v4641_v57 }
 0x1c5   : > { %3501 = vmatprep.subr.bf16.mxu0 %v4644_v58 }
 0x1c7   : > { %3298 = vmatpush1.bf16.msra.mxu1 %v4639_v59  ;;  %v1421_v59 = vld [vmem:[#allocation2 + $0x18] sm:$0xff] }
 0x1c8   : > { %3502 = vmatpush1.bf16.msra.mxu0 %v4642_v60  ;;  %3299 = vmatprep.subr.bf16.mxu1 %v4647_v61 }
 0x1c9   : > { %3503 = vmatprep.subr.bf16.mxu0 %v4650_v62 }
 0x1cb   : > { %3300 = vmatpush1.bf16.msra.mxu1 %v4645_v1 }
 0x1cc   : > { %3504 = vmatpush1.bf16.msra.mxu0 %v4648_v2  ;;  %3301 = vmatprep.subr.bf16.mxu1 %v4654_v5 }
 0x1cd   : > { %3505 = vmatprep.subr.bf16.mxu0 %v4658_v6 }
 0x1cf   : > { %3302 = vmatpush1.bf16.msra.mxu1 %v4652_v7 }
 0x1d0   : > { %3506 = vmatpush1.bf16.msra.mxu0 %v4656_v8  ;;  %3303 = vmatprep.subr.bf16.mxu1 %v4661_v9 }
 0x1d1   : > { %3507 = vmatprep.subr.bf16.mxu0 %v4664_v63 }
 0x1d3   : > { %3304 = vmatpush1.bf16.msra.mxu1 %v4659_v0 }
 0x1d4   : > { %3508 = vmatpush1.bf16.msra.mxu0 %v4662_v3 }
 0x1d6   : > { %3306 = vmatmul.mubr.bf16.vlgmr.msra.gmra.mrb[0].mxu1 %v3859_v12 }
 0x1d7   : > { %3510 = vmatmul.mubr.bf16.vlgmr.msra.gmra.mrb[0].mxu0 %v3867_v13  ;;  %3315 = vmatprep.mubr.bf16.mxu1 %v3876_v17 }
 0x1d8   : > { %3519 = vmatprep.mubr.bf16.mxu0 %v3884_v18 }
 0x1de   : > { %3316 = vmatmul.mubr.bf16.gmra.mrb[16].mxu1 %v3875_v19 }
 0x1df   : > { %3520 = vmatmul.mubr.bf16.gmra.mrb[16].mxu0 %v3883_v20  ;;  %v1422_v20 = vld [vmem:[#allocation2 + $0x20] sm:$0xff] }
 0x1f1   : > { %v3164_v21 = vpop.f32.mrb[4].mxu1 }
 0x1f2   : > { %v3368_v22 = vpop.f32.mrb[4].mxu0  ;;  %v3166_v23 = vpop.f32.mrb[5].mxu1 }
 0x1f3   : > { %v3370_v24 = vpop.f32.mrb[5].mxu0  ;;  %v3168_v11 = vpop.f32.mrb[6].mxu1 }
 0x1f4   : > { %v3372_v14 = vpop.f32.mrb[6].mxu0  ;;  %v3169_v25 = vpop.f32.mrb[7].mxu1  ;;  %v1423_v11 = vld [vmem:[#allocation2 + $0x28] sm:$0xff] }
 0x1f5   : > { %v3373_v15 = vpop.f32.mrb[7].mxu0 }
 0x231   : > { %v3215_v16 = vpop.f32.mrb[8].mxu1 }
 0x232   : > { %v3419_v26 = vpop.f32.mrb[8].mxu0  ;;  %v3216_v27 = vadd.f32 %v3215_v16, %v3164_v21  ;;  %v3217_v28 = vpop.f32.mrb[9].mxu1 }
 0x233   : > { %v3421_v29 = vpop.f32.mrb[9].mxu0  ;;  %v3218_v30 = vadd.f32 %v3217_v28, %v3166_v23  ;;  %v3219_v31 = vpop.f32.mrb[10].mxu1 }
 0x234   : > { %v3423_v32 = vpop.f32.mrb[10].mxu0  ;;  %v3220_v33 = vpop.f32.mrb[11].mxu1 }
 0x235   : > { %v3424_v34 = vpop.f32.mrb[11].mxu0 }
 0x236   : > { %v3568_v34 = vlaneseq (!%p4141_p5) }
 0x271   : > { %v3266_v35 = vpop.f32.mrb[12].mxu1 }
 0x272   : > { %v3470_v36 = vpop.f32.mrb[12].mxu0  ;;  %v3267_v37 = vadd.f32 %v3266_v35, %v3216_v27  ;;  %v3268_v38 = vpop.f32.mrb[13].mxu1 }
 0x273   : > { %v3472_v39 = vpop.f32.mrb[13].mxu0  ;;  %v3269_v40 = vadd.f32 %v3268_v38, %v3218_v30  ;;  %v3270_v41 = vpop.f32.mrb[14].mxu1 }
 0x274   : > { %v3474_v42 = vpop.f32.mrb[14].mxu0  ;;  %v3271_v43 = vpop.f32.mrb[15].mxu1 }
 0x275   : > { %v3475_v44 = vpop.f32.mrb[15].mxu0 }
 0x2a9   : > { %v3307_v45 = vpop.f32.mrb[0].mxu1 }
 0x2aa   : > { %v3511_v47 = vpop.f32.mrb[0].mxu0  ;;  %v3309_v49 = vpop.f32.mrb[1].mxu1 }
 0x2ab   : > { %v4149_v48 = vadd.f32 %v3511_v47, %v3307_v45  ;;  %v3513_v51 = vpop.f32.mrb[1].mxu0  ;;  %v3311_v53 = vpop.f32.mrb[2].mxu1 }
 0x2ac   : > { %v4150_v52 = vadd.f32 %v3513_v51, %v3309_v49  ;;  %v3515_v55 = vpop.f32.mrb[2].mxu0  ;;  %v3313_v58 = vpop.f32.mrb[3].mxu1 }
 0x2ad   : > { %v3528_v56 = vadd.f32 %v4149_v48, %v1418_v46  ;;  %v4151_v57 = vadd.f32 %v3515_v55, %v3311_v53  ;;  %v3517_v60 = vpop.f32.mrb[3].mxu0 }
 0x2ae   : > { %v3529_v61 = vadd.f32 %v4150_v52, %v1419_v50  ;;  %v4152_v62 = vadd.f32 %v3517_v60, %v3313_v58 }
 0x2af   : > { %3534 = vst [vmem:[#allocation2] sm:$0xff] %v3528_v56  ;;  %v3530_v1 = vadd.f32 %v4151_v57, %v1420_v54 }
 0x2b0   : > { %3535 = vst [vmem:[#allocation2 + $0x8] sm:$0xff] %v3529_v61  ;;  %v3531_v2 = vadd.f32 %v4152_v62, %v1421_v59 }
 0x2b1   : > { %3536 = vst [vmem:[#allocation2 + $0x10] sm:$0xff] %v3530_v1  ;;  %v3317_v5 = vpop.f32.mrb[16].mxu1 }
 0x2b2   : > { %3537 = vst [vmem:[#allocation2 + $0x18] sm:$0xff] %v3531_v2  ;;  %v3521_v6 = vpop.f32.mrb[16].mxu0  ;;  %v3318_v7 = vadd.f32 %v3317_v5, %v3267_v37  ;;  %v3319_v8 = vpop.f32.mrb[17].mxu1 }
 0x2b3   : > { %v3523_v9 = vpop.f32.mrb[17].mxu0  ;;  %v3320_v63 = vadd.f32 %v3319_v8, %v3269_v40  ;;  %v3321_v0 = vpop.f32.mrb[18].mxu1 }
 0x2b4   : > { %v3525_v3 = vpop.f32.mrb[18].mxu0  ;;  %v3369_v4 = vadd.f32 %v3368_v22, %v3318_v7  ;;  %v3322_v10 = vpop.f32.mrb[19].mxu1 }
 0x2b5   : > { %v3526_v12 = vpop.f32.mrb[19].mxu0  ;;  %v3371_v13 = vadd.f32 %v3370_v24, %v3320_v63 }
 0x2b6   : > { %v3420_v17 = vadd.f32 %v3419_v26, %v3369_v4  ;;  %v3544_v16 = vld [vmem:[#allocation2] sm:$0xff] (!%p4141_p5) }
 0x2b7   : > { %v3422_v18 = vadd.f32 %v3421_v29, %v3371_v13  ;;  %v3545_v24 = vld [vmem:[#allocation2 + $0x8] sm:$0xff] (!%p4141_p5) }
 0x2b8   : > { %v3471_v19 = vadd.f32 %v3470_v36, %v3420_v17  ;;  %v3546_v22 = vld [vmem:[#allocation2 + $0x10] sm:$0xff] (!%p4141_p5) }
 0x2b9   : > { %v3473_v21 = vadd.f32 %v3472_v39, %v3422_v18  ;;  %3543 = sbr.rel (%p4141_p5) target bundleno = 774 (0x306), region = 105  ;;  %v3550_v28 = vadd.f32 (!%p4141_p5), %v3546_v22, %v3544_v16  ;;  %v3547_v26 = vld [vmem:[#allocation2 + $0x18] sm:$0xff] (!%p4141_p5)  ;;  %v5821_v39 = vshrl.u32 (!%p4141_p5), %v3568_v34, 7 }
 0x2ba   : > { %v3522_v23 = vadd.f32 %v3521_v6, %v3471_v19  ;;  %v3558_v31 = vadd.f32 (!%p4141_p5), %v3547_v26, %v3545_v24 }
 0x2bb   : > { %v3524_v14 = vadd.f32 %v3523_v9, %v3473_v21  ;;  %v3571_v44 = vadd.s32 (!%p4141_p5), 16, %v5821_v39 }
 0x2bc   : > { %v3532_v25 = vadd.f32 %v3522_v23, %v1422_v20 }
 0x2bd   : > { %v3533_v15 = vadd.f32 %v3524_v14, %v1423_v11  ;;  %vm3574_vm0 = vcmp.lt.s32.totalorder (!%p4141_p5), %v3571_v44, 18  ;;  %v3625_v14 = vsub.s32 (!%p4141_p5), 0, %v5821_v39 }
 0x2be   : > { %3538 = vst [vmem:[#allocation2 + $0x20] sm:$0xff] %v3532_v25  ;;  %v3621_v25 = vld [vmem:[%s1399_s11] sm:$0x3] (!%p4141_p5) }
 0x2bf   : > { %3539 = vst [vmem:[#allocation2 + $0x28] sm:$0xff] %v3533_v15  ;;  %v3639_v15 = vld [vmem:[%s1404_s27] sm:$0x3] (!%p4141_p5) }
 0x2c5   : > { %v3548_v27 = vld [vmem:[#allocation2 + $0x20] sm:$0xff] }
 0x2c6   : > { %v3549_v29 = vld [vmem:[#allocation2 + $0x28] sm:$0xff]  ;;  %v3551_v30 = vadd.f32 %v3550_v28, %v3548_v27 }
 0x2c7   : > { %v3559_v33 = vadd.f32 %v3558_v31, %v3549_v29 }
 0x2c8   : > { %v3552_v32 = vrot.slane %v3551_v30, 4 }
 0x2c9   : > { %v3560_v36 = vrot.slane %v3559_v33, 4 }
 0x2ca   : > { %v3553_v35 = vadd.f32 %v3552_v32, %v3551_v30 }
 0x2cb   : > { %v3561_v38 = vadd.f32 %v3560_v36, %v3559_v33 }
 0x2cc   : > { %v3554_v37 = vrot.slane %v3553_v35, 2 }
 0x2cd   : > { %v3562_v41 = vrot.slane %v3561_v38, 2 }
 0x2ce   : > { %v3555_v40 = vadd.f32 %v3554_v37, %v3553_v35 }
 0x2cf   : > { %v3563_v43 = vadd.f32 %v3562_v41, %v3561_v38 }
 0x2d0   : > { %v3556_v42 = vrot.slane %v3555_v40, 1 }
 0x2d1   : > { %v3564_v46 = vrot.slane %v3563_v43, 1 }
 0x2d2   : > { %v3557_v45 = vadd.f32 %v3556_v42, %v3555_v40 }
 0x2d3   : > { %v3565_v48 = vadd.f32 %v3564_v46, %v3563_v43 }
 0x2d4   : > { %v3566_v47 = vmul.f32 0.055555556, %v3557_v45 }
 0x2d5   : > { %v3567_v52 = vmul.f32 0.055555556, %v3565_v48 }
 0x2d6   : > { %v3575_v49 = vsub.f32 %v3544_v16, %v3566_v47  ;;  %v3577_v50 = vsub.f32 %v3546_v22, %v3566_v47  ;;  %v3579_v51 = vsub.f32 %v3548_v27, %v3566_v47  ;;  %v3629_v16 = vsub.s32 1, %v5821_v39 }
 0x2d7   : > { %v3576_v56 = vsub.f32 %v3545_v24, %v3567_v52  ;;  %v3578_v58 = vsub.f32 %v3547_v26, %v3567_v52  ;;  %v3580_v59 = vsub.f32 %v3549_v29, %v3567_v52  ;;  %v3626_v22 = vrot.slane %v3621_v25, %v3625_v14 }
 0x2d8   : > { %v3585_v53 = vsel %vm3574_vm0, %v3579_v51, 0.0  ;;  %v3587_v54 = vmul.f32 %v3575_v49, %v3575_v49  ;;  %v3589_v55 = vmul.f32 %v3577_v50, %v3577_v50  ;;  %v3644_v24 = vrot.slane %v3639_v15, %v3625_v14 }
 0x2d9   : > { %v3591_v57 = vmul.f32 %v3585_v53, %v3585_v53  ;;  %v3588_v61 = vmul.f32 %v3576_v56, %v3576_v56  ;;  %v3586_v62 = vsel %vm3574_vm0, %v3580_v59, 0.0  ;;  %v3590_v1 = vmul.f32 %v3578_v58, %v3578_v58 }
 0x2da   : > { %v3593_v60 = vadd.f32 %v3589_v55, %v3587_v54  ;;  %v3592_v5 = vmul.f32 %v3586_v62, %v3586_v62  ;;  %v3630_v30 = vrot.slane %v3621_v25, %v3629_v16  ;;  %v3648_v36 = vrot.slane %v3639_v15, %v3629_v16 }
 0x2db   : > { %v3601_v6 = vadd.f32 %v3590_v1, %v3588_v61 }
 0x2dc   : > { %v3594_v2 = vadd.f32 %v3593_v60, %v3591_v57 }
 0x2dd   : > { %v3602_v8 = vadd.f32 %v3601_v6, %v3592_v5 }
 0x2de   : > { %v3595_v7 = vrot.slane %v3594_v2, 4 }
 0x2df   : > { %v3603_v63 = vrot.slane %v3602_v8, 4 }
 0x2e0   : > { %v3596_v9 = vadd.f32 %v3595_v7, %v3594_v2 }
 0x2e1   : > { %v3604_v3 = vadd.f32 %v3603_v63, %v3602_v8 }
 0x2e2   : > { %v3597_v0 = vrot.slane %v3596_v9, 2 }
 0x2e3   : > { %v3605_v10 = vrot.slane %v3604_v3, 2 }
 0x2e4   : > { %v3598_v4 = vadd.f32 %v3597_v0, %v3596_v9 }
 0x2e5   : > { %v3606_v13 = vadd.f32 %v3605_v10, %v3604_v3 }
 0x2e6   : > { %v3599_v12 = vrot.slane %v3598_v4, 1 }
 0x2e7   : > { %v3607_v18 = vrot.slane %v3606_v13, 1 }
 0x2e8   : > { %v3600_v17 = vadd.f32 %v3599_v12, %v3598_v4 }
 0x2e9   : > { %v3608_v20 = vadd.f32 %v3607_v18, %v3606_v13 }
 0x2ea   : > { %v3609_v19 = vmul.f32 0.055555556, %v3600_v17 }
 0x2eb   : > { %v3610_v23 = vmul.f32 0.055555556, %v3608_v20 }
 0x2ec   : > { %v3611_v21 = vadd.f32 1e-05, %v3609_v19 }
 0x2ed   : > { %v3612_v11 = vadd.f32 1e-05, %v3610_v23 }
 0x2ee   : > { %4669 = vrsqrt.f32 %v3611_v21 }
 0x2ef   : > { %4671 = vrsqrt.f32 %v3612_v11 }
 0x2f8   : > { %v4670_v27 = vpop.eup %4669 }
 0x2f9   : > { %v3615_v28 = vmul.f32 %v4670_v27, %v3575_v49  ;;  %v3617_v26 = vmul.f32 %v4670_v27, %v3577_v50  ;;  %v3619_v29 = vmul.f32 %v4670_v27, %v3585_v53  ;;  %v4672_v31 = vpop.eup %4671 }
 0x2fa   : > { %v3616_v35 = vmul.f32 %v4672_v31, %v3576_v56  ;;  %v3618_v37 = vmul.f32 %v4672_v31, %v3578_v58  ;;  %v3620_v38 = vmul.f32 %v4672_v31, %v3586_v62 }
 0x2fb   : > { %v3633_v32 = vmul.f32 %v3626_v22, %v3615_v28  ;;  %v3635_v33 = vmul.f32 %v3626_v22, %v3617_v26  ;;  %v3637_v34 = vmul.f32 %v3626_v22, %v3619_v29 }
 0x2fc   : > { %v3634_v39 = vmul.f32 %v3630_v30, %v3616_v35  ;;  %v3636_v43 = vmul.f32 %v3630_v30, %v3618_v37  ;;  %v3638_v44 = vmul.f32 %v3630_v30, %v3620_v38 }
 0x2fd   : > { %v3651_v40 = vadd.f32 %v3644_v24, %v3633_v32  ;;  %v3653_v41 = vadd.f32 %v3644_v24, %v3635_v33  ;;  %v3655_v42 = vadd.f32 %v3644_v24, %v3637_v34 }
 0x2fe   : > { %v3652_v47 = vadd.f32 %v3648_v36, %v3634_v39  ;;  %v3654_v48 = vadd.f32 %v3648_v36, %v3636_v43  ;;  %v3656_v52 = vadd.f32 %v3648_v36, %v3638_v44 }
 0x2ff   : > { %vm3657_vm1 = vcmp.gt.f32.partialorder %v3651_v40, 0.0  ;;  %v3663_v45 = vmul.f32 0.2, %v3651_v40  ;;  %vm3659_vm2 = vcmp.gt.f32.partialorder %v3653_v41, 0.0  ;;  %v3665_v46 = vmul.f32 0.2, %v3653_v41 }
 0x300   : > { %vm3661_vm3 = vcmp.gt.f32.partialorder %v3655_v42, 0.0  ;;  %v3667_v49 = vmul.f32 0.2, %v3655_v42  ;;  %vm3658_vm4 = vcmp.gt.f32.partialorder %v3652_v47, 0.0  ;;  %v3664_v53 = vmul.f32 0.2, %v3652_v47 }
 0x301   : > { %v3669_v50 = vsel %vm3657_vm1, %v3651_v40, %v3663_v45  ;;  %v3671_v51 = vsel %vm3659_vm2, %v3653_v41, %v3665_v46  ;;  %vm3660_vm5 = vcmp.gt.f32.partialorder %v3654_v48, 0.0  ;;  %v3666_v54 = vmul.f32 0.2, %v3654_v48 }
 0x302   : > { %3675 = vst [vmem:[%s5489_s15] sm:$0xff] %v3669_v50  ;;  %3677 = vst [vmem:[%s5489_s15 + $0x10] sm:$0xff] %v3671_v51  ;;  %v3673_v55 = vsel %vm3661_vm3, %v3655_v42, %v3667_v49  ;;  %vm3662_vm6 = vcmp.gt.f32.partialorder %v3656_v52, 0.0  ;;  %v3668_v56 = vmul.f32 0.2, %v3656_v52  ;;  %v3670_v57 = vsel %vm3658_vm4, %v3652_v47, %v3664_v53 }
 0x303   : > { %v3672_v58 = vsel %vm3660_vm5, %v3654_v48, %v3666_v54  ;;  %3679 = vst [vmem:[%s5489_s15 + $0x20] sm:$0xff] %v3673_v55  ;;  %3676 = vst [vmem:[%s5489_s15 + $0x8] sm:$0xff] %v3670_v57 }
 0x304   : > { %3678 = vst [vmem:[%s5489_s15 + $0x18] sm:$0xff] %v3672_v58  ;;  %v3674_v59 = vsel %vm3662_vm6, %v3656_v52, %v3668_v56 }
 0x305   : > { %3680 = vst [vmem:[%s5489_s15 + $0x28] sm:$0xff] %v3674_v59 }
 0x306 PF: > { %3687 = sbr.rel (!%p4881_p12) target bundleno = 782 (0x30e), region = 109  ;;  %s4148_s27 = sshll.u32 (%p4881_p12), %s4747_s22, 4 }
 0x307   : > { %s3693_s29 = scalar_lea.vmem (%p4881_p12), %s5891_s4, %s4148_s27 }
 0x309   : > { %v3706_v60 = vld [vmem:[%s5489_s15] sm:$0xff] (%p4881_p12)  ;;  %v3710_v62 = vld [vmem:[%s5489_s15 + $0x10] sm:$0xff] (%p4881_p12) }
 0x30a   : > { %v3708_v61 = vld [vmem:[%s5489_s15 + $0x8] sm:$0xff] (%p4881_p12)  ;;  %v3714_v2 = vld [vmem:[%s5489_s15 + $0x20] sm:$0xff] (%p4881_p12)  ;;  %3707 = vst [vmem:[%s3693_s29] sm:$0xff] (%p4881_p12), %v3706_v60  ;;  %3711 = vst [vmem:[%s3693_s29 + $0x20] sm:$0xff] (%p4881_p12), %v3710_v62 }
 0x30b   : > { %v3712_v1 = vld [vmem:[%s5489_s15 + $0x18] sm:$0xff] (%p4881_p12)  ;;  %3709 = vst [vmem:[%s3693_s29 + $0x8] sm:$0xff] (%p4881_p12), %v3708_v61  ;;  %3715 = vst [vmem:[%s3693_s29 + $0x40] sm:$0xff] (%p4881_p12), %v3714_v2 }
 0x30c   : > { %v3716_v5 = vld [vmem:[%s5489_s15 + $0x28] sm:$0xff] (%p4881_p12)  ;;  %3713 = vst [vmem:[%s3693_s29 + $0x28] sm:$0xff] (%p4881_p12), %v3712_v1 }
 0x30d   : > { %3717 = vst [vmem:[%s3693_s29 + $0x48] sm:$0xff] %v3716_v5 }
 0x30e PF: > { %s14_s25 = sadd.s32 1, %s4759_s25   ;;  %s5903_s14 = sld [smem:[#allocation6_spill]] }
 0x30f   : > { %p11_p6 = scmp.ge.s32.totalorder %s14_s25, 6   ;;  %s5904_s30 = sld [smem:[#allocation7_spill]] }
 0x310   : > { %s5905_s15 = smov %s4723_s16  ;;  %s5906_s16 = smov %s4879_s13 }
 0x311   : > { %s5907_s17 = smov %s4731_s18  ;;  %s5908_s18 = smov %s4876_s12 }
 0x312   : > { %s5909_s19 = smov %s4739_s20  ;;  %s5910_s20 = smov %s4862_s7 }
 0x313   : > { %s5911_s21 = smov %s4751_s23  ;;  %s5912_s22 = smov %s4755_s24 }
 0x314   : > { %s5913_s23 = smov %s5903_s14  ;;  %13 = sbr.rel (!%p11_p6) target bundleno = 9 (0x9), region = 177 }
 0x315   : > { %s5914_s24 = smov %s5904_s30 }

// kernel: discriminator_forward.9
= control target key start
LH: loop header
LB: loop body
LE: loop exit
PB: predicated region body
PF: predicated region fallthrough
CT: control target
= control target key end

     0   :  { %v96_v1 = vlaneseq  ;;  %vm553_vm0 = vcmask 7168   ;;  %s1097_s2 = inlined_call_operand.<no memory space> [shape: f32[1,1], index: 2, kind: input, shape index: {}]   ;;  %s1098_s1 = inlined_call_operand.vmem [shape: f32[1,8192], index: 1, kind: input, shape index: {}]   ;;  %s1099_s0 = inlined_call_operand.vmem [shape: f32[8,8192], index: 0, kind: input, shape index: {}]   ;;  %s1100_s3 = inlined_call_operand.vmem [shape: f32[8,1], index: 3, kind: output, shape index: {}]  }
   0x1   :  { %v8_v0 = vstv %s1097_s2  ;;  %v586_v3 = vld [vmem:[%s1098_s1 + $0x28] sm:$0xff]  ;;  %v599_v8 = vld [vmem:[%s1098_s1 + $0x30] sm:$0xff]  ;;  %v620_v17 = vld [vmem:[%s1098_s1 + $0x38] sm:$0xff] }
   0x2   :  { %9 = vst [vmem:[#allocation2] sm:$0x1] %v8_v0  ;;  %v97_v2 = vshrl.u32 %v96_v1, 7  ;;  %v665_v38 = vld [vmem:[%s1098_s1] sm:$0xff]  ;;  %v17_v40 = vld [vmem:[%s1099_s0 + $0x8] sm:$0xff]  ;;  %v18_v41 = vld [vmem:[%s1099_s0 + $0x10] sm:$0xff] }
   0x3   :  { %v16_v39 = vld [vmem:[%s1099_s0] sm:$0xff]  ;;  %v49_v42 = vld [vmem:[%s1099_s0 + $0x108] sm:$0xff]  ;;  %v50_v43 = vld [vmem:[%s1099_s0 + $0x110] sm:$0xff] }
   0x4   :  { %v588_v4 = vsub.s32 0, %v97_v2  ;;  %v590_v5 = vsub.s32 1, %v97_v2  ;;  %v592_v6 = vsub.s32 2, %v97_v2  ;;  %v594_v7 = vsub.s32 3, %v97_v2  ;;  %v51_v44 = vld [vmem:[%s1099_s0 + $0x118] sm:$0xff]  ;;  %v688_v45 = vld [vmem:[%s1098_s1 + $0x20] sm:$0xff] }
   0x5   :  { %v601_v9 = vsub.s32 4, %v97_v2  ;;  %v603_v10 = vsub.s32 5, %v97_v2  ;;  %v605_v11 = vsub.s32 6, %v97_v2  ;;  %v607_v12 = vsub.s32 7, %v97_v2  ;;  %v52_v48 = vld [vmem:[%s1099_s0 + $0x120] sm:$0xff]  ;;  %v53_v49 = vld [vmem:[%s1099_s0 + $0x128] sm:$0xff] }
   0x6   :  { %v259_v13 = vrot.slane %v586_v3, %v588_v4  ;;  %v263_v14 = vrot.slane %v586_v3, %v590_v5  ;;  %v267_v15 = vrot.slane %v586_v3, %v592_v6  ;;  %v271_v16 = vrot.slane %v586_v3, %v594_v7  ;;  %v54_v50 = vld [vmem:[%s1099_s0 + $0x130] sm:$0xff]  ;;  %v55_v51 = vld [vmem:[%s1099_s0 + $0x138] sm:$0xff]  ;;  %v56_v56 = vld [vmem:[%s1099_s0 + $0x140] sm:$0xff] }
   0x7   :  { %v275_v18 = vrot.slane %v586_v3, %v601_v9  ;;  %v279_v19 = vrot.slane %v586_v3, %v603_v10  ;;  %v283_v20 = vrot.slane %v586_v3, %v605_v11  ;;  %v287_v21 = vrot.slane %v586_v3, %v607_v12  ;;  %v57_v57 = vld [vmem:[%s1099_s0 + $0x148] sm:$0xff]  ;;  %v58_v58 = vld [vmem:[%s1099_s0 + $0x150] sm:$0xff]  ;;  %v59_v63 = vld [vmem:[%s1099_s0 + $0x158] sm:$0xff] }
   0x8   :  { %v291_v22 = vrot.slane %v599_v8, %v588_v4  ;;  %v295_v23 = vrot.slane %v599_v8, %v590_v5  ;;  %v299_v24 = vrot.slane %v599_v8, %v592_v6  ;;  %v99_v46 = vrot.slane %v665_v38, %v588_v4  ;;  %v60_v0 = vld [vmem:[%s1099_s0 + $0x160] sm:$0xff]  ;;  %v61_v1 = vld [vmem:[%s1099_s0 + $0x168] sm:$0xff]  ;;  %v62_v2 = vld [vmem:[%s1099_s0 + $0x170] sm:$0xff] }
   0x9   :  { %v103_v47 = vrot.slane %v665_v38, %v590_v5  ;;  %v107_v52 = vrot.slane %v665_v38, %v592_v6  ;;  %v231_v53 = vrot.slane %v688_v45, %v590_v5  ;;  %v235_v54 = vrot.slane %v688_v45, %v592_v6  ;;  %v63_v37 = vld [vmem:[%s1099_s0 + $0x178] sm:$0xff]  ;;  %v64_v36 = vld [vmem:[%s1099_s0 + $0x180] sm:$0xff]  ;;  %v65_v31 = vld [vmem:[%s1099_s0 + $0x188] sm:$0xff] }
   0xa   :  { %v239_v55 = vrot.slane %v688_v45, %v594_v7  ;;  %v243_v59 = vrot.slane %v688_v45, %v601_v9  ;;  %v247_v60 = vrot.slane %v688_v45, %v603_v10  ;;  %v251_v61 = vrot.slane %v688_v45, %v605_v11  ;;  %v66_v30 = vld [vmem:[%s1099_s0 + $0x190] sm:$0xff]  ;;  %v67_v29 = vld [vmem:[%s1099_s0 + $0x198] sm:$0xff] }
   0xb   :  { %v255_v62 = vrot.slane %v688_v45, %v607_v12  ;;  %v111_v35 = vrot.slane %v665_v38, %v594_v7  ;;  %v115_v34 = vrot.slane %v665_v38, %v601_v9  ;;  %v416_v33 = vmul.f32 %v99_v46, %v16_v39  ;;  %v68_v39 = vld [vmem:[%s1099_s0 + $0x1a0] sm:$0xff]  ;;  %v70_v46 = vld [vmem:[%s1099_s0 + $0x1b0] sm:$0xff] }
   0xc   :  { %v417_v32 = vmul.f32 %v103_v47, %v17_v40  ;;  %v418_v28 = vmul.f32 %v107_v52, %v18_v41  ;;  %v762_v27 = vmul.f32 %v231_v53, %v49_v42  ;;  %v764_v26 = vmul.f32 %v235_v54, %v50_v43  ;;  %v69_v40 = vld [vmem:[%s1099_s0 + $0x1a8] sm:$0xff]  ;;  %v72_v52 = vld [vmem:[%s1099_s0 + $0x1c0] sm:$0xff]  ;;  %v75_v54 = vld [vmem:[%s1099_s0 + $0x1d8] sm:$0xff] }
   0xd   :  { %v766_v25 = vmul.f32 %v239_v55, %v51_v44  ;;  %v777_v47 = vmul.f32 %v243_v59, %v52_v48  ;;  %v779_v41 = vmul.f32 %v247_v60, %v53_v49  ;;  %v781_v42 = vmul.f32 %v251_v61, %v54_v50  ;;  %v71_v44 = vld [vmem:[%s1099_s0 + $0x1b8] sm:$0xff]  ;;  %v73_v53 = vld [vmem:[%s1099_s0 + $0x1c8] sm:$0xff] }
   0xe   :  { %v783_v43 = vmul.f32 %v255_v62, %v55_v51  ;;  %v797_v48 = vmul.f32 %v259_v13, %v56_v56  ;;  %v802_v49 = vmul.f32 %v263_v14, %v57_v57  ;;  %v807_v50 = vmul.f32 %v267_v15, %v58_v58  ;;  %v74_v13 = vld [vmem:[%s1099_s0 + $0x1d0] sm:$0xff]  ;;  %v76_v14 = vld [vmem:[%s1099_s0 + $0x1e0] sm:$0xff] }
   0xf   :  { %v812_v51 = vmul.f32 %v271_v16, %v59_v63  ;;  %v826_v15 = vmul.f32 %v275_v18, %v60_v0  ;;  %v831_v16 = vmul.f32 %v279_v19, %v61_v1  ;;  %v836_v55 = vmul.f32 %v283_v20, %v62_v2  ;;  %v77_v18 = vld [vmem:[%s1099_s0 + $0x1e8] sm:$0xff]  ;;  %v78_v57 = vld [vmem:[%s1099_s0 + $0x1f0] sm:$0xff]  ;;  %v79_v19 = vld [vmem:[%s1099_s0 + $0x1f8] sm:$0xff] }
  0x10   :  { %v841_v56 = vmul.f32 %v287_v21, %v63_v37  ;;  %v855_v20 = vmul.f32 %v291_v22, %v64_v36  ;;  %v860_v3 = vmul.f32 %v295_v23, %v65_v31  ;;  %v865_v21 = vmul.f32 %v299_v24, %v66_v30  ;;  %v19_v22 = vld [vmem:[%s1099_s0 + $0x18] sm:$0xff] }
  0x11   :  { %v1101_v37 = vrot.slane %v599_v8, %v594_v7  ;;  %v1102_v36 = vrot.slane %v599_v8, %v601_v9  ;;  %v1103_v23 = vrot.slane %v599_v8, %v603_v10  ;;  %v1104_v24 = vrot.slane %v599_v8, %v605_v11 }
  0x12   :  { %v1106_v61 = vrot.slane %v620_v17, %v588_v4  ;;  %v1107_v63 = vrot.slane %v620_v17, %v590_v5  ;;  %v1108_v1 = vrot.slane %v620_v17, %v592_v6 }
  0x13   :  { %v870_v58 = vmul.f32 %v1101_v37, %v67_v29  ;;  %v878_v59 = vmul.f32 %v1102_v36, %v68_v39  ;;  %v883_v31 = vmul.f32 %v1103_v23, %v69_v40  ;;  %v888_v30 = vmul.f32 %v1104_v24, %v70_v46  ;;  %v20_v40 = vld [vmem:[%s1099_s0 + $0x20] sm:$0xff] }
  0x14   :  { %v1105_v29 = vrot.slane %v599_v8, %v607_v12  ;;  %v898_v62 = vmul.f32 %v1106_v61, %v72_v52  ;;  %v903_v0 = vmul.f32 %v1107_v63, %v73_v53  ;;  %v908_v2 = vmul.f32 %v1108_v1, %v74_v13  ;;  %v24_v1 = vld [vmem:[%s1099_s0 + $0x40] sm:$0xff] }
  0x15   :  { %v1109_v8 = vrot.slane %v620_v17, %v594_v7  ;;  %v1110_v46 = vrot.slane %v620_v17, %v601_v9  ;;  %v1111_v52 = vrot.slane %v620_v17, %v603_v10  ;;  %v1112_v13 = vrot.slane %v620_v17, %v605_v11 }
  0x16   :  { %v893_v60 = vmul.f32 %v1105_v29, %v71_v44  ;;  %v119_v23 = vrot.slane %v665_v38, %v603_v10  ;;  %v480_v24 = vadd.f32 %v417_v32, %v416_v33  ;;  %v123_v29 = vrot.slane %v665_v38, %v605_v11 }
  0x17   :  { %v913_v39 = vmul.f32 %v1109_v8, %v75_v54  ;;  %v921_v44 = vmul.f32 %v1110_v46, %v76_v14  ;;  %v926_v53 = vmul.f32 %v1111_v52, %v77_v18  ;;  %v931_v37 = vmul.f32 %v1112_v13, %v78_v57  ;;  %v21_v18 = vld [vmem:[%s1099_s0 + $0x28] sm:$0xff] }
  0x18   :  { %v1113_v54 = vrot.slane %v620_v17, %v607_v12  ;;  %v419_v14 = vmul.f32 %v111_v35, %v19_v22  ;;  %v420_v61 = vmul.f32 %v115_v34, %v20_v40  ;;  %v481_v57 = vadd.f32 %v480_v24, %v418_v28  ;;  %v22_v17 = vld [vmem:[%s1099_s0 + $0x30] sm:$0xff]  ;;  %v23_v22 = vld [vmem:[%s1099_s0 + $0x38] sm:$0xff] }
  0x19   :  { %v127_v32 = vrot.slane %v665_v38, %v607_v12  ;;  %v421_v33 = vmul.f32 %v119_v23, %v21_v18  ;;  %v422_v28 = vmul.f32 %v123_v29, %v22_v17  ;;  %v25_v38 = vld [vmem:[%s1099_s0 + $0x48] sm:$0xff]  ;;  %v26_v23 = vld [vmem:[%s1099_s0 + $0x50] sm:$0xff]  ;;  %v27_v29 = vld [vmem:[%s1099_s0 + $0x58] sm:$0xff] }
  0x1a   :  { %v936_v36 = vmul.f32 %v1113_v54, %v79_v19  ;;  %v81_v19 = vld [vmem:[%s1098_s1 + $0x8] sm:$0xff]  ;;  %v482_v35 = vadd.f32 %v481_v57, %v419_v14 }
  0x1b   :  { %v131_v34 = vrot.slane %v81_v19, %v588_v4  ;;  %v135_v8 = vrot.slane %v81_v19, %v590_v5  ;;  %v423_v40 = vmul.f32 %v127_v32, %v23_v22  ;;  %v139_v52 = vrot.slane %v81_v19, %v592_v6  ;;  %v28_v32 = vld [vmem:[%s1099_s0 + $0x60] sm:$0xff] }
  0x1c   :  { %v483_v63 = vadd.f32 %v482_v35, %v420_v61  ;;  %v143_v14 = vrot.slane %v81_v19, %v594_v7  ;;  %v147_v61 = vrot.slane %v81_v19, %v601_v9 }
  0x1d   :  { %v424_v13 = vmul.f32 %v131_v34, %v24_v1  ;;  %v425_v24 = vmul.f32 %v135_v8, %v25_v38  ;;  %v426_v57 = vmul.f32 %v139_v52, %v26_v23  ;;  %v29_v34 = vld [vmem:[%s1099_s0 + $0x68] sm:$0xff]  ;;  %v30_v8 = vld [vmem:[%s1099_s0 + $0x70] sm:$0xff] }
  0x1e   :  { %v484_v46 = vadd.f32 %v483_v63, %v421_v33  ;;  %v151_v33 = vrot.slane %v81_v19, %v603_v10  ;;  %v427_v35 = vmul.f32 %v143_v14, %v27_v29  ;;  %v428_v63 = vmul.f32 %v147_v61, %v28_v32 }
  0x20   :  { %v485_v54 = vadd.f32 %v484_v46, %v422_v28  ;;  %v155_v28 = vrot.slane %v81_v19, %v605_v11  ;;  %v159_v46 = vrot.slane %v81_v19, %v607_v12  ;;  %v429_v38 = vmul.f32 %v151_v33, %v29_v34  ;;  %v33_v19 = vld [vmem:[%s1099_s0 + $0x88] sm:$0xff]  ;;  %v34_v33 = vld [vmem:[%s1099_s0 + $0x90] sm:$0xff] }
  0x22   :  { %v486_v18 = vadd.f32 %v485_v54, %v423_v40  ;;  %v82_v40 = vld [vmem:[%s1098_s1 + $0x10] sm:$0xff]  ;;  %v430_v23 = vmul.f32 %v155_v28, %v30_v8  ;;  %v35_v28 = vld [vmem:[%s1099_s0 + $0x98] sm:$0xff] }
  0x23   :  { %v163_v54 = vrot.slane %v82_v40, %v588_v4 }
  0x24   :  { %v487_v17 = vadd.f32 %v486_v18, %v424_v13  ;;  %v31_v13 = vld [vmem:[%s1099_s0 + $0x78] sm:$0xff]  ;;  %v167_v18 = vrot.slane %v82_v40, %v590_v5 }
  0x25   :  { %v431_v29 = vmul.f32 %v159_v46, %v31_v13  ;;  %v36_v46 = vld [vmem:[%s1099_s0 + $0xa0] sm:$0xff] }
  0x26   :  { %v488_v22 = vadd.f32 %v487_v17, %v425_v24  ;;  %v32_v24 = vld [vmem:[%s1099_s0 + $0x80] sm:$0xff] }
  0x27   :  { %v432_v17 = vmul.f32 %v163_v54, %v32_v24  ;;  %v37_v54 = vld [vmem:[%s1099_s0 + $0xa8] sm:$0xff] }
  0x28   :  { %v489_v1 = vadd.f32 %v488_v22, %v426_v57  ;;  %v171_v57 = vrot.slane %v82_v40, %v592_v6  ;;  %v433_v22 = vmul.f32 %v167_v18, %v33_v19  ;;  %v38_v18 = vld [vmem:[%s1099_s0 + $0xb0] sm:$0xff] }
  0x2a   :  { %v490_v52 = vadd.f32 %v489_v1, %v427_v35  ;;  %v175_v35 = vrot.slane %v82_v40, %v594_v7  ;;  %v434_v1 = vmul.f32 %v171_v57, %v34_v33 }
  0x2c   :  { %v491_v14 = vadd.f32 %v490_v52, %v428_v63  ;;  %v179_v63 = vrot.slane %v82_v40, %v601_v9  ;;  %v435_v52 = vmul.f32 %v175_v35, %v35_v28 }
  0x2e   :  { %v492_v61 = vadd.f32 %v491_v14, %v429_v38  ;;  %v183_v38 = vrot.slane %v82_v40, %v603_v10  ;;  %v436_v14 = vmul.f32 %v179_v63, %v36_v46 }
  0x30   :  { %v493_v32 = vadd.f32 %v492_v61, %v430_v23  ;;  %v187_v23 = vrot.slane %v82_v40, %v605_v11  ;;  %v191_v61 = vrot.slane %v82_v40, %v607_v12  ;;  %v437_v19 = vmul.f32 %v183_v38, %v37_v54  ;;  %v41_v40 = vld [vmem:[%s1099_s0 + $0xc8] sm:$0xff]  ;;  %v42_v38 = vld [vmem:[%s1099_s0 + $0xd0] sm:$0xff] }
  0x32   :  { %v494_v34 = vadd.f32 %v493_v32, %v431_v29  ;;  %v83_v29 = vld [vmem:[%s1098_s1 + $0x18] sm:$0xff]  ;;  %v438_v33 = vmul.f32 %v187_v23, %v38_v18 }
  0x33   :  { %v195_v32 = vrot.slane %v83_v29, %v588_v4  ;;  %v211_v23 = vrot.slane %v83_v29, %v601_v9  ;;  %v215_v18 = vrot.slane %v83_v29, %v603_v10  ;;  %v46_v9 = vld [vmem:[%s1099_s0 + $0xf0] sm:$0xff]  ;;  %v47_v10 = vld [vmem:[%s1099_s0 + $0xf8] sm:$0xff] }
  0x34   :  { %v495_v8 = vadd.f32 %v494_v34, %v432_v17  ;;  %v39_v17 = vld [vmem:[%s1099_s0 + $0xb8] sm:$0xff]  ;;  %v199_v34 = vrot.slane %v83_v29, %v590_v5 }
  0x35   :  { %v439_v28 = vmul.f32 %v191_v61, %v39_v17  ;;  %v43_v5 = vld [vmem:[%s1099_s0 + $0xd8] sm:$0xff] }
  0x36   :  { %v496_v13 = vadd.f32 %v495_v8, %v433_v22  ;;  %v40_v22 = vld [vmem:[%s1099_s0 + $0xc0] sm:$0xff] }
  0x37   :  { %v440_v8 = vmul.f32 %v195_v32, %v40_v22 }
  0x38   :  { %v497_v24 = vadd.f32 %v496_v13, %v434_v1  ;;  %v203_v1 = vrot.slane %v83_v29, %v592_v6  ;;  %v441_v13 = vmul.f32 %v199_v34, %v41_v40  ;;  %v44_v6 = vld [vmem:[%s1099_s0 + $0xe0] sm:$0xff]  ;;  %v227_v34 = vrot.slane %v688_v45, %v588_v4 }
  0x39   :  { %v444_v17 = vmul.f32 %v211_v23, %v44_v6 }
  0x3a   :  { %v498_v57 = vadd.f32 %v497_v24, %v435_v52  ;;  %v207_v52 = vrot.slane %v83_v29, %v594_v7  ;;  %v45_v7 = vld [vmem:[%s1099_s0 + $0xe8] sm:$0xff] }
  0x3c   :  { %v499_v35 = vadd.f32 %v498_v57, %v436_v14  ;;  %v442_v14 = vmul.f32 %v203_v1, %v42_v38  ;;  %v443_v61 = vmul.f32 %v207_v52, %v43_v5  ;;  %v219_v57 = vrot.slane %v83_v29, %v605_v11  ;;  %v48_v11 = vld [vmem:[%s1099_s0 + $0x100] sm:$0xff] }
  0x3e   :  { %v500_v63 = vadd.f32 %v499_v35, %v437_v19  ;;  %v445_v35 = vmul.f32 %v215_v18, %v45_v7 }
  0x40   :  { %v501_v46 = vadd.f32 %v500_v63, %v438_v33  ;;  %v223_v33 = vrot.slane %v83_v29, %v607_v12 }
  0x42   :  { %v502_v54 = vadd.f32 %v501_v46, %v439_v28  ;;  %v446_v28 = vmul.f32 %v219_v57, %v46_v9  ;;  %v447_v40 = vmul.f32 %v223_v33, %v47_v10 }
  0x44   :  { %v503_v24 = vadd.f32 %v502_v54, %v440_v8  ;;  %v448_v8 = vmul.f32 %v227_v34, %v48_v11 }
  0x46   :  { %v504_v19 = vadd.f32 %v503_v24, %v441_v13 }
  0x48   :  { %v505_v32 = vadd.f32 %v504_v19, %v442_v14 }
  0x4a   :  { %v506_v22 = vadd.f32 %v505_v32, %v443_v61 }
  0x4c   :  { %v507_v63 = vadd.f32 %v506_v22, %v444_v17 }
  0x4e   :  { %v508_v1 = vadd.f32 %v507_v63, %v445_v35 }
  0x50   :  { %v509_v46 = vadd.f32 %v508_v1, %v446_v28 }
  0x52   :  { %v510_v12 = vadd.f32 %v509_v46, %v447_v40 }
  0x54   :  { %v511_v29 = vadd.f32 %v510_v12, %v448_v8 }
  0x56   :  { %v512_v38 = vadd.f32 %v511_v29, %v762_v27 }
  0x58   :  { %v513_v52 = vadd.f32 %v512_v38, %v764_v26 }
  0x5a   :  { %v514_v13 = vadd.f32 %v513_v52, %v766_v25 }
  0x5c   :  { %v515_v4 = vadd.f32 %v514_v13, %v777_v47 }
  0x5e   :  { %v516_v45 = vadd.f32 %v515_v4, %v779_v41 }
  0x60   :  { %v517_v54 = vadd.f32 %v516_v45, %v781_v42 }
  0x62   :  { %v518_v5 = vadd.f32 %v517_v54, %v783_v43 }
  0x64   :  { %v519_v23 = vadd.f32 %v518_v5, %v797_v48 }
  0x66   :  { %v520_v14 = vadd.f32 %v519_v23, %v802_v49 }
  0x68   :  { %v521_v24 = vadd.f32 %v520_v14, %v807_v50 }
  0x6a   :  { %v522_v27 = vadd.f32 %v521_v24, %v812_v51 }
  0x6c   :  { %v523_v26 = vadd.f32 %v522_v27, %v826_v15 }
  0x6e   :  { %v524_v25 = vadd.f32 %v523_v26, %v831_v16 }
  0x70   :  { %v525_v47 = vadd.f32 %v524_v25, %v836_v55 }
  0x72   :  { %v526_v41 = vadd.f32 %v525_v47, %v841_v56 }
  0x74   :  { %v527_v42 = vadd.f32 %v526_v41, %v855_v20 }
  0x76   :  { %v528_v43 = vadd.f32 %v527_v42, %v860_v3 }
  0x78   :  { %v529_v48 = vadd.f32 %v528_v43, %v865_v21 }
  0x7a   :  { %v530_v49 = vadd.f32 %v529_v48, %v870_v58 }
  0x7c   :  { %v531_v50 = vadd.f32 %v530_v49, %v878_v59 }
  0x7e   :  { %v532_v51 = vadd.f32 %v531_v50, %v883_v31 }
  0x80   :  { %v533_v15 = vadd.f32 %v532_v51, %v888_v30  ;;  %v559_v30 = vld [vmem:[#allocation2] ss:$0 sm:$0xff] }
  0x82   :  { %v534_v16 = vadd.f32 %v533_v15, %v893_v60 }
  0x84   :  { %v535_v55 = vadd.f32 %v534_v16, %v898_v62 }
  0x86   :  { %v536_v56 = vadd.f32 %v535_v55, %v903_v0 }
  0x88   :  { %v537_v20 = vadd.f32 %v536_v56, %v908_v2 }
  0x8a   :  { %v538_v3 = vadd.f32 %v537_v20, %v913_v39 }
  0x8c   :  { %v539_v21 = vadd.f32 %v538_v3, %v921_v44 }
  0x8e   :  { %v540_v58 = vadd.f32 %v539_v21, %v926_v53 }
  0x90   :  { %v541_v59 = vadd.f32 %v540_v58, %v931_v37 }
  0x92   :  { %v542_v31 = vadd.f32 %v541_v59, %v936_v36 }
  0x94   :  { %543 = vadd.xlane.f32.xlu0 %v542_v31 }
 0x121   :  { %v544_v6 = vpop.xlane.xlu0 %543 }
 0x122   :  { %v552_v60 = vadd.f32 %v559_v30, %v544_v6 }
 0x124   :  { %554 = vst.msk [vmem:[%s1100_s3] sm:$0xff] %vm553_vm0, %v552_v60 }

</bundles_post_ra>
